<compile_context>
chip_gen: v7x
topology: tpu7x:2x2x1
jax: 0.10.0
libtpu: 0.0.40
codegen_flags: <defaults>
</compile_context>

<pallas_src>
import jax
import jax.numpy as jnp
from jax import lax
from jax.experimental import pallas as pl
from jax.experimental.pallas import tpu as pltpu


_NORM_EPS_SQ = 1e-24   # (1e-12)**2 — matches F.normalize's clamp_min on the norm
_TILE_B_CAP = 256      # fills a 256-row MXU pass on v6e/v7x, 2 passes on v5e


# ---------------------------------------------------------------------------
# Hardware heuristics
# ---------------------------------------------------------------------------
def _device_kind():
    try:
        return jax.devices()[0].device_kind.lower()
    except Exception:
        return ""


def _is_v7x(kind=None):
    kind = _device_kind() if kind is None else kind
    return ("v7" in kind) or ("7x" in kind)


def _num_tensorcores_per_chip():
    # v7x has 2 TensorCores per chip that the "parallel" grid axis can shard over.
    return 2 if _is_v7x() else 1


def _vmem_limit_bytes():
    kind = _device_kind()
    if _is_v7x(kind):
        return 32 << 20          # v7x: only 64 MiB physical VMEM — stay conservative
    if ("v5" in kind) or ("v6" in kind):
        return 64 << 20          # v5e/v6e: 128 MiB physical VMEM
    return 32 << 20


# ---------------------------------------------------------------------------
# Kernel bodies
# ---------------------------------------------------------------------------
def _proj_head_body(x_ref, wproj_ref, w1_ref, w2_ref, bias_ref, bias_row, out_ref):
    """One modality: Linear(no bias) -> Linear+ReLU -> Dropout(id) -> Linear -> L2 norm."""
    cdt = wproj_ref.dtype                      # MXU operand dtype (bf16)
    x = x_ref[...].astype(cdt)                 # (TB, H)

    # clip.visual_projection / clip.text_projection : Linear(H, P, bias=False)
    emb = jnp.dot(x, wproj_ref[...], preferred_element_type=jnp.float32)       # (TB, P) f32

    b1 = bias_ref[bias_row:bias_row + 1, :]            # (1, P) f32
    b2 = bias_ref[bias_row + 1:bias_row + 2, :]        # (1, P) f32

    # ProjectionHead.fc[0]: Linear(P, P) + bias ; fc[1]: ReLU   (elementwise in f32)
    h = jnp.dot(emb.astype(cdt), w1_ref[...], preferred_element_type=jnp.float32)
    h = jnp.maximum(h + b1, 0.0)

    # fc[2]: Dropout(p=0.1) — identity in eval/inference mode.
    # fc[3]: Linear(P, P) + bias
    y = jnp.dot(h.astype(cdt), w2_ref[...], preferred_element_type=jnp.float32)
    y = y + b2

    # F.normalize(y, p=2, dim=-1): y / clamp_min(||y||_2, 1e-12)
    #   implemented as y * rsqrt(max(sum(y^2), 1e-24))  -> EUP, not VALU divide
    sumsq = jnp.sum(y * y, axis=-1, keepdims=True)
    y = y * lax.rsqrt(jnp.maximum(sumsq, _NORM_EPS_SQ))

    out_ref[...] = y.astype(out_ref.dtype)


def _fused_kernel(img_ref, txt_ref,
                  wvi_ref, wi1_ref, wi2_ref,
                  wvt_ref, wt1_ref, wt2_ref,
                  bias_ref,
                  oimg_ref, otxt_ref):
    """Image path + text path in a single launch (shared batch-tile grid)."""
    _proj_head_body(img_ref, wvi_ref, wi1_ref, wi2_ref, bias_ref, 0, oimg_ref)
    _proj_head_body(txt_ref, wvt_ref, wt1_ref, wt2_ref, bias_ref, 2, otxt_ref)


def _single_kernel(x_ref, wproj_ref, w1_ref, w2_ref, bias_ref, out_ref):
    _proj_head_body(x_ref, wproj_ref, w1_ref, w2_ref, bias_ref, 0, out_ref)


# ---------------------------------------------------------------------------
# Helpers
# ---------------------------------------------------------------------------
def _round_up(x, m):
    return ((x + m - 1) // m) * m


def _cdiv(a, b):
    return -(-a // b)


def _sublane(dtype):
    # rows per packed sublane group: 16 for 2-byte dtypes, 8 for f32
    return 8 * (4 // jnp.dtype(dtype).itemsize)


def _choose_tile_b(b, compute_dtype, min_tiles):
    sub = _sublane(compute_dtype)
    tile = min(_TILE_B_CAP, _round_up(b, sub))
    if min_tiles > 1:
        # Ensure >= min_tiles grid steps (shards across v7x's 2 TensorCores)
        # whenever the batch is big enough to split at sublane granularity.
        n_tiles = _cdiv(_round_up(b, sub), tile)
        if n_tiles < min_tiles and b >= min_tiles * sub:
            tile = _round_up(_cdiv(b, min_tiles), sub)
    return tile


def _pad_rows(x, rows):
    if x.shape[0] == rows:
        return x
    return jnp.pad(x, ((0, rows - x.shape[0]), (0, 0)))


def _resident_spec(shape, single_buffer):
    """Full-array block, constant index_map -> DMA'd once, VMEM-resident across
    batch tiles. single_buffer=True requests 1-deep pipelining (no dead second
    weight buffer); falls back to default if unsupported."""
    idx_map = lambda i: (0,) * len(shape)
    if single_buffer:
        try:
            return pl.BlockSpec(shape, idx_map, pipeline_mode=pl.Buffered(1))
        except TypeError:
            pass
    return pl.BlockSpec(shape, idx_map)


# ---------------------------------------------------------------------------
# Parameter preparation (done ONCE, outside the per-call path)
# ---------------------------------------------------------------------------
def prepare_fused_params(params, *, compute_dtype=jnp.bfloat16):
    """Pre-cast weights to the MXU operand dtype and pack the four (1,P)
    biases into a single (4,P) f32 array: [ib1, ib2, tb1, tb2]."""
    cd = lambda w: jnp.asarray(w, compute_dtype)
    bias = jnp.concatenate(
        [jnp.asarray(params[k], jnp.float32).reshape(1, -1)
         for k in ("ib1", "ib2", "tb1", "tb2")], axis=0)
    return dict(
        w_visual_proj=cd(params["w_visual_proj"]),
        iw1=cd(params["iw1"]), iw2=cd(params["iw2"]),
        w_text_proj=cd(params["w_text_proj"]),
        tw1=cd(params["tw1"]), tw2=cd(params["tw2"]),
        bias=bias,
    )


def prepare_head_params(w_proj, w1, b1, w2, b2, *, compute_dtype=jnp.bfloat16):
    """Single-modality variant: biases packed into (2,P) f32."""
    cd = lambda w: jnp.asarray(w, compute_dtype)
    bias = jnp.concatenate([jnp.asarray(b1, jnp.float32).reshape(1, -1),
                            jnp.asarray(b2, jnp.float32).reshape(1, -1)], axis=0)
    return dict(w_proj=cd(w_proj), w1=cd(w1), w2=cd(w2), bias=bias)


# ---------------------------------------------------------------------------
# Wrappers
# ---------------------------------------------------------------------------
def clip_forward(pooled_image, pooled_text, prepared, *, out_dtype=jnp.bfloat16):
    """Fused image+text projection heads (one pallas_call).

    pooled_image : (B, H_v) CLIP vision_model pooler_output
    pooled_text  : (B, H_t) CLIP text_model pooler_output
    prepared     : output of prepare_fused_params()
    Returns (image_proj, text_proj), each (B, P) L2-normalized, out_dtype.
    """
    assert pooled_image.shape[0] == pooled_text.shape[0], "fused path expects equal batch"
    b = pooled_image.shape[0]
    hv, ht = pooled_image.shape[1], pooled_text.shape[1]
    p = prepared["w_visual_proj"].shape[1]
    compute_dtype = prepared["w_visual_proj"].dtype

    tile_b = _choose_tile_b(b, compute_dtype, _num_tensorcores_per_chip())
    b_pad = _round_up(b, tile_b)
    num_tiles = b_pad // tile_b

    img = _pad_rows(pooled_image.astype(compute_dtype), b_pad)
    txt = _pad_rows(pooled_text.astype(compute_dtype), b_pad)

    weights = (prepared["w_visual_proj"], prepared["iw1"], prepared["iw2"],
               prepared["w_text_proj"], prepared["tw1"], prepared["tw2"],
               prepared["bias"])

    out_isize = jnp.dtype(out_dtype).itemsize
    flops = 2 * b_pad * (hv * p + ht * p + 4 * p * p)
    bytes_accessed = (int(img.size) * img.dtype.itemsize
                      + int(txt.size) * txt.dtype.itemsize
                      + sum(int(w.size) * w.dtype.itemsize for w in weights)
                      + 2 * b_pad * p * out_isize)
    cost = pl.CostEstimate(flops=flops, transcendentals=2 * b_pad,
                           bytes_accessed=bytes_accessed)

    def build(single_buffer):
        in_specs = [pl.BlockSpec((tile_b, hv), lambda i: (i, 0)),
                    pl.BlockSpec((tile_b, ht), lambda i: (i, 0))]
        in_specs += [_resident_spec(w.shape, single_buffer) for w in weights]
        out_spec = pl.BlockSpec((tile_b, p), lambda i: (i, 0))
        return pl.pallas_call(
            _fused_kernel,
            out_shape=(jax.ShapeDtypeStruct((b_pad, p), out_dtype),
                       jax.ShapeDtypeStruct((b_pad, p), out_dtype)),
            grid=(num_tiles,),
            in_specs=in_specs,
            out_specs=(out_spec, out_spec),
            compiler_params=pltpu.CompilerParams(
                dimension_semantics=("parallel",),
                vmem_limit_bytes=_vmem_limit_bytes()),
            cost_estimate=cost,
        )

    try:
        oimg, otxt = build(True)(img, txt, *weights)
    except Exception:
        # Fallback if single-buffered resident specs are rejected by this JAX version.
        oimg, otxt = build(False)(img, txt, *weights)
    return oimg[:b], otxt[:b]


def clip_projection_path(pooled, prepared, *, out_dtype=jnp.bfloat16):
    """Single-modality path (forward with image=None or text=None,
    get_image_features / get_text_features). `prepared` from prepare_head_params()."""
    b, h = pooled.shape
    p = prepared["w_proj"].shape[1]
    compute_dtype = prepared["w_proj"].dtype

    tile_b = _choose_tile_b(b, compute_dtype, _num_tensorcores_per_chip())
    b_pad = _round_up(b, tile_b)
    num_tiles = b_pad // tile_b

    x = _pad_rows(pooled.astype(compute_dtype), b_pad)
    weights = (prepared["w_proj"], prepared["w1"], prepared["w2"], prepared["bias"])

    flops = 2 * b_pad * (h * p + 2 * p * p)
    bytes_accessed = (int(x.size) * x.dtype.itemsize
                      + sum(int(w.size) * w.dtype.itemsize for w in weights)
                      + b_pad * p * jnp.dtype(out_dtype).itemsize)
    cost = pl.CostEstimate(flops=flops, transcendentals=b_pad,
                           bytes_accessed=bytes_accessed)

    def build(single_buffer):
        in_specs = [pl.BlockSpec((tile_b, h), lambda i: (i, 0))]
        in_specs += [_resident_spec(w.shape, single_buffer) for w in weights]
        return pl.pallas_call(
            _single_kernel,
            out_shape=jax.ShapeDtypeStruct((b_pad, p), out_dtype),
            grid=(num_tiles,),
            in_specs=in_specs,
            out_specs=pl.BlockSpec((tile_b, p), lambda i: (i, 0)),
            compiler_params=pltpu.CompilerParams(
                dimension_semantics=("parallel",),
                vmem_limit_bytes=_vmem_limit_bytes()),
            cost_estimate=cost,
        )

    try:
        out = build(True)(x, *weights)
    except Exception:
        out = build(False)(x, *weights)
    return out[:b]


# ---------------------------------------------------------------------------
# Plain-JAX reference of the same math (same bf16-operand / f32-accum recipe)
# ---------------------------------------------------------------------------
def _reference(pooled, w_proj, w1, b1, w2, b2, compute_dtype):
    cdt = compute_dtype
    x = pooled.astype(cdt)
    emb = jnp.dot(x, w_proj.astype(cdt), preferred_element_type=jnp.float32)
    h = jnp.dot(emb.astype(cdt), w1.astype(cdt), preferred_element_type=jnp.float32)
    h = jnp.maximum(h + b1.astype(jnp.float32), 0.0)
    y = jnp.dot(h.astype(cdt), w2.astype(cdt), preferred_element_type=jnp.float32)
    y = y + b2.astype(jnp.float32)
    n = jnp.sqrt(jnp.sum(y * y, axis=-1, keepdims=True))
    return y / jnp.maximum(n, 1e-12)


def _init_linear(key, in_dim, out_dim, bias=True):
    """Deterministic init (uniform, like nn.Linear default scale). Weight is
    stored transposed: (in_dim, out_dim)."""
    kw, kb = jax.random.split(key)
    bound = 1.0 / jnp.sqrt(jnp.float32(in_dim))
    w = jax.random.uniform(kw, (in_dim, out_dim), jnp.float32, -bound, bound)
    if not bias:
        return w, None
    b = jax.random.uniform(kb, (1, out_dim), jnp.float32, -bound, bound)
    return w, b


if __name__ == "__main__":
    # Real CLIP ViT-B/32 feature dims (the module hardcodes proj dim 512),
    # small batch: vision hidden 768, text hidden 512, projection 512.
    B = 32
    H_VISION, H_TEXT, PROJ = 768, 512, 512

    key = jax.random.PRNGKey(0)
    (k_pv, k_pt, k_vproj, k_tproj,
     k_iw1, k_iw2, k_tw1, k_tw2) = jax.random.split(key, 8)

    # "pooler_output" of the (untranslated) CLIP vision / text encoders.
    vision_pooled = jax.random.normal(k_pv, (B, H_VISION), jnp.float32)
    text_pooled = jax.random.normal(k_pt, (B, H_TEXT), jnp.float32)

    # clip.visual_projection / clip.text_projection (Linear, bias=False)
    w_visual_proj, _ = _init_linear(k_vproj, H_VISION, PROJ, bias=False)
    w_text_proj, _ = _init_linear(k_tproj, H_TEXT, PROJ, bias=False)

    # image_proj / text_proj = ProjectionHead(512, 512, 512)
    iw1, ib1 = _init_linear(k_iw1, PROJ, PROJ)
    iw2, ib2 = _init_linear(k_iw2, PROJ, PROJ)
    tw1, tb1 = _init_linear(k_tw1, PROJ, PROJ)
    tw2, tb2 = _init_linear(k_tw2, PROJ, PROJ)

    # logit_scale (unused in forward(); kept for parameter parity)
    logit_scale = jnp.log(1.0 / 0.07)

    raw_params = dict(w_visual_proj=w_visual_proj, w_text_proj=w_text_proj,
                      iw1=iw1, ib1=ib1, iw2=iw2, ib2=ib2,
                      tw1=tw1, tb1=tb1, tw2=tw2, tb2=tb2)

    CDT = jnp.bfloat16  # MXU operand dtype; accumulation + elementwise in f32

    # Weights cast / packed ONCE (removed from the per-call path).
    fused_params = prepare_fused_params(raw_params, compute_dtype=CDT)
    img_head_params = prepare_head_params(w_visual_proj, iw1, ib1, iw2, ib2,
                                          compute_dtype=CDT)

    # Fused forward (image + text) in one pallas_call.
    image_proj, text_proj = clip_forward(vision_pooled, text_pooled, fused_params)
    # Single-modality path (get_image_features-style).
    image_only = clip_projection_path(vision_pooled, img_head_params)
    jax.block_until_ready((image_proj, text_proj, image_only))

    # Numerical check against a plain-JAX reference using the same precision recipe.
    ref_img = _reference(vision_pooled, w_visual_proj, iw1, ib1, iw2, ib2, CDT)
    ref_txt = _reference(text_pooled, w_text_proj, tw1, tb1, tw2, tb2, CDT)

    img_f32 = image_proj.astype(jnp.float32)
    txt_f32 = text_proj.astype(jnp.float32)
    only_f32 = image_only.astype(jnp.float32)

    assert image_proj.shape == (B, PROJ) and text_proj.shape == (B, PROJ)
    assert jnp.allclose(img_f32, ref_img, atol=2e-2, rtol=2e-2)
    assert jnp.allclose(txt_f32, ref_txt, atol=2e-2, rtol=2e-2)
    assert jnp.allclose(only_f32, ref_img, atol=2e-2, rtol=2e-2)
    # Outputs must be unit-L2-normalized rows (bf16 rounding tolerance).
    assert jnp.allclose(jnp.linalg.norm(img_f32, axis=-1), 1.0, atol=1e-2)
    assert jnp.allclose(jnp.linalg.norm(txt_f32, axis=-1), 1.0, atol=1e-2)

    print("KERNEL_OK")
</pallas_src>

<mosaic_0001>
module attributes {stable_mosaic.version = 11 : i64} {
  func.func @_fused_kernel(%arg0: i32, %arg1: memref<32x768xbf16, #tpu.memory_space<vmem>>, %arg2: memref<32x512xbf16, #tpu.memory_space<vmem>>, %arg3: memref<768x512xbf16, #tpu.memory_space<vmem>>, %arg4: memref<512x512xbf16, #tpu.memory_space<vmem>>, %arg5: memref<512x512xbf16, #tpu.memory_space<vmem>>, %arg6: memref<512x512xbf16, #tpu.memory_space<vmem>>, %arg7: memref<512x512xbf16, #tpu.memory_space<vmem>>, %arg8: memref<512x512xbf16, #tpu.memory_space<vmem>>, %arg9: memref<4x512xf32, #tpu.memory_space<vmem>>, %arg10: memref<32x512xbf16, #tpu.memory_space<vmem>>, %arg11: memref<32x512xbf16, #tpu.memory_space<vmem>>) attributes {dimension_semantics = [#tpu.dimension_semantics<parallel>], iteration_bounds = array<i64: 1>, scalar_prefetch = 0 : i64, scratch_operands = 0 : i64, tpu.core_type = #tpu.core_type<tc>, window_params = [{transform_indices = @transform_0, window_bounds = array<i64: 32, 768>}, {transform_indices = @transform_1, window_bounds = array<i64: 32, 512>}, {pipeline_mode = #tpu.pipeline_mode<synchronous>, transform_indices = @transform_2, window_bounds = array<i64: 768, 512>}, {pipeline_mode = #tpu.pipeline_mode<synchronous>, transform_indices = @transform_3, window_bounds = array<i64: 512, 512>}, {pipeline_mode = #tpu.pipeline_mode<synchronous>, transform_indices = @transform_4, window_bounds = array<i64: 512, 512>}, {pipeline_mode = #tpu.pipeline_mode<synchronous>, transform_indices = @transform_5, window_bounds = array<i64: 512, 512>}, {pipeline_mode = #tpu.pipeline_mode<synchronous>, transform_indices = @transform_6, window_bounds = array<i64: 512, 512>}, {pipeline_mode = #tpu.pipeline_mode<synchronous>, transform_indices = @transform_7, window_bounds = array<i64: 512, 512>}, {pipeline_mode = #tpu.pipeline_mode<synchronous>, transform_indices = @transform_8, window_bounds = array<i64: 4, 512>}, {transform_indices = @transform_9, window_bounds = array<i64: 32, 512>}, {transform_indices = @transform_10, window_bounds = array<i64: 32, 512>}]} {
    %c0 = arith.constant 0 : index
    %c0_0 = arith.constant 0 : index
    %0 = vector.load %arg1[%c0, %c0_0] : memref<32x768xbf16, #tpu.memory_space<vmem>>, vector<32x768xbf16>
    %c0_1 = arith.constant 0 : index
    %c0_2 = arith.constant 0 : index
    %1 = vector.load %arg3[%c0_1, %c0_2] : memref<768x512xbf16, #tpu.memory_space<vmem>>, vector<768x512xbf16>
    %cst = arith.constant dense<0.000000e+00> : vector<32x512xf32>
    %2 = tpu.matmul %0, %1, %cst {dimension_numbers = #tpu.dot_dimension_numbers<[1], [0], [0], [1], [0, 0, 1, 1], [], []>} : vector<32x768xbf16>, vector<768x512xbf16>, vector<32x512xf32> -> vector<32x512xf32>
    %c0_3 = arith.constant 0 : index
    %c0_4 = arith.constant 0 : index
    %3 = vector.load %arg9[%c0_3, %c0_4] : memref<4x512xf32, #tpu.memory_space<vmem>>, vector<1x512xf32>
    %c1 = arith.constant 1 : index
    %c0_5 = arith.constant 0 : index
    %4 = vector.load %arg9[%c1, %c0_5] : memref<4x512xf32, #tpu.memory_space<vmem>>, vector<1x512xf32>
    %5 = arith.truncf %2 : vector<32x512xf32> to vector<32x512xbf16>
    %c0_6 = arith.constant 0 : index
    %c0_7 = arith.constant 0 : index
    %6 = vector.load %arg4[%c0_6, %c0_7] : memref<512x512xbf16, #tpu.memory_space<vmem>>, vector<512x512xbf16>
    %cst_8 = arith.constant dense<0.000000e+00> : vector<32x512xf32>
    %7 = tpu.matmul %5, %6, %cst_8 {dimension_numbers = #tpu.dot_dimension_numbers<[1], [0], [0], [1], [0, 0, 1, 1], [], []>} : vector<32x512xbf16>, vector<512x512xbf16>, vector<32x512xf32> -> vector<32x512xf32>
    %8 = vector.broadcast %3 : vector<1x512xf32> to vector<32x512xf32>
    %9 = arith.addf %7, %8 : vector<32x512xf32>
    %cst_9 = arith.constant 0.000000e+00 : f32
    %10 = vector.broadcast %cst_9 : f32 to vector<32x512xf32>
    %11 = arith.maximumf %9, %10 : vector<32x512xf32>
    %12 = arith.truncf %11 : vector<32x512xf32> to vector<32x512xbf16>
    %c0_10 = arith.constant 0 : index
    %c0_11 = arith.constant 0 : index
    %13 = vector.load %arg5[%c0_10, %c0_11] : memref<512x512xbf16, #tpu.memory_space<vmem>>, vector<512x512xbf16>
    %cst_12 = arith.constant dense<0.000000e+00> : vector<32x512xf32>
    %14 = tpu.matmul %12, %13, %cst_12 {dimension_numbers = #tpu.dot_dimension_numbers<[1], [0], [0], [1], [0, 0, 1, 1], [], []>} : vector<32x512xbf16>, vector<512x512xbf16>, vector<32x512xf32> -> vector<32x512xf32>
    %15 = vector.broadcast %4 : vector<1x512xf32> to vector<32x512xf32>
    %16 = arith.addf %14, %15 : vector<32x512xf32>
    %17 = arith.mulf %16, %16 : vector<32x512xf32>
    %cst_13 = arith.constant dense<0.000000e+00> : vector<32xf32>
    %18 = vector.multi_reduction <add>, %17, %cst_13 [1] : vector<32x512xf32> to vector<32xf32>
    %19 = vector.shape_cast %18 : vector<32xf32> to vector<32x1xf32>
    %cst_14 = arith.constant 1.000000e-24 : f32
    %20 = vector.broadcast %cst_14 : f32 to vector<32x1xf32>
    %21 = arith.maximumf %19, %20 : vector<32x1xf32>
    %22 = math.rsqrt %21 : vector<32x1xf32>
    %23 = vector.broadcast %22 : vector<32x1xf32> to vector<32x512xf32>
    %24 = arith.mulf %16, %23 : vector<32x512xf32>
    %25 = arith.truncf %24 : vector<32x512xf32> to vector<32x512xbf16>
    %c0_15 = arith.constant 0 : index
    %c0_16 = arith.constant 0 : index
    %26 = vector.load %arg10[%c0_15, %c0_16] : memref<32x512xbf16, #tpu.memory_space<vmem>>, vector<32x512xbf16>
    tpu.vector_store %arg10[%c0_15, %c0_16], %25 {strides = array<i32>} : memref<32x512xbf16, #tpu.memory_space<vmem>>, vector<32x512xbf16>,
    %c0_17 = arith.constant 0 : index
    %c0_18 = arith.constant 0 : index
    %27 = vector.load %arg2[%c0_17, %c0_18] : memref<32x512xbf16, #tpu.memory_space<vmem>>, vector<32x512xbf16>
    %c0_19 = arith.constant 0 : index
    %c0_20 = arith.constant 0 : index
    %28 = vector.load %arg6[%c0_19, %c0_20] : memref<512x512xbf16, #tpu.memory_space<vmem>>, vector<512x512xbf16>
    %cst_21 = arith.constant dense<0.000000e+00> : vector<32x512xf32>
    %29 = tpu.matmul %27, %28, %cst_21 {dimension_numbers = #tpu.dot_dimension_numbers<[1], [0], [0], [1], [0, 0, 1, 1], [], []>} : vector<32x512xbf16>, vector<512x512xbf16>, vector<32x512xf32> -> vector<32x512xf32>
    %c2 = arith.constant 2 : index
    %c0_22 = arith.constant 0 : index
    %30 = vector.load %arg9[%c2, %c0_22] : memref<4x512xf32, #tpu.memory_space<vmem>>, vector<1x512xf32>
    %c3 = arith.constant 3 : index
    %c0_23 = arith.constant 0 : index
    %31 = vector.load %arg9[%c3, %c0_23] : memref<4x512xf32, #tpu.memory_space<vmem>>, vector<1x512xf32>
    %32 = arith.truncf %29 : vector<32x512xf32> to vector<32x512xbf16>
    %c0_24 = arith.constant 0 : index
    %c0_25 = arith.constant 0 : index
    %33 = vector.load %arg7[%c0_24, %c0_25] : memref<512x512xbf16, #tpu.memory_space<vmem>>, vector<512x512xbf16>
    %cst_26 = arith.constant dense<0.000000e+00> : vector<32x512xf32>
    %34 = tpu.matmul %32, %33, %cst_26 {dimension_numbers = #tpu.dot_dimension_numbers<[1], [0], [0], [1], [0, 0, 1, 1], [], []>} : vector<32x512xbf16>, vector<512x512xbf16>, vector<32x512xf32> -> vector<32x512xf32>
    %35 = vector.broadcast %30 : vector<1x512xf32> to vector<32x512xf32>
    %36 = arith.addf %34, %35 : vector<32x512xf32>
    %cst_27 = arith.constant 0.000000e+00 : f32
    %37 = vector.broadcast %cst_27 : f32 to vector<32x512xf32>
    %38 = arith.maximumf %36, %37 : vector<32x512xf32>
    %39 = arith.truncf %38 : vector<32x512xf32> to vector<32x512xbf16>
    %c0_28 = arith.constant 0 : index
    %c0_29 = arith.constant 0 : index
    %40 = vector.load %arg8[%c0_28, %c0_29] : memref<512x512xbf16, #tpu.memory_space<vmem>>, vector<512x512xbf16>
    %cst_30 = arith.constant dense<0.000000e+00> : vector<32x512xf32>
    %41 = tpu.matmul %39, %40, %cst_30 {dimension_numbers = #tpu.dot_dimension_numbers<[1], [0], [0], [1], [0, 0, 1, 1], [], []>} : vector<32x512xbf16>, vector<512x512xbf16>, vector<32x512xf32> -> vector<32x512xf32>
    %42 = vector.broadcast %31 : vector<1x512xf32> to vector<32x512xf32>
    %43 = arith.addf %41, %42 : vector<32x512xf32>
    %44 = arith.mulf %43, %43 : vector<32x512xf32>
    %cst_31 = arith.constant dense<0.000000e+00> : vector<32xf32>
    %45 = vector.multi_reduction <add>, %44, %cst_31 [1] : vector<32x512xf32> to vector<32xf32>
    %46 = vector.shape_cast %45 : vector<32xf32> to vector<32x1xf32>
    %cst_32 = arith.constant 1.000000e-24 : f32
    %47 = vector.broadcast %cst_32 : f32 to vector<32x1xf32>
    %48 = arith.maximumf %46, %47 : vector<32x1xf32>
    %49 = math.rsqrt %48 : vector<32x1xf32>
    %50 = vector.broadcast %49 : vector<32x1xf32> to vector<32x512xf32>
    %51 = arith.mulf %43, %50 : vector<32x512xf32>
    %52 = arith.truncf %51 : vector<32x512xf32> to vector<32x512xbf16>
    %c0_33 = arith.constant 0 : index
    %c0_34 = arith.constant 0 : index
    %53 = vector.load %arg11[%c0_33, %c0_34] : memref<32x512xbf16, #tpu.memory_space<vmem>>, vector<32x512xbf16>
    tpu.vector_store %arg11[%c0_33, %c0_34], %52 {strides = array<i32>} : memref<32x512xbf16, #tpu.memory_space<vmem>>, vector<32x512xbf16>,
    return
  }
  func.func @transform_0(%arg0: i32) -> (i32, i32) {
    %c0_i32 = arith.constant 0 : i32
    %c0_i32_0 = arith.constant 0 : i32
    return %arg0, %c0_i32 : i32, i32
  }
  func.func @transform_1(%arg0: i32) -> (i32, i32) {
    %c0_i32 = arith.constant 0 : i32
    %c0_i32_0 = arith.constant 0 : i32
    return %arg0, %c0_i32 : i32, i32
  }
  func.func @transform_2(%arg0: i32) -> (i32, i32) {
    %c0_i32 = arith.constant 0 : i32
    %c0_i32_0 = arith.constant 0 : i32
    %c0_i32_1 = arith.constant 0 : i32
    return %c0_i32, %c0_i32_0 : i32, i32
  }
  func.func @transform_3(%arg0: i32) -> (i32, i32) {
    %c0_i32 = arith.constant 0 : i32
    %c0_i32_0 = arith.constant 0 : i32
    %c0_i32_1 = arith.constant 0 : i32
    return %c0_i32, %c0_i32_0 : i32, i32
  }
  func.func @transform_4(%arg0: i32) -> (i32, i32) {
    %c0_i32 = arith.constant 0 : i32
    %c0_i32_0 = arith.constant 0 : i32
    %c0_i32_1 = arith.constant 0 : i32
    return %c0_i32, %c0_i32_0 : i32, i32
  }
  func.func @transform_5(%arg0: i32) -> (i32, i32) {
    %c0_i32 = arith.constant 0 : i32
    %c0_i32_0 = arith.constant 0 : i32
    %c0_i32_1 = arith.constant 0 : i32
    return %c0_i32, %c0_i32_0 : i32, i32
  }
  func.func @transform_6(%arg0: i32) -> (i32, i32) {
    %c0_i32 = arith.constant 0 : i32
    %c0_i32_0 = arith.constant 0 : i32
    %c0_i32_1 = arith.constant 0 : i32
    return %c0_i32, %c0_i32_0 : i32, i32
  }
  func.func @transform_7(%arg0: i32) -> (i32, i32) {
    %c0_i32 = arith.constant 0 : i32
    %c0_i32_0 = arith.constant 0 : i32
    %c0_i32_1 = arith.constant 0 : i32
    return %c0_i32, %c0_i32_0 : i32, i32
  }
  func.func @transform_8(%arg0: i32) -> (i32, i32) {
    %c0_i32 = arith.constant 0 : i32
    %c0_i32_0 = arith.constant 0 : i32
    %c0_i32_1 = arith.constant 0 : i32
    return %c0_i32, %c0_i32_0 : i32, i32
  }
  func.func @transform_9(%arg0: i32) -> (i32, i32) {
    %c0_i32 = arith.constant 0 : i32
    %c0_i32_0 = arith.constant 0 : i32
    return %arg0, %c0_i32 : i32, i32
  }
  func.func @transform_10(%arg0: i32) -> (i32, i32) {
    %c0_i32 = arith.constant 0 : i32
    %c0_i32_0 = arith.constant 0 : i32
    return %arg0, %c0_i32 : i32, i32
  }
}

module attributes {stable_mosaic.version = 11 : i64} {
  func.func @_fused_kernel(%arg0: i32, %arg1: memref<32x768xbf16, #tpu.memory_space<vmem>>, %arg2: memref<32x512xbf16, #tpu.memory_space<vmem>>, %arg3: memref<768x512xbf16, #tpu.memory_space<vmem>>, %arg4: memref<512x512xbf16, #tpu.memory_space<vmem>>, %arg5: memref<512x512xbf16, #tpu.memory_space<vmem>>, %arg6: memref<512x512xbf16, #tpu.memory_space<vmem>>, %arg7: memref<512x512xbf16, #tpu.memory_space<vmem>>, %arg8: memref<512x512xbf16, #tpu.memory_space<vmem>>, %arg9: memref<4x512xf32, #tpu.memory_space<vmem>>, %arg10: memref<32x512xbf16, #tpu.memory_space<vmem>>, %arg11: memref<32x512xbf16, #tpu.memory_space<vmem>>) attributes {dimension_semantics = [#tpu.dimension_semantics<parallel>], iteration_bounds = array<i64: 1>, scalar_prefetch = 0 : i64, scratch_operands = 0 : i64, tpu.core_type = #tpu.core_type<tc>, window_params = [{transform_indices = @transform_0, window_bounds = array<i64: 32, 768>}, {transform_indices = @transform_1, window_bounds = array<i64: 32, 512>}, {pipeline_mode = #tpu.pipeline_mode<synchronous>, transform_indices = @transform_2, window_bounds = array<i64: 768, 512>}, {pipeline_mode = #tpu.pipeline_mode<synchronous>, transform_indices = @transform_3, window_bounds = array<i64: 512, 512>}, {pipeline_mode = #tpu.pipeline_mode<synchronous>, transform_indices = @transform_4, window_bounds = array<i64: 512, 512>}, {pipeline_mode = #tpu.pipeline_mode<synchronous>, transform_indices = @transform_5, window_bounds = array<i64: 512, 512>}, {pipeline_mode = #tpu.pipeline_mode<synchronous>, transform_indices = @transform_6, window_bounds = array<i64: 512, 512>}, {pipeline_mode = #tpu.pipeline_mode<synchronous>, transform_indices = @transform_7, window_bounds = array<i64: 512, 512>}, {pipeline_mode = #tpu.pipeline_mode<synchronous>, transform_indices = @transform_8, window_bounds = array<i64: 4, 512>}, {transform_indices = @transform_9, window_bounds = array<i64: 32, 512>}, {transform_indices = @transform_10, window_bounds = array<i64: 32, 512>}]} {
    %c0 = arith.constant 0 : index
    %c0_0 = arith.constant 0 : index
    %0 = vector.load %arg1[%c0, %c0_0] : memref<32x768xbf16, #tpu.memory_space<vmem>>, vector<32x768xbf16>
    %c0_1 = arith.constant 0 : index
    %c0_2 = arith.constant 0 : index
    %1 = vector.load %arg3[%c0_1, %c0_2] : memref<768x512xbf16, #tpu.memory_space<vmem>>, vector<768x512xbf16>
    %cst = arith.constant dense<0.000000e+00> : vector<32x512xf32>
    %2 = tpu.matmul %0, %1, %cst {dimension_numbers = #tpu.dot_dimension_numbers<[1], [0], [0], [1], [0, 0, 1, 1], [], []>} : vector<32x768xbf16>, vector<768x512xbf16>, vector<32x512xf32> -> vector<32x512xf32>
    %c0_3 = arith.constant 0 : index
    %c0_4 = arith.constant 0 : index
    %3 = vector.load %arg9[%c0_3, %c0_4] : memref<4x512xf32, #tpu.memory_space<vmem>>, vector<1x512xf32>
    %c1 = arith.constant 1 : index
    %c0_5 = arith.constant 0 : index
    %4 = vector.load %arg9[%c1, %c0_5] : memref<4x512xf32, #tpu.memory_space<vmem>>, vector<1x512xf32>
    %5 = arith.truncf %2 : vector<32x512xf32> to vector<32x512xbf16>
    %c0_6 = arith.constant 0 : index
    %c0_7 = arith.constant 0 : index
    %6 = vector.load %arg4[%c0_6, %c0_7] : memref<512x512xbf16, #tpu.memory_space<vmem>>, vector<512x512xbf16>
    %cst_8 = arith.constant dense<0.000000e+00> : vector<32x512xf32>
    %7 = tpu.matmul %5, %6, %cst_8 {dimension_numbers = #tpu.dot_dimension_numbers<[1], [0], [0], [1], [0, 0, 1, 1], [], []>} : vector<32x512xbf16>, vector<512x512xbf16>, vector<32x512xf32> -> vector<32x512xf32>
    %8 = vector.broadcast %3 : vector<1x512xf32> to vector<32x512xf32>
    %9 = arith.addf %7, %8 : vector<32x512xf32>
    %cst_9 = arith.constant 0.000000e+00 : f32
    %10 = vector.broadcast %cst_9 : f32 to vector<32x512xf32>
    %11 = arith.maximumf %9, %10 : vector<32x512xf32>
    %12 = arith.truncf %11 : vector<32x512xf32> to vector<32x512xbf16>
    %c0_10 = arith.constant 0 : index
    %c0_11 = arith.constant 0 : index
    %13 = vector.load %arg5[%c0_10, %c0_11] : memref<512x512xbf16, #tpu.memory_space<vmem>>, vector<512x512xbf16>
    %cst_12 = arith.constant dense<0.000000e+00> : vector<32x512xf32>
    %14 = tpu.matmul %12, %13, %cst_12 {dimension_numbers = #tpu.dot_dimension_numbers<[1], [0], [0], [1], [0, 0, 1, 1], [], []>} : vector<32x512xbf16>, vector<512x512xbf16>, vector<32x512xf32> -> vector<32x512xf32>
    %15 = vector.broadcast %4 : vector<1x512xf32> to vector<32x512xf32>
    %16 = arith.addf %14, %15 : vector<32x512xf32>
    %17 = arith.mulf %16, %16 : vector<32x512xf32>
    %cst_13 = arith.constant dense<0.000000e+00> : vector<32xf32>
    %18 = vector.multi_reduction <add>, %17, %cst_13 [1] : vector<32x512xf32> to vector<32xf32>
    %19 = vector.shape_cast %18 : vector<32xf32> to vector<32x1xf32>
    %cst_14 = arith.constant 1.000000e-24 : f32
    %20 = vector.broadcast %cst_14 : f32 to vector<32x1xf32>
    %21 = arith.maximumf %19, %20 : vector<32x1xf32>
    %22 = math.rsqrt %21 : vector<32x1xf32>
    %23 = vector.broadcast %22 : vector<32x1xf32> to vector<32x512xf32>
    %24 = arith.mulf %16, %23 : vector<32x512xf32>
    %25 = arith.truncf %24 : vector<32x512xf32> to vector<32x512xbf16>
    %c0_15 = arith.constant 0 : index
    %c0_16 = arith.constant 0 : index
    %26 = vector.load %arg10[%c0_15, %c0_16] : memref<32x512xbf16, #tpu.memory_space<vmem>>, vector<32x512xbf16>
    tpu.vector_store %arg10[%c0_15, %c0_16], %25 {strides = array<i32>} : memref<32x512xbf16, #tpu.memory_space<vmem>>, vector<32x512xbf16>,
    %c0_17 = arith.constant 0 : index
    %c0_18 = arith.constant 0 : index
    %27 = vector.load %arg2[%c0_17, %c0_18] : memref<32x512xbf16, #tpu.memory_space<vmem>>, vector<32x512xbf16>
    %c0_19 = arith.constant 0 : index
    %c0_20 = arith.constant 0 : index
    %28 = vector.load %arg6[%c0_19, %c0_20] : memref<512x512xbf16, #tpu.memory_space<vmem>>, vector<512x512xbf16>
    %cst_21 = arith.constant dense<0.000000e+00> : vector<32x512xf32>
    %29 = tpu.matmul %27, %28, %cst_21 {dimension_numbers = #tpu.dot_dimension_numbers<[1], [0], [0], [1], [0, 0, 1, 1], [], []>} : vector<32x512xbf16>, vector<512x512xbf16>, vector<32x512xf32> -> vector<32x512xf32>
    %c2 = arith.constant 2 : index
    %c0_22 = arith.constant 0 : index
    %30 = vector.load %arg9[%c2, %c0_22] : memref<4x512xf32, #tpu.memory_space<vmem>>, vector<1x512xf32>
    %c3 = arith.constant 3 : index
    %c0_23 = arith.constant 0 : index
    %31 = vector.load %arg9[%c3, %c0_23] : memref<4x512xf32, #tpu.memory_space<vmem>>, vector<1x512xf32>
    %32 = arith.truncf %29 : vector<32x512xf32> to vector<32x512xbf16>
    %c0_24 = arith.constant 0 : index
    %c0_25 = arith.constant 0 : index
    %33 = vector.load %arg7[%c0_24, %c0_25] : memref<512x512xbf16, #tpu.memory_space<vmem>>, vector<512x512xbf16>
    %cst_26 = arith.constant dense<0.000000e+00> : vector<32x512xf32>
    %34 = tpu.matmul %32, %33, %cst_26 {dimension_numbers = #tpu.dot_dimension_numbers<[1], [0], [0], [1], [0, 0, 1, 1], [], []>} : vector<32x512xbf16>, vector<512x512xbf16>, vector<32x512xf32> -> vector<32x512xf32>
    %35 = vector.broadcast %30 : vector<1x512xf32> to vector<32x512xf32>
    %36 = arith.addf %34, %35 : vector<32x512xf32>
    %cst_27 = arith.constant 0.000000e+00 : f32
    %37 = vector.broadcast %cst_27 : f32 to vector<32x512xf32>
    %38 = arith.maximumf %36, %37 : vector<32x512xf32>
    %39 = arith.truncf %38 : vector<32x512xf32> to vector<32x512xbf16>
    %c0_28 = arith.constant 0 : index
    %c0_29 = arith.constant 0 : index
    %40 = vector.load %arg8[%c0_28, %c0_29] : memref<512x512xbf16, #tpu.memory_space<vmem>>, vector<512x512xbf16>
    %cst_30 = arith.constant dense<0.000000e+00> : vector<32x512xf32>
    %41 = tpu.matmul %39, %40, %cst_30 {dimension_numbers = #tpu.dot_dimension_numbers<[1], [0], [0], [1], [0, 0, 1, 1], [], []>} : vector<32x512xbf16>, vector<512x512xbf16>, vector<32x512xf32> -> vector<32x512xf32>
    %42 = vector.broadcast %31 : vector<1x512xf32> to vector<32x512xf32>
    %43 = arith.addf %41, %42 : vector<32x512xf32>
    %44 = arith.mulf %43, %43 : vector<32x512xf32>
    %cst_31 = arith.constant dense<0.000000e+00> : vector<32xf32>
    %45 = vector.multi_reduction <add>, %44, %cst_31 [1] : vector<32x512xf32> to vector<32xf32>
    %46 = vector.shape_cast %45 : vector<32xf32> to vector<32x1xf32>
    %cst_32 = arith.constant 1.000000e-24 : f32
    %47 = vector.broadcast %cst_32 : f32 to vector<32x1xf32>
    %48 = arith.maximumf %46, %47 : vector<32x1xf32>
    %49 = math.rsqrt %48 : vector<32x1xf32>
    %50 = vector.broadcast %49 : vector<32x1xf32> to vector<32x512xf32>
    %51 = arith.mulf %43, %50 : vector<32x512xf32>
    %52 = arith.truncf %51 : vector<32x512xf32> to vector<32x512xbf16>
    %c0_33 = arith.constant 0 : index
    %c0_34 = arith.constant 0 : index
    %53 = vector.load %arg11[%c0_33, %c0_34] : memref<32x512xbf16, #tpu.memory_space<vmem>>, vector<32x512xbf16>
    tpu.vector_store %arg11[%c0_33, %c0_34], %52 {strides = array<i32>} : memref<32x512xbf16, #tpu.memory_space<vmem>>, vector<32x512xbf16>,
    return
  }
  func.func @transform_0(%arg0: i32) -> (i32, i32) {
    %c0_i32 = arith.constant 0 : i32
    %c0_i32_0 = arith.constant 0 : i32
    return %arg0, %c0_i32 : i32, i32
  }
  func.func @transform_1(%arg0: i32) -> (i32, i32) {
    %c0_i32 = arith.constant 0 : i32
    %c0_i32_0 = arith.constant 0 : i32
    return %arg0, %c0_i32 : i32, i32
  }
  func.func @transform_2(%arg0: i32) -> (i32, i32) {
    %c0_i32 = arith.constant 0 : i32
    %c0_i32_0 = arith.constant 0 : i32
    %c0_i32_1 = arith.constant 0 : i32
    return %c0_i32, %c0_i32_0 : i32, i32
  }
  func.func @transform_3(%arg0: i32) -> (i32, i32) {
    %c0_i32 = arith.constant 0 : i32
    %c0_i32_0 = arith.constant 0 : i32
    %c0_i32_1 = arith.constant 0 : i32
    return %c0_i32, %c0_i32_0 : i32, i32
  }
  func.func @transform_4(%arg0: i32) -> (i32, i32) {
    %c0_i32 = arith.constant 0 : i32
    %c0_i32_0 = arith.constant 0 : i32
    %c0_i32_1 = arith.constant 0 : i32
    return %c0_i32, %c0_i32_0 : i32, i32
  }
  func.func @transform_5(%arg0: i32) -> (i32, i32) {
    %c0_i32 = arith.constant 0 : i32
    %c0_i32_0 = arith.constant 0 : i32
    %c0_i32_1 = arith.constant 0 : i32
    return %c0_i32, %c0_i32_0 : i32, i32
  }
  func.func @transform_6(%arg0: i32) -> (i32, i32) {
    %c0_i32 = arith.constant 0 : i32
    %c0_i32_0 = arith.constant 0 : i32
    %c0_i32_1 = arith.constant 0 : i32
    return %c0_i32, %c0_i32_0 : i32, i32
  }
  func.func @transform_7(%arg0: i32) -> (i32, i32) {
    %c0_i32 = arith.constant 0 : i32
    %c0_i32_0 = arith.constant 0 : i32
    %c0_i32_1 = arith.constant 0 : i32
    return %c0_i32, %c0_i32_0 : i32, i32
  }
  func.func @transform_8(%arg0: i32) -> (i32, i32) {
    %c0_i32 = arith.constant 0 : i32
    %c0_i32_0 = arith.constant 0 : i32
    %c0_i32_1 = arith.constant 0 : i32
    return %c0_i32, %c0_i32_0 : i32, i32
  }
  func.func @transform_9(%arg0: i32) -> (i32, i32) {
    %c0_i32 = arith.constant 0 : i32
    %c0_i32_0 = arith.constant 0 : i32
    return %arg0, %c0_i32 : i32, i32
  }
  func.func @transform_10(%arg0: i32) -> (i32, i32) {
    %c0_i32 = arith.constant 0 : i32
    %c0_i32_0 = arith.constant 0 : i32
    return %arg0, %c0_i32 : i32, i32
  }
}

</mosaic_0001>

<bundles_post_ra>
// kernel: tpu_custom_call.1
= control target key start
LH: loop header
LB: loop body
LE: loop exit
PB: predicated region body
PF: predicated region fallthrough
CT: control target
= control target key end

     0   :  { %16 = vsyncpa [#allocation3], 0  ;;  %s10144_s0 = inlined_call_operand.hbm [shape: bf16[32,768], index: 0, kind: input, shape index: {}]   ;;  %s10145_s1 = inlined_call_operand.hbm [shape: bf16[32,512], index: 1, kind: input, shape index: {}]   ;;  %s10146_s2 = inlined_call_operand.hbm [shape: bf16[768,512], index: 2, kind: input, shape index: {}]   ;;  %s10147_s3 = inlined_call_operand.hbm [shape: bf16[512,512], index: 3, kind: input, shape index: {}]   ;;  %s10148_s4 = inlined_call_operand.hbm [shape: bf16[512,512], index: 4, kind: input, shape index: {}]   ;;  %s10149_s5 = inlined_call_operand.hbm [shape: bf16[512,512], index: 5, kind: input, shape index: {}]   ;;  %s10150_s6 = inlined_call_operand.hbm [shape: bf16[512,512], index: 6, kind: input, shape index: {}]   ;;  %s10151_s7 = inlined_call_operand.hbm [shape: bf16[512,512], index: 7, kind: input, shape index: {}]   ;;  %s10152_s8 = inlined_call_operand.vmem [shape: f32[4,512], index: 8, kind: input, shape index: {}]   ;;  %s10153_s9 = inlined_call_operand.hbm [shape: bf16[32,512], index: 9, kind: output, shape index: {0}]   ;;  %s10154_s10 = inlined_call_operand.hbm [shape: bf16[32,512], index: 10, kind: output, shape index: {1}]  }
   0x1   :  { %17 = vsyncpa [#allocation6], 0 }
   0x2   :  { %18 = vsyncpa [#allocation9], 0 }
   0x3   :  { %19 = vsyncpa [#allocation12], 0 }
   0x4   :  { %20 = vsyncpa [#allocation15], 0 }
   0x5   :  { %21 = vsyncpa [#allocation4], 0 }
   0x6   :  { %22 = vsyncpa [#allocation18], 0  ;;  %s9664_s13 = smov [#allocation5]   ;;  %s9430_s17 = scalar_lea.hbm %s10145_s1, 1024 }
   0x7   :  { %s40_s14 = sshll.u32 %s9664_s13, 4  ;;  %p9431_p0 = scmp.ne.s32.totalorder %s10145_s1, %s9430_s17  ;;  %s41_s14 = int_to_ptr.vmem [resolvable:$true] %s40_s14 }
   0x8   :  { %p9434_p1 = scmp.lt.u32.totalorder %s9430_s17, %s10145_s1 }
   0xa   :  { %p9436_p2 = pnand %p9434_p1, %p9431_p0 }
   0xc   :  { %9439 = shalt.err (!%p9436_p2)
}
   0xd   :  { %s9440_s22 = scalar_lea.vmem %s41_s14, 1024  ;;  %p9445_p4 = scmp.lt.s32.totalorder %s41_s14, %s41_s14 }
   0xe   :  { %p9441_p3 = scmp.ne.s32.totalorder %s41_s14, %s9440_s22  ;;  %p9446_p5 = scmp.lt.s32.totalorder %s9440_s22, %s9440_s22 }
  0x10   :  { %p9447_p6 = por %p9446_p5, %p9445_p4 }
  0x12   :  { %p9448_p7 = pnand %p9447_p6, %p9441_p3 }
  0x14   :  { %9451 = shalt.err (!%p9448_p7)
}
  0x15   :  { %s9665_s23 = smov 256   ;;  %s9666_s24 = smov 16  }
  0x16   :  { %46 = dma.hbm_to_vmem [thread:$0]  %s10145_s1, 1024, %s41_s14, [#allocation6], %s9665_s23, %s9665_s23, %s9666_s24  }
  0x17   :  { %s9667_s27 = smov [#allocation8]   ;;  %s9668_s29 = smov [#allocation11]  }
  0x18   :  { %s64_s28 = sshll.u32 %s9667_s27, 4  ;;  %s88_s30 = sshll.u32 %s9668_s29, 4  ;;  %s65_s28 = int_to_ptr.vmem [resolvable:$true] %s64_s28  ;;  %s89_s30 = int_to_ptr.vmem [resolvable:$true] %s88_s30 }
  0x19   :  { %s9452_s13 = scalar_lea.hbm %s10147_s3, 16384 }
  0x1a   :  { %p9453_p8 = scmp.ne.s32.totalorder %s10147_s3, %s9452_s13  ;;  %p9456_p9 = scmp.lt.u32.totalorder %s9452_s13, %s10147_s3 }
  0x1c   :  { %p9458_p10 = pnand %p9456_p9, %p9453_p8 }
  0x1e   :  { %9461 = shalt.err (!%p9458_p10)
}
  0x1f   :  { %s9462_s1 = scalar_lea.vmem %s65_s28, 16384  ;;  %p9467_p12 = scmp.lt.s32.totalorder %s65_s28, %s65_s28 }
  0x20   :  { %p9463_p11 = scmp.ne.s32.totalorder %s65_s28, %s9462_s1  ;;  %p9468_p13 = scmp.lt.s32.totalorder %s9462_s1, %s9462_s1 }
  0x22   :  { %p9469_p0 = por %p9468_p13, %p9467_p12 }
  0x24   :  { %p9470_p1 = pnand %p9469_p0, %p9463_p11 }
  0x26   :  { %9473 = shalt.err (!%p9470_p1)
}
  0x27   :  { %70 = dma.hbm_to_vmem [thread:$0]  %s10147_s3, 16384, %s65_s28, [#allocation9], %s9665_s23, %s9665_s23, %s9666_s24  }
  0x28   :  { %s9474_s22 = scalar_lea.hbm %s10149_s5, 16384 }
  0x29   :  { %p9475_p2 = scmp.ne.s32.totalorder %s10149_s5, %s9474_s22  ;;  %p9478_p3 = scmp.lt.u32.totalorder %s9474_s22, %s10149_s5 }
  0x2b   :  { %p9480_p4 = pnand %p9478_p3, %p9475_p2 }
  0x2d   :  { %9483 = shalt.err (!%p9480_p4)
}
  0x2e   :  { %s9484_s11 = scalar_lea.vmem %s89_s30, 16384  ;;  %p9489_p6 = scmp.lt.s32.totalorder %s89_s30, %s89_s30 }
  0x2f   :  { %p9485_p5 = scmp.ne.s32.totalorder %s89_s30, %s9484_s11  ;;  %p9490_p7 = scmp.lt.s32.totalorder %s9484_s11, %s9484_s11 }
  0x31   :  { %p9491_p8 = por %p9490_p7, %p9489_p6 }
  0x33   :  { %p9492_p9 = pnand %p9491_p8, %p9485_p5 }
  0x35   :  { %9495 = shalt.err (!%p9492_p9)
}
  0x36   :  { %94 = dma.hbm_to_vmem [thread:$0]  %s10149_s5, 16384, %s89_s30, [#allocation12], %s9665_s23, %s9665_s23, %s9666_s24  }
  0x37   :  { %s9669_s12 = smov [#allocation2]   ;;  %s9496_s17 = scalar_lea.hbm %s10144_s0, 1536 }
  0x38   :  { %s28_s13 = sshll.u32 %s9669_s12, 4  ;;  %p9497_p10 = scmp.ne.s32.totalorder %s10144_s0, %s9496_s17  ;;  %s29_s13 = int_to_ptr.vmem [resolvable:$true] %s28_s13 }
  0x39   :  { %p9500_p11 = scmp.lt.u32.totalorder %s9496_s17, %s10144_s0 }
  0x3b   :  { %p9502_p12 = pnand %p9500_p11, %p9497_p10 }
  0x3d   :  { %9505 = shalt.err (!%p9502_p12)
}
  0x3e   :  { %s9506_s20 = scalar_lea.vmem %s29_s13, 1536  ;;  %p9511_p0 = scmp.lt.s32.totalorder %s29_s13, %s29_s13 }
  0x3f   :  { %p9507_p13 = scmp.ne.s32.totalorder %s29_s13, %s9506_s20  ;;  %p9512_p1 = scmp.lt.s32.totalorder %s9506_s20, %s9506_s20 }
  0x41   :  { %p9513_p2 = por %p9512_p1, %p9511_p0 }
  0x43   :  { %p9514_p3 = pnand %p9513_p2, %p9507_p13 }
  0x45   :  { %9517 = shalt.err (!%p9514_p3)
}
  0x46   :  { %s9670_s5 = smov 384   ;;  %s9671_s30 = smov 24  }
  0x47   :  { %34 = dma.hbm_to_vmem [thread:$0]  %s10144_s0, 1536, %s29_s13, [#allocation3], %s9670_s5, %s9670_s5, %s9671_s30  }
  0x48   :  { %s9672_s25 = smov [#allocation7]   ;;  %s9673_s27 = smov [#allocation10]  }
  0x49   :  { %s52_s26 = sshll.u32 %s9672_s25, 4  ;;  %s76_s29 = sshll.u32 %s9673_s27, 4  ;;  %s53_s26 = int_to_ptr.vmem [resolvable:$true] %s52_s26  ;;  %s9790_s29 = int_to_ptr.vmem [resolvable:$true] %s76_s29 }
  0x4a   :  { %s9518_s28 = scalar_lea.hbm %s10146_s2, 24576 }
  0x4b   :  { %p9519_p4 = scmp.ne.s32.totalorder %s10146_s2, %s9518_s28  ;;  %p9522_p5 = scmp.lt.u32.totalorder %s9518_s28, %s10146_s2 }
  0x4d   :  { %p9524_p6 = pnand %p9522_p5, %p9519_p4 }
  0x4f   :  { %9527 = shalt.err (!%p9524_p6)
}
  0x50   :  { %s9528_s0 = scalar_lea.vmem %s53_s26, 24576  ;;  %p9533_p8 = scmp.lt.s32.totalorder %s53_s26, %s53_s26 }
  0x51   :  { %p9529_p7 = scmp.ne.s32.totalorder %s53_s26, %s9528_s0  ;;  %p9534_p9 = scmp.lt.s32.totalorder %s9528_s0, %s9528_s0 }
  0x53   :  { %p9535_p10 = por %p9534_p9, %p9533_p8 }
  0x55   :  { %p9536_p11 = pnand %p9535_p10, %p9529_p7 }
  0x57   :  { %9539 = shalt.err (!%p9536_p11)
}
  0x58   :  { %58 = dma.hbm_to_vmem [thread:$0]  %s10146_s2, 24576, %s53_s26, [#allocation6], %s9665_s23, %s9665_s23, %s9666_s24  }
  0x59   :  { %s9540_s19 = scalar_lea.hbm %s10148_s4, 16384 }
  0x5a   :  { %p9541_p12 = scmp.ne.s32.totalorder %s10148_s4, %s9540_s19  ;;  %p9544_p13 = scmp.lt.u32.totalorder %s9540_s19, %s10148_s4 }
  0x5c   :  { %p9546_p0 = pnand %p9544_p13, %p9541_p12 }
  0x5e   :  { %9549 = shalt.err (!%p9546_p0)
}
  0x5f   :  { %s9550_s22 = scalar_lea.vmem %s9790_s29, 16384  ;;  %p9555_p2 = scmp.lt.s32.totalorder %s9790_s29, %s9790_s29 }
  0x60   :  { %p9551_p1 = scmp.ne.s32.totalorder %s9790_s29, %s9550_s22  ;;  %p9556_p3 = scmp.lt.s32.totalorder %s9550_s22, %s9550_s22 }
  0x62   :  { %p9557_p4 = por %p9556_p3, %p9555_p2 }
  0x64   :  { %p9558_p5 = pnand %p9557_p4, %p9551_p1 }
  0x66   :  { %9561 = shalt.err (!%p9558_p5)
}
  0x67   :  { %82 = dma.hbm_to_vmem [thread:$0]  %s10148_s4, 16384, %s9790_s29, [#allocation9], %s9665_s23, %s9665_s23, %s9666_s24  }
  0x68   :  { %s9674_s26 = smov [#allocation13]   ;;  %s9675_s11 = smov [#allocation14]  }
  0x69   :  { %s100_s27 = sshll.u32 %s9674_s26, 4  ;;  %s112_s3 = sshll.u32 %s9675_s11, 4  ;;  %s101_s27 = int_to_ptr.vmem [resolvable:$true] %s100_s27  ;;  %s9827_s3 = int_to_ptr.vmem [resolvable:$true] %s112_s3 }
  0x6a   :  { %s9562_s15 = scalar_lea.hbm %s10150_s6, 16384 }
  0x6b   :  { %p9563_p6 = scmp.ne.s32.totalorder %s10150_s6, %s9562_s15  ;;  %p9566_p7 = scmp.lt.u32.totalorder %s9562_s15, %s10150_s6 }
  0x6d   :  { %p9568_p8 = pnand %p9566_p7, %p9563_p6 }
  0x6f   :  { %9571 = shalt.err (!%p9568_p8)
}
  0x70   :  { %s9572_s4 = scalar_lea.vmem %s101_s27, 16384  ;;  %p9577_p10 = scmp.lt.s32.totalorder %s101_s27, %s101_s27 }
  0x71   :  { %p9573_p9 = scmp.ne.s32.totalorder %s101_s27, %s9572_s4  ;;  %p9578_p11 = scmp.lt.s32.totalorder %s9572_s4, %s9572_s4 }
  0x73   :  { %p9579_p12 = por %p9578_p11, %p9577_p10 }
  0x75   :  { %p9580_p13 = pnand %p9579_p12, %p9573_p9 }
  0x77   :  { %9583 = shalt.err (!%p9580_p13)
}
  0x78   :  { %106 = dma.hbm_to_vmem [thread:$0]  %s10150_s6, 16384, %s101_s27, [#allocation12], %s9665_s23, %s9665_s23, %s9666_s24  }
  0x79   :  { %s9584_s19 = scalar_lea.hbm %s10151_s7, 16384 }
  0x7a   :  { %p9585_p0 = scmp.ne.s32.totalorder %s10151_s7, %s9584_s19  ;;  %p9588_p1 = scmp.lt.u32.totalorder %s9584_s19, %s10151_s7 }
  0x7c   :  { %p9590_p2 = pnand %p9588_p1, %p9585_p0 }
  0x7e   :  { %9593 = shalt.err (!%p9590_p2)
}
  0x7f   :  { %s9594_s22 = scalar_lea.vmem %s9827_s3, 16384  ;;  %p9599_p4 = scmp.lt.s32.totalorder %s9827_s3, %s9827_s3 }
  0x80   :  { %p9595_p3 = scmp.ne.s32.totalorder %s9827_s3, %s9594_s22  ;;  %p9600_p5 = scmp.lt.s32.totalorder %s9594_s22, %s9594_s22 }
  0x82   :  { %p9601_p6 = por %p9600_p5, %p9599_p4 }
  0x84   :  { %p9602_p7 = pnand %p9601_p6, %p9595_p3 }
  0x86   :  { %9605 = shalt.err (!%p9602_p7)
}
  0x87   :  { %118 = dma.hbm_to_vmem [thread:$0]  %s10151_s7, 16384, %s9827_s3, [#allocation15], %s9665_s23, %s9665_s23, %s9666_s24  }
  0x88   :  { %9650 = dma.done.wait [#allocation3], 1536  }
  0x89   :  { %9651 = vsyncadd [#allocation3], 4294965760 }
  0x8a   :  { %9652 = dma.done.wait [#allocation6], 25600  }
  0x8b   :  { %9653 = vsyncadd [#allocation6], 4294941696 }
  0x8c   :  { %9654 = dma.done.wait [#allocation9], 32768  }
  0x8d   :  { %9655 = vsyncadd [#allocation9], 4294934528 }
  0x8e   :  { %9656 = dma.done.wait [#allocation12], 32768  }
  0x8f   :  { %9657 = vsyncadd [#allocation12], 4294934528 }
  0x90   :  { %9658 = dma.done.wait [#allocation15], 16384  }
  0x91   :  { %9659 = vsyncadd [#allocation15], 4294950912  ;;  %v8136_v0 = vld [vmem:[#allocation7 + $0x4] ss:$16 sps:$4 sm:$0xff]   ;;  %v8138_v1 = vld [vmem:[#allocation7 + $0xc] ss:$16 sps:$4 sm:$0xff]  }
  0x92   :  { %1369 = vmatprep.subr.bf16.mxu0 %v8136_v0  ;;  %v8140_v2 = vld [vmem:[#allocation7] ss:$16 sps:$4 sm:$0xff]   ;;  %v8141_v3 = vld [vmem:[#allocation7 + $0x8] ss:$16 sps:$4 sm:$0xff]   ;;  %1528 = vmatprep.subr.bf16.mxu1 %v8138_v1  ;;  %v8142_v4 = vld [vmem:[#allocation7 + $0x24] ss:$16 sps:$4 sm:$0xff]  }
  0x93   :  { %1370 = vmatpush1.bf16.msra.mxu0 %v8140_v2  ;;  %1529 = vmatpush1.bf16.msra.mxu1 %v8141_v3  ;;  %v8144_v5 = vld [vmem:[#allocation7 + $0x2c] ss:$16 sps:$4 sm:$0xff]   ;;  %v8146_v6 = vld [vmem:[#allocation7 + $0x20] ss:$16 sps:$4 sm:$0xff]   ;;  %v8147_v7 = vld [vmem:[#allocation7 + $0x28] ss:$16 sps:$4 sm:$0xff]  }
  0x94   :  { %1371 = vmatprep.subr.bf16.mxu0 %v8142_v4  ;;  %1530 = vmatprep.subr.bf16.mxu1 %v8144_v5  ;;  %v8148_v8 = vld [vmem:[#allocation7 + $0x44] ss:$16 sps:$4 sm:$0xff]   ;;  %v8150_v9 = vld [vmem:[#allocation7 + $0x4c] ss:$16 sps:$4 sm:$0xff]   ;;  %v8152_v10 = vld [vmem:[#allocation7 + $0x40] ss:$16 sps:$4 sm:$0xff]  }
  0x95   :  { %v8153_v11 = vld [vmem:[#allocation7 + $0x48] ss:$16 sps:$4 sm:$0xff]   ;;  %v8154_v12 = vld [vmem:[#allocation7 + $0x64] ss:$16 sps:$4 sm:$0xff]   ;;  %v8156_v13 = vld [vmem:[#allocation7 + $0x6c] ss:$16 sps:$4 sm:$0xff]  }
  0x96   :  { %v8158_v14 = vld [vmem:[#allocation7 + $0x60] ss:$16 sps:$4 sm:$0xff]   ;;  %v8159_v15 = vld [vmem:[#allocation7 + $0x68] ss:$16 sps:$4 sm:$0xff]   ;;  %v8160_v16 = vld [vmem:[#allocation7 + $0x84] ss:$16 sps:$4 sm:$0xff]  }
  0x97   :  { %1372 = vmatpush1.bf16.msra.mxu0 %v8146_v6  ;;  %1531 = vmatpush1.bf16.msra.mxu1 %v8147_v7  ;;  %v8162_v17 = vld [vmem:[#allocation7 + $0x8c] ss:$16 sps:$4 sm:$0xff]   ;;  %v8164_v18 = vld [vmem:[#allocation7 + $0x80] ss:$16 sps:$4 sm:$0xff]   ;;  %v8165_v19 = vld [vmem:[#allocation7 + $0x88] ss:$16 sps:$4 sm:$0xff]  }
  0x98   :  { %1373 = vmatprep.subr.bf16.mxu0 %v8148_v8  ;;  %1532 = vmatprep.subr.bf16.mxu1 %v8150_v9  ;;  %v8166_v20 = vld [vmem:[#allocation7 + $0xa4] ss:$16 sps:$4 sm:$0xff]   ;;  %v8168_v21 = vld [vmem:[#allocation7 + $0xac] ss:$16 sps:$4 sm:$0xff]   ;;  %v8170_v22 = vld [vmem:[#allocation7 + $0xa0] ss:$16 sps:$4 sm:$0xff]  }
  0x99   :  { %v8171_v23 = vld [vmem:[#allocation7 + $0xa8] ss:$16 sps:$4 sm:$0xff]   ;;  %v8172_v24 = vld [vmem:[#allocation7 + $0xc4] ss:$16 sps:$4 sm:$0xff]   ;;  %v8174_v25 = vld [vmem:[#allocation7 + $0xcc] ss:$16 sps:$4 sm:$0xff]  }
  0x9a   :  { %v8176_v26 = vld [vmem:[#allocation7 + $0xc0] ss:$16 sps:$4 sm:$0xff]   ;;  %v8177_v27 = vld [vmem:[#allocation7 + $0xc8] ss:$16 sps:$4 sm:$0xff]   ;;  %v8178_v28 = vld [vmem:[#allocation7 + $0xe4] ss:$16 sps:$4 sm:$0xff]  }
  0x9b   :  { %1374 = vmatpush1.bf16.msra.mxu0 %v8152_v10  ;;  %1533 = vmatpush1.bf16.msra.mxu1 %v8153_v11  ;;  %v8180_v29 = vld [vmem:[#allocation7 + $0xec] ss:$16 sps:$4 sm:$0xff]   ;;  %v8182_v30 = vld [vmem:[#allocation7 + $0xe0] ss:$16 sps:$4 sm:$0xff]   ;;  %v8183_v31 = vld [vmem:[#allocation7 + $0xe8] ss:$16 sps:$4 sm:$0xff]  }
  0x9c   :  { %1375 = vmatprep.subr.bf16.mxu0 %v8154_v12  ;;  %1534 = vmatprep.subr.bf16.mxu1 %v8156_v13  ;;  %v8184_v32 = vld [vmem:[#allocation7 + $0x104] ss:$16 sps:$4 sm:$0xff]   ;;  %v8186_v33 = vld [vmem:[#allocation7 + $0x10c] ss:$16 sps:$4 sm:$0xff]   ;;  %v8188_v34 = vld [vmem:[#allocation7 + $0x100] ss:$16 sps:$4 sm:$0xff]  }
  0x9d   :  { %v8189_v35 = vld [vmem:[#allocation7 + $0x108] ss:$16 sps:$4 sm:$0xff]   ;;  %v8190_v36 = vld [vmem:[#allocation7 + $0x124] ss:$16 sps:$4 sm:$0xff]   ;;  %v8192_v37 = vld [vmem:[#allocation7 + $0x12c] ss:$16 sps:$4 sm:$0xff]  }
  0x9e   :  { %v8194_v38 = vld [vmem:[#allocation7 + $0x120] ss:$16 sps:$4 sm:$0xff]   ;;  %v8195_v39 = vld [vmem:[#allocation7 + $0x128] ss:$16 sps:$4 sm:$0xff]   ;;  %v8196_v40 = vld [vmem:[#allocation7 + $0x144] ss:$16 sps:$4 sm:$0xff]  }
  0x9f   :  { %1376 = vmatpush1.bf16.msra.mxu0 %v8158_v14  ;;  %1535 = vmatpush1.bf16.msra.mxu1 %v8159_v15  ;;  %v8198_v41 = vld [vmem:[#allocation7 + $0x14c] ss:$16 sps:$4 sm:$0xff]   ;;  %v8200_v42 = vld [vmem:[#allocation7 + $0x140] ss:$16 sps:$4 sm:$0xff]   ;;  %v8201_v43 = vld [vmem:[#allocation7 + $0x148] ss:$16 sps:$4 sm:$0xff]  }
  0xa0   :  { %1377 = vmatprep.subr.bf16.mxu0 %v8160_v16  ;;  %1536 = vmatprep.subr.bf16.mxu1 %v8162_v17  ;;  %v8202_v44 = vld [vmem:[#allocation7 + $0x164] ss:$16 sps:$4 sm:$0xff]   ;;  %v8204_v45 = vld [vmem:[#allocation7 + $0x16c] ss:$16 sps:$4 sm:$0xff]   ;;  %v8206_v46 = vld [vmem:[#allocation7 + $0x160] ss:$16 sps:$4 sm:$0xff]  }
  0xa1   :  { %v8207_v47 = vld [vmem:[#allocation7 + $0x168] ss:$16 sps:$4 sm:$0xff]   ;;  %v8234_v48 = vld [vmem:[#allocation2 + $0x4] ss:$24 sps:$4 sm:$0xff]   ;;  %v8212_v51 = vld [vmem:[#allocation7 + $0x180] ss:$16 sps:$4 sm:$0xff]  }
  0xa2   :  { %v8208_v49 = vld [vmem:[#allocation7 + $0x184] ss:$16 sps:$4 sm:$0xff]   ;;  %v8210_v50 = vld [vmem:[#allocation7 + $0x18c] ss:$16 sps:$4 sm:$0xff]   ;;  %1401 = vmatprep.mubr.bf16.mxu0 %v8234_v48  ;;  %1560 = vmatprep.mubr.bf16.mxu1 %v8234_v48  ;;  %v8213_v52 = vld [vmem:[#allocation7 + $0x188] ss:$16 sps:$4 sm:$0xff]  }
  0xa3   :  { %1378 = vmatpush1.bf16.msra.mxu0 %v8164_v18  ;;  %1537 = vmatpush1.bf16.msra.mxu1 %v8165_v19  ;;  %v8214_v53 = vld [vmem:[#allocation7 + $0x1a4] ss:$16 sps:$4 sm:$0xff]   ;;  %v8216_v54 = vld [vmem:[#allocation7 + $0x1ac] ss:$16 sps:$4 sm:$0xff]   ;;  %v8218_v55 = vld [vmem:[#allocation7 + $0x1a0] ss:$16 sps:$4 sm:$0xff]  }
  0xa4   :  { %1379 = vmatprep.subr.bf16.mxu0 %v8166_v20  ;;  %1538 = vmatprep.subr.bf16.mxu1 %v8168_v21  ;;  %v8219_v56 = vld [vmem:[#allocation7 + $0x1a8] ss:$16 sps:$4 sm:$0xff]   ;;  %v8220_v57 = vld [vmem:[#allocation7 + $0x1c4] ss:$16 sps:$4 sm:$0xff]   ;;  %v8222_v58 = vld [vmem:[#allocation7 + $0x1cc] ss:$16 sps:$4 sm:$0xff]  }
  0xa5   :  { %v8224_v59 = vld [vmem:[#allocation7 + $0x1c0] ss:$16 sps:$4 sm:$0xff]   ;;  %v8225_v60 = vld [vmem:[#allocation7 + $0x1c8] ss:$16 sps:$4 sm:$0xff]   ;;  %v8226_v61 = vld [vmem:[#allocation7 + $0x1e4] ss:$16 sps:$4 sm:$0xff]  }
  0xa6   :  { %v8228_v62 = vld [vmem:[#allocation7 + $0x1ec] ss:$16 sps:$4 sm:$0xff]   ;;  %v8230_v63 = vld [vmem:[#allocation7 + $0x1e0] ss:$16 sps:$4 sm:$0xff]   ;;  %v8231_v0 = vld [vmem:[#allocation7 + $0x1e8] ss:$16 sps:$4 sm:$0xff]  }
  0xa7   :  { %1380 = vmatpush1.bf16.msra.mxu0 %v8170_v22  ;;  %1539 = vmatpush1.bf16.msra.mxu1 %v8171_v23  ;;  %v8237_v1 = vld [vmem:[#allocation7 + $0x204] ss:$16 sps:$4 sm:$0xff]   ;;  %v8240_v2 = vld [vmem:[#allocation7 + $0x20c] ss:$16 sps:$4 sm:$0xff]   ;;  %v8232_v3 = vld [vmem:[#allocation2] ss:$24 sps:$4 sm:$0xff]  }
  0xa8   :  { %1381 = vmatprep.subr.bf16.mxu0 %v8172_v24  ;;  %1540 = vmatprep.subr.bf16.mxu1 %v8174_v25  ;;  %v8235_v4 = vld [vmem:[#allocation7 + $0x200] ss:$16 sps:$4 sm:$0xff]   ;;  %v8238_v5 = vld [vmem:[#allocation7 + $0x208] ss:$16 sps:$4 sm:$0xff]   ;;  %v8243_v6 = vld [vmem:[#allocation7 + $0x224] ss:$16 sps:$4 sm:$0xff]  }
  0xa9   :  { %v8246_v7 = vld [vmem:[#allocation7 + $0x22c] ss:$16 sps:$4 sm:$0xff]   ;;  %v8241_v8 = vld [vmem:[#allocation7 + $0x220] ss:$16 sps:$4 sm:$0xff]   ;;  %v8244_v9 = vld [vmem:[#allocation7 + $0x228] ss:$16 sps:$4 sm:$0xff]  }
  0xaa   :  { %v8249_v10 = vld [vmem:[#allocation7 + $0x244] ss:$16 sps:$4 sm:$0xff]   ;;  %v8252_v11 = vld [vmem:[#allocation7 + $0x24c] ss:$16 sps:$4 sm:$0xff]   ;;  %v8247_v12 = vld [vmem:[#allocation7 + $0x240] ss:$16 sps:$4 sm:$0xff]  }
  0xab   :  { %1382 = vmatpush1.bf16.msra.mxu0 %v8176_v26  ;;  %1541 = vmatpush1.bf16.msra.mxu1 %v8177_v27  ;;  %v8250_v13 = vld [vmem:[#allocation7 + $0x248] ss:$16 sps:$4 sm:$0xff]   ;;  %v8255_v14 = vld [vmem:[#allocation7 + $0x264] ss:$16 sps:$4 sm:$0xff]   ;;  %v8258_v15 = vld [vmem:[#allocation7 + $0x26c] ss:$16 sps:$4 sm:$0xff]  }
  0xac   :  { %1383 = vmatprep.subr.bf16.mxu0 %v8178_v28  ;;  %1542 = vmatprep.subr.bf16.mxu1 %v8180_v29  ;;  %v8253_v16 = vld [vmem:[#allocation7 + $0x260] ss:$16 sps:$4 sm:$0xff]   ;;  %v8256_v17 = vld [vmem:[#allocation7 + $0x268] ss:$16 sps:$4 sm:$0xff]   ;;  %v8261_v18 = vld [vmem:[#allocation7 + $0x284] ss:$16 sps:$4 sm:$0xff]  }
  0xad   :  { %v8264_v19 = vld [vmem:[#allocation7 + $0x28c] ss:$16 sps:$4 sm:$0xff]   ;;  %v8259_v20 = vld [vmem:[#allocation7 + $0x280] ss:$16 sps:$4 sm:$0xff]   ;;  %v8262_v21 = vld [vmem:[#allocation7 + $0x288] ss:$16 sps:$4 sm:$0xff]  }
  0xae   :  { %v8267_v22 = vld [vmem:[#allocation7 + $0x2a4] ss:$16 sps:$4 sm:$0xff]   ;;  %v8270_v23 = vld [vmem:[#allocation7 + $0x2ac] ss:$16 sps:$4 sm:$0xff]   ;;  %v8265_v25 = vld [vmem:[#allocation7 + $0x2a0] ss:$16 sps:$4 sm:$0xff]  }
  0xaf   :  { %1384 = vmatpush1.bf16.msra.mxu0 %v8182_v30  ;;  %1543 = vmatpush1.bf16.msra.mxu1 %v8183_v31  ;;  %v8319_v24 = vld [vmem:[#allocation2 + $0x34] ss:$24 sps:$4 sm:$0xff]   ;;  %v8268_v26 = vld [vmem:[#allocation7 + $0x2a8] ss:$16 sps:$4 sm:$0xff]   ;;  %v8271_v30 = vld [vmem:[#allocation7 + $0x2c0] ss:$16 sps:$4 sm:$0xff]  }
  0xb0   :  { %1385 = vmatprep.subr.bf16.mxu0 %v8184_v32  ;;  %1544 = vmatprep.subr.bf16.mxu1 %v8186_v33  ;;  %v8273_v27 = vld [vmem:[#allocation7 + $0x2c4] ss:$16 sps:$4 sm:$0xff]   ;;  %v8276_v28 = vld [vmem:[#allocation7 + $0x2cc] ss:$16 sps:$4 sm:$0xff]   ;;  %v8327_v29 = vld [vmem:[#allocation2 + $0x30] ss:$24 sps:$4 sm:$0xff]  }
  0xb1   :  { %v8274_v31 = vld [vmem:[#allocation7 + $0x2c8] ss:$16 sps:$4 sm:$0xff]   ;;  %v8279_v32 = vld [vmem:[#allocation7 + $0x2e4] ss:$16 sps:$4 sm:$0xff]   ;;  %v8282_v33 = vld [vmem:[#allocation7 + $0x2ec] ss:$16 sps:$4 sm:$0xff]  }
  0xb2   :  { %v8298_v48 = vld [vmem:[#allocation7 + $0x348] ss:$16 sps:$4 sm:$0xff]  }
  0xb3   :  { %1386 = vmatpush1.bf16.msra.mxu0 %v8188_v34  ;;  %1545 = vmatpush1.bf16.msra.mxu1 %v8189_v35  ;;  %v8336_v34 = vld [vmem:[#allocation2 + $0xc] ss:$24 sps:$4 sm:$0xff]   ;;  %v8277_v35 = vld [vmem:[#allocation7 + $0x2e0] ss:$16 sps:$4 sm:$0xff]  }
  0xb4   :  { %1387 = vmatprep.subr.bf16.mxu0 %v8190_v36  ;;  %1546 = vmatprep.subr.bf16.mxu1 %v8192_v37  ;;  %v8280_v36 = vld [vmem:[#allocation7 + $0x2e8] ss:$16 sps:$4 sm:$0xff]   ;;  %v8285_v37 = vld [vmem:[#allocation7 + $0x304] ss:$16 sps:$4 sm:$0xff]  }
  0xb7   :  { %1388 = vmatpush1.bf16.msra.mxu0 %v8194_v38  ;;  %1547 = vmatpush1.bf16.msra.mxu1 %v8195_v39  ;;  %v8288_v38 = vld [vmem:[#allocation7 + $0x30c] ss:$16 sps:$4 sm:$0xff]   ;;  %v8283_v39 = vld [vmem:[#allocation7 + $0x300] ss:$16 sps:$4 sm:$0xff]  }
  0xb8   :  { %1389 = vmatprep.subr.bf16.mxu0 %v8196_v40  ;;  %1548 = vmatprep.subr.bf16.mxu1 %v8198_v41  ;;  %v8286_v40 = vld [vmem:[#allocation7 + $0x308] ss:$16 sps:$4 sm:$0xff]   ;;  %v8291_v41 = vld [vmem:[#allocation7 + $0x324] ss:$16 sps:$4 sm:$0xff]  }
  0xbb   :  { %1390 = vmatpush1.bf16.msra.mxu0 %v8200_v42  ;;  %1549 = vmatpush1.bf16.msra.mxu1 %v8201_v43  ;;  %v8294_v42 = vld [vmem:[#allocation7 + $0x32c] ss:$16 sps:$4 sm:$0xff]   ;;  %v8289_v43 = vld [vmem:[#allocation7 + $0x320] ss:$16 sps:$4 sm:$0xff]  }
  0xbc   :  { %1391 = vmatprep.subr.bf16.mxu0 %v8202_v44  ;;  %1550 = vmatprep.subr.bf16.mxu1 %v8204_v45  ;;  %v8292_v44 = vld [vmem:[#allocation7 + $0x328] ss:$16 sps:$4 sm:$0xff]   ;;  %v8297_v45 = vld [vmem:[#allocation7 + $0x344] ss:$16 sps:$4 sm:$0xff]  }
  0xbf   :  { %1392 = vmatpush1.bf16.msra.mxu0 %v8206_v46  ;;  %1551 = vmatpush1.bf16.msra.mxu1 %v8207_v47  ;;  %v8300_v46 = vld [vmem:[#allocation7 + $0x34c] ss:$16 sps:$4 sm:$0xff]   ;;  %v8295_v47 = vld [vmem:[#allocation7 + $0x340] ss:$16 sps:$4 sm:$0xff]  }
  0xc0   :  { %1393 = vmatprep.subr.bf16.mxu0 %v8208_v49  ;;  %1552 = vmatprep.subr.bf16.mxu1 %v8210_v50  ;;  %v8303_v49 = vld [vmem:[#allocation7 + $0x364] ss:$16 sps:$4 sm:$0xff]   ;;  %v8306_v50 = vld [vmem:[#allocation7 + $0x36c] ss:$16 sps:$4 sm:$0xff]  }
  0xc3   :  { %1394 = vmatpush1.bf16.msra.mxu0 %v8212_v51  ;;  %1553 = vmatpush1.bf16.msra.mxu1 %v8213_v52  ;;  %v8301_v51 = vld [vmem:[#allocation7 + $0x360] ss:$16 sps:$4 sm:$0xff]   ;;  %v8304_v52 = vld [vmem:[#allocation7 + $0x368] ss:$16 sps:$4 sm:$0xff]  }
  0xc4   :  { %1395 = vmatprep.subr.bf16.mxu0 %v8214_v53  ;;  %1554 = vmatprep.subr.bf16.mxu1 %v8216_v54  ;;  %v8309_v53 = vld [vmem:[#allocation7 + $0x384] ss:$16 sps:$4 sm:$0xff]   ;;  %v8312_v54 = vld [vmem:[#allocation7 + $0x38c] ss:$16 sps:$4 sm:$0xff]  }
  0xc7   :  { %1396 = vmatpush1.bf16.msra.mxu0 %v8218_v55  ;;  %1555 = vmatpush1.bf16.msra.mxu1 %v8219_v56  ;;  %v8307_v55 = vld [vmem:[#allocation7 + $0x380] ss:$16 sps:$4 sm:$0xff]   ;;  %v8310_v56 = vld [vmem:[#allocation7 + $0x388] ss:$16 sps:$4 sm:$0xff]  }
  0xc8   :  { %1397 = vmatprep.subr.bf16.mxu0 %v8220_v57  ;;  %1556 = vmatprep.subr.bf16.mxu1 %v8222_v58  ;;  %v8315_v57 = vld [vmem:[#allocation7 + $0x3a4] ss:$16 sps:$4 sm:$0xff]   ;;  %v8318_v58 = vld [vmem:[#allocation7 + $0x3ac] ss:$16 sps:$4 sm:$0xff]  }
  0xcb   :  { %1398 = vmatpush1.bf16.msra.mxu0 %v8224_v59  ;;  %1557 = vmatpush1.bf16.msra.mxu1 %v8225_v60  ;;  %v8313_v59 = vld [vmem:[#allocation7 + $0x3a0] ss:$16 sps:$4 sm:$0xff]   ;;  %v8316_v60 = vld [vmem:[#allocation7 + $0x3a8] ss:$16 sps:$4 sm:$0xff]  }
  0xcc   :  { %1399 = vmatprep.subr.bf16.mxu0 %v8226_v61  ;;  %1558 = vmatprep.subr.bf16.mxu1 %v8228_v62  ;;  %v8323_v61 = vld [vmem:[#allocation7 + $0x3c4] ss:$16 sps:$4 sm:$0xff]   ;;  %v8326_v62 = vld [vmem:[#allocation7 + $0x3cc] ss:$16 sps:$4 sm:$0xff]  }
  0xcf   :  { %1400 = vmatpush1.bf16.msra.mxu0 %v8230_v63  ;;  %1559 = vmatpush1.bf16.msra.mxu1 %v8231_v0  ;;  %v8321_v63 = vld [vmem:[#allocation7 + $0x3c0] ss:$16 sps:$4 sm:$0xff]   ;;  %v8324_v0 = vld [vmem:[#allocation7 + $0x3c8] ss:$16 sps:$4 sm:$0xff]  }
  0xd0   :  { %1422 = vmatprep.subr.bf16.mxu0 %v8237_v1  ;;  %1581 = vmatprep.subr.bf16.mxu1 %v8240_v2  ;;  %v8330_v1 = vld [vmem:[#allocation7 + $0x3e4] ss:$16 sps:$4 sm:$0xff]   ;;  %v8333_v2 = vld [vmem:[#allocation7 + $0x3ec] ss:$16 sps:$4 sm:$0xff]  }
  0xd2   :  { %1402 = vmatmul.mubr.bf16.vlgmr.msra.gmra.mrb[0].mxu0 %v8232_v3  ;;  %1561 = vmatmul.mubr.bf16.vlgmr.msra.gmra.mrb[0].mxu1 %v8232_v3  ;;  %v8328_v3 = vld [vmem:[#allocation7 + $0x3e0] ss:$16 sps:$4 sm:$0xff]  }
  0xd3   :  { %1423 = vmatpush1.bf16.msra.mxu0 %v8235_v4  ;;  %1582 = vmatpush1.bf16.msra.mxu1 %v8238_v5  ;;  %v8331_v4 = vld [vmem:[#allocation7 + $0x3e8] ss:$16 sps:$4 sm:$0xff]   ;;  %v8339_v5 = vld [vmem:[#allocation7 + $0x404] ss:$16 sps:$4 sm:$0xff]  }
  0xd4   :  { %1424 = vmatprep.subr.bf16.mxu0 %v8243_v6  ;;  %1583 = vmatprep.subr.bf16.mxu1 %v8246_v7  ;;  %v8342_v6 = vld [vmem:[#allocation7 + $0x40c] ss:$16 sps:$4 sm:$0xff]   ;;  %v8334_v7 = vld [vmem:[#allocation2 + $0x8] ss:$24 sps:$4 sm:$0xff]  }
  0xd5   :  { %1411 = vmatprep.mubr.bf16.mxu0 %v8319_v24  ;;  %1570 = vmatprep.mubr.bf16.mxu1 %v8319_v24  ;;  %v8358_v24 = vld [vmem:[#allocation7 + $0x468] ss:$16 sps:$4 sm:$0xff]  }
  0xd7   :  { %1425 = vmatpush1.bf16.msra.mxu0 %v8241_v8  ;;  %1584 = vmatpush1.bf16.msra.mxu1 %v8244_v9  ;;  %v8337_v8 = vld [vmem:[#allocation7 + $0x400] ss:$16 sps:$4 sm:$0xff]   ;;  %v8340_v9 = vld [vmem:[#allocation7 + $0x408] ss:$16 sps:$4 sm:$0xff]  }
  0xd8   :  { %1426 = vmatprep.subr.bf16.mxu0 %v8249_v10  ;;  %1585 = vmatprep.subr.bf16.mxu1 %v8252_v11  ;;  %v8345_v10 = vld [vmem:[#allocation7 + $0x424] ss:$16 sps:$4 sm:$0xff]   ;;  %v8348_v11 = vld [vmem:[#allocation7 + $0x42c] ss:$16 sps:$4 sm:$0xff]  }
  0xda   :  { %1412 = vmatmul.mubr.bf16.gmra.mrb[4].mxu0 %v8327_v29  ;;  %1571 = vmatmul.mubr.bf16.gmra.mrb[4].mxu1 %v8327_v29  ;;  %v8369_v29 = vld [vmem:[#allocation7 + $0x4a4] ss:$16 sps:$4 sm:$0xff]  }
  0xdb   :  { %1427 = vmatpush1.bf16.msra.mxu0 %v8247_v12  ;;  %1586 = vmatpush1.bf16.msra.mxu1 %v8250_v13  ;;  %v8421_v12 = vld [vmem:[#allocation2 + $0x3c] ss:$24 sps:$4 sm:$0xff]   ;;  %v8343_v13 = vld [vmem:[#allocation7 + $0x420] ss:$16 sps:$4 sm:$0xff]  }
  0xdc   :  { %1428 = vmatprep.subr.bf16.mxu0 %v8255_v14  ;;  %1587 = vmatprep.subr.bf16.mxu1 %v8258_v15  ;;  %v8346_v14 = vld [vmem:[#allocation7 + $0x428] ss:$16 sps:$4 sm:$0xff]   ;;  %v8351_v15 = vld [vmem:[#allocation7 + $0x444] ss:$16 sps:$4 sm:$0xff]  }
  0xdd   :  { %1454 = vmatprep.mubr.bf16.mxu0 %v8336_v34  ;;  %1613 = vmatprep.mubr.bf16.mxu1 %v8336_v34  ;;  %v8378_v34 = vld [vmem:[#allocation7 + $0x4cc] ss:$16 sps:$4 sm:$0xff]  }
  0xdf   :  { %1429 = vmatpush1.bf16.msra.mxu0 %v8253_v16  ;;  %1588 = vmatpush1.bf16.msra.mxu1 %v8256_v17  ;;  %v8354_v16 = vld [vmem:[#allocation7 + $0x44c] ss:$16 sps:$4 sm:$0xff]   ;;  %v8349_v17 = vld [vmem:[#allocation7 + $0x440] ss:$16 sps:$4 sm:$0xff]  }
  0xe0   :  { %1430 = vmatprep.subr.bf16.mxu0 %v8261_v18  ;;  %1589 = vmatprep.subr.bf16.mxu1 %v8264_v19  ;;  %v8352_v18 = vld [vmem:[#allocation7 + $0x448] ss:$16 sps:$4 sm:$0xff]  }
  0xe1   :  { %v8423_v19 = vld [vmem:[#allocation2 + $0x38] ss:$24 sps:$4 sm:$0xff]  }
  0xe3   :  { %1431 = vmatpush1.bf16.msra.mxu0 %v8259_v20  ;;  %1590 = vmatpush1.bf16.msra.mxu1 %v8262_v21  ;;  %v8357_v20 = vld [vmem:[#allocation7 + $0x464] ss:$16 sps:$4 sm:$0xff]   ;;  %v8360_v21 = vld [vmem:[#allocation7 + $0x46c] ss:$16 sps:$4 sm:$0xff]  }
  0xe4   :  { %1432 = vmatprep.subr.bf16.mxu0 %v8267_v22  ;;  %1591 = vmatprep.subr.bf16.mxu1 %v8270_v23  ;;  %v8438_v22 = vld [vmem:[#allocation2 + $0x14] ss:$24 sps:$4 sm:$0xff]   ;;  %v8355_v23 = vld [vmem:[#allocation7 + $0x460] ss:$16 sps:$4 sm:$0xff]  }
  0xe7   :  { %1433 = vmatpush1.bf16.msra.mxu0 %v8265_v25  ;;  %1592 = vmatpush1.bf16.msra.mxu1 %v8268_v26  ;;  %v8363_v25 = vld [vmem:[#allocation7 + $0x484] ss:$16 sps:$4 sm:$0xff]   ;;  %v8366_v26 = vld [vmem:[#allocation7 + $0x48c] ss:$16 sps:$4 sm:$0xff]  }
  0xe8   :  { %1434 = vmatprep.subr.bf16.mxu0 %v8273_v27  ;;  %1593 = vmatprep.subr.bf16.mxu1 %v8276_v28  ;;  %v8361_v27 = vld [vmem:[#allocation7 + $0x480] ss:$16 sps:$4 sm:$0xff]   ;;  %v8364_v28 = vld [vmem:[#allocation7 + $0x488] ss:$16 sps:$4 sm:$0xff]  }
  0xeb   :  { %1435 = vmatpush1.bf16.msra.mxu0 %v8271_v30  ;;  %1594 = vmatpush1.bf16.msra.mxu1 %v8274_v31  ;;  %v8372_v30 = vld [vmem:[#allocation7 + $0x4ac] ss:$16 sps:$4 sm:$0xff]   ;;  %v8367_v31 = vld [vmem:[#allocation7 + $0x4a0] ss:$16 sps:$4 sm:$0xff]  }
  0xec   :  { %1436 = vmatprep.subr.bf16.mxu0 %v8279_v32  ;;  %1595 = vmatprep.subr.bf16.mxu1 %v8282_v33  ;;  %v8370_v32 = vld [vmem:[#allocation7 + $0x4a8] ss:$16 sps:$4 sm:$0xff]   ;;  %v8375_v33 = vld [vmem:[#allocation7 + $0x4c4] ss:$16 sps:$4 sm:$0xff]  }
  0xef   :  { %1437 = vmatpush1.bf16.msra.mxu0 %v8277_v35  ;;  %1596 = vmatpush1.bf16.msra.mxu1 %v8280_v36  ;;  %v8373_v35 = vld [vmem:[#allocation7 + $0x4c0] ss:$16 sps:$4 sm:$0xff]   ;;  %v8376_v36 = vld [vmem:[#allocation7 + $0x4c8] ss:$16 sps:$4 sm:$0xff]  }
  0xf0   :  { %1438 = vmatprep.subr.bf16.mxu0 %v8285_v37  ;;  %1597 = vmatprep.subr.bf16.mxu1 %v8288_v38  ;;  %v8381_v37 = vld [vmem:[#allocation7 + $0x4e4] ss:$16 sps:$4 sm:$0xff]   ;;  %v8384_v38 = vld [vmem:[#allocation7 + $0x4ec] ss:$16 sps:$4 sm:$0xff]  }
  0xf3   :  { %1439 = vmatpush1.bf16.msra.mxu0 %v8283_v39  ;;  %1598 = vmatpush1.bf16.msra.mxu1 %v8286_v40  ;;  %v8379_v39 = vld [vmem:[#allocation7 + $0x4e0] ss:$16 sps:$4 sm:$0xff]   ;;  %v8382_v40 = vld [vmem:[#allocation7 + $0x4e8] ss:$16 sps:$4 sm:$0xff]  }
  0xf4   :  { %1440 = vmatprep.subr.bf16.mxu0 %v8291_v41  ;;  %1599 = vmatprep.subr.bf16.mxu1 %v8294_v42  ;;  %v8387_v41 = vld [vmem:[#allocation7 + $0x504] ss:$16 sps:$4 sm:$0xff]   ;;  %v8390_v42 = vld [vmem:[#allocation7 + $0x50c] ss:$16 sps:$4 sm:$0xff]  }
  0xf7   :  { %1441 = vmatpush1.bf16.msra.mxu0 %v8289_v43  ;;  %1600 = vmatpush1.bf16.msra.mxu1 %v8292_v44  ;;  %v8385_v43 = vld [vmem:[#allocation7 + $0x500] ss:$16 sps:$4 sm:$0xff]   ;;  %v8388_v44 = vld [vmem:[#allocation7 + $0x508] ss:$16 sps:$4 sm:$0xff]  }
  0xf8   :  { %1442 = vmatprep.subr.bf16.mxu0 %v8297_v45  ;;  %1601 = vmatprep.subr.bf16.mxu1 %v8300_v46  ;;  %v8393_v45 = vld [vmem:[#allocation7 + $0x524] ss:$16 sps:$4 sm:$0xff]   ;;  %v8396_v46 = vld [vmem:[#allocation7 + $0x52c] ss:$16 sps:$4 sm:$0xff]  }
  0xfb   :  { %1443 = vmatpush1.bf16.msra.mxu0 %v8295_v47  ;;  %1602 = vmatpush1.bf16.msra.mxu1 %v8298_v48  ;;  %v8391_v47 = vld [vmem:[#allocation7 + $0x520] ss:$16 sps:$4 sm:$0xff]   ;;  %v8394_v48 = vld [vmem:[#allocation7 + $0x528] ss:$16 sps:$4 sm:$0xff]  }
  0xfc   :  { %1444 = vmatprep.subr.bf16.mxu0 %v8303_v49  ;;  %1603 = vmatprep.subr.bf16.mxu1 %v8306_v50  ;;  %v8399_v49 = vld [vmem:[#allocation7 + $0x544] ss:$16 sps:$4 sm:$0xff]   ;;  %v8402_v50 = vld [vmem:[#allocation7 + $0x54c] ss:$16 sps:$4 sm:$0xff]  }
  0xff   :  { %1445 = vmatpush1.bf16.msra.mxu0 %v8301_v51  ;;  %1604 = vmatpush1.bf16.msra.mxu1 %v8304_v52  ;;  %v8397_v51 = vld [vmem:[#allocation7 + $0x540] ss:$16 sps:$4 sm:$0xff]   ;;  %v8400_v52 = vld [vmem:[#allocation7 + $0x548] ss:$16 sps:$4 sm:$0xff]  }
 0x100   :  { %1446 = vmatprep.subr.bf16.mxu0 %v8309_v53  ;;  %1605 = vmatprep.subr.bf16.mxu1 %v8312_v54  ;;  %v8405_v53 = vld [vmem:[#allocation7 + $0x564] ss:$16 sps:$4 sm:$0xff]   ;;  %v8408_v54 = vld [vmem:[#allocation7 + $0x56c] ss:$16 sps:$4 sm:$0xff]  }
 0x103   :  { %1447 = vmatpush1.bf16.msra.mxu0 %v8307_v55  ;;  %1606 = vmatpush1.bf16.msra.mxu1 %v8310_v56  ;;  %v8403_v55 = vld [vmem:[#allocation7 + $0x560] ss:$16 sps:$4 sm:$0xff]   ;;  %v8406_v56 = vld [vmem:[#allocation7 + $0x568] ss:$16 sps:$4 sm:$0xff]  }
 0x104   :  { %1448 = vmatprep.subr.bf16.mxu0 %v8315_v57  ;;  %1607 = vmatprep.subr.bf16.mxu1 %v8318_v58  ;;  %v8411_v57 = vld [vmem:[#allocation7 + $0x584] ss:$16 sps:$4 sm:$0xff]   ;;  %v8414_v58 = vld [vmem:[#allocation7 + $0x58c] ss:$16 sps:$4 sm:$0xff]  }
 0x107   :  { %1449 = vmatpush1.bf16.msra.mxu0 %v8313_v59  ;;  %1608 = vmatpush1.bf16.msra.mxu1 %v8316_v60  ;;  %v8409_v59 = vld [vmem:[#allocation7 + $0x580] ss:$16 sps:$4 sm:$0xff]   ;;  %v8412_v60 = vld [vmem:[#allocation7 + $0x588] ss:$16 sps:$4 sm:$0xff]  }
 0x108   :  { %1450 = vmatprep.subr.bf16.mxu0 %v8323_v61  ;;  %1609 = vmatprep.subr.bf16.mxu1 %v8326_v62  ;;  %v8417_v61 = vld [vmem:[#allocation7 + $0x5a4] ss:$16 sps:$4 sm:$0xff]   ;;  %v8420_v62 = vld [vmem:[#allocation7 + $0x5ac] ss:$16 sps:$4 sm:$0xff]  }
 0x10b   :  { %1451 = vmatpush1.bf16.msra.mxu0 %v8321_v63  ;;  %1610 = vmatpush1.bf16.msra.mxu1 %v8324_v0  ;;  %v8415_v63 = vld [vmem:[#allocation7 + $0x5a0] ss:$16 sps:$4 sm:$0xff]   ;;  %v8418_v0 = vld [vmem:[#allocation7 + $0x5a8] ss:$16 sps:$4 sm:$0xff]  }
 0x10c   :  { %1452 = vmatprep.subr.bf16.mxu0 %v8330_v1  ;;  %1611 = vmatprep.subr.bf16.mxu1 %v8333_v2  ;;  %v8426_v1 = vld [vmem:[#allocation7 + $0x5c4] ss:$16 sps:$4 sm:$0xff]   ;;  %v8429_v2 = vld [vmem:[#allocation7 + $0x5cc] ss:$16 sps:$4 sm:$0xff]  }
 0x10f   :  { %1453 = vmatpush1.bf16.msra.mxu0 %v8328_v3  ;;  %1612 = vmatpush1.bf16.msra.mxu1 %v8331_v4  ;;  %v8424_v3 = vld [vmem:[#allocation7 + $0x5c0] ss:$16 sps:$4 sm:$0xff]   ;;  %v8427_v4 = vld [vmem:[#allocation7 + $0x5c8] ss:$16 sps:$4 sm:$0xff]  }
 0x110   :  { %1475 = vmatprep.subr.bf16.mxu0 %v8339_v5  ;;  %1634 = vmatprep.subr.bf16.mxu1 %v8342_v6  ;;  %v8432_v5 = vld [vmem:[#allocation7 + $0x5e4] ss:$16 sps:$4 sm:$0xff]   ;;  %v8435_v6 = vld [vmem:[#allocation7 + $0x5ec] ss:$16 sps:$4 sm:$0xff]  }
 0x112   :  { %1455 = vmatmul.mubr.bf16.vlgmr.msra.gmra.mrb[0].mxu0 %v8334_v7  ;;  %1614 = vmatmul.mubr.bf16.vlgmr.msra.gmra.mrb[0].mxu1 %v8334_v7  ;;  %v8430_v7 = vld [vmem:[#allocation7 + $0x5e0] ss:$16 sps:$4 sm:$0xff]  }
 0x113   :  { %1476 = vmatpush1.bf16.msra.mxu0 %v8337_v8  ;;  %1635 = vmatpush1.bf16.msra.mxu1 %v8340_v9  ;;  %v8433_v8 = vld [vmem:[#allocation7 + $0x5e8] ss:$16 sps:$4 sm:$0xff]   ;;  %v8444_v9 = vld [vmem:[#allocation8 + $0x4] ss:$16 sps:$4 sm:$0xff]  }
 0x114   :  { %1477 = vmatprep.subr.bf16.mxu0 %v8345_v10  ;;  %1636 = vmatprep.subr.bf16.mxu1 %v8348_v11  ;;  %v8447_v10 = vld [vmem:[#allocation8 + $0xc] ss:$16 sps:$4 sm:$0xff]   ;;  %v8436_v11 = vld [vmem:[#allocation2 + $0x10] ss:$24 sps:$4 sm:$0xff]  }
 0x115   :  { %1464 = vmatprep.mubr.bf16.mxu0 %v8421_v12  ;;  %1623 = vmatprep.mubr.bf16.mxu1 %v8421_v12  ;;  %v8439_v12 = vld [vmem:[#allocation2 + $0x44] ss:$24 sps:$4 sm:$0xff]  }
 0x117   :  { %1478 = vmatpush1.bf16.msra.mxu0 %v8343_v13  ;;  %1637 = vmatpush1.bf16.msra.mxu1 %v8346_v14  ;;  %v8442_v13 = vld [vmem:[#allocation8] ss:$16 sps:$4 sm:$0xff]   ;;  %v8445_v14 = vld [vmem:[#allocation8 + $0x8] ss:$16 sps:$4 sm:$0xff]  }
 0x118   :  { %1479 = vmatprep.subr.bf16.mxu0 %v8351_v15  ;;  %1638 = vmatprep.subr.bf16.mxu1 %v8354_v16  ;;  %v8450_v15 = vld [vmem:[#allocation8 + $0x24] ss:$16 sps:$4 sm:$0xff]   ;;  %v8453_v16 = vld [vmem:[#allocation8 + $0x2c] ss:$16 sps:$4 sm:$0xff]  }
 0x11a   :  { %1465 = vmatmul.mubr.bf16.gmra.mrb[4].mxu0 %v8423_v19  ;;  %1624 = vmatmul.mubr.bf16.gmra.mrb[4].mxu1 %v8423_v19  ;;  %v8456_v19 = vld [vmem:[#allocation8 + $0x44] ss:$16 sps:$4 sm:$0xff]  }
 0x11b   :  { %1480 = vmatpush1.bf16.msra.mxu0 %v8349_v17  ;;  %1639 = vmatpush1.bf16.msra.mxu1 %v8352_v18  ;;  %v8448_v17 = vld [vmem:[#allocation8 + $0x20] ss:$16 sps:$4 sm:$0xff]   ;;  %v8451_v18 = vld [vmem:[#allocation8 + $0x28] ss:$16 sps:$4 sm:$0xff]  }
 0x11c   :  { %1481 = vmatprep.subr.bf16.mxu0 %v8357_v20  ;;  %1640 = vmatprep.subr.bf16.mxu1 %v8360_v21  ;;  %v8459_v20 = vld [vmem:[#allocation8 + $0x4c] ss:$16 sps:$4 sm:$0xff]   ;;  %v8441_v21 = vld [vmem:[#allocation2 + $0x40] ss:$24 sps:$4 sm:$0xff]  }
 0x11d   :  { %1507 = vmatprep.mubr.bf16.mxu0 %v8438_v22  ;;  %1666 = vmatprep.mubr.bf16.mxu1 %v8438_v22  ;;  %v8454_v22 = vld [vmem:[#allocation8 + $0x40] ss:$16 sps:$4 sm:$0xff]  }
 0x11f   :  { %1482 = vmatpush1.bf16.msra.mxu0 %v8355_v23  ;;  %1641 = vmatpush1.bf16.msra.mxu1 %v8358_v24  ;;  %v8457_v23 = vld [vmem:[#allocation8 + $0x48] ss:$16 sps:$4 sm:$0xff]   ;;  %v8462_v24 = vld [vmem:[#allocation8 + $0x64] ss:$16 sps:$4 sm:$0xff]  }
 0x120   :  { %1483 = vmatprep.subr.bf16.mxu0 %v8363_v25  ;;  %1642 = vmatprep.subr.bf16.mxu1 %v8366_v26  ;;  %v8465_v25 = vld [vmem:[#allocation8 + $0x6c] ss:$16 sps:$4 sm:$0xff]   ;;  %v8460_v26 = vld [vmem:[#allocation8 + $0x60] ss:$16 sps:$4 sm:$0xff]  }
 0x123   :  { %1484 = vmatpush1.bf16.msra.mxu0 %v8361_v27  ;;  %1643 = vmatpush1.bf16.msra.mxu1 %v8364_v28  ;;  %v8463_v27 = vld [vmem:[#allocation8 + $0x68] ss:$16 sps:$4 sm:$0xff]   ;;  %v8468_v28 = vld [vmem:[#allocation8 + $0x84] ss:$16 sps:$4 sm:$0xff]  }
 0x124   :  { %1485 = vmatprep.subr.bf16.mxu0 %v8369_v29  ;;  %1644 = vmatprep.subr.bf16.mxu1 %v8372_v30  ;;  %v8471_v29 = vld [vmem:[#allocation8 + $0x8c] ss:$16 sps:$4 sm:$0xff]   ;;  %v8466_v30 = vld [vmem:[#allocation8 + $0x80] ss:$16 sps:$4 sm:$0xff]  }
 0x127   :  { %1486 = vmatpush1.bf16.msra.mxu0 %v8367_v31  ;;  %1645 = vmatpush1.bf16.msra.mxu1 %v8370_v32  ;;  %v8469_v31 = vld [vmem:[#allocation8 + $0x88] ss:$16 sps:$4 sm:$0xff]   ;;  %v8474_v32 = vld [vmem:[#allocation8 + $0xa4] ss:$16 sps:$4 sm:$0xff]  }
 0x128   :  { %1487 = vmatprep.subr.bf16.mxu0 %v8375_v33  ;;  %1646 = vmatprep.subr.bf16.mxu1 %v8378_v34  ;;  %v8477_v33 = vld [vmem:[#allocation8 + $0xac] ss:$16 sps:$4 sm:$0xff]   ;;  %v8472_v34 = vld [vmem:[#allocation8 + $0xa0] ss:$16 sps:$4 sm:$0xff]  }
 0x12b   :  { %1488 = vmatpush1.bf16.msra.mxu0 %v8373_v35  ;;  %1647 = vmatpush1.bf16.msra.mxu1 %v8376_v36  ;;  %v8475_v35 = vld [vmem:[#allocation8 + $0xa8] ss:$16 sps:$4 sm:$0xff]   ;;  %v8480_v36 = vld [vmem:[#allocation8 + $0xc4] ss:$16 sps:$4 sm:$0xff]  }
 0x12c   :  { %1489 = vmatprep.subr.bf16.mxu0 %v8381_v37  ;;  %1648 = vmatprep.subr.bf16.mxu1 %v8384_v38  ;;  %v8483_v37 = vld [vmem:[#allocation8 + $0xcc] ss:$16 sps:$4 sm:$0xff]   ;;  %v8478_v38 = vld [vmem:[#allocation8 + $0xc0] ss:$16 sps:$4 sm:$0xff]  }
 0x12f   :  { %1490 = vmatpush1.bf16.msra.mxu0 %v8379_v39  ;;  %1649 = vmatpush1.bf16.msra.mxu1 %v8382_v40  ;;  %v8481_v39 = vld [vmem:[#allocation8 + $0xc8] ss:$16 sps:$4 sm:$0xff]   ;;  %v8486_v40 = vld [vmem:[#allocation8 + $0xe4] ss:$16 sps:$4 sm:$0xff]  }
 0x130   :  { %1491 = vmatprep.subr.bf16.mxu0 %v8387_v41  ;;  %1650 = vmatprep.subr.bf16.mxu1 %v8390_v42  ;;  %v8489_v41 = vld [vmem:[#allocation8 + $0xec] ss:$16 sps:$4 sm:$0xff]   ;;  %v8484_v42 = vld [vmem:[#allocation8 + $0xe0] ss:$16 sps:$4 sm:$0xff]  }
 0x133   :  { %1492 = vmatpush1.bf16.msra.mxu0 %v8385_v43  ;;  %1651 = vmatpush1.bf16.msra.mxu1 %v8388_v44  ;;  %v8487_v43 = vld [vmem:[#allocation8 + $0xe8] ss:$16 sps:$4 sm:$0xff]   ;;  %v8492_v44 = vld [vmem:[#allocation8 + $0x104] ss:$16 sps:$4 sm:$0xff]  }
 0x134   :  { %1493 = vmatprep.subr.bf16.mxu0 %v8393_v45  ;;  %1652 = vmatprep.subr.bf16.mxu1 %v8396_v46  ;;  %v8495_v45 = vld [vmem:[#allocation8 + $0x10c] ss:$16 sps:$4 sm:$0xff]   ;;  %v8490_v46 = vld [vmem:[#allocation8 + $0x100] ss:$16 sps:$4 sm:$0xff]  }
 0x137   :  { %1494 = vmatpush1.bf16.msra.mxu0 %v8391_v47  ;;  %1653 = vmatpush1.bf16.msra.mxu1 %v8394_v48  ;;  %v8493_v47 = vld [vmem:[#allocation8 + $0x108] ss:$16 sps:$4 sm:$0xff]   ;;  %v8498_v48 = vld [vmem:[#allocation8 + $0x124] ss:$16 sps:$4 sm:$0xff]  }
 0x138   :  { %1495 = vmatprep.subr.bf16.mxu0 %v8399_v49  ;;  %1654 = vmatprep.subr.bf16.mxu1 %v8402_v50  ;;  %v8501_v49 = vld [vmem:[#allocation8 + $0x12c] ss:$16 sps:$4 sm:$0xff]   ;;  %v8496_v50 = vld [vmem:[#allocation8 + $0x120] ss:$16 sps:$4 sm:$0xff]  }
 0x13b   :  { %1496 = vmatpush1.bf16.msra.mxu0 %v8397_v51  ;;  %1655 = vmatpush1.bf16.msra.mxu1 %v8400_v52  ;;  %v8499_v51 = vld [vmem:[#allocation8 + $0x128] ss:$16 sps:$4 sm:$0xff]   ;;  %v8504_v52 = vld [vmem:[#allocation8 + $0x144] ss:$16 sps:$4 sm:$0xff]  }
 0x13c   :  { %1497 = vmatprep.subr.bf16.mxu0 %v8405_v53  ;;  %1656 = vmatprep.subr.bf16.mxu1 %v8408_v54  ;;  %v8507_v53 = vld [vmem:[#allocation8 + $0x14c] ss:$16 sps:$4 sm:$0xff]   ;;  %v8502_v54 = vld [vmem:[#allocation8 + $0x140] ss:$16 sps:$4 sm:$0xff]  }
 0x13f   :  { %1498 = vmatpush1.bf16.msra.mxu0 %v8403_v55  ;;  %1657 = vmatpush1.bf16.msra.mxu1 %v8406_v56  ;;  %v8505_v55 = vld [vmem:[#allocation8 + $0x148] ss:$16 sps:$4 sm:$0xff]   ;;  %v8510_v56 = vld [vmem:[#allocation8 + $0x164] ss:$16 sps:$4 sm:$0xff]  }
 0x140   :  { %1499 = vmatprep.subr.bf16.mxu0 %v8411_v57  ;;  %1658 = vmatprep.subr.bf16.mxu1 %v8414_v58  ;;  %v8513_v57 = vld [vmem:[#allocation8 + $0x16c] ss:$16 sps:$4 sm:$0xff]   ;;  %v8508_v58 = vld [vmem:[#allocation8 + $0x160] ss:$16 sps:$4 sm:$0xff]  }
 0x143   :  { %1500 = vmatpush1.bf16.msra.mxu0 %v8409_v59  ;;  %1659 = vmatpush1.bf16.msra.mxu1 %v8412_v60  ;;  %v8511_v59 = vld [vmem:[#allocation8 + $0x168] ss:$16 sps:$4 sm:$0xff]   ;;  %v8516_v60 = vld [vmem:[#allocation8 + $0x184] ss:$16 sps:$4 sm:$0xff]  }
 0x144   :  { %1501 = vmatprep.subr.bf16.mxu0 %v8417_v61  ;;  %1660 = vmatprep.subr.bf16.mxu1 %v8420_v62  ;;  %v8519_v61 = vld [vmem:[#allocation8 + $0x18c] ss:$16 sps:$4 sm:$0xff]   ;;  %v8514_v62 = vld [vmem:[#allocation8 + $0x180] ss:$16 sps:$4 sm:$0xff]  }
 0x147   :  { %1502 = vmatpush1.bf16.msra.mxu0 %v8415_v63  ;;  %1661 = vmatpush1.bf16.msra.mxu1 %v8418_v0  ;;  %v8517_v63 = vld [vmem:[#allocation8 + $0x188] ss:$16 sps:$4 sm:$0xff]   ;;  %v8522_v0 = vld [vmem:[#allocation8 + $0x1a4] ss:$16 sps:$4 sm:$0xff]  }
 0x148   :  { %1503 = vmatprep.subr.bf16.mxu0 %v8426_v1  ;;  %1662 = vmatprep.subr.bf16.mxu1 %v8429_v2  ;;  %v8525_v1 = vld [vmem:[#allocation8 + $0x1ac] ss:$16 sps:$4 sm:$0xff]   ;;  %v8520_v2 = vld [vmem:[#allocation8 + $0x1a0] ss:$16 sps:$4 sm:$0xff]  }
 0x14b   :  { %1504 = vmatpush1.bf16.msra.mxu0 %v8424_v3  ;;  %1663 = vmatpush1.bf16.msra.mxu1 %v8427_v4  ;;  %v8523_v3 = vld [vmem:[#allocation8 + $0x1a8] ss:$16 sps:$4 sm:$0xff]   ;;  %v8528_v4 = vld [vmem:[#allocation8 + $0x1c4] ss:$16 sps:$4 sm:$0xff]  }
 0x14c   :  { %1505 = vmatprep.subr.bf16.mxu0 %v8432_v5  ;;  %1664 = vmatprep.subr.bf16.mxu1 %v8435_v6  ;;  %v8531_v5 = vld [vmem:[#allocation8 + $0x1cc] ss:$16 sps:$4 sm:$0xff]   ;;  %v8526_v6 = vld [vmem:[#allocation8 + $0x1c0] ss:$16 sps:$4 sm:$0xff]  }
 0x14f   :  { %1506 = vmatpush1.bf16.msra.mxu0 %v8430_v7  ;;  %1665 = vmatpush1.bf16.msra.mxu1 %v8433_v8  ;;  %v8529_v7 = vld [vmem:[#allocation8 + $0x1c8] ss:$16 sps:$4 sm:$0xff]   ;;  %v8534_v8 = vld [vmem:[#allocation8 + $0x1e4] ss:$16 sps:$4 sm:$0xff]  }
 0x150   :  { %2487 = vmatprep.subr.bf16.mxu0 %v8444_v9  ;;  %2593 = vmatprep.subr.bf16.mxu1 %v8447_v10  ;;  %v8537_v9 = vld [vmem:[#allocation8 + $0x1ec] ss:$16 sps:$4 sm:$0xff]   ;;  %v8532_v10 = vld [vmem:[#allocation8 + $0x1e0] ss:$16 sps:$4 sm:$0xff]  }
 0x152   :  { %1508 = vmatmul.mubr.bf16.vlgmr.msra.gmra.mrb[0].mxu0 %v8436_v11  ;;  %1667 = vmatmul.mubr.bf16.vlgmr.msra.gmra.mrb[0].mxu1 %v8436_v11  ;;  %v8535_v11 = vld [vmem:[#allocation8 + $0x1e8] ss:$16 sps:$4 sm:$0xff]  }
 0x153   :  { %1517 = vmatprep.mubr.bf16.mxu0 %v8439_v12  ;;  %1676 = vmatprep.mubr.bf16.mxu1 %v8439_v12  ;;  %v8540_v12 = vld [vmem:[#allocation8 + $0x204] ss:$16 sps:$4 sm:$0xff]  }
 0x154   :  { %2488 = vmatpush1.bf16.msra.mxu0 %v8442_v13  ;;  %2594 = vmatpush1.bf16.msra.mxu1 %v8445_v14  ;;  %v8543_v13 = vld [vmem:[#allocation8 + $0x20c] ss:$16 sps:$4 sm:$0xff]  }
 0x155   :  { %2489 = vmatprep.subr.bf16.mxu0 %v8450_v15  ;;  %2595 = vmatprep.subr.bf16.mxu1 %v8453_v16 }
 0x158   :  { %2490 = vmatpush1.bf16.msra.mxu0 %v8448_v17  ;;  %2596 = vmatpush1.bf16.msra.mxu1 %v8451_v18 }
 0x159   :  { %2491 = vmatprep.subr.bf16.mxu0 %v8456_v19  ;;  %2597 = vmatprep.subr.bf16.mxu1 %v8459_v20  ;;  %v8538_v20 = vld [vmem:[#allocation8 + $0x200] ss:$16 sps:$4 sm:$0xff]  }
 0x15a   :  { %1518 = vmatmul.mubr.bf16.gmra.mrb[4].mxu0 %v8441_v21  ;;  %1677 = vmatmul.mubr.bf16.gmra.mrb[4].mxu1 %v8441_v21  ;;  %v8541_v21 = vld [vmem:[#allocation8 + $0x208] ss:$16 sps:$4 sm:$0xff]  }
 0x15c   :  { %2492 = vmatpush1.bf16.msra.mxu0 %v8454_v22  ;;  %2598 = vmatpush1.bf16.msra.mxu1 %v8457_v23 }
 0x15d   :  { %2493 = vmatprep.subr.bf16.mxu0 %v8462_v24  ;;  %2599 = vmatprep.subr.bf16.mxu1 %v8465_v25 }
 0x160   :  { %2494 = vmatpush1.bf16.msra.mxu0 %v8460_v26  ;;  %2600 = vmatpush1.bf16.msra.mxu1 %v8463_v27  ;;  %v8546_v26 = vld [vmem:[#allocation8 + $0x224] ss:$16 sps:$4 sm:$0xff]   ;;  %v8549_v27 = vld [vmem:[#allocation8 + $0x22c] ss:$16 sps:$4 sm:$0xff]  }
 0x161   :  { %2495 = vmatprep.subr.bf16.mxu0 %v8468_v28  ;;  %2601 = vmatprep.subr.bf16.mxu1 %v8471_v29 }
 0x164   :  { %2496 = vmatpush1.bf16.msra.mxu0 %v8466_v30  ;;  %2602 = vmatpush1.bf16.msra.mxu1 %v8469_v31 }
 0x165   :  { %2497 = vmatprep.subr.bf16.mxu0 %v8474_v32  ;;  %2603 = vmatprep.subr.bf16.mxu1 %v8477_v33  ;;  %v8544_v32 = vld [vmem:[#allocation8 + $0x220] ss:$16 sps:$4 sm:$0xff]   ;;  %v8547_v33 = vld [vmem:[#allocation8 + $0x228] ss:$16 sps:$4 sm:$0xff]  }
 0x168   :  { %2498 = vmatpush1.bf16.msra.mxu0 %v8472_v34  ;;  %2604 = vmatpush1.bf16.msra.mxu1 %v8475_v35 }
 0x169   :  { %2499 = vmatprep.subr.bf16.mxu0 %v8480_v36  ;;  %2605 = vmatprep.subr.bf16.mxu1 %v8483_v37  ;;  %v8552_v36 = vld [vmem:[#allocation8 + $0x244] ss:$16 sps:$4 sm:$0xff]   ;;  %v8555_v37 = vld [vmem:[#allocation8 + $0x24c] ss:$16 sps:$4 sm:$0xff]  }
 0x16c   :  { %2500 = vmatpush1.bf16.msra.mxu0 %v8478_v38  ;;  %2606 = vmatpush1.bf16.msra.mxu1 %v8481_v39 }
 0x16d   :  { %2501 = vmatprep.subr.bf16.mxu0 %v8486_v40  ;;  %2607 = vmatprep.subr.bf16.mxu1 %v8489_v41 }
 0x170   :  { %2502 = vmatpush1.bf16.msra.mxu0 %v8484_v42  ;;  %2608 = vmatpush1.bf16.msra.mxu1 %v8487_v43 }
 0x171   :  { %2503 = vmatprep.subr.bf16.mxu0 %v8492_v44  ;;  %2609 = vmatprep.subr.bf16.mxu1 %v8495_v45 }
 0x174   :  { %2504 = vmatpush1.bf16.msra.mxu0 %v8490_v46  ;;  %2610 = vmatpush1.bf16.msra.mxu1 %v8493_v47  ;;  %v8550_v46 = vld [vmem:[#allocation8 + $0x240] ss:$16 sps:$4 sm:$0xff]   ;;  %v8553_v47 = vld [vmem:[#allocation8 + $0x248] ss:$16 sps:$4 sm:$0xff]  }
 0x175   :  { %2505 = vmatprep.subr.bf16.mxu0 %v8498_v48  ;;  %2611 = vmatprep.subr.bf16.mxu1 %v8501_v49  ;;  %v8558_v48 = vld [vmem:[#allocation8 + $0x264] ss:$16 sps:$4 sm:$0xff]   ;;  %v8561_v49 = vld [vmem:[#allocation8 + $0x26c] ss:$16 sps:$4 sm:$0xff]  }
 0x178   :  { %2506 = vmatpush1.bf16.msra.mxu0 %v8496_v50  ;;  %2612 = vmatpush1.bf16.msra.mxu1 %v8499_v51  ;;  %v8556_v50 = vld [vmem:[#allocation8 + $0x260] ss:$16 sps:$4 sm:$0xff]   ;;  %v8559_v51 = vld [vmem:[#allocation8 + $0x268] ss:$16 sps:$4 sm:$0xff]  }
 0x179   :  { %2507 = vmatprep.subr.bf16.mxu0 %v8504_v52  ;;  %2613 = vmatprep.subr.bf16.mxu1 %v8507_v53  ;;  %v8564_v52 = vld [vmem:[#allocation8 + $0x284] ss:$16 sps:$4 sm:$0xff]   ;;  %v8567_v53 = vld [vmem:[#allocation8 + $0x28c] ss:$16 sps:$4 sm:$0xff]  }
 0x17c   :  { %2508 = vmatpush1.bf16.msra.mxu0 %v8502_v54  ;;  %2614 = vmatpush1.bf16.msra.mxu1 %v8505_v55  ;;  %v8562_v54 = vld [vmem:[#allocation8 + $0x280] ss:$16 sps:$4 sm:$0xff]   ;;  %v8565_v55 = vld [vmem:[#allocation8 + $0x288] ss:$16 sps:$4 sm:$0xff]  }
 0x17d   :  { %2509 = vmatprep.subr.bf16.mxu0 %v8510_v56  ;;  %2615 = vmatprep.subr.bf16.mxu1 %v8513_v57  ;;  %v8570_v56 = vld [vmem:[#allocation8 + $0x2a4] ss:$16 sps:$4 sm:$0xff]   ;;  %v8573_v57 = vld [vmem:[#allocation8 + $0x2ac] ss:$16 sps:$4 sm:$0xff]  }
 0x180   :  { %2510 = vmatpush1.bf16.msra.mxu0 %v8508_v58  ;;  %2616 = vmatpush1.bf16.msra.mxu1 %v8511_v59  ;;  %v8568_v58 = vld [vmem:[#allocation8 + $0x2a0] ss:$16 sps:$4 sm:$0xff]   ;;  %v8571_v59 = vld [vmem:[#allocation8 + $0x2a8] ss:$16 sps:$4 sm:$0xff]  }
 0x181   :  { %2511 = vmatprep.subr.bf16.mxu0 %v8516_v60  ;;  %2617 = vmatprep.subr.bf16.mxu1 %v8519_v61  ;;  %v8576_v60 = vld [vmem:[#allocation8 + $0x2c4] ss:$16 sps:$4 sm:$0xff]   ;;  %v8579_v61 = vld [vmem:[#allocation8 + $0x2cc] ss:$16 sps:$4 sm:$0xff]  }
 0x184   :  { %2512 = vmatpush1.bf16.msra.mxu0 %v8514_v62  ;;  %2618 = vmatpush1.bf16.msra.mxu1 %v8517_v63  ;;  %v8574_v62 = vld [vmem:[#allocation8 + $0x2c0] ss:$16 sps:$4 sm:$0xff]   ;;  %v8577_v63 = vld [vmem:[#allocation8 + $0x2c8] ss:$16 sps:$4 sm:$0xff]  }
 0x185   :  { %2513 = vmatprep.subr.bf16.mxu0 %v8522_v0  ;;  %2619 = vmatprep.subr.bf16.mxu1 %v8525_v1  ;;  %v8582_v0 = vld [vmem:[#allocation8 + $0x2e4] ss:$16 sps:$4 sm:$0xff]   ;;  %v8585_v1 = vld [vmem:[#allocation8 + $0x2ec] ss:$16 sps:$4 sm:$0xff]  }
 0x188   :  { %2514 = vmatpush1.bf16.msra.mxu0 %v8520_v2  ;;  %2620 = vmatpush1.bf16.msra.mxu1 %v8523_v3  ;;  %v8580_v2 = vld [vmem:[#allocation8 + $0x2e0] ss:$16 sps:$4 sm:$0xff]   ;;  %v8583_v3 = vld [vmem:[#allocation8 + $0x2e8] ss:$16 sps:$4 sm:$0xff]  }
 0x189   :  { %2515 = vmatprep.subr.bf16.mxu0 %v8528_v4  ;;  %2621 = vmatprep.subr.bf16.mxu1 %v8531_v5  ;;  %v8588_v4 = vld [vmem:[#allocation8 + $0x304] ss:$16 sps:$4 sm:$0xff]   ;;  %v8591_v5 = vld [vmem:[#allocation8 + $0x30c] ss:$16 sps:$4 sm:$0xff]  }
 0x18c   :  { %2516 = vmatpush1.bf16.msra.mxu0 %v8526_v6  ;;  %2622 = vmatpush1.bf16.msra.mxu1 %v8529_v7  ;;  %v8586_v6 = vld [vmem:[#allocation8 + $0x300] ss:$16 sps:$4 sm:$0xff]   ;;  %v8589_v7 = vld [vmem:[#allocation8 + $0x308] ss:$16 sps:$4 sm:$0xff]  }
 0x18d   :  { %2517 = vmatprep.subr.bf16.mxu0 %v8534_v8  ;;  %2623 = vmatprep.subr.bf16.mxu1 %v8537_v9  ;;  %v8594_v8 = vld [vmem:[#allocation8 + $0x324] ss:$16 sps:$4 sm:$0xff]   ;;  %v8597_v9 = vld [vmem:[#allocation8 + $0x32c] ss:$16 sps:$4 sm:$0xff]  }
 0x190   :  { %2518 = vmatpush1.bf16.msra.mxu0 %v8532_v10  ;;  %2624 = vmatpush1.bf16.msra.mxu1 %v8535_v11  ;;  %v8592_v10 = vld [vmem:[#allocation8 + $0x320] ss:$16 sps:$4 sm:$0xff]   ;;  %v8595_v11 = vld [vmem:[#allocation8 + $0x328] ss:$16 sps:$4 sm:$0xff]  }
 0x191   :  { %2540 = vmatprep.subr.bf16.mxu0 %v8540_v12  ;;  %2646 = vmatprep.subr.bf16.mxu1 %v8543_v13  ;;  %v8600_v12 = vld [vmem:[#allocation8 + $0x344] ss:$16 sps:$4 sm:$0xff]   ;;  %v8603_v13 = vld [vmem:[#allocation8 + $0x34c] ss:$16 sps:$4 sm:$0xff]  }
 0x225   :  { %v1509_v14 = vpop.f32.mrb[0].mxu0  ;;  %v1668_v15 = vpop.f32.mrb[0].mxu1 }
 0x226   :  { %v1511_v16 = vpop.f32.mrb[1].mxu0  ;;  %v1670_v17 = vpop.f32.mrb[1].mxu1 }
 0x227   :  { %v1513_v18 = vpop.f32.mrb[2].mxu0  ;;  %v1672_v19 = vpop.f32.mrb[2].mxu1 }
 0x228   :  { %v1690_v22 = vpack.c.bf16 %v1513_v18, %v1509_v14  ;;  %v9864_v23 = vpack.c.bf16 %v1672_v19, %v1668_v15  ;;  %v1515_v24 = vpop.f32.mrb[3].mxu0  ;;  %v1674_v25 = vpop.f32.mrb[3].mxu1  ;;  %v8598_v14 = vld [vmem:[#allocation8 + $0x340] ss:$16 sps:$4 sm:$0xff]   ;;  %v8601_v15 = vld [vmem:[#allocation8 + $0x348] ss:$16 sps:$4 sm:$0xff]  }
 0x229   :  { %v1691_v28 = vpack.c.bf16 %v1515_v24, %v1511_v16  ;;  %v1693_v29 = vpack.c.bf16 %v1674_v25, %v1670_v17  ;;  %v8606_v16 = vld [vmem:[#allocation8 + $0x364] ss:$16 sps:$4 sm:$0xff]   ;;  %v8609_v17 = vld [vmem:[#allocation8 + $0x36c] ss:$16 sps:$4 sm:$0xff]   ;;  %v8604_v18 = vld [vmem:[#allocation8 + $0x360] ss:$16 sps:$4 sm:$0xff]  }
 0x22a   :  { %v8607_v19 = vld [vmem:[#allocation8 + $0x368] ss:$16 sps:$4 sm:$0xff]   ;;  %v8618_v25 = vld [vmem:[#allocation8 + $0x3a4] ss:$16 sps:$4 sm:$0xff]  }
 0x22b   :  { %2519 = vmatprep.mubr.bf16.mxu0 %v1691_v28  ;;  %2625 = vmatprep.mubr.bf16.mxu1 %v1691_v28  ;;  %v8613_v24 = vld [vmem:[#allocation8 + $0x388] ss:$16 sps:$4 sm:$0xff]  }
 0x22c   :  { %2520 = vmatmul.mubr.bf16.vlgmr.msra.gmra.mrb[8].mxu0 %v1690_v22  ;;  %2626 = vmatmul.mubr.bf16.vlgmr.msra.gmra.mrb[8].mxu1 %v1690_v22  ;;  %v8610_v22 = vld [vmem:[#allocation8 + $0x380] ss:$16 sps:$4 sm:$0xff]   ;;  %v8619_v28 = vld [vmem:[#allocation8 + $0x3a8] ss:$16 sps:$4 sm:$0xff]  }
 0x22d   :  { %2541 = vmatpush1.bf16.msra.mxu0 %v8538_v20  ;;  %2647 = vmatpush1.bf16.msra.mxu1 %v8541_v21  ;;  %v1519_v30 = vpop.f32.mrb[4].mxu0  ;;  %v1678_v31 = vpop.f32.mrb[4].mxu1  ;;  %v8612_v20 = vld [vmem:[#allocation8 + $0x384] ss:$16 sps:$4 sm:$0xff]   ;;  %v8615_v21 = vld [vmem:[#allocation8 + $0x38c] ss:$16 sps:$4 sm:$0xff]  }
 0x22e   :  { %v1521_v34 = vpop.f32.mrb[5].mxu0  ;;  %v1680_v35 = vpop.f32.mrb[5].mxu1  ;;  %2542 = vmatprep.subr.bf16.mxu0 %v8546_v26  ;;  %2648 = vmatprep.subr.bf16.mxu1 %v8549_v27  ;;  %v8621_v26 = vld [vmem:[#allocation8 + $0x3ac] ss:$16 sps:$4 sm:$0xff]   ;;  %v8616_v27 = vld [vmem:[#allocation8 + $0x3a0] ss:$16 sps:$4 sm:$0xff]  }
 0x22f   :  { %v1523_v38 = vpop.f32.mrb[6].mxu0  ;;  %v1682_v39 = vpop.f32.mrb[6].mxu1 }
 0x230   :  { %v1694_v40 = vpack.c.bf16 %v1523_v38, %v1519_v30  ;;  %v9866_v41 = vpack.c.bf16 %v1682_v39, %v1678_v31  ;;  %v1525_v42 = vpop.f32.mrb[7].mxu0  ;;  %v1684_v43 = vpop.f32.mrb[7].mxu1  ;;  %v8627_v30 = vld [vmem:[#allocation8 + $0x3cc] ss:$16 sps:$4 sm:$0xff]   ;;  %v8622_v31 = vld [vmem:[#allocation8 + $0x3c0] ss:$16 sps:$4 sm:$0xff]  }
 0x231   :  { %v1695_v44 = vpack.c.bf16 %v1525_v42, %v1521_v34  ;;  %v9868_v45 = vpack.c.bf16 %v1684_v43, %v1680_v35  ;;  %2543 = vmatpush1.bf16.msra.mxu0 %v8544_v32  ;;  %2649 = vmatpush1.bf16.msra.mxu1 %v8547_v33  ;;  %v8625_v32 = vld [vmem:[#allocation8 + $0x3c8] ss:$16 sps:$4 sm:$0xff]   ;;  %v8630_v33 = vld [vmem:[#allocation8 + $0x3e4] ss:$16 sps:$4 sm:$0xff]   ;;  %v8633_v34 = vld [vmem:[#allocation8 + $0x3ec] ss:$16 sps:$4 sm:$0xff]  }
 0x232   :  { %2544 = vmatprep.subr.bf16.mxu0 %v8552_v36  ;;  %2650 = vmatprep.subr.bf16.mxu1 %v8555_v37  ;;  %v8628_v35 = vld [vmem:[#allocation8 + $0x3e0] ss:$16 sps:$4 sm:$0xff]   ;;  %v8631_v36 = vld [vmem:[#allocation8 + $0x3e8] ss:$16 sps:$4 sm:$0xff]   ;;  %v8636_v37 = vld [vmem:[#allocation10 + $0x4] ss:$16 sps:$4 sm:$0xff]  }
 0x233   :  { %2529 = vmatprep.mubr.bf16.mxu0 %v1695_v44  ;;  %2635 = vmatprep.mubr.bf16.mxu1 %v1695_v44  ;;  %v8639_v38 = vld [vmem:[#allocation10 + $0xc] ss:$16 sps:$4 sm:$0xff]   ;;  %v8634_v39 = vld [vmem:[#allocation10] ss:$16 sps:$4 sm:$0xff]   ;;  %v8642_v42 = vld [vmem:[#allocation10 + $0x24] ss:$16 sps:$4 sm:$0xff]  }
 0x234   :  { %2530 = vmatmul.mubr.bf16.gmra.mrb[12].mxu0 %v1694_v40  ;;  %2636 = vmatmul.mubr.bf16.gmra.mrb[12].mxu1 %v1694_v40  ;;  %v8637_v40 = vld [vmem:[#allocation10 + $0x8] ss:$16 sps:$4 sm:$0xff]   ;;  %v8645_v43 = vld [vmem:[#allocation10 + $0x2c] ss:$16 sps:$4 sm:$0xff]   ;;  %v8640_v44 = vld [vmem:[#allocation10 + $0x20] ss:$16 sps:$4 sm:$0xff]  }
 0x235   :  { %2545 = vmatpush1.bf16.msra.mxu0 %v8550_v46  ;;  %2651 = vmatpush1.bf16.msra.mxu1 %v8553_v47  ;;  %v8643_v46 = vld [vmem:[#allocation10 + $0x28] ss:$16 sps:$4 sm:$0xff]   ;;  %v8648_v47 = vld [vmem:[#allocation10 + $0x44] ss:$16 sps:$4 sm:$0xff]  }
 0x236   :  { %2572 = vmatprep.mubr.bf16.mxu0 %v1693_v29  ;;  %2678 = vmatprep.mubr.bf16.mxu1 %v1693_v29  ;;  %v8624_v29 = vld [vmem:[#allocation8 + $0x3c4] ss:$16 sps:$4 sm:$0xff]  }
 0x237   :  { %2546 = vmatprep.subr.bf16.mxu0 %v8558_v48  ;;  %2652 = vmatprep.subr.bf16.mxu1 %v8561_v49  ;;  %v8651_v48 = vld [vmem:[#allocation10 + $0x4c] ss:$16 sps:$4 sm:$0xff]   ;;  %v8646_v49 = vld [vmem:[#allocation10 + $0x40] ss:$16 sps:$4 sm:$0xff]  }
 0x239   :  { %2547 = vmatpush1.bf16.msra.mxu0 %v8556_v50  ;;  %2653 = vmatpush1.bf16.msra.mxu1 %v8559_v51  ;;  %v8649_v50 = vld [vmem:[#allocation10 + $0x48] ss:$16 sps:$4 sm:$0xff]   ;;  %v8654_v51 = vld [vmem:[#allocation10 + $0x64] ss:$16 sps:$4 sm:$0xff]  }
 0x23a   :  { %2548 = vmatprep.subr.bf16.mxu0 %v8564_v52  ;;  %2654 = vmatprep.subr.bf16.mxu1 %v8567_v53  ;;  %v8655_v52 = vld [vmem:[#allocation10 + $0x68] ss:$16 sps:$4 sm:$0xff]   ;;  %v8660_v53 = vld [vmem:[#allocation10 + $0x84] ss:$16 sps:$4 sm:$0xff]  }
 0x23d   :  { %2549 = vmatpush1.bf16.msra.mxu0 %v8562_v54  ;;  %2655 = vmatpush1.bf16.msra.mxu1 %v8565_v55  ;;  %v8663_v54 = vld [vmem:[#allocation10 + $0x8c] ss:$16 sps:$4 sm:$0xff]   ;;  %v8658_v55 = vld [vmem:[#allocation10 + $0x80] ss:$16 sps:$4 sm:$0xff]  }
 0x23e   :  { %2550 = vmatprep.subr.bf16.mxu0 %v8570_v56  ;;  %2656 = vmatprep.subr.bf16.mxu1 %v8573_v57  ;;  %v8661_v56 = vld [vmem:[#allocation10 + $0x88] ss:$16 sps:$4 sm:$0xff]   ;;  %v8666_v57 = vld [vmem:[#allocation10 + $0xa4] ss:$16 sps:$4 sm:$0xff]  }
 0x241   :  { %2551 = vmatpush1.bf16.msra.mxu0 %v8568_v58  ;;  %2657 = vmatpush1.bf16.msra.mxu1 %v8571_v59  ;;  %v8669_v58 = vld [vmem:[#allocation10 + $0xac] ss:$16 sps:$4 sm:$0xff]   ;;  %v8664_v59 = vld [vmem:[#allocation10 + $0xa0] ss:$16 sps:$4 sm:$0xff]  }
 0x242   :  { %2552 = vmatprep.subr.bf16.mxu0 %v8576_v60  ;;  %2658 = vmatprep.subr.bf16.mxu1 %v8579_v61  ;;  %v8672_v60 = vld [vmem:[#allocation10 + $0xc4] ss:$16 sps:$4 sm:$0xff]   ;;  %v8675_v61 = vld [vmem:[#allocation10 + $0xcc] ss:$16 sps:$4 sm:$0xff]  }
 0x245   :  { %2553 = vmatpush1.bf16.msra.mxu0 %v8574_v62  ;;  %2659 = vmatpush1.bf16.msra.mxu1 %v8577_v63  ;;  %v8670_v62 = vld [vmem:[#allocation10 + $0xc0] ss:$16 sps:$4 sm:$0xff]   ;;  %v8673_v63 = vld [vmem:[#allocation10 + $0xc8] ss:$16 sps:$4 sm:$0xff]  }
 0x246   :  { %2554 = vmatprep.subr.bf16.mxu0 %v8582_v0  ;;  %2660 = vmatprep.subr.bf16.mxu1 %v8585_v1  ;;  %v8678_v0 = vld [vmem:[#allocation10 + $0xe4] ss:$16 sps:$4 sm:$0xff]   ;;  %v8681_v1 = vld [vmem:[#allocation10 + $0xec] ss:$16 sps:$4 sm:$0xff]  }
 0x249   :  { %2555 = vmatpush1.bf16.msra.mxu0 %v8580_v2  ;;  %2661 = vmatpush1.bf16.msra.mxu1 %v8583_v3  ;;  %v8676_v2 = vld [vmem:[#allocation10 + $0xe0] ss:$16 sps:$4 sm:$0xff]   ;;  %v8679_v3 = vld [vmem:[#allocation10 + $0xe8] ss:$16 sps:$4 sm:$0xff]  }
 0x24a   :  { %2556 = vmatprep.subr.bf16.mxu0 %v8588_v4  ;;  %2662 = vmatprep.subr.bf16.mxu1 %v8591_v5  ;;  %v8684_v4 = vld [vmem:[#allocation10 + $0x104] ss:$16 sps:$4 sm:$0xff]   ;;  %v8687_v5 = vld [vmem:[#allocation10 + $0x10c] ss:$16 sps:$4 sm:$0xff]  }
 0x24d   :  { %2557 = vmatpush1.bf16.msra.mxu0 %v8586_v6  ;;  %2663 = vmatpush1.bf16.msra.mxu1 %v8589_v7  ;;  %v8682_v6 = vld [vmem:[#allocation10 + $0x100] ss:$16 sps:$4 sm:$0xff]   ;;  %v8685_v7 = vld [vmem:[#allocation10 + $0x108] ss:$16 sps:$4 sm:$0xff]  }
 0x24e   :  { %2558 = vmatprep.subr.bf16.mxu0 %v8594_v8  ;;  %2664 = vmatprep.subr.bf16.mxu1 %v8597_v9  ;;  %v8690_v8 = vld [vmem:[#allocation10 + $0x124] ss:$16 sps:$4 sm:$0xff]   ;;  %v8693_v9 = vld [vmem:[#allocation10 + $0x12c] ss:$16 sps:$4 sm:$0xff]  }
 0x251   :  { %2559 = vmatpush1.bf16.msra.mxu0 %v8592_v10  ;;  %2665 = vmatpush1.bf16.msra.mxu1 %v8595_v11  ;;  %v8688_v10 = vld [vmem:[#allocation10 + $0x120] ss:$16 sps:$4 sm:$0xff]   ;;  %v8691_v11 = vld [vmem:[#allocation10 + $0x128] ss:$16 sps:$4 sm:$0xff]  }
 0x252   :  { %2560 = vmatprep.subr.bf16.mxu0 %v8600_v12  ;;  %2666 = vmatprep.subr.bf16.mxu1 %v8603_v13  ;;  %v8696_v12 = vld [vmem:[#allocation10 + $0x144] ss:$16 sps:$4 sm:$0xff]   ;;  %v8699_v13 = vld [vmem:[#allocation10 + $0x14c] ss:$16 sps:$4 sm:$0xff]  }
 0x255   :  { %2561 = vmatpush1.bf16.msra.mxu0 %v8598_v14  ;;  %2667 = vmatpush1.bf16.msra.mxu1 %v8601_v15  ;;  %v8694_v14 = vld [vmem:[#allocation10 + $0x140] ss:$16 sps:$4 sm:$0xff]   ;;  %v8697_v15 = vld [vmem:[#allocation10 + $0x148] ss:$16 sps:$4 sm:$0xff]  }
 0x256   :  { %2562 = vmatprep.subr.bf16.mxu0 %v8606_v16  ;;  %2668 = vmatprep.subr.bf16.mxu1 %v8609_v17  ;;  %v8702_v16 = vld [vmem:[#allocation10 + $0x164] ss:$16 sps:$4 sm:$0xff]   ;;  %v8705_v17 = vld [vmem:[#allocation10 + $0x16c] ss:$16 sps:$4 sm:$0xff]  }
 0x259   :  { %2563 = vmatpush1.bf16.msra.mxu0 %v8604_v18  ;;  %2669 = vmatpush1.bf16.msra.mxu1 %v8607_v19  ;;  %v8700_v18 = vld [vmem:[#allocation10 + $0x160] ss:$16 sps:$4 sm:$0xff]   ;;  %v8703_v19 = vld [vmem:[#allocation10 + $0x168] ss:$16 sps:$4 sm:$0xff]  }
 0x25a   :  { %2564 = vmatprep.subr.bf16.mxu0 %v8612_v20  ;;  %2670 = vmatprep.subr.bf16.mxu1 %v8615_v21  ;;  %v8708_v20 = vld [vmem:[#allocation10 + $0x184] ss:$16 sps:$4 sm:$0xff]   ;;  %v8711_v21 = vld [vmem:[#allocation10 + $0x18c] ss:$16 sps:$4 sm:$0xff]  }
 0x25d   :  { %2565 = vmatpush1.bf16.msra.mxu0 %v8610_v22  ;;  %2671 = vmatpush1.bf16.msra.mxu1 %v8613_v24  ;;  %v8706_v22 = vld [vmem:[#allocation10 + $0x180] ss:$16 sps:$4 sm:$0xff]   ;;  %v8709_v24 = vld [vmem:[#allocation10 + $0x188] ss:$16 sps:$4 sm:$0xff]  }
 0x25e   :  { %2566 = vmatprep.subr.bf16.mxu0 %v8618_v25  ;;  %2672 = vmatprep.subr.bf16.mxu1 %v8621_v26  ;;  %v8714_v25 = vld [vmem:[#allocation10 + $0x1a4] ss:$16 sps:$4 sm:$0xff]   ;;  %v8717_v26 = vld [vmem:[#allocation10 + $0x1ac] ss:$16 sps:$4 sm:$0xff]  }
 0x261   :  { %2567 = vmatpush1.bf16.msra.mxu0 %v8616_v27  ;;  %2673 = vmatpush1.bf16.msra.mxu1 %v8619_v28  ;;  %v8712_v27 = vld [vmem:[#allocation10 + $0x1a0] ss:$16 sps:$4 sm:$0xff]   ;;  %v8715_v28 = vld [vmem:[#allocation10 + $0x1a8] ss:$16 sps:$4 sm:$0xff]  }
 0x262   :  { %2568 = vmatprep.subr.bf16.mxu0 %v8624_v29  ;;  %2674 = vmatprep.subr.bf16.mxu1 %v8627_v30  ;;  %v8720_v29 = vld [vmem:[#allocation10 + $0x1c4] ss:$16 sps:$4 sm:$0xff]   ;;  %v8723_v30 = vld [vmem:[#allocation10 + $0x1cc] ss:$16 sps:$4 sm:$0xff]  }
 0x265   :  { %2569 = vmatpush1.bf16.msra.mxu0 %v8622_v31  ;;  %2675 = vmatpush1.bf16.msra.mxu1 %v8625_v32  ;;  %v8718_v31 = vld [vmem:[#allocation10 + $0x1c0] ss:$16 sps:$4 sm:$0xff]   ;;  %v8721_v32 = vld [vmem:[#allocation10 + $0x1c8] ss:$16 sps:$4 sm:$0xff]  }
 0x266   :  { %2570 = vmatprep.subr.bf16.mxu0 %v8630_v33  ;;  %2676 = vmatprep.subr.bf16.mxu1 %v8633_v34  ;;  %v8726_v33 = vld [vmem:[#allocation10 + $0x1e4] ss:$16 sps:$4 sm:$0xff]   ;;  %v8729_v34 = vld [vmem:[#allocation10 + $0x1ec] ss:$16 sps:$4 sm:$0xff]  }
 0x269   :  { %2571 = vmatpush1.bf16.msra.mxu0 %v8628_v35  ;;  %2677 = vmatpush1.bf16.msra.mxu1 %v8631_v36  ;;  %v8724_v35 = vld [vmem:[#allocation10 + $0x1e0] ss:$16 sps:$4 sm:$0xff]   ;;  %v8727_v36 = vld [vmem:[#allocation10 + $0x1e8] ss:$16 sps:$4 sm:$0xff]  }
 0x26a   :  { %3512 = vmatprep.subr.bf16.mxu0 %v8636_v37  ;;  %3618 = vmatprep.subr.bf16.mxu1 %v8639_v38  ;;  %v8732_v37 = vld [vmem:[#allocation10 + $0x204] ss:$16 sps:$4 sm:$0xff]   ;;  %v8735_v38 = vld [vmem:[#allocation10 + $0x20c] ss:$16 sps:$4 sm:$0xff]  }
 0x26c   :  { %2573 = vmatmul.mubr.bf16.vlgmr.msra.gmra.mrb[8].mxu0 %v9864_v23  ;;  %2679 = vmatmul.mubr.bf16.vlgmr.msra.gmra.mrb[8].mxu1 %v9864_v23  ;;  %v8657_v23 = vld [vmem:[#allocation10 + $0x6c] ss:$16 sps:$4 sm:$0xff]  }
 0x26d   :  { %2582 = vmatprep.mubr.bf16.mxu0 %v9868_v45  ;;  %2688 = vmatprep.mubr.bf16.mxu1 %v9868_v45  ;;  %v8652_v45 = vld [vmem:[#allocation10 + $0x60] ss:$16 sps:$4 sm:$0xff]  }
 0x26e   :  { %3513 = vmatpush1.bf16.msra.mxu0 %v8634_v39  ;;  %3619 = vmatpush1.bf16.msra.mxu1 %v8637_v40  ;;  %v1827_v39 = vlaneseq }
 0x26f   :  { %3514 = vmatprep.subr.bf16.mxu0 %v8642_v42  ;;  %3620 = vmatprep.subr.bf16.mxu1 %v8645_v43 }
 0x270   :  { %v1828_v40 = vshrl.u32 %v1827_v39, 7 }
 0x272   :  { %3515 = vmatpush1.bf16.msra.mxu0 %v8640_v44  ;;  %3621 = vmatpush1.bf16.msra.mxu1 %v8643_v46  ;;  %v9876_v42 = vsub.s32 0, %v1828_v40  ;;  %v9878_v43 = vsub.s32 2, %v1828_v40  ;;  %v1687_v44 = vld [vmem:[%s10152_s8] ss:$4 sm:$0xf]  ;;  %v9883_v46 = vsub.s32 1, %v1828_v40 }
 0x273   :  { %3516 = vmatprep.subr.bf16.mxu0 %v8648_v47  ;;  %3622 = vmatprep.subr.bf16.mxu1 %v8651_v48  ;;  %v9885_v47 = vsub.s32 3, %v1828_v40 }
 0x274   :  { %2583 = vmatmul.mubr.bf16.gmra.mrb[12].mxu0 %v9866_v41  ;;  %2689 = vmatmul.mubr.bf16.gmra.mrb[12].mxu1 %v9866_v41  ;;  %v8667_v41 = vld [vmem:[#allocation10 + $0xa8] ss:$16 sps:$4 sm:$0xff]   ;;  %v1830_v48 = vrot.slane %v1687_v44, %v9876_v42 }
 0x276   :  { %3517 = vmatpush1.bf16.msra.mxu0 %v8646_v49  ;;  %3623 = vmatpush1.bf16.msra.mxu1 %v8649_v50  ;;  %v1838_v49 = vrot.slane %v1687_v44, %v9878_v43  ;;  %v1834_v50 = vrot.slane %v1687_v44, %v9883_v46 }
 0x277   :  { %3518 = vmatprep.subr.bf16.mxu0 %v8654_v51  ;;  %3624 = vmatprep.subr.bf16.mxu1 %v8657_v23  ;;  %v1842_v51 = vrot.slane %v1687_v44, %v9885_v47  ;;  %v8747_v44 = vld [vmem:[#allocation10 + $0x24c] ss:$16 sps:$4 sm:$0xff]  }
 0x27a   :  { %3519 = vmatpush1.bf16.msra.mxu0 %v8652_v45  ;;  %3625 = vmatpush1.bf16.msra.mxu1 %v8655_v52 }
 0x27b   :  { %3520 = vmatprep.subr.bf16.mxu0 %v8660_v53  ;;  %3626 = vmatprep.subr.bf16.mxu1 %v8663_v54 }
 0x27e   :  { %3521 = vmatpush1.bf16.msra.mxu0 %v8658_v55  ;;  %3627 = vmatpush1.bf16.msra.mxu1 %v8661_v56 }
 0x27f   :  { %3522 = vmatprep.subr.bf16.mxu0 %v8666_v57  ;;  %3628 = vmatprep.subr.bf16.mxu1 %v8669_v58 }
 0x282   :  { %3523 = vmatpush1.bf16.msra.mxu0 %v8664_v59  ;;  %3629 = vmatpush1.bf16.msra.mxu1 %v8667_v41 }
 0x283   :  { %3524 = vmatprep.subr.bf16.mxu0 %v8672_v60  ;;  %3630 = vmatprep.subr.bf16.mxu1 %v8675_v61 }
 0x286   :  { %3525 = vmatpush1.bf16.msra.mxu0 %v8670_v62  ;;  %3631 = vmatpush1.bf16.msra.mxu1 %v8673_v63 }
 0x287   :  { %3526 = vmatprep.subr.bf16.mxu0 %v8678_v0  ;;  %3632 = vmatprep.subr.bf16.mxu1 %v8681_v1 }
 0x28a   :  { %3527 = vmatpush1.bf16.msra.mxu0 %v8676_v2  ;;  %3633 = vmatpush1.bf16.msra.mxu1 %v8679_v3 }
 0x28b   :  { %3528 = vmatprep.subr.bf16.mxu0 %v8684_v4  ;;  %3634 = vmatprep.subr.bf16.mxu1 %v8687_v5 }
 0x28e   :  { %3529 = vmatpush1.bf16.msra.mxu0 %v8682_v6  ;;  %3635 = vmatpush1.bf16.msra.mxu1 %v8685_v7 }
 0x28f   :  { %3530 = vmatprep.subr.bf16.mxu0 %v8690_v8  ;;  %3636 = vmatprep.subr.bf16.mxu1 %v8693_v9 }
 0x292   :  { %3531 = vmatpush1.bf16.msra.mxu0 %v8688_v10  ;;  %3637 = vmatpush1.bf16.msra.mxu1 %v8691_v11 }
 0x293   :  { %3532 = vmatprep.subr.bf16.mxu0 %v8696_v12  ;;  %3638 = vmatprep.subr.bf16.mxu1 %v8699_v13 }
 0x296   :  { %3533 = vmatpush1.bf16.msra.mxu0 %v8694_v14  ;;  %3639 = vmatpush1.bf16.msra.mxu1 %v8697_v15  ;;  %v8730_v15 = vld [vmem:[#allocation10 + $0x200] ss:$16 sps:$4 sm:$0xff]  }
 0x297   :  { %3534 = vmatprep.subr.bf16.mxu0 %v8702_v16  ;;  %3640 = vmatprep.subr.bf16.mxu1 %v8705_v17  ;;  %v8733_v16 = vld [vmem:[#allocation10 + $0x208] ss:$16 sps:$4 sm:$0xff]  }
 0x29a   :  { %3535 = vmatpush1.bf16.msra.mxu0 %v8700_v18  ;;  %3641 = vmatpush1.bf16.msra.mxu1 %v8703_v19 }
 0x29b   :  { %3536 = vmatprep.subr.bf16.mxu0 %v8708_v20  ;;  %3642 = vmatprep.subr.bf16.mxu1 %v8711_v21  ;;  %v8738_v21 = vld [vmem:[#allocation10 + $0x224] ss:$16 sps:$4 sm:$0xff]  }
 0x29e   :  { %3537 = vmatpush1.bf16.msra.mxu0 %v8706_v22  ;;  %3643 = vmatpush1.bf16.msra.mxu1 %v8709_v24  ;;  %v8741_v22 = vld [vmem:[#allocation10 + $0x22c] ss:$16 sps:$4 sm:$0xff]  }
 0x29f   :  { %3538 = vmatprep.subr.bf16.mxu0 %v8714_v25  ;;  %3644 = vmatprep.subr.bf16.mxu1 %v8717_v26 }
 0x2a2   :  { %3539 = vmatpush1.bf16.msra.mxu0 %v8712_v27  ;;  %3645 = vmatpush1.bf16.msra.mxu1 %v8715_v28 }
 0x2a3   :  { %3540 = vmatprep.subr.bf16.mxu0 %v8720_v29  ;;  %3646 = vmatprep.subr.bf16.mxu1 %v8723_v30 }
 0x2a6   :  { %3541 = vmatpush1.bf16.msra.mxu0 %v8718_v31  ;;  %3647 = vmatpush1.bf16.msra.mxu1 %v8721_v32 }
 0x2a7   :  { %3542 = vmatprep.subr.bf16.mxu0 %v8726_v33  ;;  %3648 = vmatprep.subr.bf16.mxu1 %v8729_v34  ;;  %v8736_v34 = vld [vmem:[#allocation10 + $0x220] ss:$16 sps:$4 sm:$0xff]  }
 0x2aa   :  { %3543 = vmatpush1.bf16.msra.mxu0 %v8724_v35  ;;  %3649 = vmatpush1.bf16.msra.mxu1 %v8727_v36  ;;  %v8739_v35 = vld [vmem:[#allocation10 + $0x228] ss:$16 sps:$4 sm:$0xff]   ;;  %v8744_v36 = vld [vmem:[#allocation10 + $0x244] ss:$16 sps:$4 sm:$0xff]  }
 0x2ab   :  { %3565 = vmatprep.subr.bf16.mxu0 %v8732_v37  ;;  %3671 = vmatprep.subr.bf16.mxu1 %v8735_v38 }
 0x33f   :  { %v2574_v23 = vpop.f32.mrb[8].mxu0  ;;  %v2680_v45 = vpop.f32.mrb[8].mxu1 }
 0x340   :  { %v7946_v52 = vadd.f32 %v2574_v23, %v1830_v48  ;;  %v7954_v53 = vadd.f32 %v2680_v45, %v1838_v49  ;;  %v2576_v54 = vpop.f32.mrb[9].mxu0  ;;  %v2682_v55 = vpop.f32.mrb[9].mxu1 }
 0x341   :  { %v7947_v56 = vadd.f32 %v2576_v54, %v1834_v50  ;;  %v7955_v57 = vadd.f32 %v2682_v55, %v1842_v51  ;;  %v2578_v58 = vpop.f32.mrb[10].mxu0  ;;  %v2684_v59 = vpop.f32.mrb[10].mxu1  ;;  %v8742_v54 = vld [vmem:[#allocation10 + $0x240] ss:$16 sps:$4 sm:$0xff]   ;;  %v8745_v55 = vld [vmem:[#allocation10 + $0x248] ss:$16 sps:$4 sm:$0xff]  }
 0x342   :  { %v7948_v41 = vadd.f32 %v2578_v58, %v1830_v48  ;;  %v7956_v60 = vadd.f32 %v2684_v59, %v1838_v49  ;;  %v2580_v61 = vpop.f32.mrb[11].mxu0  ;;  %v2686_v62 = vpop.f32.mrb[11].mxu1  ;;  %v2699_v1 = vmax.f32 %v7946_v52, 0.0  ;;  %v2701_v2 = vmax.f32 %v7954_v53, 0.0  ;;  %v8748_v58 = vld [vmem:[#allocation10 + $0x260] ss:$16 sps:$4 sm:$0xff]  }
 0x343   :  { %v7949_v63 = vadd.f32 %v2580_v61, %v1834_v50  ;;  %v7957_v0 = vadd.f32 %v2686_v62, %v1842_v51  ;;  %v2700_v5 = vmax.f32 %v7947_v56, 0.0  ;;  %v2702_v6 = vmax.f32 %v7955_v57, 0.0  ;;  %v8750_v56 = vld [vmem:[#allocation10 + $0x264] ss:$16 sps:$4 sm:$0xff]   ;;  %v8753_v57 = vld [vmem:[#allocation10 + $0x26c] ss:$16 sps:$4 sm:$0xff]  }
 0x344   :  { %v2703_v3 = vmax.f32 %v7948_v41, 0.0  ;;  %v2705_v4 = vmax.f32 %v7956_v60, 0.0  ;;  %v8751_v59 = vld [vmem:[#allocation10 + $0x268] ss:$16 sps:$4 sm:$0xff]   ;;  %v8756_v41 = vld [vmem:[#allocation10 + $0x284] ss:$16 sps:$4 sm:$0xff]  }
 0x345   :  { %v2704_v7 = vmax.f32 %v7949_v63, 0.0  ;;  %v2706_v8 = vmax.f32 %v7957_v0, 0.0  ;;  %v8759_v60 = vld [vmem:[#allocation10 + $0x28c] ss:$16 sps:$4 sm:$0xff]   ;;  %v8754_v61 = vld [vmem:[#allocation10 + $0x280] ss:$16 sps:$4 sm:$0xff]  }
 0x346   :  { %v2715_v9 = vpack.c.bf16 %v2703_v3, %v2699_v1  ;;  %v9891_v10 = vpack.c.bf16 %v2705_v4, %v2701_v2  ;;  %v8757_v62 = vld [vmem:[#allocation10 + $0x288] ss:$16 sps:$4 sm:$0xff]   ;;  %v8762_v63 = vld [vmem:[#allocation10 + $0x2a4] ss:$16 sps:$4 sm:$0xff]   ;;  %v8765_v0 = vld [vmem:[#allocation10 + $0x2ac] ss:$16 sps:$4 sm:$0xff]  }
 0x347   :  { %v2716_v11 = vpack.c.bf16 %v2704_v7, %v2700_v5  ;;  %v2718_v12 = vpack.c.bf16 %v2706_v8, %v2702_v6  ;;  %v2584_v13 = vpop.f32.mrb[12].mxu0  ;;  %v2690_v14 = vpop.f32.mrb[12].mxu1  ;;  %v8760_v1 = vld [vmem:[#allocation10 + $0x2a0] ss:$16 sps:$4 sm:$0xff]   ;;  %v8763_v2 = vld [vmem:[#allocation10 + $0x2a8] ss:$16 sps:$4 sm:$0xff]  }
 0x348   :  { %v7950_v17 = vadd.f32 %v2584_v13, %v1830_v48  ;;  %v7958_v18 = vadd.f32 %v2690_v14, %v1838_v49  ;;  %v2586_v19 = vpop.f32.mrb[13].mxu0  ;;  %v2692_v20 = vpop.f32.mrb[13].mxu1  ;;  %v8768_v3 = vld [vmem:[#allocation10 + $0x2c4] ss:$16 sps:$4 sm:$0xff]   ;;  %v8771_v4 = vld [vmem:[#allocation10 + $0x2cc] ss:$16 sps:$4 sm:$0xff]  }
 0x349   :  { %v7951_v24 = vadd.f32 %v2586_v19, %v1834_v50  ;;  %v7959_v25 = vadd.f32 %v2692_v20, %v1842_v51  ;;  %v2588_v26 = vpop.f32.mrb[14].mxu0  ;;  %v2694_v27 = vpop.f32.mrb[14].mxu1  ;;  %3544 = vmatprep.mubr.bf16.mxu0 %v2716_v11  ;;  %3650 = vmatprep.mubr.bf16.mxu1 %v2716_v11  ;;  %v8766_v5 = vld [vmem:[#allocation10 + $0x2c0] ss:$16 sps:$4 sm:$0xff]   ;;  %v8769_v6 = vld [vmem:[#allocation10 + $0x2c8] ss:$16 sps:$4 sm:$0xff]  }
 0x34a   :  { %v7952_v28 = vadd.f32 %v2588_v26, %v1830_v48  ;;  %v7960_v29 = vadd.f32 %v2694_v27, %v1838_v49  ;;  %v2590_v30 = vpop.f32.mrb[15].mxu0  ;;  %v2696_v31 = vpop.f32.mrb[15].mxu1  ;;  %3545 = vmatmul.mubr.bf16.vlgmr.msra.gmra.mrb[16].mxu0 %v2715_v9  ;;  %3651 = vmatmul.mubr.bf16.vlgmr.msra.gmra.mrb[16].mxu1 %v2715_v9  ;;  %v2707_v37 = vmax.f32 %v7950_v17, 0.0  ;;  %v2709_v38 = vmax.f32 %v7958_v18, 0.0  ;;  %v8774_v7 = vld [vmem:[#allocation10 + $0x2e4] ss:$16 sps:$4 sm:$0xff]  }
 0x34b   :  { %v7953_v32 = vadd.f32 %v2590_v30, %v1834_v50  ;;  %v7961_v33 = vadd.f32 %v2696_v31, %v1842_v51  ;;  %3566 = vmatpush1.bf16.msra.mxu0 %v8730_v15  ;;  %3672 = vmatpush1.bf16.msra.mxu1 %v8733_v16  ;;  %v2708_v48 = vmax.f32 %v7951_v24, 0.0  ;;  %v2710_v49 = vmax.f32 %v7959_v25, 0.0  ;;  %v8777_v8 = vld [vmem:[#allocation10 + $0x2ec] ss:$16 sps:$4 sm:$0xff]   ;;  %v8772_v9 = vld [vmem:[#allocation10 + $0x2e0] ss:$16 sps:$4 sm:$0xff]  }
 0x34c   :  { %v2711_v39 = vmax.f32 %v7952_v28, 0.0  ;;  %v2713_v40 = vmax.f32 %v7960_v29, 0.0  ;;  %3567 = vmatprep.subr.bf16.mxu0 %v8738_v21  ;;  %3673 = vmatprep.subr.bf16.mxu1 %v8741_v22  ;;  %v8775_v11 = vld [vmem:[#allocation10 + $0x2e8] ss:$16 sps:$4 sm:$0xff]   ;;  %v8783_v13 = vld [vmem:[#allocation10 + $0x30c] ss:$16 sps:$4 sm:$0xff]  }
 0x34d   :  { %v2712_v23 = vmax.f32 %v7953_v32, 0.0  ;;  %v2714_v45 = vmax.f32 %v7961_v33, 0.0  ;;  %v8778_v14 = vld [vmem:[#allocation10 + $0x300] ss:$16 sps:$4 sm:$0xff]   ;;  %v8781_v15 = vld [vmem:[#allocation10 + $0x308] ss:$16 sps:$4 sm:$0xff]  }
 0x34e   :  { %v2719_v52 = vpack.c.bf16 %v2711_v39, %v2707_v37  ;;  %v9893_v53 = vpack.c.bf16 %v2713_v40, %v2709_v38  ;;  %v8786_v16 = vld [vmem:[#allocation10 + $0x324] ss:$16 sps:$4 sm:$0xff]   ;;  %v8789_v17 = vld [vmem:[#allocation10 + $0x32c] ss:$16 sps:$4 sm:$0xff]   ;;  %v8784_v18 = vld [vmem:[#allocation10 + $0x320] ss:$16 sps:$4 sm:$0xff]  }
 0x34f   :  { %v2720_v50 = vpack.c.bf16 %v2712_v23, %v2708_v48  ;;  %v9895_v51 = vpack.c.bf16 %v2714_v45, %v2710_v49  ;;  %3568 = vmatpush1.bf16.msra.mxu0 %v8736_v34  ;;  %3674 = vmatpush1.bf16.msra.mxu1 %v8739_v35  ;;  %v8787_v19 = vld [vmem:[#allocation10 + $0x328] ss:$16 sps:$4 sm:$0xff]   ;;  %v8792_v20 = vld [vmem:[#allocation10 + $0x344] ss:$16 sps:$4 sm:$0xff]   ;;  %v8795_v21 = vld [vmem:[#allocation10 + $0x34c] ss:$16 sps:$4 sm:$0xff]  }
 0x350   :  { %3569 = vmatprep.subr.bf16.mxu0 %v8744_v36  ;;  %3675 = vmatprep.subr.bf16.mxu1 %v8747_v44  ;;  %v8790_v22 = vld [vmem:[#allocation10 + $0x340] ss:$16 sps:$4 sm:$0xff]   ;;  %v8793_v24 = vld [vmem:[#allocation10 + $0x348] ss:$16 sps:$4 sm:$0xff]   ;;  %v8798_v25 = vld [vmem:[#allocation10 + $0x364] ss:$16 sps:$4 sm:$0xff]  }
 0x351   :  { %3554 = vmatprep.mubr.bf16.mxu0 %v2720_v50  ;;  %3660 = vmatprep.mubr.bf16.mxu1 %v2720_v50  ;;  %v8801_v26 = vld [vmem:[#allocation10 + $0x36c] ss:$16 sps:$4 sm:$0xff]   ;;  %v8796_v27 = vld [vmem:[#allocation10 + $0x360] ss:$16 sps:$4 sm:$0xff]   ;;  %v8799_v28 = vld [vmem:[#allocation10 + $0x368] ss:$16 sps:$4 sm:$0xff]  }
 0x352   :  { %3555 = vmatmul.mubr.bf16.gmra.mrb[20].mxu0 %v2719_v52  ;;  %3661 = vmatmul.mubr.bf16.gmra.mrb[20].mxu1 %v2719_v52  ;;  %v8804_v29 = vld [vmem:[#allocation10 + $0x384] ss:$16 sps:$4 sm:$0xff]   ;;  %v8807_v30 = vld [vmem:[#allocation10 + $0x38c] ss:$16 sps:$4 sm:$0xff]   ;;  %v8802_v31 = vld [vmem:[#allocation10 + $0x380] ss:$16 sps:$4 sm:$0xff]  }
 0x353   :  { %3570 = vmatpush1.bf16.msra.mxu0 %v8742_v54  ;;  %3676 = vmatpush1.bf16.msra.mxu1 %v8745_v55  ;;  %v8805_v32 = vld [vmem:[#allocation10 + $0x388] ss:$16 sps:$4 sm:$0xff]   ;;  %v8810_v33 = vld [vmem:[#allocation10 + $0x3a4] ss:$16 sps:$4 sm:$0xff]   ;;  %v8813_v34 = vld [vmem:[#allocation10 + $0x3ac] ss:$16 sps:$4 sm:$0xff]  }
 0x354   :  { %3597 = vmatprep.mubr.bf16.mxu0 %v2718_v12  ;;  %3703 = vmatprep.mubr.bf16.mxu1 %v2718_v12  ;;  %v8780_v12 = vld [vmem:[#allocation10 + $0x304] ss:$16 sps:$4 sm:$0xff]   ;;  %v8808_v35 = vld [vmem:[#allocation10 + $0x3a0] ss:$16 sps:$4 sm:$0xff]   ;;  %v8811_v36 = vld [vmem:[#allocation10 + $0x3a8] ss:$16 sps:$4 sm:$0xff]  }
 0x355   :  { %3571 = vmatprep.subr.bf16.mxu0 %v8750_v56  ;;  %3677 = vmatprep.subr.bf16.mxu1 %v8753_v57  ;;  %v8816_v37 = vld [vmem:[#allocation10 + $0x3c4] ss:$16 sps:$4 sm:$0xff]   ;;  %v8819_v38 = vld [vmem:[#allocation10 + $0x3cc] ss:$16 sps:$4 sm:$0xff]   ;;  %v8814_v39 = vld [vmem:[#allocation10 + $0x3c0] ss:$16 sps:$4 sm:$0xff]  }
 0x356   :  { %v8817_v40 = vld [vmem:[#allocation10 + $0x3c8] ss:$16 sps:$4 sm:$0xff]   ;;  %v8822_v44 = vld [vmem:[#allocation10 + $0x3e4] ss:$16 sps:$4 sm:$0xff]   ;;  %v8825_v48 = vld [vmem:[#allocation10 + $0x3ec] ss:$16 sps:$4 sm:$0xff]  }
 0x357   :  { %3572 = vmatpush1.bf16.msra.mxu0 %v8748_v58  ;;  %3678 = vmatpush1.bf16.msra.mxu1 %v8751_v59  ;;  %v8820_v49 = vld [vmem:[#allocation10 + $0x3e0] ss:$16 sps:$4 sm:$0xff]   ;;  %v8823_v23 = vld [vmem:[#allocation10 + $0x3e8] ss:$16 sps:$4 sm:$0xff]   ;;  %v8828_v45 = vld [vmem:[#allocation11 + $0x4] ss:$16 sps:$4 sm:$0xff]  }
 0x358   :  { %3573 = vmatprep.subr.bf16.mxu0 %v8756_v41  ;;  %3679 = vmatprep.subr.bf16.mxu1 %v8759_v60  ;;  %v8831_v52 = vld [vmem:[#allocation11 + $0xc] ss:$16 sps:$4 sm:$0xff]   ;;  %v8826_v50 = vld [vmem:[#allocation11] ss:$16 sps:$4 sm:$0xff]   ;;  %v8829_v54 = vld [vmem:[#allocation11 + $0x8] ss:$16 sps:$4 sm:$0xff]  }
 0x359   :  { %v8834_v55 = vld [vmem:[#allocation11 + $0x24] ss:$16 sps:$4 sm:$0xff]   ;;  %v8837_v56 = vld [vmem:[#allocation11 + $0x2c] ss:$16 sps:$4 sm:$0xff]   ;;  %v8832_v57 = vld [vmem:[#allocation11 + $0x20] ss:$16 sps:$4 sm:$0xff]  }
 0x35a   :  { %v8835_v58 = vld [vmem:[#allocation11 + $0x28] ss:$16 sps:$4 sm:$0xff]   ;;  %v8840_v59 = vld [vmem:[#allocation11 + $0x44] ss:$16 sps:$4 sm:$0xff]   ;;  %v8843_v41 = vld [vmem:[#allocation11 + $0x4c] ss:$16 sps:$4 sm:$0xff]  }
 0x35b   :  { %3574 = vmatpush1.bf16.msra.mxu0 %v8754_v61  ;;  %3680 = vmatpush1.bf16.msra.mxu1 %v8757_v62  ;;  %v8924_v60 = vld [vmem:[#allocation5 + $0x4] ss:$16 sps:$4 sm:$0xff]   ;;  %v8838_v61 = vld [vmem:[#allocation11 + $0x40] ss:$16 sps:$4 sm:$0xff]   ;;  %v8841_v62 = vld [vmem:[#allocation11 + $0x48] ss:$16 sps:$4 sm:$0xff]  }
 0x35c   :  { %3575 = vmatprep.subr.bf16.mxu0 %v8762_v63  ;;  %3681 = vmatprep.subr.bf16.mxu1 %v8765_v0  ;;  %v8849_v63 = vld [vmem:[#allocation11 + $0x6c] ss:$16 sps:$4 sm:$0xff]   ;;  %v8847_v0 = vld [vmem:[#allocation11 + $0x68] ss:$16 sps:$4 sm:$0xff]  }
 0x35f   :  { %3576 = vmatpush1.bf16.msra.mxu0 %v8760_v1  ;;  %3682 = vmatpush1.bf16.msra.mxu1 %v8763_v2  ;;  %v8852_v1 = vld [vmem:[#allocation11 + $0x84] ss:$16 sps:$4 sm:$0xff]   ;;  %v8855_v2 = vld [vmem:[#allocation11 + $0x8c] ss:$16 sps:$4 sm:$0xff]  }
 0x360   :  { %3577 = vmatprep.subr.bf16.mxu0 %v8768_v3  ;;  %3683 = vmatprep.subr.bf16.mxu1 %v8771_v4  ;;  %v8850_v3 = vld [vmem:[#allocation11 + $0x80] ss:$16 sps:$4 sm:$0xff]   ;;  %v8853_v4 = vld [vmem:[#allocation11 + $0x88] ss:$16 sps:$4 sm:$0xff]  }
 0x363   :  { %3578 = vmatpush1.bf16.msra.mxu0 %v8766_v5  ;;  %3684 = vmatpush1.bf16.msra.mxu1 %v8769_v6  ;;  %v8858_v5 = vld [vmem:[#allocation11 + $0xa4] ss:$16 sps:$4 sm:$0xff]   ;;  %v8861_v6 = vld [vmem:[#allocation11 + $0xac] ss:$16 sps:$4 sm:$0xff]  }
 0x364   :  { %3579 = vmatprep.subr.bf16.mxu0 %v8774_v7  ;;  %3685 = vmatprep.subr.bf16.mxu1 %v8777_v8  ;;  %v8859_v7 = vld [vmem:[#allocation11 + $0xa8] ss:$16 sps:$4 sm:$0xff]   ;;  %v8864_v8 = vld [vmem:[#allocation11 + $0xc4] ss:$16 sps:$4 sm:$0xff]  }
 0x367   :  { %3580 = vmatpush1.bf16.msra.mxu0 %v8772_v9  ;;  %3686 = vmatpush1.bf16.msra.mxu1 %v8775_v11  ;;  %v8867_v9 = vld [vmem:[#allocation11 + $0xcc] ss:$16 sps:$4 sm:$0xff]   ;;  %v8862_v11 = vld [vmem:[#allocation11 + $0xc0] ss:$16 sps:$4 sm:$0xff]  }
 0x368   :  { %3581 = vmatprep.subr.bf16.mxu0 %v8780_v12  ;;  %3687 = vmatprep.subr.bf16.mxu1 %v8783_v13  ;;  %v8865_v12 = vld [vmem:[#allocation11 + $0xc8] ss:$16 sps:$4 sm:$0xff]   ;;  %v8870_v13 = vld [vmem:[#allocation11 + $0xe4] ss:$16 sps:$4 sm:$0xff]  }
 0x36b   :  { %3582 = vmatpush1.bf16.msra.mxu0 %v8778_v14  ;;  %3688 = vmatpush1.bf16.msra.mxu1 %v8781_v15  ;;  %v8873_v14 = vld [vmem:[#allocation11 + $0xec] ss:$16 sps:$4 sm:$0xff]   ;;  %v8868_v15 = vld [vmem:[#allocation11 + $0xe0] ss:$16 sps:$4 sm:$0xff]  }
 0x36c   :  { %3583 = vmatprep.subr.bf16.mxu0 %v8786_v16  ;;  %3689 = vmatprep.subr.bf16.mxu1 %v8789_v17  ;;  %v8871_v16 = vld [vmem:[#allocation11 + $0xe8] ss:$16 sps:$4 sm:$0xff]   ;;  %v8876_v17 = vld [vmem:[#allocation11 + $0x104] ss:$16 sps:$4 sm:$0xff]  }
 0x36f   :  { %3584 = vmatpush1.bf16.msra.mxu0 %v8784_v18  ;;  %3690 = vmatpush1.bf16.msra.mxu1 %v8787_v19  ;;  %v8879_v18 = vld [vmem:[#allocation11 + $0x10c] ss:$16 sps:$4 sm:$0xff]   ;;  %v8874_v19 = vld [vmem:[#allocation11 + $0x100] ss:$16 sps:$4 sm:$0xff]  }
 0x370   :  { %3585 = vmatprep.subr.bf16.mxu0 %v8792_v20  ;;  %3691 = vmatprep.subr.bf16.mxu1 %v8795_v21  ;;  %v8877_v20 = vld [vmem:[#allocation11 + $0x108] ss:$16 sps:$4 sm:$0xff]   ;;  %v8882_v21 = vld [vmem:[#allocation11 + $0x124] ss:$16 sps:$4 sm:$0xff]  }
 0x373   :  { %3586 = vmatpush1.bf16.msra.mxu0 %v8790_v22  ;;  %3692 = vmatpush1.bf16.msra.mxu1 %v8793_v24  ;;  %v8885_v22 = vld [vmem:[#allocation11 + $0x12c] ss:$16 sps:$4 sm:$0xff]   ;;  %v8880_v24 = vld [vmem:[#allocation11 + $0x120] ss:$16 sps:$4 sm:$0xff]  }
 0x374   :  { %3587 = vmatprep.subr.bf16.mxu0 %v8798_v25  ;;  %3693 = vmatprep.subr.bf16.mxu1 %v8801_v26  ;;  %v8883_v25 = vld [vmem:[#allocation11 + $0x128] ss:$16 sps:$4 sm:$0xff]   ;;  %v8888_v26 = vld [vmem:[#allocation11 + $0x144] ss:$16 sps:$4 sm:$0xff]  }
 0x377   :  { %3588 = vmatpush1.bf16.msra.mxu0 %v8796_v27  ;;  %3694 = vmatpush1.bf16.msra.mxu1 %v8799_v28  ;;  %v8891_v27 = vld [vmem:[#allocation11 + $0x14c] ss:$16 sps:$4 sm:$0xff]   ;;  %v8886_v28 = vld [vmem:[#allocation11 + $0x140] ss:$16 sps:$4 sm:$0xff]  }
 0x378   :  { %3589 = vmatprep.subr.bf16.mxu0 %v8804_v29  ;;  %3695 = vmatprep.subr.bf16.mxu1 %v8807_v30  ;;  %v8889_v29 = vld [vmem:[#allocation11 + $0x148] ss:$16 sps:$4 sm:$0xff]   ;;  %v8894_v30 = vld [vmem:[#allocation11 + $0x164] ss:$16 sps:$4 sm:$0xff]  }
 0x37b   :  { %3590 = vmatpush1.bf16.msra.mxu0 %v8802_v31  ;;  %3696 = vmatpush1.bf16.msra.mxu1 %v8805_v32  ;;  %v8897_v31 = vld [vmem:[#allocation11 + $0x16c] ss:$16 sps:$4 sm:$0xff]   ;;  %v8892_v32 = vld [vmem:[#allocation11 + $0x160] ss:$16 sps:$4 sm:$0xff]  }
 0x37c   :  { %3591 = vmatprep.subr.bf16.mxu0 %v8810_v33  ;;  %3697 = vmatprep.subr.bf16.mxu1 %v8813_v34  ;;  %v8895_v33 = vld [vmem:[#allocation11 + $0x168] ss:$16 sps:$4 sm:$0xff]   ;;  %v8900_v34 = vld [vmem:[#allocation11 + $0x184] ss:$16 sps:$4 sm:$0xff]  }
 0x37f   :  { %3592 = vmatpush1.bf16.msra.mxu0 %v8808_v35  ;;  %3698 = vmatpush1.bf16.msra.mxu1 %v8811_v36  ;;  %v8903_v35 = vld [vmem:[#allocation11 + $0x18c] ss:$16 sps:$4 sm:$0xff]   ;;  %v8898_v36 = vld [vmem:[#allocation11 + $0x180] ss:$16 sps:$4 sm:$0xff]  }
 0x380   :  { %3593 = vmatprep.subr.bf16.mxu0 %v8816_v37  ;;  %3699 = vmatprep.subr.bf16.mxu1 %v8819_v38  ;;  %v8901_v37 = vld [vmem:[#allocation11 + $0x188] ss:$16 sps:$4 sm:$0xff]   ;;  %v8906_v38 = vld [vmem:[#allocation11 + $0x1a4] ss:$16 sps:$4 sm:$0xff]  }
 0x383   :  { %3594 = vmatpush1.bf16.msra.mxu0 %v8814_v39  ;;  %3700 = vmatpush1.bf16.msra.mxu1 %v8817_v40  ;;  %v8909_v39 = vld [vmem:[#allocation11 + $0x1ac] ss:$16 sps:$4 sm:$0xff]   ;;  %v8904_v40 = vld [vmem:[#allocation11 + $0x1a0] ss:$16 sps:$4 sm:$0xff]  }
 0x384   :  { %3595 = vmatprep.subr.bf16.mxu0 %v8822_v44  ;;  %3701 = vmatprep.subr.bf16.mxu1 %v8825_v48  ;;  %v8907_v44 = vld [vmem:[#allocation11 + $0x1a8] ss:$16 sps:$4 sm:$0xff]   ;;  %v8912_v48 = vld [vmem:[#allocation11 + $0x1c4] ss:$16 sps:$4 sm:$0xff]  }
 0x387   :  { %3596 = vmatpush1.bf16.msra.mxu0 %v8820_v49  ;;  %3702 = vmatpush1.bf16.msra.mxu1 %v8823_v23  ;;  %v8915_v49 = vld [vmem:[#allocation11 + $0x1cc] ss:$16 sps:$4 sm:$0xff]   ;;  %v8910_v23 = vld [vmem:[#allocation11 + $0x1c0] ss:$16 sps:$4 sm:$0xff]  }
 0x388   :  { %4656 = vmatprep.subr.bf16.mxu0 %v8828_v45  ;;  %4762 = vmatprep.subr.bf16.mxu1 %v8831_v52  ;;  %v8913_v45 = vld [vmem:[#allocation11 + $0x1c8] ss:$16 sps:$4 sm:$0xff]   ;;  %v8918_v52 = vld [vmem:[#allocation11 + $0x1e4] ss:$16 sps:$4 sm:$0xff]  }
 0x38a   :  { %3598 = vmatmul.mubr.bf16.vlgmr.msra.gmra.mrb[16].mxu0 %v9891_v10  ;;  %3704 = vmatmul.mubr.bf16.vlgmr.msra.gmra.mrb[16].mxu1 %v9891_v10  ;;  %v8846_v10 = vld [vmem:[#allocation11 + $0x64] ss:$16 sps:$4 sm:$0xff]  }
 0x38b   :  { %3607 = vmatprep.mubr.bf16.mxu0 %v9895_v51  ;;  %3713 = vmatprep.mubr.bf16.mxu1 %v9895_v51  ;;  %v8844_v51 = vld [vmem:[#allocation11 + $0x60] ss:$16 sps:$4 sm:$0xff]  }
 0x38c   :  { %4657 = vmatpush1.bf16.msra.mxu0 %v8826_v50  ;;  %4763 = vmatpush1.bf16.msra.mxu1 %v8829_v54  ;;  %v8921_v50 = vld [vmem:[#allocation11 + $0x1ec] ss:$16 sps:$4 sm:$0xff]   ;;  %v8916_v54 = vld [vmem:[#allocation11 + $0x1e0] ss:$16 sps:$4 sm:$0xff]  }
 0x38d   :  { %4658 = vmatprep.subr.bf16.mxu0 %v8834_v55  ;;  %4764 = vmatprep.subr.bf16.mxu1 %v8837_v56  ;;  %v8919_v55 = vld [vmem:[#allocation11 + $0x1e8] ss:$16 sps:$4 sm:$0xff]   ;;  %v8927_v56 = vld [vmem:[#allocation11 + $0x204] ss:$16 sps:$4 sm:$0xff]  }
 0x390   :  { %4659 = vmatpush1.bf16.msra.mxu0 %v8832_v57  ;;  %4765 = vmatpush1.bf16.msra.mxu1 %v8835_v58  ;;  %v8930_v57 = vld [vmem:[#allocation11 + $0x20c] ss:$16 sps:$4 sm:$0xff]   ;;  %v8922_v58 = vld [vmem:[#allocation5] ss:$16 sps:$4 sm:$0xff]  }
 0x391   :  { %4660 = vmatprep.subr.bf16.mxu0 %v8840_v59  ;;  %4766 = vmatprep.subr.bf16.mxu1 %v8843_v41  ;;  %v8925_v59 = vld [vmem:[#allocation11 + $0x200] ss:$16 sps:$4 sm:$0xff]   ;;  %v8928_v41 = vld [vmem:[#allocation11 + $0x208] ss:$16 sps:$4 sm:$0xff]  }
 0x392   :  { %3608 = vmatmul.mubr.bf16.gmra.mrb[20].mxu0 %v9893_v53  ;;  %3714 = vmatmul.mubr.bf16.gmra.mrb[20].mxu1 %v9893_v53  ;;  %v8856_v53 = vld [vmem:[#allocation11 + $0xa0] ss:$16 sps:$4 sm:$0xff]  }
 0x393   :  { %4688 = vmatprep.mubr.bf16.mxu0 %v8924_v60  ;;  %4794 = vmatprep.mubr.bf16.mxu1 %v8924_v60  ;;  %v8933_v60 = vld [vmem:[#allocation11 + $0x224] ss:$16 sps:$4 sm:$0xff]  }
 0x394   :  { %4661 = vmatpush1.bf16.msra.mxu0 %v8838_v61  ;;  %4767 = vmatpush1.bf16.msra.mxu1 %v8841_v62  ;;  %v8936_v61 = vld [vmem:[#allocation11 + $0x22c] ss:$16 sps:$4 sm:$0xff]   ;;  %v9009_v62 = vld [vmem:[#allocation5 + $0x24] ss:$16 sps:$4 sm:$0xff]  }
 0x395   :  { %4662 = vmatprep.subr.bf16.mxu0 %v8846_v10  ;;  %4768 = vmatprep.subr.bf16.mxu1 %v8849_v63  ;;  %v8931_v10 = vld [vmem:[#allocation11 + $0x220] ss:$16 sps:$4 sm:$0xff]   ;;  %v8934_v63 = vld [vmem:[#allocation11 + $0x228] ss:$16 sps:$4 sm:$0xff]  }
 0x398   :  { %4663 = vmatpush1.bf16.msra.mxu0 %v8844_v51  ;;  %4769 = vmatpush1.bf16.msra.mxu1 %v8847_v0  ;;  %v8939_v51 = vld [vmem:[#allocation11 + $0x244] ss:$16 sps:$4 sm:$0xff]   ;;  %v8942_v0 = vld [vmem:[#allocation11 + $0x24c] ss:$16 sps:$4 sm:$0xff]  }
 0x399   :  { %4664 = vmatprep.subr.bf16.mxu0 %v8852_v1  ;;  %4770 = vmatprep.subr.bf16.mxu1 %v8855_v2  ;;  %v9011_v1 = vld [vmem:[#allocation5 + $0x20] ss:$16 sps:$4 sm:$0xff]  }
 0x39a   :  { %v8937_v2 = vld [vmem:[#allocation11 + $0x240] ss:$16 sps:$4 sm:$0xff]  }
 0x39c   :  { %4665 = vmatpush1.bf16.msra.mxu0 %v8850_v3  ;;  %4771 = vmatpush1.bf16.msra.mxu1 %v8853_v4  ;;  %v8940_v3 = vld [vmem:[#allocation11 + $0x248] ss:$16 sps:$4 sm:$0xff]   ;;  %v8945_v4 = vld [vmem:[#allocation11 + $0x264] ss:$16 sps:$4 sm:$0xff]  }
 0x39d   :  { %4666 = vmatprep.subr.bf16.mxu0 %v8858_v5  ;;  %4772 = vmatprep.subr.bf16.mxu1 %v8861_v6  ;;  %v8948_v5 = vld [vmem:[#allocation11 + $0x26c] ss:$16 sps:$4 sm:$0xff]  }
 0x39e   :  { %v9026_v6 = vld [vmem:[#allocation5 + $0xc] ss:$16 sps:$4 sm:$0xff]  }
 0x3a0   :  { %4667 = vmatpush1.bf16.msra.mxu0 %v8856_v53  ;;  %4773 = vmatpush1.bf16.msra.mxu1 %v8859_v7  ;;  %v8943_v53 = vld [vmem:[#allocation11 + $0x260] ss:$16 sps:$4 sm:$0xff]   ;;  %v8946_v7 = vld [vmem:[#allocation11 + $0x268] ss:$16 sps:$4 sm:$0xff]  }
 0x3a1   :  { %4668 = vmatprep.subr.bf16.mxu0 %v8864_v8  ;;  %4774 = vmatprep.subr.bf16.mxu1 %v8867_v9  ;;  %v8951_v8 = vld [vmem:[#allocation11 + $0x284] ss:$16 sps:$4 sm:$0xff]   ;;  %v8954_v9 = vld [vmem:[#allocation11 + $0x28c] ss:$16 sps:$4 sm:$0xff]  }
 0x3a4   :  { %4669 = vmatpush1.bf16.msra.mxu0 %v8862_v11  ;;  %4775 = vmatpush1.bf16.msra.mxu1 %v8865_v12  ;;  %v8949_v11 = vld [vmem:[#allocation11 + $0x280] ss:$16 sps:$4 sm:$0xff]   ;;  %v8952_v12 = vld [vmem:[#allocation11 + $0x288] ss:$16 sps:$4 sm:$0xff]  }
 0x3a5   :  { %4670 = vmatprep.subr.bf16.mxu0 %v8870_v13  ;;  %4776 = vmatprep.subr.bf16.mxu1 %v8873_v14  ;;  %v8957_v13 = vld [vmem:[#allocation11 + $0x2a4] ss:$16 sps:$4 sm:$0xff]   ;;  %v8960_v14 = vld [vmem:[#allocation11 + $0x2ac] ss:$16 sps:$4 sm:$0xff]  }
 0x3a8   :  { %4671 = vmatpush1.bf16.msra.mxu0 %v8868_v15  ;;  %4777 = vmatpush1.bf16.msra.mxu1 %v8871_v16  ;;  %v8955_v15 = vld [vmem:[#allocation11 + $0x2a0] ss:$16 sps:$4 sm:$0xff]   ;;  %v8958_v16 = vld [vmem:[#allocation11 + $0x2a8] ss:$16 sps:$4 sm:$0xff]  }
 0x3a9   :  { %4672 = vmatprep.subr.bf16.mxu0 %v8876_v17  ;;  %4778 = vmatprep.subr.bf16.mxu1 %v8879_v18  ;;  %v8963_v17 = vld [vmem:[#allocation11 + $0x2c4] ss:$16 sps:$4 sm:$0xff]   ;;  %v8966_v18 = vld [vmem:[#allocation11 + $0x2cc] ss:$16 sps:$4 sm:$0xff]  }
 0x3ac   :  { %4673 = vmatpush1.bf16.msra.mxu0 %v8874_v19  ;;  %4779 = vmatpush1.bf16.msra.mxu1 %v8877_v20  ;;  %v8961_v19 = vld [vmem:[#allocation11 + $0x2c0] ss:$16 sps:$4 sm:$0xff]   ;;  %v8964_v20 = vld [vmem:[#allocation11 + $0x2c8] ss:$16 sps:$4 sm:$0xff]  }
 0x3ad   :  { %4674 = vmatprep.subr.bf16.mxu0 %v8882_v21  ;;  %4780 = vmatprep.subr.bf16.mxu1 %v8885_v22  ;;  %v8969_v21 = vld [vmem:[#allocation11 + $0x2e4] ss:$16 sps:$4 sm:$0xff]   ;;  %v8972_v22 = vld [vmem:[#allocation11 + $0x2ec] ss:$16 sps:$4 sm:$0xff]  }
 0x3b0   :  { %4675 = vmatpush1.bf16.msra.mxu0 %v8880_v24  ;;  %4781 = vmatpush1.bf16.msra.mxu1 %v8883_v25  ;;  %v8967_v24 = vld [vmem:[#allocation11 + $0x2e0] ss:$16 sps:$4 sm:$0xff]   ;;  %v8970_v25 = vld [vmem:[#allocation11 + $0x2e8] ss:$16 sps:$4 sm:$0xff]  }
 0x3b1   :  { %4676 = vmatprep.subr.bf16.mxu0 %v8888_v26  ;;  %4782 = vmatprep.subr.bf16.mxu1 %v8891_v27  ;;  %v8975_v26 = vld [vmem:[#allocation11 + $0x304] ss:$16 sps:$4 sm:$0xff]   ;;  %v8978_v27 = vld [vmem:[#allocation11 + $0x30c] ss:$16 sps:$4 sm:$0xff]  }
 0x3b4   :  { %4677 = vmatpush1.bf16.msra.mxu0 %v8886_v28  ;;  %4783 = vmatpush1.bf16.msra.mxu1 %v8889_v29  ;;  %v8973_v28 = vld [vmem:[#allocation11 + $0x300] ss:$16 sps:$4 sm:$0xff]   ;;  %v8976_v29 = vld [vmem:[#allocation11 + $0x308] ss:$16 sps:$4 sm:$0xff]  }
 0x3b5   :  { %4678 = vmatprep.subr.bf16.mxu0 %v8894_v30  ;;  %4784 = vmatprep.subr.bf16.mxu1 %v8897_v31  ;;  %v8981_v30 = vld [vmem:[#allocation11 + $0x324] ss:$16 sps:$4 sm:$0xff]   ;;  %v8984_v31 = vld [vmem:[#allocation11 + $0x32c] ss:$16 sps:$4 sm:$0xff]  }
 0x3b8   :  { %4679 = vmatpush1.bf16.msra.mxu0 %v8892_v32  ;;  %4785 = vmatpush1.bf16.msra.mxu1 %v8895_v33  ;;  %v8979_v32 = vld [vmem:[#allocation11 + $0x320] ss:$16 sps:$4 sm:$0xff]   ;;  %v8982_v33 = vld [vmem:[#allocation11 + $0x328] ss:$16 sps:$4 sm:$0xff]  }
 0x3b9   :  { %4680 = vmatprep.subr.bf16.mxu0 %v8900_v34  ;;  %4786 = vmatprep.subr.bf16.mxu1 %v8903_v35  ;;  %v8987_v34 = vld [vmem:[#allocation11 + $0x344] ss:$16 sps:$4 sm:$0xff]   ;;  %v8990_v35 = vld [vmem:[#allocation11 + $0x34c] ss:$16 sps:$4 sm:$0xff]  }
 0x3bc   :  { %4681 = vmatpush1.bf16.msra.mxu0 %v8898_v36  ;;  %4787 = vmatpush1.bf16.msra.mxu1 %v8901_v37  ;;  %v8985_v36 = vld [vmem:[#allocation11 + $0x340] ss:$16 sps:$4 sm:$0xff]   ;;  %v8988_v37 = vld [vmem:[#allocation11 + $0x348] ss:$16 sps:$4 sm:$0xff]  }
 0x3bd   :  { %4682 = vmatprep.subr.bf16.mxu0 %v8906_v38  ;;  %4788 = vmatprep.subr.bf16.mxu1 %v8909_v39  ;;  %v8993_v38 = vld [vmem:[#allocation11 + $0x364] ss:$16 sps:$4 sm:$0xff]   ;;  %v8996_v39 = vld [vmem:[#allocation11 + $0x36c] ss:$16 sps:$4 sm:$0xff]  }
 0x3c0   :  { %4683 = vmatpush1.bf16.msra.mxu0 %v8904_v40  ;;  %4789 = vmatpush1.bf16.msra.mxu1 %v8907_v44  ;;  %v8991_v40 = vld [vmem:[#allocation11 + $0x360] ss:$16 sps:$4 sm:$0xff]   ;;  %v8994_v44 = vld [vmem:[#allocation11 + $0x368] ss:$16 sps:$4 sm:$0xff]  }
 0x3c1   :  { %4684 = vmatprep.subr.bf16.mxu0 %v8912_v48  ;;  %4790 = vmatprep.subr.bf16.mxu1 %v8915_v49  ;;  %v8999_v48 = vld [vmem:[#allocation11 + $0x384] ss:$16 sps:$4 sm:$0xff]   ;;  %v9002_v49 = vld [vmem:[#allocation11 + $0x38c] ss:$16 sps:$4 sm:$0xff]  }
 0x3c4   :  { %4685 = vmatpush1.bf16.msra.mxu0 %v8910_v23  ;;  %4791 = vmatpush1.bf16.msra.mxu1 %v8913_v45  ;;  %v8997_v23 = vld [vmem:[#allocation11 + $0x380] ss:$16 sps:$4 sm:$0xff]   ;;  %v9000_v45 = vld [vmem:[#allocation11 + $0x388] ss:$16 sps:$4 sm:$0xff]  }
 0x3c5   :  { %4686 = vmatprep.subr.bf16.mxu0 %v8918_v52  ;;  %4792 = vmatprep.subr.bf16.mxu1 %v8921_v50  ;;  %v9005_v52 = vld [vmem:[#allocation11 + $0x3a4] ss:$16 sps:$4 sm:$0xff]   ;;  %v9008_v50 = vld [vmem:[#allocation11 + $0x3ac] ss:$16 sps:$4 sm:$0xff]  }
 0x3c8   :  { %4687 = vmatpush1.bf16.msra.mxu0 %v8916_v54  ;;  %4793 = vmatpush1.bf16.msra.mxu1 %v8919_v55  ;;  %v9003_v54 = vld [vmem:[#allocation11 + $0x3a0] ss:$16 sps:$4 sm:$0xff]   ;;  %v9006_v55 = vld [vmem:[#allocation11 + $0x3a8] ss:$16 sps:$4 sm:$0xff]  }
 0x3c9   :  { %4709 = vmatprep.subr.bf16.mxu0 %v8927_v56  ;;  %4815 = vmatprep.subr.bf16.mxu1 %v8930_v57  ;;  %v9014_v56 = vld [vmem:[#allocation11 + $0x3c4] ss:$16 sps:$4 sm:$0xff]   ;;  %v9017_v57 = vld [vmem:[#allocation11 + $0x3cc] ss:$16 sps:$4 sm:$0xff]  }
 0x3cb   :  { %4689 = vmatmul.mubr.bf16.vlgmr.msra.gmra.mrb[24].mxu0 %v8922_v58  ;;  %4795 = vmatmul.mubr.bf16.vlgmr.msra.gmra.mrb[24].mxu1 %v8922_v58  ;;  %v9012_v58 = vld [vmem:[#allocation11 + $0x3c0] ss:$16 sps:$4 sm:$0xff]  }
 0x3cc   :  { %4710 = vmatpush1.bf16.msra.mxu0 %v8925_v59  ;;  %4816 = vmatpush1.bf16.msra.mxu1 %v8928_v41  ;;  %v9015_v59 = vld [vmem:[#allocation11 + $0x3c8] ss:$16 sps:$4 sm:$0xff]   ;;  %v9020_v41 = vld [vmem:[#allocation11 + $0x3e4] ss:$16 sps:$4 sm:$0xff]  }
 0x3cd   :  { %4711 = vmatprep.subr.bf16.mxu0 %v8933_v60  ;;  %4817 = vmatprep.subr.bf16.mxu1 %v8936_v61  ;;  %v9023_v60 = vld [vmem:[#allocation11 + $0x3ec] ss:$16 sps:$4 sm:$0xff]   ;;  %v9018_v61 = vld [vmem:[#allocation11 + $0x3e0] ss:$16 sps:$4 sm:$0xff]  }
 0x3ce   :  { %4698 = vmatprep.mubr.bf16.mxu0 %v9009_v62  ;;  %4804 = vmatprep.mubr.bf16.mxu1 %v9009_v62  ;;  %v9021_v62 = vld [vmem:[#allocation11 + $0x3e8] ss:$16 sps:$4 sm:$0xff]  }
 0x3d0   :  { %4712 = vmatpush1.bf16.msra.mxu0 %v8931_v10  ;;  %4818 = vmatpush1.bf16.msra.mxu1 %v8934_v63  ;;  %v9032_v10 = vld [vmem:[#allocation13 + $0x4] ss:$16 sps:$4 sm:$0xff]   ;;  %v9035_v63 = vld [vmem:[#allocation13 + $0xc] ss:$16 sps:$4 sm:$0xff]  }
 0x3d1   :  { %4713 = vmatprep.subr.bf16.mxu0 %v8939_v51  ;;  %4819 = vmatprep.subr.bf16.mxu1 %v8942_v0  ;;  %v9024_v51 = vld [vmem:[#allocation5 + $0x8] ss:$16 sps:$4 sm:$0xff]   ;;  %v9027_v0 = vld [vmem:[#allocation5 + $0x2c] ss:$16 sps:$4 sm:$0xff]  }
 0x3d3   :  { %4699 = vmatmul.mubr.bf16.gmra.mrb[28].mxu0 %v9011_v1  ;;  %4805 = vmatmul.mubr.bf16.gmra.mrb[28].mxu1 %v9011_v1  ;;  %v9030_v1 = vld [vmem:[#allocation13] ss:$16 sps:$4 sm:$0xff]  }
 0x3d4   :  { %4714 = vmatpush1.bf16.msra.mxu0 %v8937_v2  ;;  %4820 = vmatpush1.bf16.msra.mxu1 %v8940_v3  ;;  %v9033_v2 = vld [vmem:[#allocation13 + $0x8] ss:$16 sps:$4 sm:$0xff]   ;;  %v9038_v3 = vld [vmem:[#allocation13 + $0x24] ss:$16 sps:$4 sm:$0xff]  }
 0x3d5   :  { %4715 = vmatprep.subr.bf16.mxu0 %v8945_v4  ;;  %4821 = vmatprep.subr.bf16.mxu1 %v8948_v5  ;;  %v9041_v4 = vld [vmem:[#allocation13 + $0x2c] ss:$16 sps:$4 sm:$0xff]   ;;  %v9036_v5 = vld [vmem:[#allocation13 + $0x20] ss:$16 sps:$4 sm:$0xff]  }
 0x3d6   :  { %4741 = vmatprep.mubr.bf16.mxu0 %v9026_v6  ;;  %4847 = vmatprep.mubr.bf16.mxu1 %v9026_v6  ;;  %v9039_v6 = vld [vmem:[#allocation13 + $0x28] ss:$16 sps:$4 sm:$0xff]  }
 0x3d8   :  { %4716 = vmatpush1.bf16.msra.mxu0 %v8943_v53  ;;  %4822 = vmatpush1.bf16.msra.mxu1 %v8946_v7  ;;  %v9044_v53 = vld [vmem:[#allocation13 + $0x44] ss:$16 sps:$4 sm:$0xff]   ;;  %v9047_v7 = vld [vmem:[#allocation13 + $0x4c] ss:$16 sps:$4 sm:$0xff]  }
 0x3d9   :  { %4717 = vmatprep.subr.bf16.mxu0 %v8951_v8  ;;  %4823 = vmatprep.subr.bf16.mxu1 %v8954_v9  ;;  %v9029_v8 = vld [vmem:[#allocation5 + $0x28] ss:$16 sps:$4 sm:$0xff]   ;;  %v9042_v9 = vld [vmem:[#allocation13 + $0x40] ss:$16 sps:$4 sm:$0xff]  }
 0x3dc   :  { %4718 = vmatpush1.bf16.msra.mxu0 %v8949_v11  ;;  %4824 = vmatpush1.bf16.msra.mxu1 %v8952_v12  ;;  %v9045_v11 = vld [vmem:[#allocation13 + $0x48] ss:$16 sps:$4 sm:$0xff]   ;;  %v9050_v12 = vld [vmem:[#allocation13 + $0x64] ss:$16 sps:$4 sm:$0xff]  }
 0x3dd   :  { %4719 = vmatprep.subr.bf16.mxu0 %v8957_v13  ;;  %4825 = vmatprep.subr.bf16.mxu1 %v8960_v14  ;;  %v9053_v13 = vld [vmem:[#allocation13 + $0x6c] ss:$16 sps:$4 sm:$0xff]   ;;  %v9048_v14 = vld [vmem:[#allocation13 + $0x60] ss:$16 sps:$4 sm:$0xff]  }
 0x3e0   :  { %4720 = vmatpush1.bf16.msra.mxu0 %v8955_v15  ;;  %4826 = vmatpush1.bf16.msra.mxu1 %v8958_v16  ;;  %v9051_v15 = vld [vmem:[#allocation13 + $0x68] ss:$16 sps:$4 sm:$0xff]   ;;  %v9056_v16 = vld [vmem:[#allocation13 + $0x84] ss:$16 sps:$4 sm:$0xff]  }
 0x3e1   :  { %4721 = vmatprep.subr.bf16.mxu0 %v8963_v17  ;;  %4827 = vmatprep.subr.bf16.mxu1 %v8966_v18  ;;  %v9059_v17 = vld [vmem:[#allocation13 + $0x8c] ss:$16 sps:$4 sm:$0xff]   ;;  %v9054_v18 = vld [vmem:[#allocation13 + $0x80] ss:$16 sps:$4 sm:$0xff]  }
 0x3e4   :  { %4722 = vmatpush1.bf16.msra.mxu0 %v8961_v19  ;;  %4828 = vmatpush1.bf16.msra.mxu1 %v8964_v20  ;;  %v9057_v19 = vld [vmem:[#allocation13 + $0x88] ss:$16 sps:$4 sm:$0xff]   ;;  %v9062_v20 = vld [vmem:[#allocation13 + $0xa4] ss:$16 sps:$4 sm:$0xff]  }
 0x3e5   :  { %4723 = vmatprep.subr.bf16.mxu0 %v8969_v21  ;;  %4829 = vmatprep.subr.bf16.mxu1 %v8972_v22  ;;  %v9065_v21 = vld [vmem:[#allocation13 + $0xac] ss:$16 sps:$4 sm:$0xff]   ;;  %v9060_v22 = vld [vmem:[#allocation13 + $0xa0] ss:$16 sps:$4 sm:$0xff]  }
 0x3e8   :  { %4724 = vmatpush1.bf16.msra.mxu0 %v8967_v24  ;;  %4830 = vmatpush1.bf16.msra.mxu1 %v8970_v25  ;;  %v9063_v24 = vld [vmem:[#allocation13 + $0xa8] ss:$16 sps:$4 sm:$0xff]   ;;  %v9068_v25 = vld [vmem:[#allocation13 + $0xc4] ss:$16 sps:$4 sm:$0xff]  }
 0x3e9   :  { %4725 = vmatprep.subr.bf16.mxu0 %v8975_v26  ;;  %4831 = vmatprep.subr.bf16.mxu1 %v8978_v27  ;;  %v9071_v26 = vld [vmem:[#allocation13 + $0xcc] ss:$16 sps:$4 sm:$0xff]   ;;  %v9066_v27 = vld [vmem:[#allocation13 + $0xc0] ss:$16 sps:$4 sm:$0xff]  }
 0x3ec   :  { %4726 = vmatpush1.bf16.msra.mxu0 %v8973_v28  ;;  %4832 = vmatpush1.bf16.msra.mxu1 %v8976_v29  ;;  %v9069_v28 = vld [vmem:[#allocation13 + $0xc8] ss:$16 sps:$4 sm:$0xff]   ;;  %v9074_v29 = vld [vmem:[#allocation13 + $0xe4] ss:$16 sps:$4 sm:$0xff]  }
 0x3ed   :  { %4727 = vmatprep.subr.bf16.mxu0 %v8981_v30  ;;  %4833 = vmatprep.subr.bf16.mxu1 %v8984_v31  ;;  %v9077_v30 = vld [vmem:[#allocation13 + $0xec] ss:$16 sps:$4 sm:$0xff]   ;;  %v9072_v31 = vld [vmem:[#allocation13 + $0xe0] ss:$16 sps:$4 sm:$0xff]  }
 0x3f0   :  { %4728 = vmatpush1.bf16.msra.mxu0 %v8979_v32  ;;  %4834 = vmatpush1.bf16.msra.mxu1 %v8982_v33  ;;  %v9075_v32 = vld [vmem:[#allocation13 + $0xe8] ss:$16 sps:$4 sm:$0xff]   ;;  %v9080_v33 = vld [vmem:[#allocation13 + $0x104] ss:$16 sps:$4 sm:$0xff]  }
 0x3f1   :  { %4729 = vmatprep.subr.bf16.mxu0 %v8987_v34  ;;  %4835 = vmatprep.subr.bf16.mxu1 %v8990_v35  ;;  %v9083_v34 = vld [vmem:[#allocation13 + $0x10c] ss:$16 sps:$4 sm:$0xff]   ;;  %v9078_v35 = vld [vmem:[#allocation13 + $0x100] ss:$16 sps:$4 sm:$0xff]  }
 0x3f4   :  { %4730 = vmatpush1.bf16.msra.mxu0 %v8985_v36  ;;  %4836 = vmatpush1.bf16.msra.mxu1 %v8988_v37  ;;  %v9081_v36 = vld [vmem:[#allocation13 + $0x108] ss:$16 sps:$4 sm:$0xff]   ;;  %v9086_v37 = vld [vmem:[#allocation13 + $0x124] ss:$16 sps:$4 sm:$0xff]  }
 0x3f5   :  { %4731 = vmatprep.subr.bf16.mxu0 %v8993_v38  ;;  %4837 = vmatprep.subr.bf16.mxu1 %v8996_v39  ;;  %v9089_v38 = vld [vmem:[#allocation13 + $0x12c] ss:$16 sps:$4 sm:$0xff]   ;;  %v9084_v39 = vld [vmem:[#allocation13 + $0x120] ss:$16 sps:$4 sm:$0xff]  }
 0x3f8   :  { %4732 = vmatpush1.bf16.msra.mxu0 %v8991_v40  ;;  %4838 = vmatpush1.bf16.msra.mxu1 %v8994_v44  ;;  %v9087_v40 = vld [vmem:[#allocation13 + $0x128] ss:$16 sps:$4 sm:$0xff]   ;;  %v9092_v44 = vld [vmem:[#allocation13 + $0x144] ss:$16 sps:$4 sm:$0xff]  }
 0x3f9   :  { %4733 = vmatprep.subr.bf16.mxu0 %v8999_v48  ;;  %4839 = vmatprep.subr.bf16.mxu1 %v9002_v49  ;;  %v9095_v48 = vld [vmem:[#allocation13 + $0x14c] ss:$16 sps:$4 sm:$0xff]   ;;  %v9090_v49 = vld [vmem:[#allocation13 + $0x140] ss:$16 sps:$4 sm:$0xff]  }
 0x3fc   :  { %4734 = vmatpush1.bf16.msra.mxu0 %v8997_v23  ;;  %4840 = vmatpush1.bf16.msra.mxu1 %v9000_v45  ;;  %v9093_v23 = vld [vmem:[#allocation13 + $0x148] ss:$16 sps:$4 sm:$0xff]   ;;  %v9098_v45 = vld [vmem:[#allocation13 + $0x164] ss:$16 sps:$4 sm:$0xff]  }
 0x3fd   :  { %4735 = vmatprep.subr.bf16.mxu0 %v9005_v52  ;;  %4841 = vmatprep.subr.bf16.mxu1 %v9008_v50  ;;  %v9101_v52 = vld [vmem:[#allocation13 + $0x16c] ss:$16 sps:$4 sm:$0xff]   ;;  %v9096_v50 = vld [vmem:[#allocation13 + $0x160] ss:$16 sps:$4 sm:$0xff]  }
 0x400   :  { %4736 = vmatpush1.bf16.msra.mxu0 %v9003_v54  ;;  %4842 = vmatpush1.bf16.msra.mxu1 %v9006_v55  ;;  %v9099_v54 = vld [vmem:[#allocation13 + $0x168] ss:$16 sps:$4 sm:$0xff]   ;;  %v9104_v55 = vld [vmem:[#allocation13 + $0x184] ss:$16 sps:$4 sm:$0xff]  }
 0x401   :  { %4737 = vmatprep.subr.bf16.mxu0 %v9014_v56  ;;  %4843 = vmatprep.subr.bf16.mxu1 %v9017_v57  ;;  %v9107_v56 = vld [vmem:[#allocation13 + $0x18c] ss:$16 sps:$4 sm:$0xff]   ;;  %v9102_v57 = vld [vmem:[#allocation13 + $0x180] ss:$16 sps:$4 sm:$0xff]  }
 0x404   :  { %4738 = vmatpush1.bf16.msra.mxu0 %v9012_v58  ;;  %4844 = vmatpush1.bf16.msra.mxu1 %v9015_v59  ;;  %v9105_v58 = vld [vmem:[#allocation13 + $0x188] ss:$16 sps:$4 sm:$0xff]   ;;  %v9110_v59 = vld [vmem:[#allocation13 + $0x1a4] ss:$16 sps:$4 sm:$0xff]  }
 0x405   :  { %4739 = vmatprep.subr.bf16.mxu0 %v9020_v41  ;;  %4845 = vmatprep.subr.bf16.mxu1 %v9023_v60  ;;  %v9113_v41 = vld [vmem:[#allocation13 + $0x1ac] ss:$16 sps:$4 sm:$0xff]   ;;  %v9108_v60 = vld [vmem:[#allocation13 + $0x1a0] ss:$16 sps:$4 sm:$0xff]  }
 0x408   :  { %4740 = vmatpush1.bf16.msra.mxu0 %v9018_v61  ;;  %4846 = vmatpush1.bf16.msra.mxu1 %v9021_v62  ;;  %v9111_v61 = vld [vmem:[#allocation13 + $0x1a8] ss:$16 sps:$4 sm:$0xff]   ;;  %v9116_v62 = vld [vmem:[#allocation13 + $0x1c4] ss:$16 sps:$4 sm:$0xff]  }
 0x409   :  { %5669 = vmatprep.subr.bf16.mxu0 %v9032_v10  ;;  %5775 = vmatprep.subr.bf16.mxu1 %v9035_v63  ;;  %v9119_v10 = vld [vmem:[#allocation13 + $0x1cc] ss:$16 sps:$4 sm:$0xff]   ;;  %v9114_v63 = vld [vmem:[#allocation13 + $0x1c0] ss:$16 sps:$4 sm:$0xff]  }
 0x40b   :  { %4742 = vmatmul.mubr.bf16.vlgmr.msra.gmra.mrb[24].mxu0 %v9024_v51  ;;  %4848 = vmatmul.mubr.bf16.vlgmr.msra.gmra.mrb[24].mxu1 %v9024_v51  ;;  %v9117_v51 = vld [vmem:[#allocation13 + $0x1c8] ss:$16 sps:$4 sm:$0xff]  }
 0x40c   :  { %4751 = vmatprep.mubr.bf16.mxu0 %v9027_v0  ;;  %4857 = vmatprep.mubr.bf16.mxu1 %v9027_v0  ;;  %v7263_v0 = vld [vmem:[%s10152_s8 + $0x1] ss:$4 sm:$0xf] }
 0x40d   :  { %5670 = vmatpush1.bf16.msra.mxu0 %v9030_v1  ;;  %5776 = vmatpush1.bf16.msra.mxu1 %v9033_v2  ;;  %v2855_v1 = vrot.slane %v7263_v0, %v9876_v42  ;;  %v2863_v2 = vrot.slane %v7263_v0, %v9878_v43 }
 0x40e   :  { %5671 = vmatprep.subr.bf16.mxu0 %v9038_v3  ;;  %5777 = vmatprep.subr.bf16.mxu1 %v9041_v4  ;;  %v2859_v3 = vrot.slane %v7263_v0, %v9883_v46 }
 0x411   :  { %5672 = vmatpush1.bf16.msra.mxu0 %v9036_v5  ;;  %5778 = vmatpush1.bf16.msra.mxu1 %v9039_v6  ;;  %v9910_v6 = vrot.slane %v7263_v0, %v9885_v47 }
 0x412   :  { %5673 = vmatprep.subr.bf16.mxu0 %v9044_v53  ;;  %5779 = vmatprep.subr.bf16.mxu1 %v9047_v7 }
 0x413   :  { %4752 = vmatmul.mubr.bf16.gmra.mrb[28].mxu0 %v9029_v8  ;;  %4858 = vmatmul.mubr.bf16.gmra.mrb[28].mxu1 %v9029_v8 }
 0x415   :  { %5674 = vmatpush1.bf16.msra.mxu0 %v9042_v9  ;;  %5780 = vmatpush1.bf16.msra.mxu1 %v9045_v11  ;;  %v9122_v9 = vld [vmem:[#allocation13 + $0x1e4] ss:$16 sps:$4 sm:$0xff]   ;;  %v9125_v11 = vld [vmem:[#allocation13 + $0x1ec] ss:$16 sps:$4 sm:$0xff]  }
 0x416   :  { %5675 = vmatprep.subr.bf16.mxu0 %v9050_v12  ;;  %5781 = vmatprep.subr.bf16.mxu1 %v9053_v13 }
 0x419   :  { %5676 = vmatpush1.bf16.msra.mxu0 %v9048_v14  ;;  %5782 = vmatpush1.bf16.msra.mxu1 %v9051_v15 }
 0x41a   :  { %5677 = vmatprep.subr.bf16.mxu0 %v9056_v16  ;;  %5783 = vmatprep.subr.bf16.mxu1 %v9059_v17  ;;  %v9120_v16 = vld [vmem:[#allocation13 + $0x1e0] ss:$16 sps:$4 sm:$0xff]   ;;  %v9123_v17 = vld [vmem:[#allocation13 + $0x1e8] ss:$16 sps:$4 sm:$0xff]  }
 0x41d   :  { %5678 = vmatpush1.bf16.msra.mxu0 %v9054_v18  ;;  %5784 = vmatpush1.bf16.msra.mxu1 %v9057_v19 }
 0x41e   :  { %5679 = vmatprep.subr.bf16.mxu0 %v9062_v20  ;;  %5785 = vmatprep.subr.bf16.mxu1 %v9065_v21 }
 0x421   :  { %5680 = vmatpush1.bf16.msra.mxu0 %v9060_v22  ;;  %5786 = vmatpush1.bf16.msra.mxu1 %v9063_v24 }
 0x422   :  { %5681 = vmatprep.subr.bf16.mxu0 %v9068_v25  ;;  %5787 = vmatprep.subr.bf16.mxu1 %v9071_v26 }
 0x425   :  { %5682 = vmatpush1.bf16.msra.mxu0 %v9066_v27  ;;  %5788 = vmatpush1.bf16.msra.mxu1 %v9069_v28  ;;  %v9128_v28 = vld [vmem:[#allocation13 + $0x204] ss:$16 sps:$4 sm:$0xff]  }
 0x426   :  { %5683 = vmatprep.subr.bf16.mxu0 %v9074_v29  ;;  %5789 = vmatprep.subr.bf16.mxu1 %v9077_v30  ;;  %v9131_v29 = vld [vmem:[#allocation13 + $0x20c] ss:$16 sps:$4 sm:$0xff]  }
 0x429   :  { %5684 = vmatpush1.bf16.msra.mxu0 %v9072_v31  ;;  %5790 = vmatpush1.bf16.msra.mxu1 %v9075_v32 }
 0x42a   :  { %5685 = vmatprep.subr.bf16.mxu0 %v9080_v33  ;;  %5791 = vmatprep.subr.bf16.mxu1 %v9083_v34 }
 0x42d   :  { %5686 = vmatpush1.bf16.msra.mxu0 %v9078_v35  ;;  %5792 = vmatpush1.bf16.msra.mxu1 %v9081_v36 }
 0x42e   :  { %5687 = vmatprep.subr.bf16.mxu0 %v9086_v37  ;;  %5793 = vmatprep.subr.bf16.mxu1 %v9089_v38 }
 0x431   :  { %5688 = vmatpush1.bf16.msra.mxu0 %v9084_v39  ;;  %5794 = vmatpush1.bf16.msra.mxu1 %v9087_v40 }
 0x432   :  { %5689 = vmatprep.subr.bf16.mxu0 %v9092_v44  ;;  %5795 = vmatprep.subr.bf16.mxu1 %v9095_v48 }
 0x435   :  { %5690 = vmatpush1.bf16.msra.mxu0 %v9090_v49  ;;  %5796 = vmatpush1.bf16.msra.mxu1 %v9093_v23 }
 0x436   :  { %5691 = vmatprep.subr.bf16.mxu0 %v9098_v45  ;;  %5797 = vmatprep.subr.bf16.mxu1 %v9101_v52 }
 0x439   :  { %5692 = vmatpush1.bf16.msra.mxu0 %v9096_v50  ;;  %5798 = vmatpush1.bf16.msra.mxu1 %v9099_v54 }
 0x43a   :  { %5693 = vmatprep.subr.bf16.mxu0 %v9104_v55  ;;  %5799 = vmatprep.subr.bf16.mxu1 %v9107_v56 }
 0x43d   :  { %5694 = vmatpush1.bf16.msra.mxu0 %v9102_v57  ;;  %5800 = vmatpush1.bf16.msra.mxu1 %v9105_v58 }
 0x43e   :  { %5695 = vmatprep.subr.bf16.mxu0 %v9110_v59  ;;  %5801 = vmatprep.subr.bf16.mxu1 %v9113_v41 }
 0x441   :  { %5696 = vmatpush1.bf16.msra.mxu0 %v9108_v60  ;;  %5802 = vmatpush1.bf16.msra.mxu1 %v9111_v61 }
 0x442   :  { %5697 = vmatprep.subr.bf16.mxu0 %v9116_v62  ;;  %5803 = vmatprep.subr.bf16.mxu1 %v9119_v10 }
 0x445   :  { %5698 = vmatpush1.bf16.msra.mxu0 %v9114_v63  ;;  %5804 = vmatpush1.bf16.msra.mxu1 %v9117_v51 }
 0x446   :  { %5699 = vmatprep.subr.bf16.mxu0 %v9122_v9  ;;  %5805 = vmatprep.subr.bf16.mxu1 %v9125_v11 }
 0x449   :  { %5700 = vmatpush1.bf16.msra.mxu0 %v9120_v16  ;;  %5806 = vmatpush1.bf16.msra.mxu1 %v9123_v17 }
 0x44a   :  { %5722 = vmatprep.subr.bf16.mxu0 %v9128_v28  ;;  %5828 = vmatprep.subr.bf16.mxu1 %v9131_v29 }
 0x45d   :  { %v3599_v4 = vpop.f32.mrb[16].mxu0  ;;  %v3705_v5 = vpop.f32.mrb[16].mxu1 }
 0x45e   :  { %v9912_v53 = vadd.f32 %v3599_v4, %v2855_v1  ;;  %v3601_v7 = vpop.f32.mrb[17].mxu0  ;;  %v3707_v8 = vpop.f32.mrb[17].mxu1  ;;  %v9914_v12 = vadd.f32 %v3705_v5, %v2863_v2 }
 0x45f   :  { %v9916_v13 = vadd.f32 %v3601_v7, %v2859_v3  ;;  %v3603_v14 = vpop.f32.mrb[18].mxu0  ;;  %v3709_v15 = vpop.f32.mrb[18].mxu1  ;;  %v9925_v24 = vadd.f32 %v3707_v8, %v9910_v6 }
 0x460   :  { %v3724_v18 = vmul.f32 %v9912_v53, %v9912_v53  ;;  %v9920_v19 = vadd.f32 %v3603_v14, %v2855_v1  ;;  %v3605_v20 = vpop.f32.mrb[19].mxu0  ;;  %v3711_v21 = vpop.f32.mrb[19].mxu1  ;;  %v9927_v25 = vadd.f32 %v3709_v15, %v2863_v2  ;;  %v3726_v30 = vmul.f32 %v9914_v12, %v9914_v12 }
 0x461   :  { %v3725_v22 = vmul.f32 %v9916_v13, %v9916_v13  ;;  %v9929_v26 = vadd.f32 %v3605_v20, %v2859_v3  ;;  %v9938_v33 = vadd.f32 %v3711_v21, %v9910_v6  ;;  %v3727_v38 = vmul.f32 %v9925_v24, %v9925_v24 }
 0x462   :  { %v3728_v27 = vmul.f32 %v9920_v19, %v9920_v19  ;;  %v3730_v34 = vmul.f32 %v9927_v25, %v9927_v25 }
 0x463   :  { %v3729_v31 = vmul.f32 %v9929_v26, %v9929_v26  ;;  %v3740_v32 = vadd.f32 %v3725_v22, %v3724_v18  ;;  %v3731_v55 = vmul.f32 %v9938_v33, %v9938_v33 }
 0x465   :  { %v3745_v35 = vadd.f32 %v3729_v31, %v3728_v27  ;;  %v3609_v36 = vpop.f32.mrb[20].mxu0  ;;  %v3715_v37 = vpop.f32.mrb[20].mxu1  ;;  %v3741_v39 = vadd.f32 %v3740_v32, %v3726_v30  ;;  %v9126_v31 = vld [vmem:[#allocation13 + $0x200] ss:$16 sps:$4 sm:$0xff]   ;;  %v9129_v32 = vld [vmem:[#allocation13 + $0x208] ss:$16 sps:$4 sm:$0xff]  }
 0x466   :  { %v9944_v40 = vadd.f32 %v3609_v36, %v2855_v1  ;;  %v3611_v44 = vpop.f32.mrb[21].mxu0  ;;  %v3717_v48 = vpop.f32.mrb[21].mxu1  ;;  %v9946_v49 = vadd.f32 %v3715_v37, %v2863_v2  ;;  %v9132_v37 = vld [vmem:[#allocation13 + $0x220] ss:$16 sps:$4 sm:$0xff]  }
 0x467   :  { %v9948_v23 = vadd.f32 %v3611_v44, %v2859_v3  ;;  %v3613_v45 = vpop.f32.mrb[22].mxu0  ;;  %v3719_v52 = vpop.f32.mrb[22].mxu1  ;;  %v3742_v50 = vadd.f32 %v3741_v39, %v3727_v38  ;;  %v3746_v54 = vadd.f32 %v3745_v35, %v3730_v34  ;;  %v9959_v60 = vadd.f32 %v3717_v48, %v9910_v6  ;;  %v9134_v34 = vld [vmem:[#allocation13 + $0x224] ss:$16 sps:$4 sm:$0xff]   ;;  %v9137_v35 = vld [vmem:[#allocation13 + $0x22c] ss:$16 sps:$4 sm:$0xff]  }
 0x468   :  { %v3732_v56 = vmul.f32 %v9944_v40, %v9944_v40  ;;  %v9954_v57 = vadd.f32 %v3613_v45, %v2855_v1  ;;  %v3615_v58 = vpop.f32.mrb[23].mxu0  ;;  %v3721_v59 = vpop.f32.mrb[23].mxu1  ;;  %v9961_v61 = vadd.f32 %v3719_v52, %v2863_v2  ;;  %v3734_v63 = vmul.f32 %v9946_v49, %v9946_v49  ;;  %v9135_v38 = vld [vmem:[#allocation13 + $0x228] ss:$16 sps:$4 sm:$0xff]   ;;  %v9140_v48 = vld [vmem:[#allocation13 + $0x244] ss:$16 sps:$4 sm:$0xff]  }
 0x469   :  { %v3733_v41 = vmul.f32 %v9948_v23, %v9948_v23  ;;  %v9963_v62 = vadd.f32 %v3615_v58, %v2859_v3  ;;  %3743 = vadd.xlane.f32.xlu0 %v3742_v50  ;;  %v3747_v0 = vadd.f32 %v3746_v54, %v3731_v55  ;;  %v9972_v4 = vadd.f32 %v3721_v59, %v9910_v6  ;;  %v9143_v45 = vld [vmem:[#allocation13 + $0x24c] ss:$16 sps:$4 sm:$0xff]  }
 0x46a   :  { %v3736_v10 = vmul.f32 %v9954_v57, %v9954_v57  ;;  %v3738_v2 = vmul.f32 %v9961_v61, %v9961_v61  ;;  %v3735_v5 = vmul.f32 %v9959_v60, %v9959_v60 }
 0x46b   :  { %v3737_v51 = vmul.f32 %v9963_v62, %v9963_v62  ;;  %v3750_v1 = vadd.f32 %v3733_v41, %v3732_v56  ;;  %v3739_v11 = vmul.f32 %v9972_v4, %v9972_v4 }
 0x46d   :  { %v3755_v3 = vadd.f32 %v3737_v51, %v3736_v10  ;;  %3748 = vadd.xlane.f32.xlu0 %v3747_v0  ;;  %v3751_v7 = vadd.f32 %v3750_v1, %v3734_v63  ;;  %v9138_v10 = vld [vmem:[#allocation13 + $0x240] ss:$16 sps:$4 sm:$0xff]   ;;  %v9141_v63 = vld [vmem:[#allocation13 + $0x248] ss:$16 sps:$4 sm:$0xff]   ;;  %v9146_v0 = vld [vmem:[#allocation13 + $0x264] ss:$16 sps:$4 sm:$0xff]  }
 0x46e   :  { %v9149_v1 = vld [vmem:[#allocation13 + $0x26c] ss:$16 sps:$4 sm:$0xff]  }
 0x46f   :  { %v3752_v8 = vadd.f32 %v3751_v7, %v3735_v5  ;;  %v3756_v9 = vadd.f32 %v3755_v3, %v3738_v2  ;;  %v9144_v2 = vld [vmem:[#allocation13 + $0x260] ss:$16 sps:$4 sm:$0xff]   ;;  %v9147_v3 = vld [vmem:[#allocation13 + $0x268] ss:$16 sps:$4 sm:$0xff]   ;;  %v9152_v5 = vld [vmem:[#allocation13 + $0x284] ss:$16 sps:$4 sm:$0xff]  }
 0x470   :  { %v9155_v7 = vld [vmem:[#allocation13 + $0x28c] ss:$16 sps:$4 sm:$0xff]  }
 0x471   :  { %3753 = vadd.xlane.f32.xlu1 %v3752_v8  ;;  %v3757_v14 = vadd.f32 %v3756_v9, %v3739_v11  ;;  %v9150_v8 = vld [vmem:[#allocation13 + $0x280] ss:$16 sps:$4 sm:$0xff]   ;;  %v9153_v9 = vld [vmem:[#allocation13 + $0x288] ss:$16 sps:$4 sm:$0xff]   ;;  %v9158_v11 = vld [vmem:[#allocation13 + $0x2a4] ss:$16 sps:$4 sm:$0xff]  }
 0x475   :  { %3758 = vadd.xlane.f32.xlu1 %v3757_v14  ;;  %v9161_v14 = vld [vmem:[#allocation13 + $0x2ac] ss:$16 sps:$4 sm:$0xff]  }
 0x4de   :  { %v4743_v15 = vpop.f32.mrb[24].mxu0  ;;  %v4849_v6 = vpop.f32.mrb[24].mxu1 }
 0x4df   :  { %v4745_v16 = vpop.f32.mrb[25].mxu0  ;;  %v4851_v17 = vpop.f32.mrb[25].mxu1 }
 0x4e0   :  { %v4747_v18 = vpop.f32.mrb[26].mxu0  ;;  %v4853_v20 = vpop.f32.mrb[26].mxu1 }
 0x4e1   :  { %v4872_v21 = vpack.c.bf16 %v4747_v18, %v4743_v15  ;;  %v9980_v22 = vpack.c.bf16 %v4853_v20, %v4849_v6  ;;  %v4749_v27 = vpop.f32.mrb[27].mxu0  ;;  %v4855_v28 = vpop.f32.mrb[27].mxu1  ;;  %v9156_v6 = vld [vmem:[#allocation13 + $0x2a0] ss:$16 sps:$4 sm:$0xff]   ;;  %v9164_v18 = vld [vmem:[#allocation13 + $0x2c4] ss:$16 sps:$4 sm:$0xff]  }
 0x4e2   :  { %v4873_v29 = vpack.c.bf16 %v4749_v27, %v4745_v16  ;;  %v4875_v30 = vpack.c.bf16 %v4855_v28, %v4851_v17  ;;  %v9159_v16 = vld [vmem:[#allocation13 + $0x2a8] ss:$16 sps:$4 sm:$0xff]   ;;  %v9167_v20 = vld [vmem:[#allocation13 + $0x2cc] ss:$16 sps:$4 sm:$0xff]   ;;  %v9162_v27 = vld [vmem:[#allocation13 + $0x2c0] ss:$16 sps:$4 sm:$0xff]  }
 0x4e3   :  { %v9165_v28 = vld [vmem:[#allocation13 + $0x2c8] ss:$16 sps:$4 sm:$0xff]  }
 0x4e4   :  { %5701 = vmatprep.mubr.bf16.mxu0 %v4873_v29  ;;  %5807 = vmatprep.mubr.bf16.mxu1 %v4873_v29 }
 0x4e5   :  { %5702 = vmatmul.mubr.bf16.vlgmr.msra.gmra.mrb[32].mxu0 %v4872_v21  ;;  %5808 = vmatmul.mubr.bf16.vlgmr.msra.gmra.mrb[32].mxu1 %v4872_v21 }
 0x4e6   :  { %5723 = vmatpush1.bf16.msra.mxu0 %v9126_v31  ;;  %5829 = vmatpush1.bf16.msra.mxu1 %v9129_v32  ;;  %v4753_v36 = vpop.f32.mrb[28].mxu0  ;;  %v4859_v39 = vpop.f32.mrb[28].mxu1  ;;  %v9173_v31 = vld [vmem:[#allocation13 + $0x2ec] ss:$16 sps:$4 sm:$0xff]  }
 0x4e7   :  { %v4755_v44 = vpop.f32.mrb[29].mxu0  ;;  %5724 = vmatprep.subr.bf16.mxu0 %v9134_v34  ;;  %5830 = vmatprep.subr.bf16.mxu1 %v9137_v35  ;;  %v4861_v52 = vpop.f32.mrb[29].mxu1  ;;  %v9168_v34 = vld [vmem:[#allocation13 + $0x2e0] ss:$16 sps:$4 sm:$0xff]   ;;  %v9171_v35 = vld [vmem:[#allocation13 + $0x2e8] ss:$16 sps:$4 sm:$0xff]  }
 0x4e8   :  { %v4757_v50 = vpop.f32.mrb[30].mxu0  ;;  %v4863_v54 = vpop.f32.mrb[30].mxu1 }
 0x4e9   :  { %v4876_v55 = vpack.c.bf16 %v4757_v50, %v4753_v36  ;;  %v4759_v56 = vpop.f32.mrb[31].mxu0  ;;  %v9982_v58 = vpack.c.bf16 %v4863_v54, %v4859_v39  ;;  %v4865_v59 = vpop.f32.mrb[31].mxu1  ;;  %v9182_v50 = vld [vmem:[#allocation13 + $0x324] ss:$16 sps:$4 sm:$0xff]   ;;  %v9185_v54 = vld [vmem:[#allocation13 + $0x32c] ss:$16 sps:$4 sm:$0xff]  }
 0x4ea   :  { %v4877_v41 = vpack.c.bf16 %v4759_v56, %v4755_v44  ;;  %5725 = vmatpush1.bf16.msra.mxu0 %v9132_v37  ;;  %5831 = vmatpush1.bf16.msra.mxu1 %v9135_v38  ;;  %v9984_v51 = vpack.c.bf16 %v4865_v59, %v4861_v52  ;;  %v9176_v37 = vld [vmem:[#allocation13 + $0x304] ss:$16 sps:$4 sm:$0xff]   ;;  %v9179_v38 = vld [vmem:[#allocation13 + $0x30c] ss:$16 sps:$4 sm:$0xff]   ;;  %v9174_v44 = vld [vmem:[#allocation13 + $0x300] ss:$16 sps:$4 sm:$0xff]  }
 0x4eb   :  { %5726 = vmatprep.subr.bf16.mxu0 %v9140_v48  ;;  %5832 = vmatprep.subr.bf16.mxu1 %v9143_v45  ;;  %v9177_v48 = vld [vmem:[#allocation13 + $0x308] ss:$16 sps:$4 sm:$0xff]  }
 0x4ec   :  { %5711 = vmatprep.mubr.bf16.mxu0 %v4877_v41  ;;  %5817 = vmatprep.mubr.bf16.mxu1 %v4877_v41 }
 0x4ed   :  { %5712 = vmatmul.mubr.bf16.gmra.mrb[36].mxu0 %v4876_v55  ;;  %5818 = vmatmul.mubr.bf16.gmra.mrb[36].mxu1 %v4876_v55 }
 0x4ee   :  { %5727 = vmatpush1.bf16.msra.mxu0 %v9138_v10  ;;  %5833 = vmatpush1.bf16.msra.mxu1 %v9141_v63  ;;  %v9180_v10 = vld [vmem:[#allocation13 + $0x320] ss:$16 sps:$4 sm:$0xff]   ;;  %v9183_v63 = vld [vmem:[#allocation13 + $0x328] ss:$16 sps:$4 sm:$0xff]  }
 0x4ef   :  { %5754 = vmatprep.mubr.bf16.mxu0 %v4875_v30  ;;  %5860 = vmatprep.mubr.bf16.mxu1 %v4875_v30  ;;  %v9170_v30 = vld [vmem:[#allocation13 + $0x2e4] ss:$16 sps:$4 sm:$0xff]  }
 0x4f0   :  { %5728 = vmatprep.subr.bf16.mxu0 %v9146_v0  ;;  %5834 = vmatprep.subr.bf16.mxu1 %v9149_v1 }
 0x4f2   :  { %5729 = vmatpush1.bf16.msra.mxu0 %v9144_v2  ;;  %5835 = vmatpush1.bf16.msra.mxu1 %v9147_v3  ;;  %v9188_v3 = vld [vmem:[#allocation13 + $0x344] ss:$16 sps:$4 sm:$0xff]  }
 0x4f3   :  { %5730 = vmatprep.subr.bf16.mxu0 %v9152_v5  ;;  %5836 = vmatprep.subr.bf16.mxu1 %v9155_v7  ;;  %v9191_v5 = vld [vmem:[#allocation13 + $0x34c] ss:$16 sps:$4 sm:$0xff]   ;;  %v9186_v7 = vld [vmem:[#allocation13 + $0x340] ss:$16 sps:$4 sm:$0xff]  }
 0x4f6   :  { %5731 = vmatpush1.bf16.msra.mxu0 %v9150_v8  ;;  %5837 = vmatpush1.bf16.msra.mxu1 %v9153_v9  ;;  %v3744_v15 = vpop.xlane.xlu0 %3743  ;;  %v9189_v8 = vld [vmem:[#allocation13 + $0x348] ss:$16 sps:$4 sm:$0xff]  }
 0x4f7   :  { %v3760_v17 = vmax.f32 %v3744_v15, 1e-24  ;;  %5732 = vmatprep.subr.bf16.mxu0 %v9158_v11  ;;  %5838 = vmatprep.subr.bf16.mxu1 %v9161_v14  ;;  %v9194_v15 = vld [vmem:[#allocation13 + $0x364] ss:$16 sps:$4 sm:$0xff]  }
 0x4f9   :  { %9414 = vrsqrt.f32 %v3760_v17  ;;  %v9195_v17 = vld [vmem:[#allocation13 + $0x368] ss:$16 sps:$4 sm:$0xff]  }
 0x4fa   :  { %5733 = vmatpush1.bf16.msra.mxu0 %v9156_v6  ;;  %5839 = vmatpush1.bf16.msra.mxu1 %v9159_v16  ;;  %v3749_v21 = vpop.xlane.xlu0 %3748  ;;  %v9197_v6 = vld [vmem:[#allocation13 + $0x36c] ss:$16 sps:$4 sm:$0xff]   ;;  %v9192_v16 = vld [vmem:[#allocation13 + $0x360] ss:$16 sps:$4 sm:$0xff]  }
 0x4fb   :  { %v3761_v29 = vmax.f32 %v3749_v21, 1e-24  ;;  %5734 = vmatprep.subr.bf16.mxu0 %v9164_v18  ;;  %5840 = vmatprep.subr.bf16.mxu1 %v9167_v20 }
 0x4fd   :  { %9416 = vrsqrt.f32 %v3761_v29  ;;  %v9198_v29 = vld [vmem:[#allocation13 + $0x380] ss:$16 sps:$4 sm:$0xff]  }
 0x4fe   :  { %5735 = vmatpush1.bf16.msra.mxu0 %v9162_v27  ;;  %5841 = vmatpush1.bf16.msra.mxu1 %v9165_v28  ;;  %v3754_v32 = vpop.xlane.xlu1 %3753  ;;  %v9200_v27 = vld [vmem:[#allocation13 + $0x384] ss:$16 sps:$4 sm:$0xff]   ;;  %v9203_v28 = vld [vmem:[#allocation13 + $0x38c] ss:$16 sps:$4 sm:$0xff]  }
 0x4ff   :  { %v3762_v36 = vmax.f32 %v3754_v32, 1e-24  ;;  %5736 = vmatprep.subr.bf16.mxu0 %v9170_v30  ;;  %5842 = vmatprep.subr.bf16.mxu1 %v9173_v31  ;;  %v9201_v30 = vld [vmem:[#allocation13 + $0x388] ss:$16 sps:$4 sm:$0xff]  }
 0x501   :  { %9418 = vrsqrt.f32 %v3762_v36  ;;  %v9210_v36 = vld [vmem:[#allocation13 + $0x3c0] ss:$16 sps:$4 sm:$0xff]  }
 0x502   :  { %5737 = vmatpush1.bf16.msra.mxu0 %v9168_v34  ;;  %5843 = vmatpush1.bf16.msra.mxu1 %v9171_v35  ;;  %v3759_v39 = vpop.xlane.xlu1 %3758  ;;  %v9206_v34 = vld [vmem:[#allocation13 + $0x3a4] ss:$16 sps:$4 sm:$0xff]   ;;  %v9209_v35 = vld [vmem:[#allocation13 + $0x3ac] ss:$16 sps:$4 sm:$0xff]  }
 0x503   :  { %v9415_v45 = vpop.eup %9414  ;;  %v3763_v52 = vmax.f32 %v3759_v39, 1e-24  ;;  %5738 = vmatprep.subr.bf16.mxu0 %v9176_v37  ;;  %5844 = vmatprep.subr.bf16.mxu1 %v9179_v38  ;;  %v9213_v37 = vld [vmem:[#allocation13 + $0x3c8] ss:$16 sps:$4 sm:$0xff]   ;;  %v9218_v38 = vld [vmem:[#allocation13 + $0x3e4] ss:$16 sps:$4 sm:$0xff]  }
 0x504   :  { %v3768_v55 = vmul.f32 %v9415_v45, %v9912_v53  ;;  %v3769_v56 = vmul.f32 %v9415_v45, %v9916_v13  ;;  %v3770_v59 = vmul.f32 %v9415_v45, %v9914_v12  ;;  %v3771_v41 = vmul.f32 %v9415_v45, %v9925_v24  ;;  %v9221_v39 = vld [vmem:[#allocation13 + $0x3ec] ss:$16 sps:$4 sm:$0xff]   ;;  %v9224_v45 = vld [vmem:[#allocation14 + $0x4] ss:$16 sps:$4 sm:$0xff]  }
 0x505   :  { %9420 = vrsqrt.f32 %v3763_v52  ;;  %v9227_v52 = vld [vmem:[#allocation14 + $0xc] ss:$16 sps:$4 sm:$0xff]  }
 0x506   :  { %5739 = vmatpush1.bf16.msra.mxu0 %v9174_v44  ;;  %5845 = vmatpush1.bf16.msra.mxu1 %v9177_v48  ;;  %v7930_v0 = vpack.c.bf16 %v3769_v56, %v3768_v55  ;;  %v7931_v1 = vpack.c.bf16 %v3771_v41, %v3770_v59  ;;  %v9216_v44 = vld [vmem:[#allocation13 + $0x3e0] ss:$16 sps:$4 sm:$0xff]   ;;  %v9219_v48 = vld [vmem:[#allocation13 + $0x3e8] ss:$16 sps:$4 sm:$0xff]   ;;  %v9230_v55 = vld [vmem:[#allocation14 + $0x24] ss:$16 sps:$4 sm:$0xff]  }
 0x507   :  { %v9417_v2 = vpop.eup %9416  ;;  %5740 = vmatprep.subr.bf16.mxu0 %v9182_v50  ;;  %5846 = vmatprep.subr.bf16.mxu1 %v9185_v54  ;;  %v9222_v50 = vld [vmem:[#allocation14] ss:$16 sps:$4 sm:$0xff]   ;;  %v9225_v54 = vld [vmem:[#allocation14 + $0x8] ss:$16 sps:$4 sm:$0xff]   ;;  %v9233_v56 = vld [vmem:[#allocation14 + $0x2c] ss:$16 sps:$4 sm:$0xff]  }
 0x508   :  { %v3772_v53 = vmul.f32 %v9417_v2, %v9920_v19  ;;  %v3773_v13 = vmul.f32 %v9417_v2, %v9929_v26  ;;  %v3774_v12 = vmul.f32 %v9417_v2, %v9927_v25  ;;  %v3775_v24 = vmul.f32 %v9417_v2, %v9938_v33  ;;  %3832 = vst [vmem:[#allocation16] sm:$0xff] %v7930_v0  ;;  %v9228_v59 = vld [vmem:[#allocation14 + $0x20] ss:$16 sps:$4 sm:$0xff]   ;;  %v9231_v41 = vld [vmem:[#allocation14 + $0x28] ss:$16 sps:$4 sm:$0xff]  }
 0x509   :  { %3833 = vst [vmem:[#allocation16 + $0x8] sm:$0xff] %v7931_v1  ;;  %v9234_v0 = vld [vmem:[#allocation14 + $0x40] ss:$16 sps:$4 sm:$0xff]   ;;  %v9237_v1 = vld [vmem:[#allocation14 + $0x48] ss:$16 sps:$4 sm:$0xff]  }
 0x50a   :  { %5741 = vmatpush1.bf16.msra.mxu0 %v9180_v10  ;;  %5847 = vmatpush1.bf16.msra.mxu1 %v9183_v63  ;;  %v7932_v9 = vpack.c.bf16 %v3773_v13, %v3772_v53  ;;  %v7933_v11 = vpack.c.bf16 %v3775_v24, %v3774_v12  ;;  %v9236_v10 = vld [vmem:[#allocation14 + $0x44] ss:$16 sps:$4 sm:$0xff]   ;;  %v9239_v63 = vld [vmem:[#allocation14 + $0x4c] ss:$16 sps:$4 sm:$0xff]   ;;  %v9246_v13 = vld [vmem:[#allocation14 + $0x80] ss:$16 sps:$4 sm:$0xff]  }
 0x50b   :  { %v9419_v14 = vpop.eup %9418  ;;  %5742 = vmatprep.subr.bf16.mxu0 %v9188_v3  ;;  %5848 = vmatprep.subr.bf16.mxu1 %v9191_v5  ;;  %v9242_v2 = vld [vmem:[#allocation14 + $0x64] ss:$16 sps:$4 sm:$0xff]   ;;  %v9243_v3 = vld [vmem:[#allocation14 + $0x68] ss:$16 sps:$4 sm:$0xff]   ;;  %v9251_v53 = vld [vmem:[#allocation14 + $0x8c] ss:$16 sps:$4 sm:$0xff]  }
 0x50c   :  { %v3776_v19 = vmul.f32 %v9419_v14, %v9944_v40  ;;  %v3777_v26 = vmul.f32 %v9419_v14, %v9948_v23  ;;  %v3778_v25 = vmul.f32 %v9419_v14, %v9946_v49  ;;  %v3779_v33 = vmul.f32 %v9419_v14, %v9959_v60  ;;  %3834 = vst [vmem:[#allocation16 + $0x10] sm:$0xff] %v7932_v9  ;;  %v9248_v5 = vld [vmem:[#allocation14 + $0x84] ss:$16 sps:$4 sm:$0xff]   ;;  %v9249_v12 = vld [vmem:[#allocation14 + $0x88] ss:$16 sps:$4 sm:$0xff]  }
 0x50d   :  { %3835 = vst [vmem:[#allocation16 + $0x18] sm:$0xff] %v7933_v11  ;;  %v9254_v24 = vld [vmem:[#allocation14 + $0xa4] ss:$16 sps:$4 sm:$0xff]   ;;  %v9263_v11 = vld [vmem:[#allocation14 + $0xcc] ss:$16 sps:$4 sm:$0xff]  }
 0x50e   :  { %5743 = vmatpush1.bf16.msra.mxu0 %v9186_v7  ;;  %5849 = vmatpush1.bf16.msra.mxu1 %v9189_v8  ;;  %v7934_v18 = vpack.c.bf16 %v3777_v26, %v3776_v19  ;;  %v7935_v20 = vpack.c.bf16 %v3779_v33, %v3778_v25  ;;  %v9257_v7 = vld [vmem:[#allocation14 + $0xac] ss:$16 sps:$4 sm:$0xff]   ;;  %v9252_v8 = vld [vmem:[#allocation14 + $0xa0] ss:$16 sps:$4 sm:$0xff]   ;;  %v9260_v9 = vld [vmem:[#allocation14 + $0xc4] ss:$16 sps:$4 sm:$0xff]  }
 0x50f   :  { %v9421_v21 = vpop.eup %9420  ;;  %5744 = vmatprep.subr.bf16.mxu0 %v9194_v15  ;;  %5850 = vmatprep.subr.bf16.mxu1 %v9197_v6  ;;  %v9258_v14 = vld [vmem:[#allocation14 + $0xc0] ss:$16 sps:$4 sm:$0xff]   ;;  %v9261_v15 = vld [vmem:[#allocation14 + $0xc8] ss:$16 sps:$4 sm:$0xff]   ;;  %v9266_v6 = vld [vmem:[#allocation14 + $0xe4] ss:$16 sps:$4 sm:$0xff]  }
 0x510   :  { %v3780_v40 = vmul.f32 %v9421_v21, %v9954_v57  ;;  %v3781_v23 = vmul.f32 %v9421_v21, %v9963_v62  ;;  %v3782_v49 = vmul.f32 %v9421_v21, %v9961_v61  ;;  %v3783_v60 = vmul.f32 %v9421_v21, %v9972_v4  ;;  %3836 = vst [vmem:[#allocation16 + $0x20] sm:$0xff] %v7934_v18  ;;  %v9204_v57 = vld [vmem:[#allocation13 + $0x3a0] ss:$16 sps:$4 sm:$0xff]   ;;  %v9207_v61 = vld [vmem:[#allocation13 + $0x3a8] ss:$16 sps:$4 sm:$0xff]  }
 0x511   :  { %3837 = vst [vmem:[#allocation16 + $0x28] sm:$0xff] %v7935_v20  ;;  %v9212_v62 = vld [vmem:[#allocation13 + $0x3c4] ss:$16 sps:$4 sm:$0xff]   ;;  %v9215_v4 = vld [vmem:[#allocation13 + $0x3cc] ss:$16 sps:$4 sm:$0xff]  }
 0x512   :  { %5745 = vmatpush1.bf16.msra.mxu0 %v9192_v16  ;;  %5851 = vmatpush1.bf16.msra.mxu1 %v9195_v17  ;;  %v7936_v31 = vpack.c.bf16 %v3781_v23, %v3780_v40  ;;  %v7937_v32 = vpack.c.bf16 %v3783_v60, %v3782_v49  ;;  %v9269_v19 = vld [vmem:[#allocation14 + $0xec] ss:$16 sps:$4 sm:$0xff]   ;;  %v9264_v26 = vld [vmem:[#allocation14 + $0xe0] ss:$16 sps:$4 sm:$0xff]   ;;  %v9267_v25 = vld [vmem:[#allocation14 + $0xe8] ss:$16 sps:$4 sm:$0xff]  }
 0x513   :  { %5746 = vmatprep.subr.bf16.mxu0 %v9200_v27  ;;  %5852 = vmatprep.subr.bf16.mxu1 %v9203_v28  ;;  %v9272_v33 = vld [vmem:[#allocation14 + $0x104] ss:$16 sps:$4 sm:$0xff]   ;;  %v9275_v16 = vld [vmem:[#allocation14 + $0x10c] ss:$16 sps:$4 sm:$0xff]   ;;  %v9270_v17 = vld [vmem:[#allocation14 + $0x100] ss:$16 sps:$4 sm:$0xff]  }
 0x514   :  { %3838 = vst [vmem:[#allocation16 + $0x30] sm:$0xff] %v7936_v31  ;;  %3839 = vst [vmem:[#allocation16 + $0x38] sm:$0xff] %v7937_v32  ;;  %v9273_v18 = vld [vmem:[#allocation14 + $0x108] ss:$16 sps:$4 sm:$0xff]   ;;  %v9278_v20 = vld [vmem:[#allocation14 + $0x124] ss:$16 sps:$4 sm:$0xff]  }
 0x515   :  { %v9281_v21 = vld [vmem:[#allocation14 + $0x12c] ss:$16 sps:$4 sm:$0xff]   ;;  %v9276_v27 = vld [vmem:[#allocation14 + $0x120] ss:$16 sps:$4 sm:$0xff]   ;;  %v9279_v28 = vld [vmem:[#allocation14 + $0x128] ss:$16 sps:$4 sm:$0xff]  }
 0x516   :  { %5747 = vmatpush1.bf16.msra.mxu0 %v9198_v29  ;;  %5853 = vmatpush1.bf16.msra.mxu1 %v9201_v30  ;;  %v9284_v40 = vld [vmem:[#allocation14 + $0x144] ss:$16 sps:$4 sm:$0xff]   ;;  %v9287_v23 = vld [vmem:[#allocation14 + $0x14c] ss:$16 sps:$4 sm:$0xff]   ;;  %v9282_v49 = vld [vmem:[#allocation14 + $0x140] ss:$16 sps:$4 sm:$0xff]  }
 0x517   :  { %5748 = vmatprep.subr.bf16.mxu0 %v9206_v34  ;;  %5854 = vmatprep.subr.bf16.mxu1 %v9209_v35  ;;  %v9285_v60 = vld [vmem:[#allocation14 + $0x148] ss:$16 sps:$4 sm:$0xff]   ;;  %v9290_v29 = vld [vmem:[#allocation14 + $0x164] ss:$16 sps:$4 sm:$0xff]   ;;  %v9293_v30 = vld [vmem:[#allocation14 + $0x16c] ss:$16 sps:$4 sm:$0xff]  }
 0x518   :  { %v9288_v31 = vld [vmem:[#allocation14 + $0x160] ss:$16 sps:$4 sm:$0xff]   ;;  %v9291_v32 = vld [vmem:[#allocation14 + $0x168] ss:$16 sps:$4 sm:$0xff]   ;;  %v9296_v34 = vld [vmem:[#allocation14 + $0x184] ss:$16 sps:$4 sm:$0xff]  }
 0x519   :  { %v9299_v35 = vld [vmem:[#allocation14 + $0x18c] ss:$16 sps:$4 sm:$0xff]  }
 0x51a   :  { %5749 = vmatpush1.bf16.msra.mxu0 %v9204_v57  ;;  %5855 = vmatpush1.bf16.msra.mxu1 %v9207_v61  ;;  %v9294_v57 = vld [vmem:[#allocation14 + $0x180] ss:$16 sps:$4 sm:$0xff]   ;;  %v9297_v61 = vld [vmem:[#allocation14 + $0x188] ss:$16 sps:$4 sm:$0xff]  }
 0x51b   :  { %5750 = vmatprep.subr.bf16.mxu0 %v9212_v62  ;;  %5856 = vmatprep.subr.bf16.mxu1 %v9215_v4  ;;  %v9302_v62 = vld [vmem:[#allocation14 + $0x1a4] ss:$16 sps:$4 sm:$0xff]   ;;  %v9305_v4 = vld [vmem:[#allocation14 + $0x1ac] ss:$16 sps:$4 sm:$0xff]  }
 0x51e   :  { %5751 = vmatpush1.bf16.msra.mxu0 %v9210_v36  ;;  %5857 = vmatpush1.bf16.msra.mxu1 %v9213_v37  ;;  %v9300_v36 = vld [vmem:[#allocation14 + $0x1a0] ss:$16 sps:$4 sm:$0xff]   ;;  %v9303_v37 = vld [vmem:[#allocation14 + $0x1a8] ss:$16 sps:$4 sm:$0xff]  }
 0x51f   :  { %5752 = vmatprep.subr.bf16.mxu0 %v9218_v38  ;;  %5858 = vmatprep.subr.bf16.mxu1 %v9221_v39  ;;  %v9308_v38 = vld [vmem:[#allocation14 + $0x1c4] ss:$16 sps:$4 sm:$0xff]   ;;  %v9311_v39 = vld [vmem:[#allocation14 + $0x1cc] ss:$16 sps:$4 sm:$0xff]  }
 0x522   :  { %5753 = vmatpush1.bf16.msra.mxu0 %v9216_v44  ;;  %5859 = vmatpush1.bf16.msra.mxu1 %v9219_v48  ;;  %v9306_v44 = vld [vmem:[#allocation14 + $0x1c0] ss:$16 sps:$4 sm:$0xff]   ;;  %v9309_v48 = vld [vmem:[#allocation14 + $0x1c8] ss:$16 sps:$4 sm:$0xff]  }
 0x523   :  { %6694 = vmatprep.subr.bf16.mxu0 %v9224_v45  ;;  %6800 = vmatprep.subr.bf16.mxu1 %v9227_v52  ;;  %v9314_v45 = vld [vmem:[#allocation14 + $0x1e4] ss:$16 sps:$4 sm:$0xff]   ;;  %v9317_v52 = vld [vmem:[#allocation14 + $0x1ec] ss:$16 sps:$4 sm:$0xff]  }
 0x525   :  { %5755 = vmatmul.mubr.bf16.vlgmr.msra.gmra.mrb[32].mxu0 %v9980_v22  ;;  %5861 = vmatmul.mubr.bf16.vlgmr.msra.gmra.mrb[32].mxu1 %v9980_v22  ;;  %v9245_v22 = vld [vmem:[#allocation14 + $0x6c] ss:$16 sps:$4 sm:$0xff]  }
 0x526   :  { %5764 = vmatprep.mubr.bf16.mxu0 %v9984_v51  ;;  %5870 = vmatprep.mubr.bf16.mxu1 %v9984_v51  ;;  %v9240_v51 = vld [vmem:[#allocation14 + $0x60] ss:$16 sps:$4 sm:$0xff]  }
 0x527   :  { %6695 = vmatpush1.bf16.msra.mxu0 %v9222_v50  ;;  %6801 = vmatpush1.bf16.msra.mxu1 %v9225_v54  ;;  %v9312_v50 = vld [vmem:[#allocation14 + $0x1e0] ss:$16 sps:$4 sm:$0xff]   ;;  %v9315_v54 = vld [vmem:[#allocation14 + $0x1e8] ss:$16 sps:$4 sm:$0xff]  }
 0x528   :  { %6696 = vmatprep.subr.bf16.mxu0 %v9230_v55  ;;  %6802 = vmatprep.subr.bf16.mxu1 %v9233_v56  ;;  %v9320_v55 = vld [vmem:[#allocation14 + $0x204] ss:$16 sps:$4 sm:$0xff]   ;;  %v9323_v56 = vld [vmem:[#allocation14 + $0x20c] ss:$16 sps:$4 sm:$0xff]  }
 0x52b   :  { %6697 = vmatpush1.bf16.msra.mxu0 %v9228_v59  ;;  %6803 = vmatpush1.bf16.msra.mxu1 %v9231_v41  ;;  %v7664_v59 = vld [vmem:[%s10152_s8 + $0x2] ss:$4 sm:$0xf] }
 0x52c   :  { %6698 = vmatprep.subr.bf16.mxu0 %v9236_v10  ;;  %6804 = vmatprep.subr.bf16.mxu1 %v9239_v63  ;;  %v5012_v41 = vrot.slane %v7664_v59, %v9876_v42  ;;  %v5020_v10 = vrot.slane %v7664_v59, %v9878_v43  ;;  %v5016_v63 = vrot.slane %v7664_v59, %v9883_v46 }
 0x52d   :  { %5765 = vmatmul.mubr.bf16.gmra.mrb[36].mxu0 %v9982_v58  ;;  %5871 = vmatmul.mubr.bf16.gmra.mrb[36].mxu1 %v9982_v58  ;;  %v9255_v58 = vld [vmem:[#allocation14 + $0xa8] ss:$16 sps:$4 sm:$0xff]  }
 0x52f   :  { %6699 = vmatpush1.bf16.msra.mxu0 %v9234_v0  ;;  %6805 = vmatpush1.bf16.msra.mxu1 %v9237_v1  ;;  %v5024_v0 = vrot.slane %v7664_v59, %v9885_v47  ;;  %v9335_v59 = vld [vmem:[#allocation14 + $0x24c] ss:$16 sps:$4 sm:$0xff]  }
 0x530   :  { %6700 = vmatprep.subr.bf16.mxu0 %v9242_v2  ;;  %6806 = vmatprep.subr.bf16.mxu1 %v9245_v22 }
 0x533   :  { %6701 = vmatpush1.bf16.msra.mxu0 %v9240_v51  ;;  %6807 = vmatpush1.bf16.msra.mxu1 %v9243_v3 }
 0x534   :  { %6702 = vmatprep.subr.bf16.mxu0 %v9248_v5  ;;  %6808 = vmatprep.subr.bf16.mxu1 %v9251_v53 }
 0x537   :  { %6703 = vmatpush1.bf16.msra.mxu0 %v9246_v13  ;;  %6809 = vmatpush1.bf16.msra.mxu1 %v9249_v12 }
 0x538   :  { %6704 = vmatprep.subr.bf16.mxu0 %v9254_v24  ;;  %6810 = vmatprep.subr.bf16.mxu1 %v9257_v7 }
 0x53b   :  { %6705 = vmatpush1.bf16.msra.mxu0 %v9252_v8  ;;  %6811 = vmatpush1.bf16.msra.mxu1 %v9255_v58 }
 0x53c   :  { %6706 = vmatprep.subr.bf16.mxu0 %v9260_v9  ;;  %6812 = vmatprep.subr.bf16.mxu1 %v9263_v11 }
 0x53f   :  { %6707 = vmatpush1.bf16.msra.mxu0 %v9258_v14  ;;  %6813 = vmatpush1.bf16.msra.mxu1 %v9261_v15 }
 0x540   :  { %6708 = vmatprep.subr.bf16.mxu0 %v9266_v6  ;;  %6814 = vmatprep.subr.bf16.mxu1 %v9269_v19 }
 0x543   :  { %6709 = vmatpush1.bf16.msra.mxu0 %v9264_v26  ;;  %6815 = vmatpush1.bf16.msra.mxu1 %v9267_v25 }
 0x544   :  { %6710 = vmatprep.subr.bf16.mxu0 %v9272_v33  ;;  %6816 = vmatprep.subr.bf16.mxu1 %v9275_v16 }
 0x547   :  { %6711 = vmatpush1.bf16.msra.mxu0 %v9270_v17  ;;  %6817 = vmatpush1.bf16.msra.mxu1 %v9273_v18 }
 0x548   :  { %6712 = vmatprep.subr.bf16.mxu0 %v9278_v20  ;;  %6818 = vmatprep.subr.bf16.mxu1 %v9281_v21 }
 0x54b   :  { %6713 = vmatpush1.bf16.msra.mxu0 %v9276_v27  ;;  %6819 = vmatpush1.bf16.msra.mxu1 %v9279_v28 }
 0x54c   :  { %6714 = vmatprep.subr.bf16.mxu0 %v9284_v40  ;;  %6820 = vmatprep.subr.bf16.mxu1 %v9287_v23  ;;  %v9318_v23 = vld [vmem:[#allocation14 + $0x200] ss:$16 sps:$4 sm:$0xff]  }
 0x54f   :  { %6715 = vmatpush1.bf16.msra.mxu0 %v9282_v49  ;;  %6821 = vmatpush1.bf16.msra.mxu1 %v9285_v60  ;;  %v9321_v49 = vld [vmem:[#allocation14 + $0x208] ss:$16 sps:$4 sm:$0xff]  }
 0x550   :  { %6716 = vmatprep.subr.bf16.mxu0 %v9290_v29  ;;  %6822 = vmatprep.subr.bf16.mxu1 %v9293_v30 }
 0x553   :  { %6717 = vmatpush1.bf16.msra.mxu0 %v9288_v31  ;;  %6823 = vmatpush1.bf16.msra.mxu1 %v9291_v32  ;;  %v9326_v32 = vld [vmem:[#allocation14 + $0x224] ss:$16 sps:$4 sm:$0xff]  }
 0x554   :  { %6718 = vmatprep.subr.bf16.mxu0 %v9296_v34  ;;  %6824 = vmatprep.subr.bf16.mxu1 %v9299_v35  ;;  %v9329_v34 = vld [vmem:[#allocation14 + $0x22c] ss:$16 sps:$4 sm:$0xff]  }
 0x557   :  { %6719 = vmatpush1.bf16.msra.mxu0 %v9294_v57  ;;  %6825 = vmatpush1.bf16.msra.mxu1 %v9297_v61 }
 0x558   :  { %6720 = vmatprep.subr.bf16.mxu0 %v9302_v62  ;;  %6826 = vmatprep.subr.bf16.mxu1 %v9305_v4 }
 0x55b   :  { %6721 = vmatpush1.bf16.msra.mxu0 %v9300_v36  ;;  %6827 = vmatpush1.bf16.msra.mxu1 %v9303_v37 }
 0x55c   :  { %6722 = vmatprep.subr.bf16.mxu0 %v9308_v38  ;;  %6828 = vmatprep.subr.bf16.mxu1 %v9311_v39 }
 0x55f   :  { %6723 = vmatpush1.bf16.msra.mxu0 %v9306_v44  ;;  %6829 = vmatpush1.bf16.msra.mxu1 %v9309_v48  ;;  %v9324_v48 = vld [vmem:[#allocation14 + $0x220] ss:$16 sps:$4 sm:$0xff]  }
 0x560   :  { %6724 = vmatprep.subr.bf16.mxu0 %v9314_v45  ;;  %6830 = vmatprep.subr.bf16.mxu1 %v9317_v52  ;;  %v9327_v45 = vld [vmem:[#allocation14 + $0x228] ss:$16 sps:$4 sm:$0xff]   ;;  %v9332_v52 = vld [vmem:[#allocation14 + $0x244] ss:$16 sps:$4 sm:$0xff]  }
 0x563   :  { %6725 = vmatpush1.bf16.msra.mxu0 %v9312_v50  ;;  %6831 = vmatpush1.bf16.msra.mxu1 %v9315_v54 }
 0x564   :  { %6747 = vmatprep.subr.bf16.mxu0 %v9320_v55  ;;  %6853 = vmatprep.subr.bf16.mxu1 %v9323_v56 }
 0x5f8   :  { %v5756_v1 = vpop.f32.mrb[32].mxu0  ;;  %v5862_v2 = vpop.f32.mrb[32].mxu1 }
 0x5f9   :  { %v7978_v22 = vadd.f32 %v5756_v1, %v5012_v41  ;;  %v7986_v51 = vadd.f32 %v5862_v2, %v5020_v10  ;;  %v5758_v3 = vpop.f32.mrb[33].mxu0  ;;  %v5864_v5 = vpop.f32.mrb[33].mxu1 }
 0x5fa   :  { %v7979_v53 = vadd.f32 %v5758_v3, %v5016_v63  ;;  %v7987_v13 = vadd.f32 %v5864_v5, %v5024_v0  ;;  %v5760_v12 = vpop.f32.mrb[34].mxu0  ;;  %v5866_v24 = vpop.f32.mrb[34].mxu1  ;;  %v9330_v3 = vld [vmem:[#allocation14 + $0x240] ss:$16 sps:$4 sm:$0xff]   ;;  %v9333_v5 = vld [vmem:[#allocation14 + $0x248] ss:$16 sps:$4 sm:$0xff]  }
 0x5fb   :  { %v7980_v7 = vadd.f32 %v5760_v12, %v5012_v41  ;;  %v7988_v8 = vadd.f32 %v5866_v24, %v5020_v10  ;;  %v5762_v58 = vpop.f32.mrb[35].mxu0  ;;  %v5868_v9 = vpop.f32.mrb[35].mxu1  ;;  %v5881_v15 = vmax.f32 %v7978_v22, 0.0  ;;  %v5883_v6 = vmax.f32 %v7986_v51, 0.0  ;;  %v9336_v12 = vld [vmem:[#allocation14 + $0x260] ss:$16 sps:$4 sm:$0xff]  }
 0x5fc   :  { %v7981_v11 = vadd.f32 %v5762_v58, %v5016_v63  ;;  %v7989_v14 = vadd.f32 %v5868_v9, %v5024_v0  ;;  %v5882_v25 = vmax.f32 %v7979_v53, 0.0  ;;  %v5884_v33 = vmax.f32 %v7987_v13, 0.0  ;;  %v9338_v53 = vld [vmem:[#allocation14 + $0x264] ss:$16 sps:$4 sm:$0xff]   ;;  %v9341_v13 = vld [vmem:[#allocation14 + $0x26c] ss:$16 sps:$4 sm:$0xff]  }
 0x5fd   :  { %v5885_v19 = vmax.f32 %v7980_v7, 0.0  ;;  %v5887_v26 = vmax.f32 %v7988_v8, 0.0  ;;  %v9339_v24 = vld [vmem:[#allocation14 + $0x268] ss:$16 sps:$4 sm:$0xff]   ;;  %v9344_v7 = vld [vmem:[#allocation14 + $0x284] ss:$16 sps:$4 sm:$0xff]  }
 0x5fe   :  { %v5886_v16 = vmax.f32 %v7981_v11, 0.0  ;;  %v5888_v17 = vmax.f32 %v7989_v14, 0.0  ;;  %v9347_v8 = vld [vmem:[#allocation14 + $0x28c] ss:$16 sps:$4 sm:$0xff]   ;;  %v9342_v58 = vld [vmem:[#allocation14 + $0x280] ss:$16 sps:$4 sm:$0xff]  }
 0x5ff   :  { %v5897_v18 = vpack.c.bf16 %v5885_v19, %v5881_v15  ;;  %v10015_v20 = vpack.c.bf16 %v5887_v26, %v5883_v6  ;;  %v9345_v9 = vld [vmem:[#allocation14 + $0x288] ss:$16 sps:$4 sm:$0xff]   ;;  %v9350_v11 = vld [vmem:[#allocation14 + $0x2a4] ss:$16 sps:$4 sm:$0xff]   ;;  %v9353_v14 = vld [vmem:[#allocation14 + $0x2ac] ss:$16 sps:$4 sm:$0xff]  }
 0x600   :  { %v5898_v21 = vpack.c.bf16 %v5886_v16, %v5882_v25  ;;  %v5900_v27 = vpack.c.bf16 %v5888_v17, %v5884_v33  ;;  %v5766_v28 = vpop.f32.mrb[36].mxu0  ;;  %v5872_v40 = vpop.f32.mrb[36].mxu1  ;;  %v9348_v15 = vld [vmem:[#allocation14 + $0x2a0] ss:$16 sps:$4 sm:$0xff]   ;;  %v9351_v6 = vld [vmem:[#allocation14 + $0x2a8] ss:$16 sps:$4 sm:$0xff]  }
 0x601   :  { %v7982_v60 = vadd.f32 %v5766_v28, %v5012_v41  ;;  %v7990_v29 = vadd.f32 %v5872_v40, %v5020_v10  ;;  %v5768_v30 = vpop.f32.mrb[37].mxu0  ;;  %v5874_v31 = vpop.f32.mrb[37].mxu1  ;;  %v9356_v19 = vld [vmem:[#allocation14 + $0x2c4] ss:$16 sps:$4 sm:$0xff]   ;;  %v9359_v26 = vld [vmem:[#allocation14 + $0x2cc] ss:$16 sps:$4 sm:$0xff]  }
 0x602   :  { %v7983_v35 = vadd.f32 %v5768_v30, %v5016_v63  ;;  %v7991_v57 = vadd.f32 %v5874_v31, %v5024_v0  ;;  %v5770_v61 = vpop.f32.mrb[38].mxu0  ;;  %v5876_v62 = vpop.f32.mrb[38].mxu1  ;;  %6726 = vmatprep.mubr.bf16.mxu0 %v5898_v21  ;;  %6832 = vmatprep.mubr.bf16.mxu1 %v5898_v21  ;;  %v9354_v25 = vld [vmem:[#allocation14 + $0x2c0] ss:$16 sps:$4 sm:$0xff]   ;;  %v9357_v33 = vld [vmem:[#allocation14 + $0x2c8] ss:$16 sps:$4 sm:$0xff]  }
 0x603   :  { %v7984_v4 = vadd.f32 %v5770_v61, %v5012_v41  ;;  %v7992_v36 = vadd.f32 %v5876_v62, %v5020_v10  ;;  %v5772_v37 = vpop.f32.mrb[39].mxu0  ;;  %v5878_v38 = vpop.f32.mrb[39].mxu1  ;;  %6727 = vmatmul.mubr.bf16.vlgmr.msra.gmra.mrb[40].mxu0 %v5897_v18  ;;  %6833 = vmatmul.mubr.bf16.vlgmr.msra.gmra.mrb[40].mxu1 %v5897_v18  ;;  %v5889_v50 = vmax.f32 %v7982_v60, 0.0  ;;  %v5891_v54 = vmax.f32 %v7990_v29, 0.0  ;;  %v9362_v16 = vld [vmem:[#allocation14 + $0x2e4] ss:$16 sps:$4 sm:$0xff]  }
 0x604   :  { %v7985_v39 = vadd.f32 %v5772_v37, %v5016_v63  ;;  %v7993_v44 = vadd.f32 %v5878_v38, %v5024_v0  ;;  %6748 = vmatpush1.bf16.msra.mxu0 %v9318_v23  ;;  %6854 = vmatpush1.bf16.msra.mxu1 %v9321_v49  ;;  %v5890_v41 = vmax.f32 %v7983_v35, 0.0  ;;  %v5892_v10 = vmax.f32 %v7991_v57, 0.0  ;;  %v9365_v17 = vld [vmem:[#allocation14 + $0x2ec] ss:$16 sps:$4 sm:$0xff]   ;;  %v9360_v18 = vld [vmem:[#allocation14 + $0x2e0] ss:$16 sps:$4 sm:$0xff]  }
 0x605   :  { %v5893_v55 = vmax.f32 %v7984_v4, 0.0  ;;  %v5895_v56 = vmax.f32 %v7992_v36, 0.0  ;;  %6749 = vmatprep.subr.bf16.mxu0 %v9326_v32  ;;  %6855 = vmatprep.subr.bf16.mxu1 %v9329_v34  ;;  %v9363_v21 = vld [vmem:[#allocation14 + $0x2e8] ss:$16 sps:$4 sm:$0xff]   ;;  %v9371_v28 = vld [vmem:[#allocation14 + $0x30c] ss:$16 sps:$4 sm:$0xff]  }
 0x606   :  { %v5894_v1 = vmax.f32 %v7985_v39, 0.0  ;;  %v5896_v2 = vmax.f32 %v7993_v44, 0.0  ;;  %v9366_v40 = vld [vmem:[#allocation14 + $0x300] ss:$16 sps:$4 sm:$0xff]   ;;  %v9369_v23 = vld [vmem:[#allocation14 + $0x308] ss:$16 sps:$4 sm:$0xff]  }
 0x607   :  { %v5901_v22 = vpack.c.bf16 %v5893_v55, %v5889_v50  ;;  %v10017_v51 = vpack.c.bf16 %v5895_v56, %v5891_v54  ;;  %v9374_v49 = vld [vmem:[#allocation14 + $0x324] ss:$16 sps:$4 sm:$0xff]   ;;  %v9377_v60 = vld [vmem:[#allocation14 + $0x32c] ss:$16 sps:$4 sm:$0xff]   ;;  %v9372_v29 = vld [vmem:[#allocation14 + $0x320] ss:$16 sps:$4 sm:$0xff]  }
 0x608   :  { %v5902_v63 = vpack.c.bf16 %v5894_v1, %v5890_v41  ;;  %v10019_v0 = vpack.c.bf16 %v5896_v2, %v5892_v10  ;;  %6750 = vmatpush1.bf16.msra.mxu0 %v9324_v48  ;;  %6856 = vmatpush1.bf16.msra.mxu1 %v9327_v45  ;;  %v9375_v30 = vld [vmem:[#allocation14 + $0x328] ss:$16 sps:$4 sm:$0xff]   ;;  %v9380_v31 = vld [vmem:[#allocation14 + $0x344] ss:$16 sps:$4 sm:$0xff]   ;;  %v9383_v32 = vld [vmem:[#allocation14 + $0x34c] ss:$16 sps:$4 sm:$0xff]  }
 0x609   :  { %6751 = vmatprep.subr.bf16.mxu0 %v9332_v52  ;;  %6857 = vmatprep.subr.bf16.mxu1 %v9335_v59  ;;  %v9378_v34 = vld [vmem:[#allocation14 + $0x340] ss:$16 sps:$4 sm:$0xff]   ;;  %v9381_v35 = vld [vmem:[#allocation14 + $0x348] ss:$16 sps:$4 sm:$0xff]   ;;  %v9386_v57 = vld [vmem:[#allocation14 + $0x364] ss:$16 sps:$4 sm:$0xff]  }
 0x60a   :  { %6736 = vmatprep.mubr.bf16.mxu0 %v5902_v63  ;;  %6842 = vmatprep.mubr.bf16.mxu1 %v5902_v63  ;;  %v9389_v61 = vld [vmem:[#allocation14 + $0x36c] ss:$16 sps:$4 sm:$0xff]   ;;  %v9384_v62 = vld [vmem:[#allocation14 + $0x360] ss:$16 sps:$4 sm:$0xff]   ;;  %v9387_v4 = vld [vmem:[#allocation14 + $0x368] ss:$16 sps:$4 sm:$0xff]  }
 0x60b   :  { %6737 = vmatmul.mubr.bf16.gmra.mrb[44].mxu0 %v5901_v22  ;;  %6843 = vmatmul.mubr.bf16.gmra.mrb[44].mxu1 %v5901_v22  ;;  %v9392_v36 = vld [vmem:[#allocation14 + $0x384] ss:$16 sps:$4 sm:$0xff]   ;;  %v9395_v37 = vld [vmem:[#allocation14 + $0x38c] ss:$16 sps:$4 sm:$0xff]   ;;  %v9390_v38 = vld [vmem:[#allocation14 + $0x380] ss:$16 sps:$4 sm:$0xff]  }
 0x60c   :  { %6752 = vmatpush1.bf16.msra.mxu0 %v9330_v3  ;;  %6858 = vmatpush1.bf16.msra.mxu1 %v9333_v5  ;;  %v9393_v39 = vld [vmem:[#allocation14 + $0x388] ss:$16 sps:$4 sm:$0xff]   ;;  %v9398_v44 = vld [vmem:[#allocation14 + $0x3a4] ss:$16 sps:$4 sm:$0xff]   ;;  %v9401_v48 = vld [vmem:[#allocation14 + $0x3ac] ss:$16 sps:$4 sm:$0xff]  }
 0x60d   :  { %6779 = vmatprep.mubr.bf16.mxu0 %v5900_v27  ;;  %6885 = vmatprep.mubr.bf16.mxu1 %v5900_v27  ;;  %v9368_v27 = vld [vmem:[#allocation14 + $0x304] ss:$16 sps:$4 sm:$0xff]   ;;  %v9396_v45 = vld [vmem:[#allocation14 + $0x3a0] ss:$16 sps:$4 sm:$0xff]   ;;  %v9399_v52 = vld [vmem:[#allocation14 + $0x3a8] ss:$16 sps:$4 sm:$0xff]  }
 0x60e   :  { %6753 = vmatprep.subr.bf16.mxu0 %v9338_v53  ;;  %6859 = vmatprep.subr.bf16.mxu1 %v9341_v13  ;;  %v9404_v50 = vld [vmem:[#allocation14 + $0x3c4] ss:$16 sps:$4 sm:$0xff]   ;;  %v9407_v54 = vld [vmem:[#allocation14 + $0x3cc] ss:$16 sps:$4 sm:$0xff]   ;;  %v9402_v55 = vld [vmem:[#allocation14 + $0x3c0] ss:$16 sps:$4 sm:$0xff]  }
 0x60f   :  { %v9405_v56 = vld [vmem:[#allocation14 + $0x3c8] ss:$16 sps:$4 sm:$0xff]   ;;  %v9410_v59 = vld [vmem:[#allocation14 + $0x3e4] ss:$16 sps:$4 sm:$0xff]   ;;  %v9413_v41 = vld [vmem:[#allocation14 + $0x3ec] ss:$16 sps:$4 sm:$0xff]  }
 0x610   :  { %6754 = vmatpush1.bf16.msra.mxu0 %v9336_v12  ;;  %6860 = vmatpush1.bf16.msra.mxu1 %v9339_v24  ;;  %v9408_v10 = vld [vmem:[#allocation14 + $0x3e0] ss:$16 sps:$4 sm:$0xff]   ;;  %v9411_v1 = vld [vmem:[#allocation14 + $0x3e8] ss:$16 sps:$4 sm:$0xff]  }
 0x611   :  { %6755 = vmatprep.subr.bf16.mxu0 %v9344_v7  ;;  %6861 = vmatprep.subr.bf16.mxu1 %v9347_v8  ;;  %v7665_v2 = vld [vmem:[%s10152_s8 + $0x3] ss:$4 sm:$0xf]  ;;  %s9676_s8 = smov [#allocation16]  }
 0x612   :  { %v6037_v22 = vrot.slane %v7665_v2, %v9876_v42  ;;  %v6045_v63 = vrot.slane %v7665_v2, %v9878_v43  ;;  %v6041_v3 = vrot.slane %v7665_v2, %v9883_v46  ;;  %v6049_v53 = vrot.slane %v7665_v2, %v9885_v47  ;;  %s7027_s15 = sshll.u32 %s9676_s8, 4  ;;  %s7028_s15 = int_to_ptr.vmem [resolvable:$true] %s7027_s15 }
 0x613   :  { %s9606_s16 = scalar_lea.vmem %s7028_s15, 1024  ;;  %p9611_p9 = scmp.lt.s32.totalorder %s7028_s15, %s7028_s15 }
 0x614   :  { %6756 = vmatpush1.bf16.msra.mxu0 %v9342_v58  ;;  %6862 = vmatpush1.bf16.msra.mxu1 %v9345_v9  ;;  %p9607_p8 = scmp.ne.s32.totalorder %s7028_s15, %s9606_s16  ;;  %p9612_p10 = scmp.lt.s32.totalorder %s9606_s16, %s9606_s16 }
 0x615   :  { %6757 = vmatprep.subr.bf16.mxu0 %v9350_v11  ;;  %6863 = vmatprep.subr.bf16.mxu1 %v9353_v14 }
 0x616   :  { %p9613_p11 = por %p9612_p10, %p9611_p9 }
 0x618   :  { %6758 = vmatpush1.bf16.msra.mxu0 %v9348_v15  ;;  %6864 = vmatpush1.bf16.msra.mxu1 %v9351_v6  ;;  %p9614_p12 = pnand %p9613_p11, %p9607_p8 }
 0x619   :  { %6759 = vmatprep.subr.bf16.mxu0 %v9356_v19  ;;  %6865 = vmatprep.subr.bf16.mxu1 %v9359_v26 }
 0x61c   :  { %6760 = vmatpush1.bf16.msra.mxu0 %v9354_v25  ;;  %6866 = vmatpush1.bf16.msra.mxu1 %v9357_v33 }
 0x61d   :  { %6761 = vmatprep.subr.bf16.mxu0 %v9362_v16  ;;  %6867 = vmatprep.subr.bf16.mxu1 %v9365_v17 }
 0x620   :  { %6762 = vmatpush1.bf16.msra.mxu0 %v9360_v18  ;;  %6868 = vmatpush1.bf16.msra.mxu1 %v9363_v21 }
 0x621   :  { %6763 = vmatprep.subr.bf16.mxu0 %v9368_v27  ;;  %6869 = vmatprep.subr.bf16.mxu1 %v9371_v28 }
 0x624   :  { %6764 = vmatpush1.bf16.msra.mxu0 %v9366_v40  ;;  %6870 = vmatpush1.bf16.msra.mxu1 %v9369_v23 }
 0x625   :  { %6765 = vmatprep.subr.bf16.mxu0 %v9374_v49  ;;  %6871 = vmatprep.subr.bf16.mxu1 %v9377_v60 }
 0x628   :  { %6766 = vmatpush1.bf16.msra.mxu0 %v9372_v29  ;;  %6872 = vmatpush1.bf16.msra.mxu1 %v9375_v30 }
 0x629   :  { %6767 = vmatprep.subr.bf16.mxu0 %v9380_v31  ;;  %6873 = vmatprep.subr.bf16.mxu1 %v9383_v32 }
 0x62c   :  { %6768 = vmatpush1.bf16.msra.mxu0 %v9378_v34  ;;  %6874 = vmatpush1.bf16.msra.mxu1 %v9381_v35 }
 0x62d   :  { %6769 = vmatprep.subr.bf16.mxu0 %v9386_v57  ;;  %6875 = vmatprep.subr.bf16.mxu1 %v9389_v61 }
 0x630   :  { %6770 = vmatpush1.bf16.msra.mxu0 %v9384_v62  ;;  %6876 = vmatpush1.bf16.msra.mxu1 %v9387_v4 }
 0x631   :  { %6771 = vmatprep.subr.bf16.mxu0 %v9392_v36  ;;  %6877 = vmatprep.subr.bf16.mxu1 %v9395_v37 }
 0x634   :  { %6772 = vmatpush1.bf16.msra.mxu0 %v9390_v38  ;;  %6878 = vmatpush1.bf16.msra.mxu1 %v9393_v39 }
 0x635   :  { %6773 = vmatprep.subr.bf16.mxu0 %v9398_v44  ;;  %6879 = vmatprep.subr.bf16.mxu1 %v9401_v48 }
 0x638   :  { %6774 = vmatpush1.bf16.msra.mxu0 %v9396_v45  ;;  %6880 = vmatpush1.bf16.msra.mxu1 %v9399_v52 }
 0x639   :  { %6775 = vmatprep.subr.bf16.mxu0 %v9404_v50  ;;  %6881 = vmatprep.subr.bf16.mxu1 %v9407_v54 }
 0x63c   :  { %6776 = vmatpush1.bf16.msra.mxu0 %v9402_v55  ;;  %6882 = vmatpush1.bf16.msra.mxu1 %v9405_v56 }
 0x63d   :  { %6777 = vmatprep.subr.bf16.mxu0 %v9410_v59  ;;  %6883 = vmatprep.subr.bf16.mxu1 %v9413_v41 }
 0x640   :  { %6778 = vmatpush1.bf16.msra.mxu0 %v9408_v10  ;;  %6884 = vmatpush1.bf16.msra.mxu1 %v9411_v1 }
 0x643   :  { %6780 = vmatmul.mubr.bf16.vlgmr.msra.gmra.mrb[40].mxu0 %v10015_v20  ;;  %6886 = vmatmul.mubr.bf16.vlgmr.msra.gmra.mrb[40].mxu1 %v10015_v20 }
 0x644   :  { %6789 = vmatprep.mubr.bf16.mxu0 %v10019_v0  ;;  %6895 = vmatprep.mubr.bf16.mxu1 %v10019_v0 }
 0x64b   :  { %6790 = vmatmul.mubr.bf16.gmra.mrb[44].mxu0 %v10017_v51  ;;  %6896 = vmatmul.mubr.bf16.gmra.mrb[44].mxu1 %v10017_v51 }
 0x716   :  { %v6781_v5 = vpop.f32.mrb[40].mxu0  ;;  %v6887_v20 = vpop.f32.mrb[40].mxu1 }
 0x717   :  { %v10034_v13 = vadd.f32 %v6781_v5, %v6037_v22  ;;  %v6783_v0 = vpop.f32.mrb[41].mxu0  ;;  %v6889_v12 = vpop.f32.mrb[41].mxu1  ;;  %v10036_v24 = vadd.f32 %v6887_v20, %v6045_v63 }
 0x718   :  { %v10038_v51 = vadd.f32 %v6783_v0, %v6041_v3  ;;  %v6785_v7 = vpop.f32.mrb[42].mxu0  ;;  %v6891_v8 = vpop.f32.mrb[42].mxu1  ;;  %v10046_v9 = vadd.f32 %v6889_v12, %v6049_v53 }
 0x719   :  { %v6906_v42 = vmul.f32 %v10034_v13, %v10034_v13  ;;  %v10042_v43 = vadd.f32 %v6785_v7, %v6037_v22  ;;  %v6787_v46 = vpop.f32.mrb[43].mxu0  ;;  %v6893_v58 = vpop.f32.mrb[43].mxu1  ;;  %v10048_v11 = vadd.f32 %v6891_v8, %v6045_v63  ;;  %v6908_v6 = vmul.f32 %v10036_v24, %v10036_v24 }
 0x71a   :  { %v6907_v47 = vmul.f32 %v10038_v51, %v10038_v51  ;;  %v10050_v14 = vadd.f32 %v6787_v46, %v6041_v3  ;;  %v10058_v25 = vadd.f32 %v6893_v58, %v6049_v53  ;;  %v6909_v33 = vmul.f32 %v10046_v9, %v10046_v9 }
 0x71b   :  { %v6910_v15 = vmul.f32 %v10042_v43, %v10042_v43  ;;  %v6912_v16 = vmul.f32 %v10048_v11, %v10048_v11 }
 0x71c   :  { %v6922_v19 = vadd.f32 %v6907_v47, %v6906_v42  ;;  %v6911_v26 = vmul.f32 %v10050_v14, %v10050_v14  ;;  %v6913_v34 = vmul.f32 %v10058_v25, %v10058_v25 }
 0x71e   :  { %v6927_v17 = vadd.f32 %v6911_v26, %v6910_v15  ;;  %v6791_v18 = vpop.f32.mrb[44].mxu0  ;;  %v6897_v21 = vpop.f32.mrb[44].mxu1  ;;  %v6923_v27 = vadd.f32 %v6922_v19, %v6908_v6 }
 0x71f   :  { %v10064_v28 = vadd.f32 %v6791_v18, %v6037_v22  ;;  %v6793_v40 = vpop.f32.mrb[45].mxu0  ;;  %v6899_v23 = vpop.f32.mrb[45].mxu1  ;;  %v10066_v49 = vadd.f32 %v6897_v21, %v6045_v63 }
 0x720   :  { %v10068_v60 = vadd.f32 %v6793_v40, %v6041_v3  ;;  %v6795_v29 = vpop.f32.mrb[46].mxu0  ;;  %v6901_v30 = vpop.f32.mrb[46].mxu1  ;;  %v6924_v31 = vadd.f32 %v6923_v27, %v6909_v33  ;;  %v6928_v32 = vadd.f32 %v6927_v17, %v6912_v16  ;;  %v10078_v36 = vadd.f32 %v6899_v23, %v6049_v53 }
 0x721   :  { %v6914_v35 = vmul.f32 %v10064_v28, %v10064_v28  ;;  %v10074_v57 = vadd.f32 %v6795_v29, %v6037_v22  ;;  %v6797_v61 = vpop.f32.mrb[47].mxu0  ;;  %v6903_v62 = vpop.f32.mrb[47].mxu1  ;;  %v10080_v37 = vadd.f32 %v6901_v30, %v6045_v63  ;;  %v6916_v48 = vmul.f32 %v10066_v49, %v10066_v49 }
 0x722   :  { %v6915_v4 = vmul.f32 %v10068_v60, %v10068_v60  ;;  %v10082_v38 = vadd.f32 %v6797_v61, %v6041_v3  ;;  %6925 = vadd.xlane.f32.xlu0 %v6924_v31  ;;  %v6929_v44 = vadd.f32 %v6928_v32, %v6913_v34  ;;  %v10090_v50 = vadd.f32 %v6903_v62, %v6049_v53 }
 0x723   :  { %v6918_v39 = vmul.f32 %v10074_v57, %v10074_v57  ;;  %v6917_v54 = vmul.f32 %v10078_v36, %v10078_v36  ;;  %v6920_v55 = vmul.f32 %v10080_v37, %v10080_v37 }
 0x724   :  { %v6932_v45 = vadd.f32 %v6915_v4, %v6914_v35  ;;  %v6919_v52 = vmul.f32 %v10082_v38, %v10082_v38  ;;  %6930 = vadd.xlane.f32.xlu1 %v6929_v44  ;;  %v6921_v41 = vmul.f32 %v10090_v50, %v10090_v50 }
 0x726   :  { %v6937_v56 = vadd.f32 %v6919_v52, %v6918_v39  ;;  %v6933_v59 = vadd.f32 %v6932_v45, %v6916_v48 }
 0x728   :  { %v6934_v10 = vadd.f32 %v6933_v59, %v6917_v54  ;;  %v6938_v1 = vadd.f32 %v6937_v56, %v6920_v55 }
 0x72a   :  { %6935 = vadd.xlane.f32.xlu0 %v6934_v10  ;;  %v6939_v2 = vadd.f32 %v6938_v1, %v6921_v41 }
 0x72c   :  { %6940 = vadd.xlane.f32.xlu1 %v6939_v2 }
 0x72d   :  { %9617 = shalt.err (!%p9614_p12)
}
 0x72e   :  { %s9618_s13 = scalar_lea.hbm %s10153_s9, 1024 }
 0x72f   :  { %p9619_p13 = scmp.ne.s32.totalorder %s10153_s9, %s9618_s13  ;;  %p9622_p0 = scmp.lt.u32.totalorder %s9618_s13, %s10153_s9 }
 0x731   :  { %p9624_p1 = pnand %p9622_p0, %p9619_p13 }
 0x733   :  { %9627 = shalt.err (!%p9624_p1)
}
 0x734   :  { %7033 = dma.vmem_to_hbm [thread:$0]  %s7028_s15, 1024, %s10153_s9, [#allocation4], %s9665_s23, %s9665_s23, %s9666_s24  }
 0x735   :  { %s9677_s9 = smov [#allocation17]  }
 0x736   :  { %s7039_s20 = sshll.u32 %s9677_s9, 4  ;;  %s7040_s20 = int_to_ptr.vmem [resolvable:$true] %s7039_s20 }
 0x737   :  { %s9628_s5 = scalar_lea.vmem %s7040_s20, 1024  ;;  %p9633_p3 = scmp.lt.s32.totalorder %s7040_s20, %s7040_s20 }
 0x738   :  { %p9629_p2 = scmp.ne.s32.totalorder %s7040_s20, %s9628_s5  ;;  %p9634_p4 = scmp.lt.s32.totalorder %s9628_s5, %s9628_s5 }
 0x73a   :  { %p9635_p5 = por %p9634_p4, %p9633_p3 }
 0x73c   :  { %p9636_p6 = pnand %p9635_p5, %p9629_p2 }
 0x7af   :  { %v6926_v22 = vpop.xlane.xlu0 %6925 }
 0x7b0   :  { %v6942_v63 = vmax.f32 %v6926_v22, 1e-24 }
 0x7b1   :  { %v6931_v3 = vpop.xlane.xlu1 %6930 }
 0x7b2   :  { %9422 = vrsqrt.f32 %v6942_v63  ;;  %v6943_v5 = vmax.f32 %v6931_v3, 1e-24 }
 0x7b4   :  { %9424 = vrsqrt.f32 %v6943_v5 }
 0x7b7   :  { %v6936_v20 = vpop.xlane.xlu0 %6935 }
 0x7b8   :  { %v6944_v53 = vmax.f32 %v6936_v20, 1e-24 }
 0x7b9   :  { %v6941_v0 = vpop.xlane.xlu1 %6940 }
 0x7ba   :  { %9426 = vrsqrt.f32 %v6944_v53  ;;  %v6945_v12 = vmax.f32 %v6941_v0, 1e-24 }
 0x7bc   :  { %v9423_v7 = vpop.eup %9422  ;;  %9428 = vrsqrt.f32 %v6945_v12 }
 0x7bd   :  { %v6950_v8 = vmul.f32 %v9423_v7, %v10034_v13  ;;  %v6951_v42 = vmul.f32 %v9423_v7, %v10038_v51  ;;  %v6952_v46 = vmul.f32 %v9423_v7, %v10036_v24  ;;  %v6953_v58 = vmul.f32 %v9423_v7, %v10046_v9 }
 0x7be   :  { %v9425_v47 = vpop.eup %9424 }
 0x7bf   :  { %v7938_v15 = vpack.c.bf16 %v6951_v42, %v6950_v8  ;;  %v7939_v6 = vpack.c.bf16 %v6953_v58, %v6952_v46  ;;  %v6954_v19 = vmul.f32 %v9425_v47, %v10042_v43  ;;  %v6955_v26 = vmul.f32 %v9425_v47, %v10050_v14 }
 0x7c0   :  { %v6956_v33 = vmul.f32 %v9425_v47, %v10048_v11  ;;  %v6957_v16 = vmul.f32 %v9425_v47, %v10058_v25 }
 0x7c1   :  { %7014 = vst [vmem:[#allocation17] sm:$0xff] %v7938_v15  ;;  %7015 = vst [vmem:[#allocation17 + $0x8] sm:$0xff] %v7939_v6  ;;  %v7940_v13 = vpack.c.bf16 %v6955_v26, %v6954_v19 }
 0x7c2   :  { %v7941_v17 = vpack.c.bf16 %v6957_v16, %v6956_v33 }
 0x7c3   :  { %7016 = vst [vmem:[#allocation17 + $0x10] sm:$0xff] %v7940_v13 }
 0x7c4   :  { %v9427_v51 = vpop.eup %9426  ;;  %7017 = vst [vmem:[#allocation17 + $0x18] sm:$0xff] %v7941_v17 }
 0x7c5   :  { %v6958_v24 = vmul.f32 %v9427_v51, %v10064_v28  ;;  %v6959_v9 = vmul.f32 %v9427_v51, %v10068_v60  ;;  %v6960_v18 = vmul.f32 %v9427_v51, %v10066_v49  ;;  %v6961_v43 = vmul.f32 %v9427_v51, %v10078_v36 }
 0x7c6   :  { %v9429_v14 = vpop.eup %9428 }
 0x7c7   :  { %v6962_v11 = vmul.f32 %v9429_v14, %v10074_v57  ;;  %v6963_v25 = vmul.f32 %v9429_v14, %v10082_v38  ;;  %v6964_v21 = vmul.f32 %v9429_v14, %v10080_v37  ;;  %v6965_v27 = vmul.f32 %v9429_v14, %v10090_v50 }
 0x7c8   :  { %v7942_v40 = vpack.c.bf16 %v6959_v9, %v6958_v24  ;;  %v7943_v23 = vpack.c.bf16 %v6961_v43, %v6960_v18 }
 0x7c9   :  { %v7944_v28 = vpack.c.bf16 %v6963_v25, %v6962_v11  ;;  %v7945_v29 = vpack.c.bf16 %v6965_v27, %v6964_v21 }
 0x7ca   :  { %7018 = vst [vmem:[#allocation17 + $0x20] sm:$0xff] %v7942_v40  ;;  %7019 = vst [vmem:[#allocation17 + $0x28] sm:$0xff] %v7943_v23 }
 0x7cb   :  { %7020 = vst [vmem:[#allocation17 + $0x30] sm:$0xff] %v7944_v28  ;;  %7021 = vst [vmem:[#allocation17 + $0x38] sm:$0xff] %v7945_v29 }
 0x7cc   :  { %9639 = shalt.err (!%p9636_p6)
}
 0x7cd   :  { %s9640_s22 = scalar_lea.hbm %s10154_s10, 1024 }
 0x7ce   :  { %p9641_p7 = scmp.ne.s32.totalorder %s10154_s10, %s9640_s22  ;;  %p9644_p8 = scmp.lt.u32.totalorder %s9640_s22, %s10154_s10 }
 0x7d0   :  { %p9646_p9 = pnand %p9644_p8, %p9641_p7 }
 0x7d2   :  { %9649 = shalt.err (!%p9646_p9)
}
 0x7d3   :  { %7045 = dma.vmem_to_hbm [thread:$0]  %s7040_s20, 1024, %s10154_s10, [#allocation18], %s9665_s23, %s9665_s23, %s9666_s24  }
 0x7d4   :  { %9660 = dma.done.wait [#allocation4], 1024  }
 0x7d5   :  { %9661 = vsyncadd [#allocation4], 4294966272 }
 0x7d6   :  { %9662 = dma.done.wait [#allocation18], 1024  }
 0x7d7   :  { %9663 = vsyncadd [#allocation18], 4294966272 }
 0x7d8   :  { %7052 = vsyncpa [#allocation3], 1 }
 0x7d9   :  { %7053 = vsyncpa [#allocation6], 1 }
 0x7da   :  { %7054 = vsyncpa [#allocation9], 1 }
 0x7db   :  { %7055 = vsyncpa [#allocation12], 1 }
 0x7dc   :  { %7056 = vsyncpa [#allocation15], 1 }
 0x7dd   :  { %7057 = vsyncpa [#allocation4], 1 }
 0x7de   :  { %7058 = vsyncpa [#allocation18], 1 }

// kernel: tpu_custom_call.1
= control target key start
LH: loop header
LB: loop body
LE: loop exit
PB: predicated region body
PF: predicated region fallthrough
CT: control target
= control target key end

     0   :  { %16 = vsyncpa [#allocation3], 0  ;;  %s10144_s0 = inlined_call_operand.hbm [shape: bf16[32,768], index: 0, kind: input, shape index: {}]   ;;  %s10145_s1 = inlined_call_operand.hbm [shape: bf16[32,512], index: 1, kind: input, shape index: {}]   ;;  %s10146_s2 = inlined_call_operand.hbm [shape: bf16[768,512], index: 2, kind: input, shape index: {}]   ;;  %s10147_s3 = inlined_call_operand.hbm [shape: bf16[512,512], index: 3, kind: input, shape index: {}]   ;;  %s10148_s4 = inlined_call_operand.hbm [shape: bf16[512,512], index: 4, kind: input, shape index: {}]   ;;  %s10149_s5 = inlined_call_operand.hbm [shape: bf16[512,512], index: 5, kind: input, shape index: {}]   ;;  %s10150_s6 = inlined_call_operand.hbm [shape: bf16[512,512], index: 6, kind: input, shape index: {}]   ;;  %s10151_s7 = inlined_call_operand.hbm [shape: bf16[512,512], index: 7, kind: input, shape index: {}]   ;;  %s10152_s8 = inlined_call_operand.vmem [shape: f32[4,512], index: 8, kind: input, shape index: {}]   ;;  %s10153_s9 = inlined_call_operand.hbm [shape: bf16[32,512], index: 9, kind: output, shape index: {0}]   ;;  %s10154_s10 = inlined_call_operand.hbm [shape: bf16[32,512], index: 10, kind: output, shape index: {1}]  }
   0x1   :  { %17 = vsyncpa [#allocation6], 0 }
   0x2   :  { %18 = vsyncpa [#allocation9], 0 }
   0x3   :  { %19 = vsyncpa [#allocation12], 0 }
   0x4   :  { %20 = vsyncpa [#allocation15], 0 }
   0x5   :  { %21 = vsyncpa [#allocation4], 0 }
   0x6   :  { %22 = vsyncpa [#allocation18], 0  ;;  %s9664_s13 = smov [#allocation5]   ;;  %s9430_s17 = scalar_lea.hbm %s10145_s1, 1024 }
   0x7   :  { %s40_s14 = sshll.u32 %s9664_s13, 4  ;;  %p9431_p0 = scmp.ne.s32.totalorder %s10145_s1, %s9430_s17  ;;  %s41_s14 = int_to_ptr.vmem [resolvable:$true] %s40_s14 }
   0x8   :  { %p9434_p1 = scmp.lt.u32.totalorder %s9430_s17, %s10145_s1 }
   0xa   :  { %p9436_p2 = pnand %p9434_p1, %p9431_p0 }
   0xc   :  { %9439 = shalt.err (!%p9436_p2)
}
   0xd   :  { %s9440_s22 = scalar_lea.vmem %s41_s14, 1024  ;;  %p9445_p4 = scmp.lt.s32.totalorder %s41_s14, %s41_s14 }
   0xe   :  { %p9441_p3 = scmp.ne.s32.totalorder %s41_s14, %s9440_s22  ;;  %p9446_p5 = scmp.lt.s32.totalorder %s9440_s22, %s9440_s22 }
  0x10   :  { %p9447_p6 = por %p9446_p5, %p9445_p4 }
  0x12   :  { %p9448_p7 = pnand %p9447_p6, %p9441_p3 }
  0x14   :  { %9451 = shalt.err (!%p9448_p7)
}
  0x15   :  { %s9665_s23 = smov 256   ;;  %s9666_s24 = smov 16  }
  0x16   :  { %46 = dma.hbm_to_vmem [thread:$0]  %s10145_s1, 1024, %s41_s14, [#allocation6], %s9665_s23, %s9665_s23, %s9666_s24  }
  0x17   :  { %s9667_s27 = smov [#allocation8]   ;;  %s9668_s29 = smov [#allocation11]  }
  0x18   :  { %s64_s28 = sshll.u32 %s9667_s27, 4  ;;  %s88_s30 = sshll.u32 %s9668_s29, 4  ;;  %s65_s28 = int_to_ptr.vmem [resolvable:$true] %s64_s28  ;;  %s89_s30 = int_to_ptr.vmem [resolvable:$true] %s88_s30 }
  0x19   :  { %s9452_s13 = scalar_lea.hbm %s10147_s3, 16384 }
  0x1a   :  { %p9453_p8 = scmp.ne.s32.totalorder %s10147_s3, %s9452_s13  ;;  %p9456_p9 = scmp.lt.u32.totalorder %s9452_s13, %s10147_s3 }
  0x1c   :  { %p9458_p10 = pnand %p9456_p9, %p9453_p8 }
  0x1e   :  { %9461 = shalt.err (!%p9458_p10)
}
  0x1f   :  { %s9462_s1 = scalar_lea.vmem %s65_s28, 16384  ;;  %p9467_p12 = scmp.lt.s32.totalorder %s65_s28, %s65_s28 }
  0x20   :  { %p9463_p11 = scmp.ne.s32.totalorder %s65_s28, %s9462_s1  ;;  %p9468_p13 = scmp.lt.s32.totalorder %s9462_s1, %s9462_s1 }
  0x22   :  { %p9469_p0 = por %p9468_p13, %p9467_p12 }
  0x24   :  { %p9470_p1 = pnand %p9469_p0, %p9463_p11 }
  0x26   :  { %9473 = shalt.err (!%p9470_p1)
}
  0x27   :  { %70 = dma.hbm_to_vmem [thread:$0]  %s10147_s3, 16384, %s65_s28, [#allocation9], %s9665_s23, %s9665_s23, %s9666_s24  }
  0x28   :  { %s9474_s22 = scalar_lea.hbm %s10149_s5, 16384 }
  0x29   :  { %p9475_p2 = scmp.ne.s32.totalorder %s10149_s5, %s9474_s22  ;;  %p9478_p3 = scmp.lt.u32.totalorder %s9474_s22, %s10149_s5 }
  0x2b   :  { %p9480_p4 = pnand %p9478_p3, %p9475_p2 }
  0x2d   :  { %9483 = shalt.err (!%p9480_p4)
}
  0x2e   :  { %s9484_s11 = scalar_lea.vmem %s89_s30, 16384  ;;  %p9489_p6 = scmp.lt.s32.totalorder %s89_s30, %s89_s30 }
  0x2f   :  { %p9485_p5 = scmp.ne.s32.totalorder %s89_s30, %s9484_s11  ;;  %p9490_p7 = scmp.lt.s32.totalorder %s9484_s11, %s9484_s11 }
  0x31   :  { %p9491_p8 = por %p9490_p7, %p9489_p6 }
  0x33   :  { %p9492_p9 = pnand %p9491_p8, %p9485_p5 }
  0x35   :  { %9495 = shalt.err (!%p9492_p9)
}
  0x36   :  { %94 = dma.hbm_to_vmem [thread:$0]  %s10149_s5, 16384, %s89_s30, [#allocation12], %s9665_s23, %s9665_s23, %s9666_s24  }
  0x37   :  { %s9669_s12 = smov [#allocation2]   ;;  %s9496_s17 = scalar_lea.hbm %s10144_s0, 1536 }
  0x38   :  { %s28_s13 = sshll.u32 %s9669_s12, 4  ;;  %p9497_p10 = scmp.ne.s32.totalorder %s10144_s0, %s9496_s17  ;;  %s29_s13 = int_to_ptr.vmem [resolvable:$true] %s28_s13 }
  0x39   :  { %p9500_p11 = scmp.lt.u32.totalorder %s9496_s17, %s10144_s0 }
  0x3b   :  { %p9502_p12 = pnand %p9500_p11, %p9497_p10 }
  0x3d   :  { %9505 = shalt.err (!%p9502_p12)
}
  0x3e   :  { %s9506_s20 = scalar_lea.vmem %s29_s13, 1536  ;;  %p9511_p0 = scmp.lt.s32.totalorder %s29_s13, %s29_s13 }
  0x3f   :  { %p9507_p13 = scmp.ne.s32.totalorder %s29_s13, %s9506_s20  ;;  %p9512_p1 = scmp.lt.s32.totalorder %s9506_s20, %s9506_s20 }
  0x41   :  { %p9513_p2 = por %p9512_p1, %p9511_p0 }
  0x43   :  { %p9514_p3 = pnand %p9513_p2, %p9507_p13 }
  0x45   :  { %9517 = shalt.err (!%p9514_p3)
}
  0x46   :  { %s9670_s5 = smov 384   ;;  %s9671_s30 = smov 24  }
  0x47   :  { %34 = dma.hbm_to_vmem [thread:$0]  %s10144_s0, 1536, %s29_s13, [#allocation3], %s9670_s5, %s9670_s5, %s9671_s30  }
  0x48   :  { %s9672_s25 = smov [#allocation7]   ;;  %s9673_s27 = smov [#allocation10]  }
  0x49   :  { %s52_s26 = sshll.u32 %s9672_s25, 4  ;;  %s76_s29 = sshll.u32 %s9673_s27, 4  ;;  %s53_s26 = int_to_ptr.vmem [resolvable:$true] %s52_s26  ;;  %s9790_s29 = int_to_ptr.vmem [resolvable:$true] %s76_s29 }
  0x4a   :  { %s9518_s28 = scalar_lea.hbm %s10146_s2, 24576 }
  0x4b   :  { %p9519_p4 = scmp.ne.s32.totalorder %s10146_s2, %s9518_s28  ;;  %p9522_p5 = scmp.lt.u32.totalorder %s9518_s28, %s10146_s2 }
  0x4d   :  { %p9524_p6 = pnand %p9522_p5, %p9519_p4 }
  0x4f   :  { %9527 = shalt.err (!%p9524_p6)
}
  0x50   :  { %s9528_s0 = scalar_lea.vmem %s53_s26, 24576  ;;  %p9533_p8 = scmp.lt.s32.totalorder %s53_s26, %s53_s26 }
  0x51   :  { %p9529_p7 = scmp.ne.s32.totalorder %s53_s26, %s9528_s0  ;;  %p9534_p9 = scmp.lt.s32.totalorder %s9528_s0, %s9528_s0 }
  0x53   :  { %p9535_p10 = por %p9534_p9, %p9533_p8 }
  0x55   :  { %p9536_p11 = pnand %p9535_p10, %p9529_p7 }
  0x57   :  { %9539 = shalt.err (!%p9536_p11)
}
  0x58   :  { %58 = dma.hbm_to_vmem [thread:$0]  %s10146_s2, 24576, %s53_s26, [#allocation6], %s9665_s23, %s9665_s23, %s9666_s24  }
  0x59   :  { %s9540_s19 = scalar_lea.hbm %s10148_s4, 16384 }
  0x5a   :  { %p9541_p12 = scmp.ne.s32.totalorder %s10148_s4, %s9540_s19  ;;  %p9544_p13 = scmp.lt.u32.totalorder %s9540_s19, %s10148_s4 }
  0x5c   :  { %p9546_p0 = pnand %p9544_p13, %p9541_p12 }
  0x5e   :  { %9549 = shalt.err (!%p9546_p0)
}
  0x5f   :  { %s9550_s22 = scalar_lea.vmem %s9790_s29, 16384  ;;  %p9555_p2 = scmp.lt.s32.totalorder %s9790_s29, %s9790_s29 }
  0x60   :  { %p9551_p1 = scmp.ne.s32.totalorder %s9790_s29, %s9550_s22  ;;  %p9556_p3 = scmp.lt.s32.totalorder %s9550_s22, %s9550_s22 }
  0x62   :  { %p9557_p4 = por %p9556_p3, %p9555_p2 }
  0x64   :  { %p9558_p5 = pnand %p9557_p4, %p9551_p1 }
  0x66   :  { %9561 = shalt.err (!%p9558_p5)
}
  0x67   :  { %82 = dma.hbm_to_vmem [thread:$0]  %s10148_s4, 16384, %s9790_s29, [#allocation9], %s9665_s23, %s9665_s23, %s9666_s24  }
  0x68   :  { %s9674_s26 = smov [#allocation13]   ;;  %s9675_s11 = smov [#allocation14]  }
  0x69   :  { %s100_s27 = sshll.u32 %s9674_s26, 4  ;;  %s112_s3 = sshll.u32 %s9675_s11, 4  ;;  %s101_s27 = int_to_ptr.vmem [resolvable:$true] %s100_s27  ;;  %s9827_s3 = int_to_ptr.vmem [resolvable:$true] %s112_s3 }
  0x6a   :  { %s9562_s15 = scalar_lea.hbm %s10150_s6, 16384 }
  0x6b   :  { %p9563_p6 = scmp.ne.s32.totalorder %s10150_s6, %s9562_s15  ;;  %p9566_p7 = scmp.lt.u32.totalorder %s9562_s15, %s10150_s6 }
  0x6d   :  { %p9568_p8 = pnand %p9566_p7, %p9563_p6 }
  0x6f   :  { %9571 = shalt.err (!%p9568_p8)
}
  0x70   :  { %s9572_s4 = scalar_lea.vmem %s101_s27, 16384  ;;  %p9577_p10 = scmp.lt.s32.totalorder %s101_s27, %s101_s27 }
  0x71   :  { %p9573_p9 = scmp.ne.s32.totalorder %s101_s27, %s9572_s4  ;;  %p9578_p11 = scmp.lt.s32.totalorder %s9572_s4, %s9572_s4 }
  0x73   :  { %p9579_p12 = por %p9578_p11, %p9577_p10 }
  0x75   :  { %p9580_p13 = pnand %p9579_p12, %p9573_p9 }
  0x77   :  { %9583 = shalt.err (!%p9580_p13)
}
  0x78   :  { %106 = dma.hbm_to_vmem [thread:$0]  %s10150_s6, 16384, %s101_s27, [#allocation12], %s9665_s23, %s9665_s23, %s9666_s24  }
  0x79   :  { %s9584_s19 = scalar_lea.hbm %s10151_s7, 16384 }
  0x7a   :  { %p9585_p0 = scmp.ne.s32.totalorder %s10151_s7, %s9584_s19  ;;  %p9588_p1 = scmp.lt.u32.totalorder %s9584_s19, %s10151_s7 }
  0x7c   :  { %p9590_p2 = pnand %p9588_p1, %p9585_p0 }
  0x7e   :  { %9593 = shalt.err (!%p9590_p2)
}
  0x7f   :  { %s9594_s22 = scalar_lea.vmem %s9827_s3, 16384  ;;  %p9599_p4 = scmp.lt.s32.totalorder %s9827_s3, %s9827_s3 }
  0x80   :  { %p9595_p3 = scmp.ne.s32.totalorder %s9827_s3, %s9594_s22  ;;  %p9600_p5 = scmp.lt.s32.totalorder %s9594_s22, %s9594_s22 }
  0x82   :  { %p9601_p6 = por %p9600_p5, %p9599_p4 }
  0x84   :  { %p9602_p7 = pnand %p9601_p6, %p9595_p3 }
  0x86   :  { %9605 = shalt.err (!%p9602_p7)
}
  0x87   :  { %118 = dma.hbm_to_vmem [thread:$0]  %s10151_s7, 16384, %s9827_s3, [#allocation15], %s9665_s23, %s9665_s23, %s9666_s24  }
  0x88   :  { %9650 = dma.done.wait [#allocation3], 1536  }
  0x89   :  { %9651 = vsyncadd [#allocation3], 4294965760 }
  0x8a   :  { %9652 = dma.done.wait [#allocation6], 25600  }
  0x8b   :  { %9653 = vsyncadd [#allocation6], 4294941696 }
  0x8c   :  { %9654 = dma.done.wait [#allocation9], 32768  }
  0x8d   :  { %9655 = vsyncadd [#allocation9], 4294934528 }
  0x8e   :  { %9656 = dma.done.wait [#allocation12], 32768  }
  0x8f   :  { %9657 = vsyncadd [#allocation12], 4294934528 }
  0x90   :  { %9658 = dma.done.wait [#allocation15], 16384  }
  0x91   :  { %9659 = vsyncadd [#allocation15], 4294950912  ;;  %v8136_v0 = vld [vmem:[#allocation7 + $0x4] ss:$16 sps:$4 sm:$0xff]   ;;  %v8138_v1 = vld [vmem:[#allocation7 + $0xc] ss:$16 sps:$4 sm:$0xff]  }
  0x92   :  { %1369 = vmatprep.subr.bf16.mxu0 %v8136_v0  ;;  %v8140_v2 = vld [vmem:[#allocation7] ss:$16 sps:$4 sm:$0xff]   ;;  %v8141_v3 = vld [vmem:[#allocation7 + $0x8] ss:$16 sps:$4 sm:$0xff]   ;;  %1528 = vmatprep.subr.bf16.mxu1 %v8138_v1  ;;  %v8142_v4 = vld [vmem:[#allocation7 + $0x24] ss:$16 sps:$4 sm:$0xff]  }
  0x93   :  { %1370 = vmatpush1.bf16.msra.mxu0 %v8140_v2  ;;  %1529 = vmatpush1.bf16.msra.mxu1 %v8141_v3  ;;  %v8144_v5 = vld [vmem:[#allocation7 + $0x2c] ss:$16 sps:$4 sm:$0xff]   ;;  %v8146_v6 = vld [vmem:[#allocation7 + $0x20] ss:$16 sps:$4 sm:$0xff]   ;;  %v8147_v7 = vld [vmem:[#allocation7 + $0x28] ss:$16 sps:$4 sm:$0xff]  }
  0x94   :  { %1371 = vmatprep.subr.bf16.mxu0 %v8142_v4  ;;  %1530 = vmatprep.subr.bf16.mxu1 %v8144_v5  ;;  %v8148_v8 = vld [vmem:[#allocation7 + $0x44] ss:$16 sps:$4 sm:$0xff]   ;;  %v8150_v9 = vld [vmem:[#allocation7 + $0x4c] ss:$16 sps:$4 sm:$0xff]   ;;  %v8152_v10 = vld [vmem:[#allocation7 + $0x40] ss:$16 sps:$4 sm:$0xff]  }
  0x95   :  { %v8153_v11 = vld [vmem:[#allocation7 + $0x48] ss:$16 sps:$4 sm:$0xff]   ;;  %v8154_v12 = vld [vmem:[#allocation7 + $0x64] ss:$16 sps:$4 sm:$0xff]   ;;  %v8156_v13 = vld [vmem:[#allocation7 + $0x6c] ss:$16 sps:$4 sm:$0xff]  }
  0x96   :  { %v8158_v14 = vld [vmem:[#allocation7 + $0x60] ss:$16 sps:$4 sm:$0xff]   ;;  %v8159_v15 = vld [vmem:[#allocation7 + $0x68] ss:$16 sps:$4 sm:$0xff]   ;;  %v8160_v16 = vld [vmem:[#allocation7 + $0x84] ss:$16 sps:$4 sm:$0xff]  }
  0x97   :  { %1372 = vmatpush1.bf16.msra.mxu0 %v8146_v6  ;;  %1531 = vmatpush1.bf16.msra.mxu1 %v8147_v7  ;;  %v8162_v17 = vld [vmem:[#allocation7 + $0x8c] ss:$16 sps:$4 sm:$0xff]   ;;  %v8164_v18 = vld [vmem:[#allocation7 + $0x80] ss:$16 sps:$4 sm:$0xff]   ;;  %v8165_v19 = vld [vmem:[#allocation7 + $0x88] ss:$16 sps:$4 sm:$0xff]  }
  0x98   :  { %1373 = vmatprep.subr.bf16.mxu0 %v8148_v8  ;;  %1532 = vmatprep.subr.bf16.mxu1 %v8150_v9  ;;  %v8166_v20 = vld [vmem:[#allocation7 + $0xa4] ss:$16 sps:$4 sm:$0xff]   ;;  %v8168_v21 = vld [vmem:[#allocation7 + $0xac] ss:$16 sps:$4 sm:$0xff]   ;;  %v8170_v22 = vld [vmem:[#allocation7 + $0xa0] ss:$16 sps:$4 sm:$0xff]  }
  0x99   :  { %v8171_v23 = vld [vmem:[#allocation7 + $0xa8] ss:$16 sps:$4 sm:$0xff]   ;;  %v8172_v24 = vld [vmem:[#allocation7 + $0xc4] ss:$16 sps:$4 sm:$0xff]   ;;  %v8174_v25 = vld [vmem:[#allocation7 + $0xcc] ss:$16 sps:$4 sm:$0xff]  }
  0x9a   :  { %v8176_v26 = vld [vmem:[#allocation7 + $0xc0] ss:$16 sps:$4 sm:$0xff]   ;;  %v8177_v27 = vld [vmem:[#allocation7 + $0xc8] ss:$16 sps:$4 sm:$0xff]   ;;  %v8178_v28 = vld [vmem:[#allocation7 + $0xe4] ss:$16 sps:$4 sm:$0xff]  }
  0x9b   :  { %1374 = vmatpush1.bf16.msra.mxu0 %v8152_v10  ;;  %1533 = vmatpush1.bf16.msra.mxu1 %v8153_v11  ;;  %v8180_v29 = vld [vmem:[#allocation7 + $0xec] ss:$16 sps:$4 sm:$0xff]   ;;  %v8182_v30 = vld [vmem:[#allocation7 + $0xe0] ss:$16 sps:$4 sm:$0xff]   ;;  %v8183_v31 = vld [vmem:[#allocation7 + $0xe8] ss:$16 sps:$4 sm:$0xff]  }
  0x9c   :  { %1375 = vmatprep.subr.bf16.mxu0 %v8154_v12  ;;  %1534 = vmatprep.subr.bf16.mxu1 %v8156_v13  ;;  %v8184_v32 = vld [vmem:[#allocation7 + $0x104] ss:$16 sps:$4 sm:$0xff]   ;;  %v8186_v33 = vld [vmem:[#allocation7 + $0x10c] ss:$16 sps:$4 sm:$0xff]   ;;  %v8188_v34 = vld [vmem:[#allocation7 + $0x100] ss:$16 sps:$4 sm:$0xff]  }
  0x9d   :  { %v8189_v35 = vld [vmem:[#allocation7 + $0x108] ss:$16 sps:$4 sm:$0xff]   ;;  %v8190_v36 = vld [vmem:[#allocation7 + $0x124] ss:$16 sps:$4 sm:$0xff]   ;;  %v8192_v37 = vld [vmem:[#allocation7 + $0x12c] ss:$16 sps:$4 sm:$0xff]  }
  0x9e   :  { %v8194_v38 = vld [vmem:[#allocation7 + $0x120] ss:$16 sps:$4 sm:$0xff]   ;;  %v8195_v39 = vld [vmem:[#allocation7 + $0x128] ss:$16 sps:$4 sm:$0xff]   ;;  %v8196_v40 = vld [vmem:[#allocation7 + $0x144] ss:$16 sps:$4 sm:$0xff]  }
  0x9f   :  { %1376 = vmatpush1.bf16.msra.mxu0 %v8158_v14  ;;  %1535 = vmatpush1.bf16.msra.mxu1 %v8159_v15  ;;  %v8198_v41 = vld [vmem:[#allocation7 + $0x14c] ss:$16 sps:$4 sm:$0xff]   ;;  %v8200_v42 = vld [vmem:[#allocation7 + $0x140] ss:$16 sps:$4 sm:$0xff]   ;;  %v8201_v43 = vld [vmem:[#allocation7 + $0x148] ss:$16 sps:$4 sm:$0xff]  }
  0xa0   :  { %1377 = vmatprep.subr.bf16.mxu0 %v8160_v16  ;;  %1536 = vmatprep.subr.bf16.mxu1 %v8162_v17  ;;  %v8202_v44 = vld [vmem:[#allocation7 + $0x164] ss:$16 sps:$4 sm:$0xff]   ;;  %v8204_v45 = vld [vmem:[#allocation7 + $0x16c] ss:$16 sps:$4 sm:$0xff]   ;;  %v8206_v46 = vld [vmem:[#allocation7 + $0x160] ss:$16 sps:$4 sm:$0xff]  }
  0xa1   :  { %v8207_v47 = vld [vmem:[#allocation7 + $0x168] ss:$16 sps:$4 sm:$0xff]   ;;  %v8234_v48 = vld [vmem:[#allocation2 + $0x4] ss:$24 sps:$4 sm:$0xff]   ;;  %v8212_v51 = vld [vmem:[#allocation7 + $0x180] ss:$16 sps:$4 sm:$0xff]  }
  0xa2   :  { %v8208_v49 = vld [vmem:[#allocation7 + $0x184] ss:$16 sps:$4 sm:$0xff]   ;;  %v8210_v50 = vld [vmem:[#allocation7 + $0x18c] ss:$16 sps:$4 sm:$0xff]   ;;  %1401 = vmatprep.mubr.bf16.mxu0 %v8234_v48  ;;  %1560 = vmatprep.mubr.bf16.mxu1 %v8234_v48  ;;  %v8213_v52 = vld [vmem:[#allocation7 + $0x188] ss:$16 sps:$4 sm:$0xff]  }
  0xa3   :  { %1378 = vmatpush1.bf16.msra.mxu0 %v8164_v18  ;;  %1537 = vmatpush1.bf16.msra.mxu1 %v8165_v19  ;;  %v8214_v53 = vld [vmem:[#allocation7 + $0x1a4] ss:$16 sps:$4 sm:$0xff]   ;;  %v8216_v54 = vld [vmem:[#allocation7 + $0x1ac] ss:$16 sps:$4 sm:$0xff]   ;;  %v8218_v55 = vld [vmem:[#allocation7 + $0x1a0] ss:$16 sps:$4 sm:$0xff]  }
  0xa4   :  { %1379 = vmatprep.subr.bf16.mxu0 %v8166_v20  ;;  %1538 = vmatprep.subr.bf16.mxu1 %v8168_v21  ;;  %v8219_v56 = vld [vmem:[#allocation7 + $0x1a8] ss:$16 sps:$4 sm:$0xff]   ;;  %v8220_v57 = vld [vmem:[#allocation7 + $0x1c4] ss:$16 sps:$4 sm:$0xff]   ;;  %v8222_v58 = vld [vmem:[#allocation7 + $0x1cc] ss:$16 sps:$4 sm:$0xff]  }
  0xa5   :  { %v8224_v59 = vld [vmem:[#allocation7 + $0x1c0] ss:$16 sps:$4 sm:$0xff]   ;;  %v8225_v60 = vld [vmem:[#allocation7 + $0x1c8] ss:$16 sps:$4 sm:$0xff]   ;;  %v8226_v61 = vld [vmem:[#allocation7 + $0x1e4] ss:$16 sps:$4 sm:$0xff]  }
  0xa6   :  { %v8228_v62 = vld [vmem:[#allocation7 + $0x1ec] ss:$16 sps:$4 sm:$0xff]   ;;  %v8230_v63 = vld [vmem:[#allocation7 + $0x1e0] ss:$16 sps:$4 sm:$0xff]   ;;  %v8231_v0 = vld [vmem:[#allocation7 + $0x1e8] ss:$16 sps:$4 sm:$0xff]  }
  0xa7   :  { %1380 = vmatpush1.bf16.msra.mxu0 %v8170_v22  ;;  %1539 = vmatpush1.bf16.msra.mxu1 %v8171_v23  ;;  %v8237_v1 = vld [vmem:[#allocation7 + $0x204] ss:$16 sps:$4 sm:$0xff]   ;;  %v8240_v2 = vld [vmem:[#allocation7 + $0x20c] ss:$16 sps:$4 sm:$0xff]   ;;  %v8232_v3 = vld [vmem:[#allocation2] ss:$24 sps:$4 sm:$0xff]  }
  0xa8   :  { %1381 = vmatprep.subr.bf16.mxu0 %v8172_v24  ;;  %1540 = vmatprep.subr.bf16.mxu1 %v8174_v25  ;;  %v8235_v4 = vld [vmem:[#allocation7 + $0x200] ss:$16 sps:$4 sm:$0xff]   ;;  %v8238_v5 = vld [vmem:[#allocation7 + $0x208] ss:$16 sps:$4 sm:$0xff]   ;;  %v8243_v6 = vld [vmem:[#allocation7 + $0x224] ss:$16 sps:$4 sm:$0xff]  }
  0xa9   :  { %v8246_v7 = vld [vmem:[#allocation7 + $0x22c] ss:$16 sps:$4 sm:$0xff]   ;;  %v8241_v8 = vld [vmem:[#allocation7 + $0x220] ss:$16 sps:$4 sm:$0xff]   ;;  %v8244_v9 = vld [vmem:[#allocation7 + $0x228] ss:$16 sps:$4 sm:$0xff]  }
  0xaa   :  { %v8249_v10 = vld [vmem:[#allocation7 + $0x244] ss:$16 sps:$4 sm:$0xff]   ;;  %v8252_v11 = vld [vmem:[#allocation7 + $0x24c] ss:$16 sps:$4 sm:$0xff]   ;;  %v8247_v12 = vld [vmem:[#allocation7 + $0x240] ss:$16 sps:$4 sm:$0xff]  }
  0xab   :  { %1382 = vmatpush1.bf16.msra.mxu0 %v8176_v26  ;;  %1541 = vmatpush1.bf16.msra.mxu1 %v8177_v27  ;;  %v8250_v13 = vld [vmem:[#allocation7 + $0x248] ss:$16 sps:$4 sm:$0xff]   ;;  %v8255_v14 = vld [vmem:[#allocation7 + $0x264] ss:$16 sps:$4 sm:$0xff]   ;;  %v8258_v15 = vld [vmem:[#allocation7 + $0x26c] ss:$16 sps:$4 sm:$0xff]  }
  0xac   :  { %1383 = vmatprep.subr.bf16.mxu0 %v8178_v28  ;;  %1542 = vmatprep.subr.bf16.mxu1 %v8180_v29  ;;  %v8253_v16 = vld [vmem:[#allocation7 + $0x260] ss:$16 sps:$4 sm:$0xff]   ;;  %v8256_v17 = vld [vmem:[#allocation7 + $0x268] ss:$16 sps:$4 sm:$0xff]   ;;  %v8261_v18 = vld [vmem:[#allocation7 + $0x284] ss:$16 sps:$4 sm:$0xff]  }
  0xad   :  { %v8264_v19 = vld [vmem:[#allocation7 + $0x28c] ss:$16 sps:$4 sm:$0xff]   ;;  %v8259_v20 = vld [vmem:[#allocation7 + $0x280] ss:$16 sps:$4 sm:$0xff]   ;;  %v8262_v21 = vld [vmem:[#allocation7 + $0x288] ss:$16 sps:$4 sm:$0xff]  }
  0xae   :  { %v8267_v22 = vld [vmem:[#allocation7 + $0x2a4] ss:$16 sps:$4 sm:$0xff]   ;;  %v8270_v23 = vld [vmem:[#allocation7 + $0x2ac] ss:$16 sps:$4 sm:$0xff]   ;;  %v8265_v25 = vld [vmem:[#allocation7 + $0x2a0] ss:$16 sps:$4 sm:$0xff]  }
  0xaf   :  { %1384 = vmatpush1.bf16.msra.mxu0 %v8182_v30  ;;  %1543 = vmatpush1.bf16.msra.mxu1 %v8183_v31  ;;  %v8319_v24 = vld [vmem:[#allocation2 + $0x34] ss:$24 sps:$4 sm:$0xff]   ;;  %v8268_v26 = vld [vmem:[#allocation7 + $0x2a8] ss:$16 sps:$4 sm:$0xff]   ;;  %v8271_v30 = vld [vmem:[#allocation7 + $0x2c0] ss:$16 sps:$4 sm:$0xff]  }
  0xb0   :  { %1385 = vmatprep.subr.bf16.mxu0 %v8184_v32  ;;  %1544 = vmatprep.subr.bf16.mxu1 %v8186_v33  ;;  %v8273_v27 = vld [vmem:[#allocation7 + $0x2c4] ss:$16 sps:$4 sm:$0xff]   ;;  %v8276_v28 = vld [vmem:[#allocation7 + $0x2cc] ss:$16 sps:$4 sm:$0xff]   ;;  %v8327_v29 = vld [vmem:[#allocation2 + $0x30] ss:$24 sps:$4 sm:$0xff]  }
  0xb1   :  { %v8274_v31 = vld [vmem:[#allocation7 + $0x2c8] ss:$16 sps:$4 sm:$0xff]   ;;  %v8279_v32 = vld [vmem:[#allocation7 + $0x2e4] ss:$16 sps:$4 sm:$0xff]   ;;  %v8282_v33 = vld [vmem:[#allocation7 + $0x2ec] ss:$16 sps:$4 sm:$0xff]  }
  0xb2   :  { %v8298_v48 = vld [vmem:[#allocation7 + $0x348] ss:$16 sps:$4 sm:$0xff]  }
  0xb3   :  { %1386 = vmatpush1.bf16.msra.mxu0 %v8188_v34  ;;  %1545 = vmatpush1.bf16.msra.mxu1 %v8189_v35  ;;  %v8336_v34 = vld [vmem:[#allocation2 + $0xc] ss:$24 sps:$4 sm:$0xff]   ;;  %v8277_v35 = vld [vmem:[#allocation7 + $0x2e0] ss:$16 sps:$4 sm:$0xff]  }
  0xb4   :  { %1387 = vmatprep.subr.bf16.mxu0 %v8190_v36  ;;  %1546 = vmatprep.subr.bf16.mxu1 %v8192_v37  ;;  %v8280_v36 = vld [vmem:[#allocation7 + $0x2e8] ss:$16 sps:$4 sm:$0xff]   ;;  %v8285_v37 = vld [vmem:[#allocation7 + $0x304] ss:$16 sps:$4 sm:$0xff]  }
  0xb7   :  { %1388 = vmatpush1.bf16.msra.mxu0 %v8194_v38  ;;  %1547 = vmatpush1.bf16.msra.mxu1 %v8195_v39  ;;  %v8288_v38 = vld [vmem:[#allocation7 + $0x30c] ss:$16 sps:$4 sm:$0xff]   ;;  %v8283_v39 = vld [vmem:[#allocation7 + $0x300] ss:$16 sps:$4 sm:$0xff]  }
  0xb8   :  { %1389 = vmatprep.subr.bf16.mxu0 %v8196_v40  ;;  %1548 = vmatprep.subr.bf16.mxu1 %v8198_v41  ;;  %v8286_v40 = vld [vmem:[#allocation7 + $0x308] ss:$16 sps:$4 sm:$0xff]   ;;  %v8291_v41 = vld [vmem:[#allocation7 + $0x324] ss:$16 sps:$4 sm:$0xff]  }
  0xbb   :  { %1390 = vmatpush1.bf16.msra.mxu0 %v8200_v42  ;;  %1549 = vmatpush1.bf16.msra.mxu1 %v8201_v43  ;;  %v8294_v42 = vld [vmem:[#allocation7 + $0x32c] ss:$16 sps:$4 sm:$0xff]   ;;  %v8289_v43 = vld [vmem:[#allocation7 + $0x320] ss:$16 sps:$4 sm:$0xff]  }
  0xbc   :  { %1391 = vmatprep.subr.bf16.mxu0 %v8202_v44  ;;  %1550 = vmatprep.subr.bf16.mxu1 %v8204_v45  ;;  %v8292_v44 = vld [vmem:[#allocation7 + $0x328] ss:$16 sps:$4 sm:$0xff]   ;;  %v8297_v45 = vld [vmem:[#allocation7 + $0x344] ss:$16 sps:$4 sm:$0xff]  }
  0xbf   :  { %1392 = vmatpush1.bf16.msra.mxu0 %v8206_v46  ;;  %1551 = vmatpush1.bf16.msra.mxu1 %v8207_v47  ;;  %v8300_v46 = vld [vmem:[#allocation7 + $0x34c] ss:$16 sps:$4 sm:$0xff]   ;;  %v8295_v47 = vld [vmem:[#allocation7 + $0x340] ss:$16 sps:$4 sm:$0xff]  }
  0xc0   :  { %1393 = vmatprep.subr.bf16.mxu0 %v8208_v49  ;;  %1552 = vmatprep.subr.bf16.mxu1 %v8210_v50  ;;  %v8303_v49 = vld [vmem:[#allocation7 + $0x364] ss:$16 sps:$4 sm:$0xff]   ;;  %v8306_v50 = vld [vmem:[#allocation7 + $0x36c] ss:$16 sps:$4 sm:$0xff]  }
  0xc3   :  { %1394 = vmatpush1.bf16.msra.mxu0 %v8212_v51  ;;  %1553 = vmatpush1.bf16.msra.mxu1 %v8213_v52  ;;  %v8301_v51 = vld [vmem:[#allocation7 + $0x360] ss:$16 sps:$4 sm:$0xff]   ;;  %v8304_v52 = vld [vmem:[#allocation7 + $0x368] ss:$16 sps:$4 sm:$0xff]  }
  0xc4   :  { %1395 = vmatprep.subr.bf16.mxu0 %v8214_v53  ;;  %1554 = vmatprep.subr.bf16.mxu1 %v8216_v54  ;;  %v8309_v53 = vld [vmem:[#allocation7 + $0x384] ss:$16 sps:$4 sm:$0xff]   ;;  %v8312_v54 = vld [vmem:[#allocation7 + $0x38c] ss:$16 sps:$4 sm:$0xff]  }
  0xc7   :  { %1396 = vmatpush1.bf16.msra.mxu0 %v8218_v55  ;;  %1555 = vmatpush1.bf16.msra.mxu1 %v8219_v56  ;;  %v8307_v55 = vld [vmem:[#allocation7 + $0x380] ss:$16 sps:$4 sm:$0xff]   ;;  %v8310_v56 = vld [vmem:[#allocation7 + $0x388] ss:$16 sps:$4 sm:$0xff]  }
  0xc8   :  { %1397 = vmatprep.subr.bf16.mxu0 %v8220_v57  ;;  %1556 = vmatprep.subr.bf16.mxu1 %v8222_v58  ;;  %v8315_v57 = vld [vmem:[#allocation7 + $0x3a4] ss:$16 sps:$4 sm:$0xff]   ;;  %v8318_v58 = vld [vmem:[#allocation7 + $0x3ac] ss:$16 sps:$4 sm:$0xff]  }
  0xcb   :  { %1398 = vmatpush1.bf16.msra.mxu0 %v8224_v59  ;;  %1557 = vmatpush1.bf16.msra.mxu1 %v8225_v60  ;;  %v8313_v59 = vld [vmem:[#allocation7 + $0x3a0] ss:$16 sps:$4 sm:$0xff]   ;;  %v8316_v60 = vld [vmem:[#allocation7 + $0x3a8] ss:$16 sps:$4 sm:$0xff]  }
  0xcc   :  { %1399 = vmatprep.subr.bf16.mxu0 %v8226_v61  ;;  %1558 = vmatprep.subr.bf16.mxu1 %v8228_v62  ;;  %v8323_v61 = vld [vmem:[#allocation7 + $0x3c4] ss:$16 sps:$4 sm:$0xff]   ;;  %v8326_v62 = vld [vmem:[#allocation7 + $0x3cc] ss:$16 sps:$4 sm:$0xff]  }
  0xcf   :  { %1400 = vmatpush1.bf16.msra.mxu0 %v8230_v63  ;;  %1559 = vmatpush1.bf16.msra.mxu1 %v8231_v0  ;;  %v8321_v63 = vld [vmem:[#allocation7 + $0x3c0] ss:$16 sps:$4 sm:$0xff]   ;;  %v8324_v0 = vld [vmem:[#allocation7 + $0x3c8] ss:$16 sps:$4 sm:$0xff]  }
  0xd0   :  { %1422 = vmatprep.subr.bf16.mxu0 %v8237_v1  ;;  %1581 = vmatprep.subr.bf16.mxu1 %v8240_v2  ;;  %v8330_v1 = vld [vmem:[#allocation7 + $0x3e4] ss:$16 sps:$4 sm:$0xff]   ;;  %v8333_v2 = vld [vmem:[#allocation7 + $0x3ec] ss:$16 sps:$4 sm:$0xff]  }
  0xd2   :  { %1402 = vmatmul.mubr.bf16.vlgmr.msra.gmra.mrb[0].mxu0 %v8232_v3  ;;  %1561 = vmatmul.mubr.bf16.vlgmr.msra.gmra.mrb[0].mxu1 %v8232_v3  ;;  %v8328_v3 = vld [vmem:[#allocation7 + $0x3e0] ss:$16 sps:$4 sm:$0xff]  }
  0xd3   :  { %1423 = vmatpush1.bf16.msra.mxu0 %v8235_v4  ;;  %1582 = vmatpush1.bf16.msra.mxu1 %v8238_v5  ;;  %v8331_v4 = vld [vmem:[#allocation7 + $0x3e8] ss:$16 sps:$4 sm:$0xff]   ;;  %v8339_v5 = vld [vmem:[#allocation7 + $0x404] ss:$16 sps:$4 sm:$0xff]  }
  0xd4   :  { %1424 = vmatprep.subr.bf16.mxu0 %v8243_v6  ;;  %1583 = vmatprep.subr.bf16.mxu1 %v8246_v7  ;;  %v8342_v6 = vld [vmem:[#allocation7 + $0x40c] ss:$16 sps:$4 sm:$0xff]   ;;  %v8334_v7 = vld [vmem:[#allocation2 + $0x8] ss:$24 sps:$4 sm:$0xff]  }
  0xd5   :  { %1411 = vmatprep.mubr.bf16.mxu0 %v8319_v24  ;;  %1570 = vmatprep.mubr.bf16.mxu1 %v8319_v24  ;;  %v8358_v24 = vld [vmem:[#allocation7 + $0x468] ss:$16 sps:$4 sm:$0xff]  }
  0xd7   :  { %1425 = vmatpush1.bf16.msra.mxu0 %v8241_v8  ;;  %1584 = vmatpush1.bf16.msra.mxu1 %v8244_v9  ;;  %v8337_v8 = vld [vmem:[#allocation7 + $0x400] ss:$16 sps:$4 sm:$0xff]   ;;  %v8340_v9 = vld [vmem:[#allocation7 + $0x408] ss:$16 sps:$4 sm:$0xff]  }
  0xd8   :  { %1426 = vmatprep.subr.bf16.mxu0 %v8249_v10  ;;  %1585 = vmatprep.subr.bf16.mxu1 %v8252_v11  ;;  %v8345_v10 = vld [vmem:[#allocation7 + $0x424] ss:$16 sps:$4 sm:$0xff]   ;;  %v8348_v11 = vld [vmem:[#allocation7 + $0x42c] ss:$16 sps:$4 sm:$0xff]  }
  0xda   :  { %1412 = vmatmul.mubr.bf16.gmra.mrb[4].mxu0 %v8327_v29  ;;  %1571 = vmatmul.mubr.bf16.gmra.mrb[4].mxu1 %v8327_v29  ;;  %v8369_v29 = vld [vmem:[#allocation7 + $0x4a4] ss:$16 sps:$4 sm:$0xff]  }
  0xdb   :  { %1427 = vmatpush1.bf16.msra.mxu0 %v8247_v12  ;;  %1586 = vmatpush1.bf16.msra.mxu1 %v8250_v13  ;;  %v8421_v12 = vld [vmem:[#allocation2 + $0x3c] ss:$24 sps:$4 sm:$0xff]   ;;  %v8343_v13 = vld [vmem:[#allocation7 + $0x420] ss:$16 sps:$4 sm:$0xff]  }
  0xdc   :  { %1428 = vmatprep.subr.bf16.mxu0 %v8255_v14  ;;  %1587 = vmatprep.subr.bf16.mxu1 %v8258_v15  ;;  %v8346_v14 = vld [vmem:[#allocation7 + $0x428] ss:$16 sps:$4 sm:$0xff]   ;;  %v8351_v15 = vld [vmem:[#allocation7 + $0x444] ss:$16 sps:$4 sm:$0xff]  }
  0xdd   :  { %1454 = vmatprep.mubr.bf16.mxu0 %v8336_v34  ;;  %1613 = vmatprep.mubr.bf16.mxu1 %v8336_v34  ;;  %v8378_v34 = vld [vmem:[#allocation7 + $0x4cc] ss:$16 sps:$4 sm:$0xff]  }
  0xdf   :  { %1429 = vmatpush1.bf16.msra.mxu0 %v8253_v16  ;;  %1588 = vmatpush1.bf16.msra.mxu1 %v8256_v17  ;;  %v8354_v16 = vld [vmem:[#allocation7 + $0x44c] ss:$16 sps:$4 sm:$0xff]   ;;  %v8349_v17 = vld [vmem:[#allocation7 + $0x440] ss:$16 sps:$4 sm:$0xff]  }
  0xe0   :  { %1430 = vmatprep.subr.bf16.mxu0 %v8261_v18  ;;  %1589 = vmatprep.subr.bf16.mxu1 %v8264_v19  ;;  %v8352_v18 = vld [vmem:[#allocation7 + $0x448] ss:$16 sps:$4 sm:$0xff]  }
  0xe1   :  { %v8423_v19 = vld [vmem:[#allocation2 + $0x38] ss:$24 sps:$4 sm:$0xff]  }
  0xe3   :  { %1431 = vmatpush1.bf16.msra.mxu0 %v8259_v20  ;;  %1590 = vmatpush1.bf16.msra.mxu1 %v8262_v21  ;;  %v8357_v20 = vld [vmem:[#allocation7 + $0x464] ss:$16 sps:$4 sm:$0xff]   ;;  %v8360_v21 = vld [vmem:[#allocation7 + $0x46c] ss:$16 sps:$4 sm:$0xff]  }
  0xe4   :  { %1432 = vmatprep.subr.bf16.mxu0 %v8267_v22  ;;  %1591 = vmatprep.subr.bf16.mxu1 %v8270_v23  ;;  %v8438_v22 = vld [vmem:[#allocation2 + $0x14] ss:$24 sps:$4 sm:$0xff]   ;;  %v8355_v23 = vld [vmem:[#allocation7 + $0x460] ss:$16 sps:$4 sm:$0xff]  }
  0xe7   :  { %1433 = vmatpush1.bf16.msra.mxu0 %v8265_v25  ;;  %1592 = vmatpush1.bf16.msra.mxu1 %v8268_v26  ;;  %v8363_v25 = vld [vmem:[#allocation7 + $0x484] ss:$16 sps:$4 sm:$0xff]   ;;  %v8366_v26 = vld [vmem:[#allocation7 + $0x48c] ss:$16 sps:$4 sm:$0xff]  }
  0xe8   :  { %1434 = vmatprep.subr.bf16.mxu0 %v8273_v27  ;;  %1593 = vmatprep.subr.bf16.mxu1 %v8276_v28  ;;  %v8361_v27 = vld [vmem:[#allocation7 + $0x480] ss:$16 sps:$4 sm:$0xff]   ;;  %v8364_v28 = vld [vmem:[#allocation7 + $0x488] ss:$16 sps:$4 sm:$0xff]  }
  0xeb   :  { %1435 = vmatpush1.bf16.msra.mxu0 %v8271_v30  ;;  %1594 = vmatpush1.bf16.msra.mxu1 %v8274_v31  ;;  %v8372_v30 = vld [vmem:[#allocation7 + $0x4ac] ss:$16 sps:$4 sm:$0xff]   ;;  %v8367_v31 = vld [vmem:[#allocation7 + $0x4a0] ss:$16 sps:$4 sm:$0xff]  }
  0xec   :  { %1436 = vmatprep.subr.bf16.mxu0 %v8279_v32  ;;  %1595 = vmatprep.subr.bf16.mxu1 %v8282_v33  ;;  %v8370_v32 = vld [vmem:[#allocation7 + $0x4a8] ss:$16 sps:$4 sm:$0xff]   ;;  %v8375_v33 = vld [vmem:[#allocation7 + $0x4c4] ss:$16 sps:$4 sm:$0xff]  }
  0xef   :  { %1437 = vmatpush1.bf16.msra.mxu0 %v8277_v35  ;;  %1596 = vmatpush1.bf16.msra.mxu1 %v8280_v36  ;;  %v8373_v35 = vld [vmem:[#allocation7 + $0x4c0] ss:$16 sps:$4 sm:$0xff]   ;;  %v8376_v36 = vld [vmem:[#allocation7 + $0x4c8] ss:$16 sps:$4 sm:$0xff]  }
  0xf0   :  { %1438 = vmatprep.subr.bf16.mxu0 %v8285_v37  ;;  %1597 = vmatprep.subr.bf16.mxu1 %v8288_v38  ;;  %v8381_v37 = vld [vmem:[#allocation7 + $0x4e4] ss:$16 sps:$4 sm:$0xff]   ;;  %v8384_v38 = vld [vmem:[#allocation7 + $0x4ec] ss:$16 sps:$4 sm:$0xff]  }
  0xf3   :  { %1439 = vmatpush1.bf16.msra.mxu0 %v8283_v39  ;;  %1598 = vmatpush1.bf16.msra.mxu1 %v8286_v40  ;;  %v8379_v39 = vld [vmem:[#allocation7 + $0x4e0] ss:$16 sps:$4 sm:$0xff]   ;;  %v8382_v40 = vld [vmem:[#allocation7 + $0x4e8] ss:$16 sps:$4 sm:$0xff]  }
  0xf4   :  { %1440 = vmatprep.subr.bf16.mxu0 %v8291_v41  ;;  %1599 = vmatprep.subr.bf16.mxu1 %v8294_v42  ;;  %v8387_v41 = vld [vmem:[#allocation7 + $0x504] ss:$16 sps:$4 sm:$0xff]   ;;  %v8390_v42 = vld [vmem:[#allocation7 + $0x50c] ss:$16 sps:$4 sm:$0xff]  }
  0xf7   :  { %1441 = vmatpush1.bf16.msra.mxu0 %v8289_v43  ;;  %1600 = vmatpush1.bf16.msra.mxu1 %v8292_v44  ;;  %v8385_v43 = vld [vmem:[#allocation7 + $0x500] ss:$16 sps:$4 sm:$0xff]   ;;  %v8388_v44 = vld [vmem:[#allocation7 + $0x508] ss:$16 sps:$4 sm:$0xff]  }
  0xf8   :  { %1442 = vmatprep.subr.bf16.mxu0 %v8297_v45  ;;  %1601 = vmatprep.subr.bf16.mxu1 %v8300_v46  ;;  %v8393_v45 = vld [vmem:[#allocation7 + $0x524] ss:$16 sps:$4 sm:$0xff]   ;;  %v8396_v46 = vld [vmem:[#allocation7 + $0x52c] ss:$16 sps:$4 sm:$0xff]  }
  0xfb   :  { %1443 = vmatpush1.bf16.msra.mxu0 %v8295_v47  ;;  %1602 = vmatpush1.bf16.msra.mxu1 %v8298_v48  ;;  %v8391_v47 = vld [vmem:[#allocation7 + $0x520] ss:$16 sps:$4 sm:$0xff]   ;;  %v8394_v48 = vld [vmem:[#allocation7 + $0x528] ss:$16 sps:$4 sm:$0xff]  }
  0xfc   :  { %1444 = vmatprep.subr.bf16.mxu0 %v8303_v49  ;;  %1603 = vmatprep.subr.bf16.mxu1 %v8306_v50  ;;  %v8399_v49 = vld [vmem:[#allocation7 + $0x544] ss:$16 sps:$4 sm:$0xff]   ;;  %v8402_v50 = vld [vmem:[#allocation7 + $0x54c] ss:$16 sps:$4 sm:$0xff]  }
  0xff   :  { %1445 = vmatpush1.bf16.msra.mxu0 %v8301_v51  ;;  %1604 = vmatpush1.bf16.msra.mxu1 %v8304_v52  ;;  %v8397_v51 = vld [vmem:[#allocation7 + $0x540] ss:$16 sps:$4 sm:$0xff]   ;;  %v8400_v52 = vld [vmem:[#allocation7 + $0x548] ss:$16 sps:$4 sm:$0xff]  }
 0x100   :  { %1446 = vmatprep.subr.bf16.mxu0 %v8309_v53  ;;  %1605 = vmatprep.subr.bf16.mxu1 %v8312_v54  ;;  %v8405_v53 = vld [vmem:[#allocation7 + $0x564] ss:$16 sps:$4 sm:$0xff]   ;;  %v8408_v54 = vld [vmem:[#allocation7 + $0x56c] ss:$16 sps:$4 sm:$0xff]  }
 0x103   :  { %1447 = vmatpush1.bf16.msra.mxu0 %v8307_v55  ;;  %1606 = vmatpush1.bf16.msra.mxu1 %v8310_v56  ;;  %v8403_v55 = vld [vmem:[#allocation7 + $0x560] ss:$16 sps:$4 sm:$0xff]   ;;  %v8406_v56 = vld [vmem:[#allocation7 + $0x568] ss:$16 sps:$4 sm:$0xff]  }
 0x104   :  { %1448 = vmatprep.subr.bf16.mxu0 %v8315_v57  ;;  %1607 = vmatprep.subr.bf16.mxu1 %v8318_v58  ;;  %v8411_v57 = vld [vmem:[#allocation7 + $0x584] ss:$16 sps:$4 sm:$0xff]   ;;  %v8414_v58 = vld [vmem:[#allocation7 + $0x58c] ss:$16 sps:$4 sm:$0xff]  }
 0x107   :  { %1449 = vmatpush1.bf16.msra.mxu0 %v8313_v59  ;;  %1608 = vmatpush1.bf16.msra.mxu1 %v8316_v60  ;;  %v8409_v59 = vld [vmem:[#allocation7 + $0x580] ss:$16 sps:$4 sm:$0xff]   ;;  %v8412_v60 = vld [vmem:[#allocation7 + $0x588] ss:$16 sps:$4 sm:$0xff]  }
 0x108   :  { %1450 = vmatprep.subr.bf16.mxu0 %v8323_v61  ;;  %1609 = vmatprep.subr.bf16.mxu1 %v8326_v62  ;;  %v8417_v61 = vld [vmem:[#allocation7 + $0x5a4] ss:$16 sps:$4 sm:$0xff]   ;;  %v8420_v62 = vld [vmem:[#allocation7 + $0x5ac] ss:$16 sps:$4 sm:$0xff]  }
 0x10b   :  { %1451 = vmatpush1.bf16.msra.mxu0 %v8321_v63  ;;  %1610 = vmatpush1.bf16.msra.mxu1 %v8324_v0  ;;  %v8415_v63 = vld [vmem:[#allocation7 + $0x5a0] ss:$16 sps:$4 sm:$0xff]   ;;  %v8418_v0 = vld [vmem:[#allocation7 + $0x5a8] ss:$16 sps:$4 sm:$0xff]  }
 0x10c   :  { %1452 = vmatprep.subr.bf16.mxu0 %v8330_v1  ;;  %1611 = vmatprep.subr.bf16.mxu1 %v8333_v2  ;;  %v8426_v1 = vld [vmem:[#allocation7 + $0x5c4] ss:$16 sps:$4 sm:$0xff]   ;;  %v8429_v2 = vld [vmem:[#allocation7 + $0x5cc] ss:$16 sps:$4 sm:$0xff]  }
 0x10f   :  { %1453 = vmatpush1.bf16.msra.mxu0 %v8328_v3  ;;  %1612 = vmatpush1.bf16.msra.mxu1 %v8331_v4  ;;  %v8424_v3 = vld [vmem:[#allocation7 + $0x5c0] ss:$16 sps:$4 sm:$0xff]   ;;  %v8427_v4 = vld [vmem:[#allocation7 + $0x5c8] ss:$16 sps:$4 sm:$0xff]  }
 0x110   :  { %1475 = vmatprep.subr.bf16.mxu0 %v8339_v5  ;;  %1634 = vmatprep.subr.bf16.mxu1 %v8342_v6  ;;  %v8432_v5 = vld [vmem:[#allocation7 + $0x5e4] ss:$16 sps:$4 sm:$0xff]   ;;  %v8435_v6 = vld [vmem:[#allocation7 + $0x5ec] ss:$16 sps:$4 sm:$0xff]  }
 0x112   :  { %1455 = vmatmul.mubr.bf16.vlgmr.msra.gmra.mrb[0].mxu0 %v8334_v7  ;;  %1614 = vmatmul.mubr.bf16.vlgmr.msra.gmra.mrb[0].mxu1 %v8334_v7  ;;  %v8430_v7 = vld [vmem:[#allocation7 + $0x5e0] ss:$16 sps:$4 sm:$0xff]  }
 0x113   :  { %1476 = vmatpush1.bf16.msra.mxu0 %v8337_v8  ;;  %1635 = vmatpush1.bf16.msra.mxu1 %v8340_v9  ;;  %v8433_v8 = vld [vmem:[#allocation7 + $0x5e8] ss:$16 sps:$4 sm:$0xff]   ;;  %v8444_v9 = vld [vmem:[#allocation8 + $0x4] ss:$16 sps:$4 sm:$0xff]  }
 0x114   :  { %1477 = vmatprep.subr.bf16.mxu0 %v8345_v10  ;;  %1636 = vmatprep.subr.bf16.mxu1 %v8348_v11  ;;  %v8447_v10 = vld [vmem:[#allocation8 + $0xc] ss:$16 sps:$4 sm:$0xff]   ;;  %v8436_v11 = vld [vmem:[#allocation2 + $0x10] ss:$24 sps:$4 sm:$0xff]  }
 0x115   :  { %1464 = vmatprep.mubr.bf16.mxu0 %v8421_v12  ;;  %1623 = vmatprep.mubr.bf16.mxu1 %v8421_v12  ;;  %v8439_v12 = vld [vmem:[#allocation2 + $0x44] ss:$24 sps:$4 sm:$0xff]  }
 0x117   :  { %1478 = vmatpush1.bf16.msra.mxu0 %v8343_v13  ;;  %1637 = vmatpush1.bf16.msra.mxu1 %v8346_v14  ;;  %v8442_v13 = vld [vmem:[#allocation8] ss:$16 sps:$4 sm:$0xff]   ;;  %v8445_v14 = vld [vmem:[#allocation8 + $0x8] ss:$16 sps:$4 sm:$0xff]  }
 0x118   :  { %1479 = vmatprep.subr.bf16.mxu0 %v8351_v15  ;;  %1638 = vmatprep.subr.bf16.mxu1 %v8354_v16  ;;  %v8450_v15 = vld [vmem:[#allocation8 + $0x24] ss:$16 sps:$4 sm:$0xff]   ;;  %v8453_v16 = vld [vmem:[#allocation8 + $0x2c] ss:$16 sps:$4 sm:$0xff]  }
 0x11a   :  { %1465 = vmatmul.mubr.bf16.gmra.mrb[4].mxu0 %v8423_v19  ;;  %1624 = vmatmul.mubr.bf16.gmra.mrb[4].mxu1 %v8423_v19  ;;  %v8456_v19 = vld [vmem:[#allocation8 + $0x44] ss:$16 sps:$4 sm:$0xff]  }
 0x11b   :  { %1480 = vmatpush1.bf16.msra.mxu0 %v8349_v17  ;;  %1639 = vmatpush1.bf16.msra.mxu1 %v8352_v18  ;;  %v8448_v17 = vld [vmem:[#allocation8 + $0x20] ss:$16 sps:$4 sm:$0xff]   ;;  %v8451_v18 = vld [vmem:[#allocation8 + $0x28] ss:$16 sps:$4 sm:$0xff]  }
 0x11c   :  { %1481 = vmatprep.subr.bf16.mxu0 %v8357_v20  ;;  %1640 = vmatprep.subr.bf16.mxu1 %v8360_v21  ;;  %v8459_v20 = vld [vmem:[#allocation8 + $0x4c] ss:$16 sps:$4 sm:$0xff]   ;;  %v8441_v21 = vld [vmem:[#allocation2 + $0x40] ss:$24 sps:$4 sm:$0xff]  }
 0x11d   :  { %1507 = vmatprep.mubr.bf16.mxu0 %v8438_v22  ;;  %1666 = vmatprep.mubr.bf16.mxu1 %v8438_v22  ;;  %v8454_v22 = vld [vmem:[#allocation8 + $0x40] ss:$16 sps:$4 sm:$0xff]  }
 0x11f   :  { %1482 = vmatpush1.bf16.msra.mxu0 %v8355_v23  ;;  %1641 = vmatpush1.bf16.msra.mxu1 %v8358_v24  ;;  %v8457_v23 = vld [vmem:[#allocation8 + $0x48] ss:$16 sps:$4 sm:$0xff]   ;;  %v8462_v24 = vld [vmem:[#allocation8 + $0x64] ss:$16 sps:$4 sm:$0xff]  }
 0x120   :  { %1483 = vmatprep.subr.bf16.mxu0 %v8363_v25  ;;  %1642 = vmatprep.subr.bf16.mxu1 %v8366_v26  ;;  %v8465_v25 = vld [vmem:[#allocation8 + $0x6c] ss:$16 sps:$4 sm:$0xff]   ;;  %v8460_v26 = vld [vmem:[#allocation8 + $0x60] ss:$16 sps:$4 sm:$0xff]  }
 0x123   :  { %1484 = vmatpush1.bf16.msra.mxu0 %v8361_v27  ;;  %1643 = vmatpush1.bf16.msra.mxu1 %v8364_v28  ;;  %v8463_v27 = vld [vmem:[#allocation8 + $0x68] ss:$16 sps:$4 sm:$0xff]   ;;  %v8468_v28 = vld [vmem:[#allocation8 + $0x84] ss:$16 sps:$4 sm:$0xff]  }
 0x124   :  { %1485 = vmatprep.subr.bf16.mxu0 %v8369_v29  ;;  %1644 = vmatprep.subr.bf16.mxu1 %v8372_v30  ;;  %v8471_v29 = vld [vmem:[#allocation8 + $0x8c] ss:$16 sps:$4 sm:$0xff]   ;;  %v8466_v30 = vld [vmem:[#allocation8 + $0x80] ss:$16 sps:$4 sm:$0xff]  }
 0x127   :  { %1486 = vmatpush1.bf16.msra.mxu0 %v8367_v31  ;;  %1645 = vmatpush1.bf16.msra.mxu1 %v8370_v32  ;;  %v8469_v31 = vld [vmem:[#allocation8 + $0x88] ss:$16 sps:$4 sm:$0xff]   ;;  %v8474_v32 = vld [vmem:[#allocation8 + $0xa4] ss:$16 sps:$4 sm:$0xff]  }
 0x128   :  { %1487 = vmatprep.subr.bf16.mxu0 %v8375_v33  ;;  %1646 = vmatprep.subr.bf16.mxu1 %v8378_v34  ;;  %v8477_v33 = vld [vmem:[#allocation8 + $0xac] ss:$16 sps:$4 sm:$0xff]   ;;  %v8472_v34 = vld [vmem:[#allocation8 + $0xa0] ss:$16 sps:$4 sm:$0xff]  }
 0x12b   :  { %1488 = vmatpush1.bf16.msra.mxu0 %v8373_v35  ;;  %1647 = vmatpush1.bf16.msra.mxu1 %v8376_v36  ;;  %v8475_v35 = vld [vmem:[#allocation8 + $0xa8] ss:$16 sps:$4 sm:$0xff]   ;;  %v8480_v36 = vld [vmem:[#allocation8 + $0xc4] ss:$16 sps:$4 sm:$0xff]  }
 0x12c   :  { %1489 = vmatprep.subr.bf16.mxu0 %v8381_v37  ;;  %1648 = vmatprep.subr.bf16.mxu1 %v8384_v38  ;;  %v8483_v37 = vld [vmem:[#allocation8 + $0xcc] ss:$16 sps:$4 sm:$0xff]   ;;  %v8478_v38 = vld [vmem:[#allocation8 + $0xc0] ss:$16 sps:$4 sm:$0xff]  }
 0x12f   :  { %1490 = vmatpush1.bf16.msra.mxu0 %v8379_v39  ;;  %1649 = vmatpush1.bf16.msra.mxu1 %v8382_v40  ;;  %v8481_v39 = vld [vmem:[#allocation8 + $0xc8] ss:$16 sps:$4 sm:$0xff]   ;;  %v8486_v40 = vld [vmem:[#allocation8 + $0xe4] ss:$16 sps:$4 sm:$0xff]  }
 0x130   :  { %1491 = vmatprep.subr.bf16.mxu0 %v8387_v41  ;;  %1650 = vmatprep.subr.bf16.mxu1 %v8390_v42  ;;  %v8489_v41 = vld [vmem:[#allocation8 + $0xec] ss:$16 sps:$4 sm:$0xff]   ;;  %v8484_v42 = vld [vmem:[#allocation8 + $0xe0] ss:$16 sps:$4 sm:$0xff]  }
 0x133   :  { %1492 = vmatpush1.bf16.msra.mxu0 %v8385_v43  ;;  %1651 = vmatpush1.bf16.msra.mxu1 %v8388_v44  ;;  %v8487_v43 = vld [vmem:[#allocation8 + $0xe8] ss:$16 sps:$4 sm:$0xff]   ;;  %v8492_v44 = vld [vmem:[#allocation8 + $0x104] ss:$16 sps:$4 sm:$0xff]  }
 0x134   :  { %1493 = vmatprep.subr.bf16.mxu0 %v8393_v45  ;;  %1652 = vmatprep.subr.bf16.mxu1 %v8396_v46  ;;  %v8495_v45 = vld [vmem:[#allocation8 + $0x10c] ss:$16 sps:$4 sm:$0xff]   ;;  %v8490_v46 = vld [vmem:[#allocation8 + $0x100] ss:$16 sps:$4 sm:$0xff]  }
 0x137   :  { %1494 = vmatpush1.bf16.msra.mxu0 %v8391_v47  ;;  %1653 = vmatpush1.bf16.msra.mxu1 %v8394_v48  ;;  %v8493_v47 = vld [vmem:[#allocation8 + $0x108] ss:$16 sps:$4 sm:$0xff]   ;;  %v8498_v48 = vld [vmem:[#allocation8 + $0x124] ss:$16 sps:$4 sm:$0xff]  }
 0x138   :  { %1495 = vmatprep.subr.bf16.mxu0 %v8399_v49  ;;  %1654 = vmatprep.subr.bf16.mxu1 %v8402_v50  ;;  %v8501_v49 = vld [vmem:[#allocation8 + $0x12c] ss:$16 sps:$4 sm:$0xff]   ;;  %v8496_v50 = vld [vmem:[#allocation8 + $0x120] ss:$16 sps:$4 sm:$0xff]  }
 0x13b   :  { %1496 = vmatpush1.bf16.msra.mxu0 %v8397_v51  ;;  %1655 = vmatpush1.bf16.msra.mxu1 %v8400_v52  ;;  %v8499_v51 = vld [vmem:[#allocation8 + $0x128] ss:$16 sps:$4 sm:$0xff]   ;;  %v8504_v52 = vld [vmem:[#allocation8 + $0x144] ss:$16 sps:$4 sm:$0xff]  }
 0x13c   :  { %1497 = vmatprep.subr.bf16.mxu0 %v8405_v53  ;;  %1656 = vmatprep.subr.bf16.mxu1 %v8408_v54  ;;  %v8507_v53 = vld [vmem:[#allocation8 + $0x14c] ss:$16 sps:$4 sm:$0xff]   ;;  %v8502_v54 = vld [vmem:[#allocation8 + $0x140] ss:$16 sps:$4 sm:$0xff]  }
 0x13f   :  { %1498 = vmatpush1.bf16.msra.mxu0 %v8403_v55  ;;  %1657 = vmatpush1.bf16.msra.mxu1 %v8406_v56  ;;  %v8505_v55 = vld [vmem:[#allocation8 + $0x148] ss:$16 sps:$4 sm:$0xff]   ;;  %v8510_v56 = vld [vmem:[#allocation8 + $0x164] ss:$16 sps:$4 sm:$0xff]  }
 0x140   :  { %1499 = vmatprep.subr.bf16.mxu0 %v8411_v57  ;;  %1658 = vmatprep.subr.bf16.mxu1 %v8414_v58  ;;  %v8513_v57 = vld [vmem:[#allocation8 + $0x16c] ss:$16 sps:$4 sm:$0xff]   ;;  %v8508_v58 = vld [vmem:[#allocation8 + $0x160] ss:$16 sps:$4 sm:$0xff]  }
 0x143   :  { %1500 = vmatpush1.bf16.msra.mxu0 %v8409_v59  ;;  %1659 = vmatpush1.bf16.msra.mxu1 %v8412_v60  ;;  %v8511_v59 = vld [vmem:[#allocation8 + $0x168] ss:$16 sps:$4 sm:$0xff]   ;;  %v8516_v60 = vld [vmem:[#allocation8 + $0x184] ss:$16 sps:$4 sm:$0xff]  }
 0x144   :  { %1501 = vmatprep.subr.bf16.mxu0 %v8417_v61  ;;  %1660 = vmatprep.subr.bf16.mxu1 %v8420_v62  ;;  %v8519_v61 = vld [vmem:[#allocation8 + $0x18c] ss:$16 sps:$4 sm:$0xff]   ;;  %v8514_v62 = vld [vmem:[#allocation8 + $0x180] ss:$16 sps:$4 sm:$0xff]  }
 0x147   :  { %1502 = vmatpush1.bf16.msra.mxu0 %v8415_v63  ;;  %1661 = vmatpush1.bf16.msra.mxu1 %v8418_v0  ;;  %v8517_v63 = vld [vmem:[#allocation8 + $0x188] ss:$16 sps:$4 sm:$0xff]   ;;  %v8522_v0 = vld [vmem:[#allocation8 + $0x1a4] ss:$16 sps:$4 sm:$0xff]  }
 0x148   :  { %1503 = vmatprep.subr.bf16.mxu0 %v8426_v1  ;;  %1662 = vmatprep.subr.bf16.mxu1 %v8429_v2  ;;  %v8525_v1 = vld [vmem:[#allocation8 + $0x1ac] ss:$16 sps:$4 sm:$0xff]   ;;  %v8520_v2 = vld [vmem:[#allocation8 + $0x1a0] ss:$16 sps:$4 sm:$0xff]  }
 0x14b   :  { %1504 = vmatpush1.bf16.msra.mxu0 %v8424_v3  ;;  %1663 = vmatpush1.bf16.msra.mxu1 %v8427_v4  ;;  %v8523_v3 = vld [vmem:[#allocation8 + $0x1a8] ss:$16 sps:$4 sm:$0xff]   ;;  %v8528_v4 = vld [vmem:[#allocation8 + $0x1c4] ss:$16 sps:$4 sm:$0xff]  }
 0x14c   :  { %1505 = vmatprep.subr.bf16.mxu0 %v8432_v5  ;;  %1664 = vmatprep.subr.bf16.mxu1 %v8435_v6  ;;  %v8531_v5 = vld [vmem:[#allocation8 + $0x1cc] ss:$16 sps:$4 sm:$0xff]   ;;  %v8526_v6 = vld [vmem:[#allocation8 + $0x1c0] ss:$16 sps:$4 sm:$0xff]  }
 0x14f   :  { %1506 = vmatpush1.bf16.msra.mxu0 %v8430_v7  ;;  %1665 = vmatpush1.bf16.msra.mxu1 %v8433_v8  ;;  %v8529_v7 = vld [vmem:[#allocation8 + $0x1c8] ss:$16 sps:$4 sm:$0xff]   ;;  %v8534_v8 = vld [vmem:[#allocation8 + $0x1e4] ss:$16 sps:$4 sm:$0xff]  }
 0x150   :  { %2487 = vmatprep.subr.bf16.mxu0 %v8444_v9  ;;  %2593 = vmatprep.subr.bf16.mxu1 %v8447_v10  ;;  %v8537_v9 = vld [vmem:[#allocation8 + $0x1ec] ss:$16 sps:$4 sm:$0xff]   ;;  %v8532_v10 = vld [vmem:[#allocation8 + $0x1e0] ss:$16 sps:$4 sm:$0xff]  }
 0x152   :  { %1508 = vmatmul.mubr.bf16.vlgmr.msra.gmra.mrb[0].mxu0 %v8436_v11  ;;  %1667 = vmatmul.mubr.bf16.vlgmr.msra.gmra.mrb[0].mxu1 %v8436_v11  ;;  %v8535_v11 = vld [vmem:[#allocation8 + $0x1e8] ss:$16 sps:$4 sm:$0xff]  }
 0x153   :  { %1517 = vmatprep.mubr.bf16.mxu0 %v8439_v12  ;;  %1676 = vmatprep.mubr.bf16.mxu1 %v8439_v12  ;;  %v8540_v12 = vld [vmem:[#allocation8 + $0x204] ss:$16 sps:$4 sm:$0xff]  }
 0x154   :  { %2488 = vmatpush1.bf16.msra.mxu0 %v8442_v13  ;;  %2594 = vmatpush1.bf16.msra.mxu1 %v8445_v14  ;;  %v8543_v13 = vld [vmem:[#allocation8 + $0x20c] ss:$16 sps:$4 sm:$0xff]  }
 0x155   :  { %2489 = vmatprep.subr.bf16.mxu0 %v8450_v15  ;;  %2595 = vmatprep.subr.bf16.mxu1 %v8453_v16 }
 0x158   :  { %2490 = vmatpush1.bf16.msra.mxu0 %v8448_v17  ;;  %2596 = vmatpush1.bf16.msra.mxu1 %v8451_v18 }
 0x159   :  { %2491 = vmatprep.subr.bf16.mxu0 %v8456_v19  ;;  %2597 = vmatprep.subr.bf16.mxu1 %v8459_v20  ;;  %v8538_v20 = vld [vmem:[#allocation8 + $0x200] ss:$16 sps:$4 sm:$0xff]  }
 0x15a   :  { %1518 = vmatmul.mubr.bf16.gmra.mrb[4].mxu0 %v8441_v21  ;;  %1677 = vmatmul.mubr.bf16.gmra.mrb[4].mxu1 %v8441_v21  ;;  %v8541_v21 = vld [vmem:[#allocation8 + $0x208] ss:$16 sps:$4 sm:$0xff]  }
 0x15c   :  { %2492 = vmatpush1.bf16.msra.mxu0 %v8454_v22  ;;  %2598 = vmatpush1.bf16.msra.mxu1 %v8457_v23 }
 0x15d   :  { %2493 = vmatprep.subr.bf16.mxu0 %v8462_v24  ;;  %2599 = vmatprep.subr.bf16.mxu1 %v8465_v25 }
 0x160   :  { %2494 = vmatpush1.bf16.msra.mxu0 %v8460_v26  ;;  %2600 = vmatpush1.bf16.msra.mxu1 %v8463_v27  ;;  %v8546_v26 = vld [vmem:[#allocation8 + $0x224] ss:$16 sps:$4 sm:$0xff]   ;;  %v8549_v27 = vld [vmem:[#allocation8 + $0x22c] ss:$16 sps:$4 sm:$0xff]  }
 0x161   :  { %2495 = vmatprep.subr.bf16.mxu0 %v8468_v28  ;;  %2601 = vmatprep.subr.bf16.mxu1 %v8471_v29 }
 0x164   :  { %2496 = vmatpush1.bf16.msra.mxu0 %v8466_v30  ;;  %2602 = vmatpush1.bf16.msra.mxu1 %v8469_v31 }
 0x165   :  { %2497 = vmatprep.subr.bf16.mxu0 %v8474_v32  ;;  %2603 = vmatprep.subr.bf16.mxu1 %v8477_v33  ;;  %v8544_v32 = vld [vmem:[#allocation8 + $0x220] ss:$16 sps:$4 sm:$0xff]   ;;  %v8547_v33 = vld [vmem:[#allocation8 + $0x228] ss:$16 sps:$4 sm:$0xff]  }
 0x168   :  { %2498 = vmatpush1.bf16.msra.mxu0 %v8472_v34  ;;  %2604 = vmatpush1.bf16.msra.mxu1 %v8475_v35 }
 0x169   :  { %2499 = vmatprep.subr.bf16.mxu0 %v8480_v36  ;;  %2605 = vmatprep.subr.bf16.mxu1 %v8483_v37  ;;  %v8552_v36 = vld [vmem:[#allocation8 + $0x244] ss:$16 sps:$4 sm:$0xff]   ;;  %v8555_v37 = vld [vmem:[#allocation8 + $0x24c] ss:$16 sps:$4 sm:$0xff]  }
 0x16c   :  { %2500 = vmatpush1.bf16.msra.mxu0 %v8478_v38  ;;  %2606 = vmatpush1.bf16.msra.mxu1 %v8481_v39 }
 0x16d   :  { %2501 = vmatprep.subr.bf16.mxu0 %v8486_v40  ;;  %2607 = vmatprep.subr.bf16.mxu1 %v8489_v41 }
 0x170   :  { %2502 = vmatpush1.bf16.msra.mxu0 %v8484_v42  ;;  %2608 = vmatpush1.bf16.msra.mxu1 %v8487_v43 }
 0x171   :  { %2503 = vmatprep.subr.bf16.mxu0 %v8492_v44  ;;  %2609 = vmatprep.subr.bf16.mxu1 %v8495_v45 }
 0x174   :  { %2504 = vmatpush1.bf16.msra.mxu0 %v8490_v46  ;;  %2610 = vmatpush1.bf16.msra.mxu1 %v8493_v47  ;;  %v8550_v46 = vld [vmem:[#allocation8 + $0x240] ss:$16 sps:$4 sm:$0xff]   ;;  %v8553_v47 = vld [vmem:[#allocation8 + $0x248] ss:$16 sps:$4 sm:$0xff]  }
 0x175   :  { %2505 = vmatprep.subr.bf16.mxu0 %v8498_v48  ;;  %2611 = vmatprep.subr.bf16.mxu1 %v8501_v49  ;;  %v8558_v48 = vld [vmem:[#allocation8 + $0x264] ss:$16 sps:$4 sm:$0xff]   ;;  %v8561_v49 = vld [vmem:[#allocation8 + $0x26c] ss:$16 sps:$4 sm:$0xff]  }
 0x178   :  { %2506 = vmatpush1.bf16.msra.mxu0 %v8496_v50  ;;  %2612 = vmatpush1.bf16.msra.mxu1 %v8499_v51  ;;  %v8556_v50 = vld [vmem:[#allocation8 + $0x260] ss:$16 sps:$4 sm:$0xff]   ;;  %v8559_v51 = vld [vmem:[#allocation8 + $0x268] ss:$16 sps:$4 sm:$0xff]  }
 0x179   :  { %2507 = vmatprep.subr.bf16.mxu0 %v8504_v52  ;;  %2613 = vmatprep.subr.bf16.mxu1 %v8507_v53  ;;  %v8564_v52 = vld [vmem:[#allocation8 + $0x284] ss:$16 sps:$4 sm:$0xff]   ;;  %v8567_v53 = vld [vmem:[#allocation8 + $0x28c] ss:$16 sps:$4 sm:$0xff]  }
 0x17c   :  { %2508 = vmatpush1.bf16.msra.mxu0 %v8502_v54  ;;  %2614 = vmatpush1.bf16.msra.mxu1 %v8505_v55  ;;  %v8562_v54 = vld [vmem:[#allocation8 + $0x280] ss:$16 sps:$4 sm:$0xff]   ;;  %v8565_v55 = vld [vmem:[#allocation8 + $0x288] ss:$16 sps:$4 sm:$0xff]  }
 0x17d   :  { %2509 = vmatprep.subr.bf16.mxu0 %v8510_v56  ;;  %2615 = vmatprep.subr.bf16.mxu1 %v8513_v57  ;;  %v8570_v56 = vld [vmem:[#allocation8 + $0x2a4] ss:$16 sps:$4 sm:$0xff]   ;;  %v8573_v57 = vld [vmem:[#allocation8 + $0x2ac] ss:$16 sps:$4 sm:$0xff]  }
 0x180   :  { %2510 = vmatpush1.bf16.msra.mxu0 %v8508_v58  ;;  %2616 = vmatpush1.bf16.msra.mxu1 %v8511_v59  ;;  %v8568_v58 = vld [vmem:[#allocation8 + $0x2a0] ss:$16 sps:$4 sm:$0xff]   ;;  %v8571_v59 = vld [vmem:[#allocation8 + $0x2a8] ss:$16 sps:$4 sm:$0xff]  }
 0x181   :  { %2511 = vmatprep.subr.bf16.mxu0 %v8516_v60  ;;  %2617 = vmatprep.subr.bf16.mxu1 %v8519_v61  ;;  %v8576_v60 = vld [vmem:[#allocation8 + $0x2c4] ss:$16 sps:$4 sm:$0xff]   ;;  %v8579_v61 = vld [vmem:[#allocation8 + $0x2cc] ss:$16 sps:$4 sm:$0xff]  }
 0x184   :  { %2512 = vmatpush1.bf16.msra.mxu0 %v8514_v62  ;;  %2618 = vmatpush1.bf16.msra.mxu1 %v8517_v63  ;;  %v8574_v62 = vld [vmem:[#allocation8 + $0x2c0] ss:$16 sps:$4 sm:$0xff]   ;;  %v8577_v63 = vld [vmem:[#allocation8 + $0x2c8] ss:$16 sps:$4 sm:$0xff]  }
 0x185   :  { %2513 = vmatprep.subr.bf16.mxu0 %v8522_v0  ;;  %2619 = vmatprep.subr.bf16.mxu1 %v8525_v1  ;;  %v8582_v0 = vld [vmem:[#allocation8 + $0x2e4] ss:$16 sps:$4 sm:$0xff]   ;;  %v8585_v1 = vld [vmem:[#allocation8 + $0x2ec] ss:$16 sps:$4 sm:$0xff]  }
 0x188   :  { %2514 = vmatpush1.bf16.msra.mxu0 %v8520_v2  ;;  %2620 = vmatpush1.bf16.msra.mxu1 %v8523_v3  ;;  %v8580_v2 = vld [vmem:[#allocation8 + $0x2e0] ss:$16 sps:$4 sm:$0xff]   ;;  %v8583_v3 = vld [vmem:[#allocation8 + $0x2e8] ss:$16 sps:$4 sm:$0xff]  }
 0x189   :  { %2515 = vmatprep.subr.bf16.mxu0 %v8528_v4  ;;  %2621 = vmatprep.subr.bf16.mxu1 %v8531_v5  ;;  %v8588_v4 = vld [vmem:[#allocation8 + $0x304] ss:$16 sps:$4 sm:$0xff]   ;;  %v8591_v5 = vld [vmem:[#allocation8 + $0x30c] ss:$16 sps:$4 sm:$0xff]  }
 0x18c   :  { %2516 = vmatpush1.bf16.msra.mxu0 %v8526_v6  ;;  %2622 = vmatpush1.bf16.msra.mxu1 %v8529_v7  ;;  %v8586_v6 = vld [vmem:[#allocation8 + $0x300] ss:$16 sps:$4 sm:$0xff]   ;;  %v8589_v7 = vld [vmem:[#allocation8 + $0x308] ss:$16 sps:$4 sm:$0xff]  }
 0x18d   :  { %2517 = vmatprep.subr.bf16.mxu0 %v8534_v8  ;;  %2623 = vmatprep.subr.bf16.mxu1 %v8537_v9  ;;  %v8594_v8 = vld [vmem:[#allocation8 + $0x324] ss:$16 sps:$4 sm:$0xff]   ;;  %v8597_v9 = vld [vmem:[#allocation8 + $0x32c] ss:$16 sps:$4 sm:$0xff]  }
 0x190   :  { %2518 = vmatpush1.bf16.msra.mxu0 %v8532_v10  ;;  %2624 = vmatpush1.bf16.msra.mxu1 %v8535_v11  ;;  %v8592_v10 = vld [vmem:[#allocation8 + $0x320] ss:$16 sps:$4 sm:$0xff]   ;;  %v8595_v11 = vld [vmem:[#allocation8 + $0x328] ss:$16 sps:$4 sm:$0xff]  }
 0x191   :  { %2540 = vmatprep.subr.bf16.mxu0 %v8540_v12  ;;  %2646 = vmatprep.subr.bf16.mxu1 %v8543_v13  ;;  %v8600_v12 = vld [vmem:[#allocation8 + $0x344] ss:$16 sps:$4 sm:$0xff]   ;;  %v8603_v13 = vld [vmem:[#allocation8 + $0x34c] ss:$16 sps:$4 sm:$0xff]  }
 0x225   :  { %v1509_v14 = vpop.f32.mrb[0].mxu0  ;;  %v1668_v15 = vpop.f32.mrb[0].mxu1 }
 0x226   :  { %v1511_v16 = vpop.f32.mrb[1].mxu0  ;;  %v1670_v17 = vpop.f32.mrb[1].mxu1 }
 0x227   :  { %v1513_v18 = vpop.f32.mrb[2].mxu0  ;;  %v1672_v19 = vpop.f32.mrb[2].mxu1 }
 0x228   :  { %v1690_v22 = vpack.c.bf16 %v1513_v18, %v1509_v14  ;;  %v9864_v23 = vpack.c.bf16 %v1672_v19, %v1668_v15  ;;  %v1515_v24 = vpop.f32.mrb[3].mxu0  ;;  %v1674_v25 = vpop.f32.mrb[3].mxu1  ;;  %v8598_v14 = vld [vmem:[#allocation8 + $0x340] ss:$16 sps:$4 sm:$0xff]   ;;  %v8601_v15 = vld [vmem:[#allocation8 + $0x348] ss:$16 sps:$4 sm:$0xff]  }
 0x229   :  { %v1691_v28 = vpack.c.bf16 %v1515_v24, %v1511_v16  ;;  %v1693_v29 = vpack.c.bf16 %v1674_v25, %v1670_v17  ;;  %v8606_v16 = vld [vmem:[#allocation8 + $0x364] ss:$16 sps:$4 sm:$0xff]   ;;  %v8609_v17 = vld [vmem:[#allocation8 + $0x36c] ss:$16 sps:$4 sm:$0xff]   ;;  %v8604_v18 = vld [vmem:[#allocation8 + $0x360] ss:$16 sps:$4 sm:$0xff]  }
 0x22a   :  { %v8607_v19 = vld [vmem:[#allocation8 + $0x368] ss:$16 sps:$4 sm:$0xff]   ;;  %v8618_v25 = vld [vmem:[#allocation8 + $0x3a4] ss:$16 sps:$4 sm:$0xff]  }
 0x22b   :  { %2519 = vmatprep.mubr.bf16.mxu0 %v1691_v28  ;;  %2625 = vmatprep.mubr.bf16.mxu1 %v1691_v28  ;;  %v8613_v24 = vld [vmem:[#allocation8 + $0x388] ss:$16 sps:$4 sm:$0xff]  }
 0x22c   :  { %2520 = vmatmul.mubr.bf16.vlgmr.msra.gmra.mrb[8].mxu0 %v1690_v22  ;;  %2626 = vmatmul.mubr.bf16.vlgmr.msra.gmra.mrb[8].mxu1 %v1690_v22  ;;  %v8610_v22 = vld [vmem:[#allocation8 + $0x380] ss:$16 sps:$4 sm:$0xff]   ;;  %v8619_v28 = vld [vmem:[#allocation8 + $0x3a8] ss:$16 sps:$4 sm:$0xff]  }
 0x22d   :  { %2541 = vmatpush1.bf16.msra.mxu0 %v8538_v20  ;;  %2647 = vmatpush1.bf16.msra.mxu1 %v8541_v21  ;;  %v1519_v30 = vpop.f32.mrb[4].mxu0  ;;  %v1678_v31 = vpop.f32.mrb[4].mxu1  ;;  %v8612_v20 = vld [vmem:[#allocation8 + $0x384] ss:$16 sps:$4 sm:$0xff]   ;;  %v8615_v21 = vld [vmem:[#allocation8 + $0x38c] ss:$16 sps:$4 sm:$0xff]  }
 0x22e   :  { %v1521_v34 = vpop.f32.mrb[5].mxu0  ;;  %v1680_v35 = vpop.f32.mrb[5].mxu1  ;;  %2542 = vmatprep.subr.bf16.mxu0 %v8546_v26  ;;  %2648 = vmatprep.subr.bf16.mxu1 %v8549_v27  ;;  %v8621_v26 = vld [vmem:[#allocation8 + $0x3ac] ss:$16 sps:$4 sm:$0xff]   ;;  %v8616_v27 = vld [vmem:[#allocation8 + $0x3a0] ss:$16 sps:$4 sm:$0xff]  }
 0x22f   :  { %v1523_v38 = vpop.f32.mrb[6].mxu0  ;;  %v1682_v39 = vpop.f32.mrb[6].mxu1 }
 0x230   :  { %v1694_v40 = vpack.c.bf16 %v1523_v38, %v1519_v30  ;;  %v9866_v41 = vpack.c.bf16 %v1682_v39, %v1678_v31  ;;  %v1525_v42 = vpop.f32.mrb[7].mxu0  ;;  %v1684_v43 = vpop.f32.mrb[7].mxu1  ;;  %v8627_v30 = vld [vmem:[#allocation8 + $0x3cc] ss:$16 sps:$4 sm:$0xff]   ;;  %v8622_v31 = vld [vmem:[#allocation8 + $0x3c0] ss:$16 sps:$4 sm:$0xff]  }
 0x231   :  { %v1695_v44 = vpack.c.bf16 %v1525_v42, %v1521_v34  ;;  %v9868_v45 = vpack.c.bf16 %v1684_v43, %v1680_v35  ;;  %2543 = vmatpush1.bf16.msra.mxu0 %v8544_v32  ;;  %2649 = vmatpush1.bf16.msra.mxu1 %v8547_v33  ;;  %v8625_v32 = vld [vmem:[#allocation8 + $0x3c8] ss:$16 sps:$4 sm:$0xff]   ;;  %v8630_v33 = vld [vmem:[#allocation8 + $0x3e4] ss:$16 sps:$4 sm:$0xff]   ;;  %v8633_v34 = vld [vmem:[#allocation8 + $0x3ec] ss:$16 sps:$4 sm:$0xff]  }
 0x232   :  { %2544 = vmatprep.subr.bf16.mxu0 %v8552_v36  ;;  %2650 = vmatprep.subr.bf16.mxu1 %v8555_v37  ;;  %v8628_v35 = vld [vmem:[#allocation8 + $0x3e0] ss:$16 sps:$4 sm:$0xff]   ;;  %v8631_v36 = vld [vmem:[#allocation8 + $0x3e8] ss:$16 sps:$4 sm:$0xff]   ;;  %v8636_v37 = vld [vmem:[#allocation10 + $0x4] ss:$16 sps:$4 sm:$0xff]  }
 0x233   :  { %2529 = vmatprep.mubr.bf16.mxu0 %v1695_v44  ;;  %2635 = vmatprep.mubr.bf16.mxu1 %v1695_v44  ;;  %v8639_v38 = vld [vmem:[#allocation10 + $0xc] ss:$16 sps:$4 sm:$0xff]   ;;  %v8634_v39 = vld [vmem:[#allocation10] ss:$16 sps:$4 sm:$0xff]   ;;  %v8642_v42 = vld [vmem:[#allocation10 + $0x24] ss:$16 sps:$4 sm:$0xff]  }
 0x234   :  { %2530 = vmatmul.mubr.bf16.gmra.mrb[12].mxu0 %v1694_v40  ;;  %2636 = vmatmul.mubr.bf16.gmra.mrb[12].mxu1 %v1694_v40  ;;  %v8637_v40 = vld [vmem:[#allocation10 + $0x8] ss:$16 sps:$4 sm:$0xff]   ;;  %v8645_v43 = vld [vmem:[#allocation10 + $0x2c] ss:$16 sps:$4 sm:$0xff]   ;;  %v8640_v44 = vld [vmem:[#allocation10 + $0x20] ss:$16 sps:$4 sm:$0xff]  }
 0x235   :  { %2545 = vmatpush1.bf16.msra.mxu0 %v8550_v46  ;;  %2651 = vmatpush1.bf16.msra.mxu1 %v8553_v47  ;;  %v8643_v46 = vld [vmem:[#allocation10 + $0x28] ss:$16 sps:$4 sm:$0xff]   ;;  %v8648_v47 = vld [vmem:[#allocation10 + $0x44] ss:$16 sps:$4 sm:$0xff]  }
 0x236   :  { %2572 = vmatprep.mubr.bf16.mxu0 %v1693_v29  ;;  %2678 = vmatprep.mubr.bf16.mxu1 %v1693_v29  ;;  %v8624_v29 = vld [vmem:[#allocation8 + $0x3c4] ss:$16 sps:$4 sm:$0xff]  }
 0x237   :  { %2546 = vmatprep.subr.bf16.mxu0 %v8558_v48  ;;  %2652 = vmatprep.subr.bf16.mxu1 %v8561_v49  ;;  %v8651_v48 = vld [vmem:[#allocation10 + $0x4c] ss:$16 sps:$4 sm:$0xff]   ;;  %v8646_v49 = vld [vmem:[#allocation10 + $0x40] ss:$16 sps:$4 sm:$0xff]  }
 0x239   :  { %2547 = vmatpush1.bf16.msra.mxu0 %v8556_v50  ;;  %2653 = vmatpush1.bf16.msra.mxu1 %v8559_v51  ;;  %v8649_v50 = vld [vmem:[#allocation10 + $0x48] ss:$16 sps:$4 sm:$0xff]   ;;  %v8654_v51 = vld [vmem:[#allocation10 + $0x64] ss:$16 sps:$4 sm:$0xff]  }
 0x23a   :  { %2548 = vmatprep.subr.bf16.mxu0 %v8564_v52  ;;  %2654 = vmatprep.subr.bf16.mxu1 %v8567_v53  ;;  %v8655_v52 = vld [vmem:[#allocation10 + $0x68] ss:$16 sps:$4 sm:$0xff]   ;;  %v8660_v53 = vld [vmem:[#allocation10 + $0x84] ss:$16 sps:$4 sm:$0xff]  }
 0x23d   :  { %2549 = vmatpush1.bf16.msra.mxu0 %v8562_v54  ;;  %2655 = vmatpush1.bf16.msra.mxu1 %v8565_v55  ;;  %v8663_v54 = vld [vmem:[#allocation10 + $0x8c] ss:$16 sps:$4 sm:$0xff]   ;;  %v8658_v55 = vld [vmem:[#allocation10 + $0x80] ss:$16 sps:$4 sm:$0xff]  }
 0x23e   :  { %2550 = vmatprep.subr.bf16.mxu0 %v8570_v56  ;;  %2656 = vmatprep.subr.bf16.mxu1 %v8573_v57  ;;  %v8661_v56 = vld [vmem:[#allocation10 + $0x88] ss:$16 sps:$4 sm:$0xff]   ;;  %v8666_v57 = vld [vmem:[#allocation10 + $0xa4] ss:$16 sps:$4 sm:$0xff]  }
 0x241   :  { %2551 = vmatpush1.bf16.msra.mxu0 %v8568_v58  ;;  %2657 = vmatpush1.bf16.msra.mxu1 %v8571_v59  ;;  %v8669_v58 = vld [vmem:[#allocation10 + $0xac] ss:$16 sps:$4 sm:$0xff]   ;;  %v8664_v59 = vld [vmem:[#allocation10 + $0xa0] ss:$16 sps:$4 sm:$0xff]  }
 0x242   :  { %2552 = vmatprep.subr.bf16.mxu0 %v8576_v60  ;;  %2658 = vmatprep.subr.bf16.mxu1 %v8579_v61  ;;  %v8672_v60 = vld [vmem:[#allocation10 + $0xc4] ss:$16 sps:$4 sm:$0xff]   ;;  %v8675_v61 = vld [vmem:[#allocation10 + $0xcc] ss:$16 sps:$4 sm:$0xff]  }
 0x245   :  { %2553 = vmatpush1.bf16.msra.mxu0 %v8574_v62  ;;  %2659 = vmatpush1.bf16.msra.mxu1 %v8577_v63  ;;  %v8670_v62 = vld [vmem:[#allocation10 + $0xc0] ss:$16 sps:$4 sm:$0xff]   ;;  %v8673_v63 = vld [vmem:[#allocation10 + $0xc8] ss:$16 sps:$4 sm:$0xff]  }
 0x246   :  { %2554 = vmatprep.subr.bf16.mxu0 %v8582_v0  ;;  %2660 = vmatprep.subr.bf16.mxu1 %v8585_v1  ;;  %v8678_v0 = vld [vmem:[#allocation10 + $0xe4] ss:$16 sps:$4 sm:$0xff]   ;;  %v8681_v1 = vld [vmem:[#allocation10 + $0xec] ss:$16 sps:$4 sm:$0xff]  }
 0x249   :  { %2555 = vmatpush1.bf16.msra.mxu0 %v8580_v2  ;;  %2661 = vmatpush1.bf16.msra.mxu1 %v8583_v3  ;;  %v8676_v2 = vld [vmem:[#allocation10 + $0xe0] ss:$16 sps:$4 sm:$0xff]   ;;  %v8679_v3 = vld [vmem:[#allocation10 + $0xe8] ss:$16 sps:$4 sm:$0xff]  }
 0x24a   :  { %2556 = vmatprep.subr.bf16.mxu0 %v8588_v4  ;;  %2662 = vmatprep.subr.bf16.mxu1 %v8591_v5  ;;  %v8684_v4 = vld [vmem:[#allocation10 + $0x104] ss:$16 sps:$4 sm:$0xff]   ;;  %v8687_v5 = vld [vmem:[#allocation10 + $0x10c] ss:$16 sps:$4 sm:$0xff]  }
 0x24d   :  { %2557 = vmatpush1.bf16.msra.mxu0 %v8586_v6  ;;  %2663 = vmatpush1.bf16.msra.mxu1 %v8589_v7  ;;  %v8682_v6 = vld [vmem:[#allocation10 + $0x100] ss:$16 sps:$4 sm:$0xff]   ;;  %v8685_v7 = vld [vmem:[#allocation10 + $0x108] ss:$16 sps:$4 sm:$0xff]  }
 0x24e   :  { %2558 = vmatprep.subr.bf16.mxu0 %v8594_v8  ;;  %2664 = vmatprep.subr.bf16.mxu1 %v8597_v9  ;;  %v8690_v8 = vld [vmem:[#allocation10 + $0x124] ss:$16 sps:$4 sm:$0xff]   ;;  %v8693_v9 = vld [vmem:[#allocation10 + $0x12c] ss:$16 sps:$4 sm:$0xff]  }
 0x251   :  { %2559 = vmatpush1.bf16.msra.mxu0 %v8592_v10  ;;  %2665 = vmatpush1.bf16.msra.mxu1 %v8595_v11  ;;  %v8688_v10 = vld [vmem:[#allocation10 + $0x120] ss:$16 sps:$4 sm:$0xff]   ;;  %v8691_v11 = vld [vmem:[#allocation10 + $0x128] ss:$16 sps:$4 sm:$0xff]  }
 0x252   :  { %2560 = vmatprep.subr.bf16.mxu0 %v8600_v12  ;;  %2666 = vmatprep.subr.bf16.mxu1 %v8603_v13  ;;  %v8696_v12 = vld [vmem:[#allocation10 + $0x144] ss:$16 sps:$4 sm:$0xff]   ;;  %v8699_v13 = vld [vmem:[#allocation10 + $0x14c] ss:$16 sps:$4 sm:$0xff]  }
 0x255   :  { %2561 = vmatpush1.bf16.msra.mxu0 %v8598_v14  ;;  %2667 = vmatpush1.bf16.msra.mxu1 %v8601_v15  ;;  %v8694_v14 = vld [vmem:[#allocation10 + $0x140] ss:$16 sps:$4 sm:$0xff]   ;;  %v8697_v15 = vld [vmem:[#allocation10 + $0x148] ss:$16 sps:$4 sm:$0xff]  }
 0x256   :  { %2562 = vmatprep.subr.bf16.mxu0 %v8606_v16  ;;  %2668 = vmatprep.subr.bf16.mxu1 %v8609_v17  ;;  %v8702_v16 = vld [vmem:[#allocation10 + $0x164] ss:$16 sps:$4 sm:$0xff]   ;;  %v8705_v17 = vld [vmem:[#allocation10 + $0x16c] ss:$16 sps:$4 sm:$0xff]  }
 0x259   :  { %2563 = vmatpush1.bf16.msra.mxu0 %v8604_v18  ;;  %2669 = vmatpush1.bf16.msra.mxu1 %v8607_v19  ;;  %v8700_v18 = vld [vmem:[#allocation10 + $0x160] ss:$16 sps:$4 sm:$0xff]   ;;  %v8703_v19 = vld [vmem:[#allocation10 + $0x168] ss:$16 sps:$4 sm:$0xff]  }
 0x25a   :  { %2564 = vmatprep.subr.bf16.mxu0 %v8612_v20  ;;  %2670 = vmatprep.subr.bf16.mxu1 %v8615_v21  ;;  %v8708_v20 = vld [vmem:[#allocation10 + $0x184] ss:$16 sps:$4 sm:$0xff]   ;;  %v8711_v21 = vld [vmem:[#allocation10 + $0x18c] ss:$16 sps:$4 sm:$0xff]  }
 0x25d   :  { %2565 = vmatpush1.bf16.msra.mxu0 %v8610_v22  ;;  %2671 = vmatpush1.bf16.msra.mxu1 %v8613_v24  ;;  %v8706_v22 = vld [vmem:[#allocation10 + $0x180] ss:$16 sps:$4 sm:$0xff]   ;;  %v8709_v24 = vld [vmem:[#allocation10 + $0x188] ss:$16 sps:$4 sm:$0xff]  }
 0x25e   :  { %2566 = vmatprep.subr.bf16.mxu0 %v8618_v25  ;;  %2672 = vmatprep.subr.bf16.mxu1 %v8621_v26  ;;  %v8714_v25 = vld [vmem:[#allocation10 + $0x1a4] ss:$16 sps:$4 sm:$0xff]   ;;  %v8717_v26 = vld [vmem:[#allocation10 + $0x1ac] ss:$16 sps:$4 sm:$0xff]  }
 0x261   :  { %2567 = vmatpush1.bf16.msra.mxu0 %v8616_v27  ;;  %2673 = vmatpush1.bf16.msra.mxu1 %v8619_v28  ;;  %v8712_v27 = vld [vmem:[#allocation10 + $0x1a0] ss:$16 sps:$4 sm:$0xff]   ;;  %v8715_v28 = vld [vmem:[#allocation10 + $0x1a8] ss:$16 sps:$4 sm:$0xff]  }
 0x262   :  { %2568 = vmatprep.subr.bf16.mxu0 %v8624_v29  ;;  %2674 = vmatprep.subr.bf16.mxu1 %v8627_v30  ;;  %v8720_v29 = vld [vmem:[#allocation10 + $0x1c4] ss:$16 sps:$4 sm:$0xff]   ;;  %v8723_v30 = vld [vmem:[#allocation10 + $0x1cc] ss:$16 sps:$4 sm:$0xff]  }
 0x265   :  { %2569 = vmatpush1.bf16.msra.mxu0 %v8622_v31  ;;  %2675 = vmatpush1.bf16.msra.mxu1 %v8625_v32  ;;  %v8718_v31 = vld [vmem:[#allocation10 + $0x1c0] ss:$16 sps:$4 sm:$0xff]   ;;  %v8721_v32 = vld [vmem:[#allocation10 + $0x1c8] ss:$16 sps:$4 sm:$0xff]  }
 0x266   :  { %2570 = vmatprep.subr.bf16.mxu0 %v8630_v33  ;;  %2676 = vmatprep.subr.bf16.mxu1 %v8633_v34  ;;  %v8726_v33 = vld [vmem:[#allocation10 + $0x1e4] ss:$16 sps:$4 sm:$0xff]   ;;  %v8729_v34 = vld [vmem:[#allocation10 + $0x1ec] ss:$16 sps:$4 sm:$0xff]  }
 0x269   :  { %2571 = vmatpush1.bf16.msra.mxu0 %v8628_v35  ;;  %2677 = vmatpush1.bf16.msra.mxu1 %v8631_v36  ;;  %v8724_v35 = vld [vmem:[#allocation10 + $0x1e0] ss:$16 sps:$4 sm:$0xff]   ;;  %v8727_v36 = vld [vmem:[#allocation10 + $0x1e8] ss:$16 sps:$4 sm:$0xff]  }
 0x26a   :  { %3512 = vmatprep.subr.bf16.mxu0 %v8636_v37  ;;  %3618 = vmatprep.subr.bf16.mxu1 %v8639_v38  ;;  %v8732_v37 = vld [vmem:[#allocation10 + $0x204] ss:$16 sps:$4 sm:$0xff]   ;;  %v8735_v38 = vld [vmem:[#allocation10 + $0x20c] ss:$16 sps:$4 sm:$0xff]  }
 0x26c   :  { %2573 = vmatmul.mubr.bf16.vlgmr.msra.gmra.mrb[8].mxu0 %v9864_v23  ;;  %2679 = vmatmul.mubr.bf16.vlgmr.msra.gmra.mrb[8].mxu1 %v9864_v23  ;;  %v8657_v23 = vld [vmem:[#allocation10 + $0x6c] ss:$16 sps:$4 sm:$0xff]  }
 0x26d   :  { %2582 = vmatprep.mubr.bf16.mxu0 %v9868_v45  ;;  %2688 = vmatprep.mubr.bf16.mxu1 %v9868_v45  ;;  %v8652_v45 = vld [vmem:[#allocation10 + $0x60] ss:$16 sps:$4 sm:$0xff]  }
 0x26e   :  { %3513 = vmatpush1.bf16.msra.mxu0 %v8634_v39  ;;  %3619 = vmatpush1.bf16.msra.mxu1 %v8637_v40  ;;  %v1827_v39 = vlaneseq }
 0x26f   :  { %3514 = vmatprep.subr.bf16.mxu0 %v8642_v42  ;;  %3620 = vmatprep.subr.bf16.mxu1 %v8645_v43 }
 0x270   :  { %v1828_v40 = vshrl.u32 %v1827_v39, 7 }
 0x272   :  { %3515 = vmatpush1.bf16.msra.mxu0 %v8640_v44  ;;  %3621 = vmatpush1.bf16.msra.mxu1 %v8643_v46  ;;  %v9876_v42 = vsub.s32 0, %v1828_v40  ;;  %v9878_v43 = vsub.s32 2, %v1828_v40  ;;  %v1687_v44 = vld [vmem:[%s10152_s8] ss:$4 sm:$0xf]  ;;  %v9883_v46 = vsub.s32 1, %v1828_v40 }
 0x273   :  { %3516 = vmatprep.subr.bf16.mxu0 %v8648_v47  ;;  %3622 = vmatprep.subr.bf16.mxu1 %v8651_v48  ;;  %v9885_v47 = vsub.s32 3, %v1828_v40 }
 0x274   :  { %2583 = vmatmul.mubr.bf16.gmra.mrb[12].mxu0 %v9866_v41  ;;  %2689 = vmatmul.mubr.bf16.gmra.mrb[12].mxu1 %v9866_v41  ;;  %v8667_v41 = vld [vmem:[#allocation10 + $0xa8] ss:$16 sps:$4 sm:$0xff]   ;;  %v1830_v48 = vrot.slane %v1687_v44, %v9876_v42 }
 0x276   :  { %3517 = vmatpush1.bf16.msra.mxu0 %v8646_v49  ;;  %3623 = vmatpush1.bf16.msra.mxu1 %v8649_v50  ;;  %v1838_v49 = vrot.slane %v1687_v44, %v9878_v43  ;;  %v1834_v50 = vrot.slane %v1687_v44, %v9883_v46 }
 0x277   :  { %3518 = vmatprep.subr.bf16.mxu0 %v8654_v51  ;;  %3624 = vmatprep.subr.bf16.mxu1 %v8657_v23  ;;  %v1842_v51 = vrot.slane %v1687_v44, %v9885_v47  ;;  %v8747_v44 = vld [vmem:[#allocation10 + $0x24c] ss:$16 sps:$4 sm:$0xff]  }
 0x27a   :  { %3519 = vmatpush1.bf16.msra.mxu0 %v8652_v45  ;;  %3625 = vmatpush1.bf16.msra.mxu1 %v8655_v52 }
 0x27b   :  { %3520 = vmatprep.subr.bf16.mxu0 %v8660_v53  ;;  %3626 = vmatprep.subr.bf16.mxu1 %v8663_v54 }
 0x27e   :  { %3521 = vmatpush1.bf16.msra.mxu0 %v8658_v55  ;;  %3627 = vmatpush1.bf16.msra.mxu1 %v8661_v56 }
 0x27f   :  { %3522 = vmatprep.subr.bf16.mxu0 %v8666_v57  ;;  %3628 = vmatprep.subr.bf16.mxu1 %v8669_v58 }
 0x282   :  { %3523 = vmatpush1.bf16.msra.mxu0 %v8664_v59  ;;  %3629 = vmatpush1.bf16.msra.mxu1 %v8667_v41 }
 0x283   :  { %3524 = vmatprep.subr.bf16.mxu0 %v8672_v60  ;;  %3630 = vmatprep.subr.bf16.mxu1 %v8675_v61 }
 0x286   :  { %3525 = vmatpush1.bf16.msra.mxu0 %v8670_v62  ;;  %3631 = vmatpush1.bf16.msra.mxu1 %v8673_v63 }
 0x287   :  { %3526 = vmatprep.subr.bf16.mxu0 %v8678_v0  ;;  %3632 = vmatprep.subr.bf16.mxu1 %v8681_v1 }
 0x28a   :  { %3527 = vmatpush1.bf16.msra.mxu0 %v8676_v2  ;;  %3633 = vmatpush1.bf16.msra.mxu1 %v8679_v3 }
 0x28b   :  { %3528 = vmatprep.subr.bf16.mxu0 %v8684_v4  ;;  %3634 = vmatprep.subr.bf16.mxu1 %v8687_v5 }
 0x28e   :  { %3529 = vmatpush1.bf16.msra.mxu0 %v8682_v6  ;;  %3635 = vmatpush1.bf16.msra.mxu1 %v8685_v7 }
 0x28f   :  { %3530 = vmatprep.subr.bf16.mxu0 %v8690_v8  ;;  %3636 = vmatprep.subr.bf16.mxu1 %v8693_v9 }
 0x292   :  { %3531 = vmatpush1.bf16.msra.mxu0 %v8688_v10  ;;  %3637 = vmatpush1.bf16.msra.mxu1 %v8691_v11 }
 0x293   :  { %3532 = vmatprep.subr.bf16.mxu0 %v8696_v12  ;;  %3638 = vmatprep.subr.bf16.mxu1 %v8699_v13 }
 0x296   :  { %3533 = vmatpush1.bf16.msra.mxu0 %v8694_v14  ;;  %3639 = vmatpush1.bf16.msra.mxu1 %v8697_v15  ;;  %v8730_v15 = vld [vmem:[#allocation10 + $0x200] ss:$16 sps:$4 sm:$0xff]  }
 0x297   :  { %3534 = vmatprep.subr.bf16.mxu0 %v8702_v16  ;;  %3640 = vmatprep.subr.bf16.mxu1 %v8705_v17  ;;  %v8733_v16 = vld [vmem:[#allocation10 + $0x208] ss:$16 sps:$4 sm:$0xff]  }
 0x29a   :  { %3535 = vmatpush1.bf16.msra.mxu0 %v8700_v18  ;;  %3641 = vmatpush1.bf16.msra.mxu1 %v8703_v19 }
 0x29b   :  { %3536 = vmatprep.subr.bf16.mxu0 %v8708_v20  ;;  %3642 = vmatprep.subr.bf16.mxu1 %v8711_v21  ;;  %v8738_v21 = vld [vmem:[#allocation10 + $0x224] ss:$16 sps:$4 sm:$0xff]  }
 0x29e   :  { %3537 = vmatpush1.bf16.msra.mxu0 %v8706_v22  ;;  %3643 = vmatpush1.bf16.msra.mxu1 %v8709_v24  ;;  %v8741_v22 = vld [vmem:[#allocation10 + $0x22c] ss:$16 sps:$4 sm:$0xff]  }
 0x29f   :  { %3538 = vmatprep.subr.bf16.mxu0 %v8714_v25  ;;  %3644 = vmatprep.subr.bf16.mxu1 %v8717_v26 }
 0x2a2   :  { %3539 = vmatpush1.bf16.msra.mxu0 %v8712_v27  ;;  %3645 = vmatpush1.bf16.msra.mxu1 %v8715_v28 }
 0x2a3   :  { %3540 = vmatprep.subr.bf16.mxu0 %v8720_v29  ;;  %3646 = vmatprep.subr.bf16.mxu1 %v8723_v30 }
 0x2a6   :  { %3541 = vmatpush1.bf16.msra.mxu0 %v8718_v31  ;;  %3647 = vmatpush1.bf16.msra.mxu1 %v8721_v32 }
 0x2a7   :  { %3542 = vmatprep.subr.bf16.mxu0 %v8726_v33  ;;  %3648 = vmatprep.subr.bf16.mxu1 %v8729_v34  ;;  %v8736_v34 = vld [vmem:[#allocation10 + $0x220] ss:$16 sps:$4 sm:$0xff]  }
 0x2aa   :  { %3543 = vmatpush1.bf16.msra.mxu0 %v8724_v35  ;;  %3649 = vmatpush1.bf16.msra.mxu1 %v8727_v36  ;;  %v8739_v35 = vld [vmem:[#allocation10 + $0x228] ss:$16 sps:$4 sm:$0xff]   ;;  %v8744_v36 = vld [vmem:[#allocation10 + $0x244] ss:$16 sps:$4 sm:$0xff]  }
 0x2ab   :  { %3565 = vmatprep.subr.bf16.mxu0 %v8732_v37  ;;  %3671 = vmatprep.subr.bf16.mxu1 %v8735_v38 }
 0x33f   :  { %v2574_v23 = vpop.f32.mrb[8].mxu0  ;;  %v2680_v45 = vpop.f32.mrb[8].mxu1 }
 0x340   :  { %v7946_v52 = vadd.f32 %v2574_v23, %v1830_v48  ;;  %v7954_v53 = vadd.f32 %v2680_v45, %v1838_v49  ;;  %v2576_v54 = vpop.f32.mrb[9].mxu0  ;;  %v2682_v55 = vpop.f32.mrb[9].mxu1 }
 0x341   :  { %v7947_v56 = vadd.f32 %v2576_v54, %v1834_v50  ;;  %v7955_v57 = vadd.f32 %v2682_v55, %v1842_v51  ;;  %v2578_v58 = vpop.f32.mrb[10].mxu0  ;;  %v2684_v59 = vpop.f32.mrb[10].mxu1  ;;  %v8742_v54 = vld [vmem:[#allocation10 + $0x240] ss:$16 sps:$4 sm:$0xff]   ;;  %v8745_v55 = vld [vmem:[#allocation10 + $0x248] ss:$16 sps:$4 sm:$0xff]  }
 0x342   :  { %v7948_v41 = vadd.f32 %v2578_v58, %v1830_v48  ;;  %v7956_v60 = vadd.f32 %v2684_v59, %v1838_v49  ;;  %v2580_v61 = vpop.f32.mrb[11].mxu0  ;;  %v2686_v62 = vpop.f32.mrb[11].mxu1  ;;  %v2699_v1 = vmax.f32 %v7946_v52, 0.0  ;;  %v2701_v2 = vmax.f32 %v7954_v53, 0.0  ;;  %v8748_v58 = vld [vmem:[#allocation10 + $0x260] ss:$16 sps:$4 sm:$0xff]  }
 0x343   :  { %v7949_v63 = vadd.f32 %v2580_v61, %v1834_v50  ;;  %v7957_v0 = vadd.f32 %v2686_v62, %v1842_v51  ;;  %v2700_v5 = vmax.f32 %v7947_v56, 0.0  ;;  %v2702_v6 = vmax.f32 %v7955_v57, 0.0  ;;  %v8750_v56 = vld [vmem:[#allocation10 + $0x264] ss:$16 sps:$4 sm:$0xff]   ;;  %v8753_v57 = vld [vmem:[#allocation10 + $0x26c] ss:$16 sps:$4 sm:$0xff]  }
 0x344   :  { %v2703_v3 = vmax.f32 %v7948_v41, 0.0  ;;  %v2705_v4 = vmax.f32 %v7956_v60, 0.0  ;;  %v8751_v59 = vld [vmem:[#allocation10 + $0x268] ss:$16 sps:$4 sm:$0xff]   ;;  %v8756_v41 = vld [vmem:[#allocation10 + $0x284] ss:$16 sps:$4 sm:$0xff]  }
 0x345   :  { %v2704_v7 = vmax.f32 %v7949_v63, 0.0  ;;  %v2706_v8 = vmax.f32 %v7957_v0, 0.0  ;;  %v8759_v60 = vld [vmem:[#allocation10 + $0x28c] ss:$16 sps:$4 sm:$0xff]   ;;  %v8754_v61 = vld [vmem:[#allocation10 + $0x280] ss:$16 sps:$4 sm:$0xff]  }
 0x346   :  { %v2715_v9 = vpack.c.bf16 %v2703_v3, %v2699_v1  ;;  %v9891_v10 = vpack.c.bf16 %v2705_v4, %v2701_v2  ;;  %v8757_v62 = vld [vmem:[#allocation10 + $0x288] ss:$16 sps:$4 sm:$0xff]   ;;  %v8762_v63 = vld [vmem:[#allocation10 + $0x2a4] ss:$16 sps:$4 sm:$0xff]   ;;  %v8765_v0 = vld [vmem:[#allocation10 + $0x2ac] ss:$16 sps:$4 sm:$0xff]  }
 0x347   :  { %v2716_v11 = vpack.c.bf16 %v2704_v7, %v2700_v5  ;;  %v2718_v12 = vpack.c.bf16 %v2706_v8, %v2702_v6  ;;  %v2584_v13 = vpop.f32.mrb[12].mxu0  ;;  %v2690_v14 = vpop.f32.mrb[12].mxu1  ;;  %v8760_v1 = vld [vmem:[#allocation10 + $0x2a0] ss:$16 sps:$4 sm:$0xff]   ;;  %v8763_v2 = vld [vmem:[#allocation10 + $0x2a8] ss:$16 sps:$4 sm:$0xff]  }
 0x348   :  { %v7950_v17 = vadd.f32 %v2584_v13, %v1830_v48  ;;  %v7958_v18 = vadd.f32 %v2690_v14, %v1838_v49  ;;  %v2586_v19 = vpop.f32.mrb[13].mxu0  ;;  %v2692_v20 = vpop.f32.mrb[13].mxu1  ;;  %v8768_v3 = vld [vmem:[#allocation10 + $0x2c4] ss:$16 sps:$4 sm:$0xff]   ;;  %v8771_v4 = vld [vmem:[#allocation10 + $0x2cc] ss:$16 sps:$4 sm:$0xff]  }
 0x349   :  { %v7951_v24 = vadd.f32 %v2586_v19, %v1834_v50  ;;  %v7959_v25 = vadd.f32 %v2692_v20, %v1842_v51  ;;  %v2588_v26 = vpop.f32.mrb[14].mxu0  ;;  %v2694_v27 = vpop.f32.mrb[14].mxu1  ;;  %3544 = vmatprep.mubr.bf16.mxu0 %v2716_v11  ;;  %3650 = vmatprep.mubr.bf16.mxu1 %v2716_v11  ;;  %v8766_v5 = vld [vmem:[#allocation10 + $0x2c0] ss:$16 sps:$4 sm:$0xff]   ;;  %v8769_v6 = vld [vmem:[#allocation10 + $0x2c8] ss:$16 sps:$4 sm:$0xff]  }
 0x34a   :  { %v7952_v28 = vadd.f32 %v2588_v26, %v1830_v48  ;;  %v7960_v29 = vadd.f32 %v2694_v27, %v1838_v49  ;;  %v2590_v30 = vpop.f32.mrb[15].mxu0  ;;  %v2696_v31 = vpop.f32.mrb[15].mxu1  ;;  %3545 = vmatmul.mubr.bf16.vlgmr.msra.gmra.mrb[16].mxu0 %v2715_v9  ;;  %3651 = vmatmul.mubr.bf16.vlgmr.msra.gmra.mrb[16].mxu1 %v2715_v9  ;;  %v2707_v37 = vmax.f32 %v7950_v17, 0.0  ;;  %v2709_v38 = vmax.f32 %v7958_v18, 0.0  ;;  %v8774_v7 = vld [vmem:[#allocation10 + $0x2e4] ss:$16 sps:$4 sm:$0xff]  }
 0x34b   :  { %v7953_v32 = vadd.f32 %v2590_v30, %v1834_v50  ;;  %v7961_v33 = vadd.f32 %v2696_v31, %v1842_v51  ;;  %3566 = vmatpush1.bf16.msra.mxu0 %v8730_v15  ;;  %3672 = vmatpush1.bf16.msra.mxu1 %v8733_v16  ;;  %v2708_v48 = vmax.f32 %v7951_v24, 0.0  ;;  %v2710_v49 = vmax.f32 %v7959_v25, 0.0  ;;  %v8777_v8 = vld [vmem:[#allocation10 + $0x2ec] ss:$16 sps:$4 sm:$0xff]   ;;  %v8772_v9 = vld [vmem:[#allocation10 + $0x2e0] ss:$16 sps:$4 sm:$0xff]  }
 0x34c   :  { %v2711_v39 = vmax.f32 %v7952_v28, 0.0  ;;  %v2713_v40 = vmax.f32 %v7960_v29, 0.0  ;;  %3567 = vmatprep.subr.bf16.mxu0 %v8738_v21  ;;  %3673 = vmatprep.subr.bf16.mxu1 %v8741_v22  ;;  %v8775_v11 = vld [vmem:[#allocation10 + $0x2e8] ss:$16 sps:$4 sm:$0xff]   ;;  %v8783_v13 = vld [vmem:[#allocation10 + $0x30c] ss:$16 sps:$4 sm:$0xff]  }
 0x34d   :  { %v2712_v23 = vmax.f32 %v7953_v32, 0.0  ;;  %v2714_v45 = vmax.f32 %v7961_v33, 0.0  ;;  %v8778_v14 = vld [vmem:[#allocation10 + $0x300] ss:$16 sps:$4 sm:$0xff]   ;;  %v8781_v15 = vld [vmem:[#allocation10 + $0x308] ss:$16 sps:$4 sm:$0xff]  }
 0x34e   :  { %v2719_v52 = vpack.c.bf16 %v2711_v39, %v2707_v37  ;;  %v9893_v53 = vpack.c.bf16 %v2713_v40, %v2709_v38  ;;  %v8786_v16 = vld [vmem:[#allocation10 + $0x324] ss:$16 sps:$4 sm:$0xff]   ;;  %v8789_v17 = vld [vmem:[#allocation10 + $0x32c] ss:$16 sps:$4 sm:$0xff]   ;;  %v8784_v18 = vld [vmem:[#allocation10 + $0x320] ss:$16 sps:$4 sm:$0xff]  }
 0x34f   :  { %v2720_v50 = vpack.c.bf16 %v2712_v23, %v2708_v48  ;;  %v9895_v51 = vpack.c.bf16 %v2714_v45, %v2710_v49  ;;  %3568 = vmatpush1.bf16.msra.mxu0 %v8736_v34  ;;  %3674 = vmatpush1.bf16.msra.mxu1 %v8739_v35  ;;  %v8787_v19 = vld [vmem:[#allocation10 + $0x328] ss:$16 sps:$4 sm:$0xff]   ;;  %v8792_v20 = vld [vmem:[#allocation10 + $0x344] ss:$16 sps:$4 sm:$0xff]   ;;  %v8795_v21 = vld [vmem:[#allocation10 + $0x34c] ss:$16 sps:$4 sm:$0xff]  }
 0x350   :  { %3569 = vmatprep.subr.bf16.mxu0 %v8744_v36  ;;  %3675 = vmatprep.subr.bf16.mxu1 %v8747_v44  ;;  %v8790_v22 = vld [vmem:[#allocation10 + $0x340] ss:$16 sps:$4 sm:$0xff]   ;;  %v8793_v24 = vld [vmem:[#allocation10 + $0x348] ss:$16 sps:$4 sm:$0xff]   ;;  %v8798_v25 = vld [vmem:[#allocation10 + $0x364] ss:$16 sps:$4 sm:$0xff]  }
 0x351   :  { %3554 = vmatprep.mubr.bf16.mxu0 %v2720_v50  ;;  %3660 = vmatprep.mubr.bf16.mxu1 %v2720_v50  ;;  %v8801_v26 = vld [vmem:[#allocation10 + $0x36c] ss:$16 sps:$4 sm:$0xff]   ;;  %v8796_v27 = vld [vmem:[#allocation10 + $0x360] ss:$16 sps:$4 sm:$0xff]   ;;  %v8799_v28 = vld [vmem:[#allocation10 + $0x368] ss:$16 sps:$4 sm:$0xff]  }
 0x352   :  { %3555 = vmatmul.mubr.bf16.gmra.mrb[20].mxu0 %v2719_v52  ;;  %3661 = vmatmul.mubr.bf16.gmra.mrb[20].mxu1 %v2719_v52  ;;  %v8804_v29 = vld [vmem:[#allocation10 + $0x384] ss:$16 sps:$4 sm:$0xff]   ;;  %v8807_v30 = vld [vmem:[#allocation10 + $0x38c] ss:$16 sps:$4 sm:$0xff]   ;;  %v8802_v31 = vld [vmem:[#allocation10 + $0x380] ss:$16 sps:$4 sm:$0xff]  }
 0x353   :  { %3570 = vmatpush1.bf16.msra.mxu0 %v8742_v54  ;;  %3676 = vmatpush1.bf16.msra.mxu1 %v8745_v55  ;;  %v8805_v32 = vld [vmem:[#allocation10 + $0x388] ss:$16 sps:$4 sm:$0xff]   ;;  %v8810_v33 = vld [vmem:[#allocation10 + $0x3a4] ss:$16 sps:$4 sm:$0xff]   ;;  %v8813_v34 = vld [vmem:[#allocation10 + $0x3ac] ss:$16 sps:$4 sm:$0xff]  }
 0x354   :  { %3597 = vmatprep.mubr.bf16.mxu0 %v2718_v12  ;;  %3703 = vmatprep.mubr.bf16.mxu1 %v2718_v12  ;;  %v8780_v12 = vld [vmem:[#allocation10 + $0x304] ss:$16 sps:$4 sm:$0xff]   ;;  %v8808_v35 = vld [vmem:[#allocation10 + $0x3a0] ss:$16 sps:$4 sm:$0xff]   ;;  %v8811_v36 = vld [vmem:[#allocation10 + $0x3a8] ss:$16 sps:$4 sm:$0xff]  }
 0x355   :  { %3571 = vmatprep.subr.bf16.mxu0 %v8750_v56  ;;  %3677 = vmatprep.subr.bf16.mxu1 %v8753_v57  ;;  %v8816_v37 = vld [vmem:[#allocation10 + $0x3c4] ss:$16 sps:$4 sm:$0xff]   ;;  %v8819_v38 = vld [vmem:[#allocation10 + $0x3cc] ss:$16 sps:$4 sm:$0xff]   ;;  %v8814_v39 = vld [vmem:[#allocation10 + $0x3c0] ss:$16 sps:$4 sm:$0xff]  }
 0x356   :  { %v8817_v40 = vld [vmem:[#allocation10 + $0x3c8] ss:$16 sps:$4 sm:$0xff]   ;;  %v8822_v44 = vld [vmem:[#allocation10 + $0x3e4] ss:$16 sps:$4 sm:$0xff]   ;;  %v8825_v48 = vld [vmem:[#allocation10 + $0x3ec] ss:$16 sps:$4 sm:$0xff]  }
 0x357   :  { %3572 = vmatpush1.bf16.msra.mxu0 %v8748_v58  ;;  %3678 = vmatpush1.bf16.msra.mxu1 %v8751_v59  ;;  %v8820_v49 = vld [vmem:[#allocation10 + $0x3e0] ss:$16 sps:$4 sm:$0xff]   ;;  %v8823_v23 = vld [vmem:[#allocation10 + $0x3e8] ss:$16 sps:$4 sm:$0xff]   ;;  %v8828_v45 = vld [vmem:[#allocation11 + $0x4] ss:$16 sps:$4 sm:$0xff]  }
 0x358   :  { %3573 = vmatprep.subr.bf16.mxu0 %v8756_v41  ;;  %3679 = vmatprep.subr.bf16.mxu1 %v8759_v60  ;;  %v8831_v52 = vld [vmem:[#allocation11 + $0xc] ss:$16 sps:$4 sm:$0xff]   ;;  %v8826_v50 = vld [vmem:[#allocation11] ss:$16 sps:$4 sm:$0xff]   ;;  %v8829_v54 = vld [vmem:[#allocation11 + $0x8] ss:$16 sps:$4 sm:$0xff]  }
 0x359   :  { %v8834_v55 = vld [vmem:[#allocation11 + $0x24] ss:$16 sps:$4 sm:$0xff]   ;;  %v8837_v56 = vld [vmem:[#allocation11 + $0x2c] ss:$16 sps:$4 sm:$0xff]   ;;  %v8832_v57 = vld [vmem:[#allocation11 + $0x20] ss:$16 sps:$4 sm:$0xff]  }
 0x35a   :  { %v8835_v58 = vld [vmem:[#allocation11 + $0x28] ss:$16 sps:$4 sm:$0xff]   ;;  %v8840_v59 = vld [vmem:[#allocation11 + $0x44] ss:$16 sps:$4 sm:$0xff]   ;;  %v8843_v41 = vld [vmem:[#allocation11 + $0x4c] ss:$16 sps:$4 sm:$0xff]  }
 0x35b   :  { %3574 = vmatpush1.bf16.msra.mxu0 %v8754_v61  ;;  %3680 = vmatpush1.bf16.msra.mxu1 %v8757_v62  ;;  %v8924_v60 = vld [vmem:[#allocation5 + $0x4] ss:$16 sps:$4 sm:$0xff]   ;;  %v8838_v61 = vld [vmem:[#allocation11 + $0x40] ss:$16 sps:$4 sm:$0xff]   ;;  %v8841_v62 = vld [vmem:[#allocation11 + $0x48] ss:$16 sps:$4 sm:$0xff]  }
 0x35c   :  { %3575 = vmatprep.subr.bf16.mxu0 %v8762_v63  ;;  %3681 = vmatprep.subr.bf16.mxu1 %v8765_v0  ;;  %v8849_v63 = vld [vmem:[#allocation11 + $0x6c] ss:$16 sps:$4 sm:$0xff]   ;;  %v8847_v0 = vld [vmem:[#allocation11 + $0x68] ss:$16 sps:$4 sm:$0xff]  }
 0x35f   :  { %3576 = vmatpush1.bf16.msra.mxu0 %v8760_v1  ;;  %3682 = vmatpush1.bf16.msra.mxu1 %v8763_v2  ;;  %v8852_v1 = vld [vmem:[#allocation11 + $0x84] ss:$16 sps:$4 sm:$0xff]   ;;  %v8855_v2 = vld [vmem:[#allocation11 + $0x8c] ss:$16 sps:$4 sm:$0xff]  }
 0x360   :  { %3577 = vmatprep.subr.bf16.mxu0 %v8768_v3  ;;  %3683 = vmatprep.subr.bf16.mxu1 %v8771_v4  ;;  %v8850_v3 = vld [vmem:[#allocation11 + $0x80] ss:$16 sps:$4 sm:$0xff]   ;;  %v8853_v4 = vld [vmem:[#allocation11 + $0x88] ss:$16 sps:$4 sm:$0xff]  }
 0x363   :  { %3578 = vmatpush1.bf16.msra.mxu0 %v8766_v5  ;;  %3684 = vmatpush1.bf16.msra.mxu1 %v8769_v6  ;;  %v8858_v5 = vld [vmem:[#allocation11 + $0xa4] ss:$16 sps:$4 sm:$0xff]   ;;  %v8861_v6 = vld [vmem:[#allocation11 + $0xac] ss:$16 sps:$4 sm:$0xff]  }
 0x364   :  { %3579 = vmatprep.subr.bf16.mxu0 %v8774_v7  ;;  %3685 = vmatprep.subr.bf16.mxu1 %v8777_v8  ;;  %v8859_v7 = vld [vmem:[#allocation11 + $0xa8] ss:$16 sps:$4 sm:$0xff]   ;;  %v8864_v8 = vld [vmem:[#allocation11 + $0xc4] ss:$16 sps:$4 sm:$0xff]  }
 0x367   :  { %3580 = vmatpush1.bf16.msra.mxu0 %v8772_v9  ;;  %3686 = vmatpush1.bf16.msra.mxu1 %v8775_v11  ;;  %v8867_v9 = vld [vmem:[#allocation11 + $0xcc] ss:$16 sps:$4 sm:$0xff]   ;;  %v8862_v11 = vld [vmem:[#allocation11 + $0xc0] ss:$16 sps:$4 sm:$0xff]  }
 0x368   :  { %3581 = vmatprep.subr.bf16.mxu0 %v8780_v12  ;;  %3687 = vmatprep.subr.bf16.mxu1 %v8783_v13  ;;  %v8865_v12 = vld [vmem:[#allocation11 + $0xc8] ss:$16 sps:$4 sm:$0xff]   ;;  %v8870_v13 = vld [vmem:[#allocation11 + $0xe4] ss:$16 sps:$4 sm:$0xff]  }
 0x36b   :  { %3582 = vmatpush1.bf16.msra.mxu0 %v8778_v14  ;;  %3688 = vmatpush1.bf16.msra.mxu1 %v8781_v15  ;;  %v8873_v14 = vld [vmem:[#allocation11 + $0xec] ss:$16 sps:$4 sm:$0xff]   ;;  %v8868_v15 = vld [vmem:[#allocation11 + $0xe0] ss:$16 sps:$4 sm:$0xff]  }
 0x36c   :  { %3583 = vmatprep.subr.bf16.mxu0 %v8786_v16  ;;  %3689 = vmatprep.subr.bf16.mxu1 %v8789_v17  ;;  %v8871_v16 = vld [vmem:[#allocation11 + $0xe8] ss:$16 sps:$4 sm:$0xff]   ;;  %v8876_v17 = vld [vmem:[#allocation11 + $0x104] ss:$16 sps:$4 sm:$0xff]  }
 0x36f   :  { %3584 = vmatpush1.bf16.msra.mxu0 %v8784_v18  ;;  %3690 = vmatpush1.bf16.msra.mxu1 %v8787_v19  ;;  %v8879_v18 = vld [vmem:[#allocation11 + $0x10c] ss:$16 sps:$4 sm:$0xff]   ;;  %v8874_v19 = vld [vmem:[#allocation11 + $0x100] ss:$16 sps:$4 sm:$0xff]  }
 0x370   :  { %3585 = vmatprep.subr.bf16.mxu0 %v8792_v20  ;;  %3691 = vmatprep.subr.bf16.mxu1 %v8795_v21  ;;  %v8877_v20 = vld [vmem:[#allocation11 + $0x108] ss:$16 sps:$4 sm:$0xff]   ;;  %v8882_v21 = vld [vmem:[#allocation11 + $0x124] ss:$16 sps:$4 sm:$0xff]  }
 0x373   :  { %3586 = vmatpush1.bf16.msra.mxu0 %v8790_v22  ;;  %3692 = vmatpush1.bf16.msra.mxu1 %v8793_v24  ;;  %v8885_v22 = vld [vmem:[#allocation11 + $0x12c] ss:$16 sps:$4 sm:$0xff]   ;;  %v8880_v24 = vld [vmem:[#allocation11 + $0x120] ss:$16 sps:$4 sm:$0xff]  }
 0x374   :  { %3587 = vmatprep.subr.bf16.mxu0 %v8798_v25  ;;  %3693 = vmatprep.subr.bf16.mxu1 %v8801_v26  ;;  %v8883_v25 = vld [vmem:[#allocation11 + $0x128] ss:$16 sps:$4 sm:$0xff]   ;;  %v8888_v26 = vld [vmem:[#allocation11 + $0x144] ss:$16 sps:$4 sm:$0xff]  }
 0x377   :  { %3588 = vmatpush1.bf16.msra.mxu0 %v8796_v27  ;;  %3694 = vmatpush1.bf16.msra.mxu1 %v8799_v28  ;;  %v8891_v27 = vld [vmem:[#allocation11 + $0x14c] ss:$16 sps:$4 sm:$0xff]   ;;  %v8886_v28 = vld [vmem:[#allocation11 + $0x140] ss:$16 sps:$4 sm:$0xff]  }
 0x378   :  { %3589 = vmatprep.subr.bf16.mxu0 %v8804_v29  ;;  %3695 = vmatprep.subr.bf16.mxu1 %v8807_v30  ;;  %v8889_v29 = vld [vmem:[#allocation11 + $0x148] ss:$16 sps:$4 sm:$0xff]   ;;  %v8894_v30 = vld [vmem:[#allocation11 + $0x164] ss:$16 sps:$4 sm:$0xff]  }
 0x37b   :  { %3590 = vmatpush1.bf16.msra.mxu0 %v8802_v31  ;;  %3696 = vmatpush1.bf16.msra.mxu1 %v8805_v32  ;;  %v8897_v31 = vld [vmem:[#allocation11 + $0x16c] ss:$16 sps:$4 sm:$0xff]   ;;  %v8892_v32 = vld [vmem:[#allocation11 + $0x160] ss:$16 sps:$4 sm:$0xff]  }
 0x37c   :  { %3591 = vmatprep.subr.bf16.mxu0 %v8810_v33  ;;  %3697 = vmatprep.subr.bf16.mxu1 %v8813_v34  ;;  %v8895_v33 = vld [vmem:[#allocation11 + $0x168] ss:$16 sps:$4 sm:$0xff]   ;;  %v8900_v34 = vld [vmem:[#allocation11 + $0x184] ss:$16 sps:$4 sm:$0xff]  }
 0x37f   :  { %3592 = vmatpush1.bf16.msra.mxu0 %v8808_v35  ;;  %3698 = vmatpush1.bf16.msra.mxu1 %v8811_v36  ;;  %v8903_v35 = vld [vmem:[#allocation11 + $0x18c] ss:$16 sps:$4 sm:$0xff]   ;;  %v8898_v36 = vld [vmem:[#allocation11 + $0x180] ss:$16 sps:$4 sm:$0xff]  }
 0x380   :  { %3593 = vmatprep.subr.bf16.mxu0 %v8816_v37  ;;  %3699 = vmatprep.subr.bf16.mxu1 %v8819_v38  ;;  %v8901_v37 = vld [vmem:[#allocation11 + $0x188] ss:$16 sps:$4 sm:$0xff]   ;;  %v8906_v38 = vld [vmem:[#allocation11 + $0x1a4] ss:$16 sps:$4 sm:$0xff]  }
 0x383   :  { %3594 = vmatpush1.bf16.msra.mxu0 %v8814_v39  ;;  %3700 = vmatpush1.bf16.msra.mxu1 %v8817_v40  ;;  %v8909_v39 = vld [vmem:[#allocation11 + $0x1ac] ss:$16 sps:$4 sm:$0xff]   ;;  %v8904_v40 = vld [vmem:[#allocation11 + $0x1a0] ss:$16 sps:$4 sm:$0xff]  }
 0x384   :  { %3595 = vmatprep.subr.bf16.mxu0 %v8822_v44  ;;  %3701 = vmatprep.subr.bf16.mxu1 %v8825_v48  ;;  %v8907_v44 = vld [vmem:[#allocation11 + $0x1a8] ss:$16 sps:$4 sm:$0xff]   ;;  %v8912_v48 = vld [vmem:[#allocation11 + $0x1c4] ss:$16 sps:$4 sm:$0xff]  }
 0x387   :  { %3596 = vmatpush1.bf16.msra.mxu0 %v8820_v49  ;;  %3702 = vmatpush1.bf16.msra.mxu1 %v8823_v23  ;;  %v8915_v49 = vld [vmem:[#allocation11 + $0x1cc] ss:$16 sps:$4 sm:$0xff]   ;;  %v8910_v23 = vld [vmem:[#allocation11 + $0x1c0] ss:$16 sps:$4 sm:$0xff]  }
 0x388   :  { %4656 = vmatprep.subr.bf16.mxu0 %v8828_v45  ;;  %4762 = vmatprep.subr.bf16.mxu1 %v8831_v52  ;;  %v8913_v45 = vld [vmem:[#allocation11 + $0x1c8] ss:$16 sps:$4 sm:$0xff]   ;;  %v8918_v52 = vld [vmem:[#allocation11 + $0x1e4] ss:$16 sps:$4 sm:$0xff]  }
 0x38a   :  { %3598 = vmatmul.mubr.bf16.vlgmr.msra.gmra.mrb[16].mxu0 %v9891_v10  ;;  %3704 = vmatmul.mubr.bf16.vlgmr.msra.gmra.mrb[16].mxu1 %v9891_v10  ;;  %v8846_v10 = vld [vmem:[#allocation11 + $0x64] ss:$16 sps:$4 sm:$0xff]  }
 0x38b   :  { %3607 = vmatprep.mubr.bf16.mxu0 %v9895_v51  ;;  %3713 = vmatprep.mubr.bf16.mxu1 %v9895_v51  ;;  %v8844_v51 = vld [vmem:[#allocation11 + $0x60] ss:$16 sps:$4 sm:$0xff]  }
 0x38c   :  { %4657 = vmatpush1.bf16.msra.mxu0 %v8826_v50  ;;  %4763 = vmatpush1.bf16.msra.mxu1 %v8829_v54  ;;  %v8921_v50 = vld [vmem:[#allocation11 + $0x1ec] ss:$16 sps:$4 sm:$0xff]   ;;  %v8916_v54 = vld [vmem:[#allocation11 + $0x1e0] ss:$16 sps:$4 sm:$0xff]  }
 0x38d   :  { %4658 = vmatprep.subr.bf16.mxu0 %v8834_v55  ;;  %4764 = vmatprep.subr.bf16.mxu1 %v8837_v56  ;;  %v8919_v55 = vld [vmem:[#allocation11 + $0x1e8] ss:$16 sps:$4 sm:$0xff]   ;;  %v8927_v56 = vld [vmem:[#allocation11 + $0x204] ss:$16 sps:$4 sm:$0xff]  }
 0x390   :  { %4659 = vmatpush1.bf16.msra.mxu0 %v8832_v57  ;;  %4765 = vmatpush1.bf16.msra.mxu1 %v8835_v58  ;;  %v8930_v57 = vld [vmem:[#allocation11 + $0x20c] ss:$16 sps:$4 sm:$0xff]   ;;  %v8922_v58 = vld [vmem:[#allocation5] ss:$16 sps:$4 sm:$0xff]  }
 0x391   :  { %4660 = vmatprep.subr.bf16.mxu0 %v8840_v59  ;;  %4766 = vmatprep.subr.bf16.mxu1 %v8843_v41  ;;  %v8925_v59 = vld [vmem:[#allocation11 + $0x200] ss:$16 sps:$4 sm:$0xff]   ;;  %v8928_v41 = vld [vmem:[#allocation11 + $0x208] ss:$16 sps:$4 sm:$0xff]  }
 0x392   :  { %3608 = vmatmul.mubr.bf16.gmra.mrb[20].mxu0 %v9893_v53  ;;  %3714 = vmatmul.mubr.bf16.gmra.mrb[20].mxu1 %v9893_v53  ;;  %v8856_v53 = vld [vmem:[#allocation11 + $0xa0] ss:$16 sps:$4 sm:$0xff]  }
 0x393   :  { %4688 = vmatprep.mubr.bf16.mxu0 %v8924_v60  ;;  %4794 = vmatprep.mubr.bf16.mxu1 %v8924_v60  ;;  %v8933_v60 = vld [vmem:[#allocation11 + $0x224] ss:$16 sps:$4 sm:$0xff]  }
 0x394   :  { %4661 = vmatpush1.bf16.msra.mxu0 %v8838_v61  ;;  %4767 = vmatpush1.bf16.msra.mxu1 %v8841_v62  ;;  %v8936_v61 = vld [vmem:[#allocation11 + $0x22c] ss:$16 sps:$4 sm:$0xff]   ;;  %v9009_v62 = vld [vmem:[#allocation5 + $0x24] ss:$16 sps:$4 sm:$0xff]  }
 0x395   :  { %4662 = vmatprep.subr.bf16.mxu0 %v8846_v10  ;;  %4768 = vmatprep.subr.bf16.mxu1 %v8849_v63  ;;  %v8931_v10 = vld [vmem:[#allocation11 + $0x220] ss:$16 sps:$4 sm:$0xff]   ;;  %v8934_v63 = vld [vmem:[#allocation11 + $0x228] ss:$16 sps:$4 sm:$0xff]  }
 0x398   :  { %4663 = vmatpush1.bf16.msra.mxu0 %v8844_v51  ;;  %4769 = vmatpush1.bf16.msra.mxu1 %v8847_v0  ;;  %v8939_v51 = vld [vmem:[#allocation11 + $0x244] ss:$16 sps:$4 sm:$0xff]   ;;  %v8942_v0 = vld [vmem:[#allocation11 + $0x24c] ss:$16 sps:$4 sm:$0xff]  }
 0x399   :  { %4664 = vmatprep.subr.bf16.mxu0 %v8852_v1  ;;  %4770 = vmatprep.subr.bf16.mxu1 %v8855_v2  ;;  %v9011_v1 = vld [vmem:[#allocation5 + $0x20] ss:$16 sps:$4 sm:$0xff]  }
 0x39a   :  { %v8937_v2 = vld [vmem:[#allocation11 + $0x240] ss:$16 sps:$4 sm:$0xff]  }
 0x39c   :  { %4665 = vmatpush1.bf16.msra.mxu0 %v8850_v3  ;;  %4771 = vmatpush1.bf16.msra.mxu1 %v8853_v4  ;;  %v8940_v3 = vld [vmem:[#allocation11 + $0x248] ss:$16 sps:$4 sm:$0xff]   ;;  %v8945_v4 = vld [vmem:[#allocation11 + $0x264] ss:$16 sps:$4 sm:$0xff]  }
 0x39d   :  { %4666 = vmatprep.subr.bf16.mxu0 %v8858_v5  ;;  %4772 = vmatprep.subr.bf16.mxu1 %v8861_v6  ;;  %v8948_v5 = vld [vmem:[#allocation11 + $0x26c] ss:$16 sps:$4 sm:$0xff]  }
 0x39e   :  { %v9026_v6 = vld [vmem:[#allocation5 + $0xc] ss:$16 sps:$4 sm:$0xff]  }
 0x3a0   :  { %4667 = vmatpush1.bf16.msra.mxu0 %v8856_v53  ;;  %4773 = vmatpush1.bf16.msra.mxu1 %v8859_v7  ;;  %v8943_v53 = vld [vmem:[#allocation11 + $0x260] ss:$16 sps:$4 sm:$0xff]   ;;  %v8946_v7 = vld [vmem:[#allocation11 + $0x268] ss:$16 sps:$4 sm:$0xff]  }
 0x3a1   :  { %4668 = vmatprep.subr.bf16.mxu0 %v8864_v8  ;;  %4774 = vmatprep.subr.bf16.mxu1 %v8867_v9  ;;  %v8951_v8 = vld [vmem:[#allocation11 + $0x284] ss:$16 sps:$4 sm:$0xff]   ;;  %v8954_v9 = vld [vmem:[#allocation11 + $0x28c] ss:$16 sps:$4 sm:$0xff]  }
 0x3a4   :  { %4669 = vmatpush1.bf16.msra.mxu0 %v8862_v11  ;;  %4775 = vmatpush1.bf16.msra.mxu1 %v8865_v12  ;;  %v8949_v11 = vld [vmem:[#allocation11 + $0x280] ss:$16 sps:$4 sm:$0xff]   ;;  %v8952_v12 = vld [vmem:[#allocation11 + $0x288] ss:$16 sps:$4 sm:$0xff]  }
 0x3a5   :  { %4670 = vmatprep.subr.bf16.mxu0 %v8870_v13  ;;  %4776 = vmatprep.subr.bf16.mxu1 %v8873_v14  ;;  %v8957_v13 = vld [vmem:[#allocation11 + $0x2a4] ss:$16 sps:$4 sm:$0xff]   ;;  %v8960_v14 = vld [vmem:[#allocation11 + $0x2ac] ss:$16 sps:$4 sm:$0xff]  }
 0x3a8   :  { %4671 = vmatpush1.bf16.msra.mxu0 %v8868_v15  ;;  %4777 = vmatpush1.bf16.msra.mxu1 %v8871_v16  ;;  %v8955_v15 = vld [vmem:[#allocation11 + $0x2a0] ss:$16 sps:$4 sm:$0xff]   ;;  %v8958_v16 = vld [vmem:[#allocation11 + $0x2a8] ss:$16 sps:$4 sm:$0xff]  }
 0x3a9   :  { %4672 = vmatprep.subr.bf16.mxu0 %v8876_v17  ;;  %4778 = vmatprep.subr.bf16.mxu1 %v8879_v18  ;;  %v8963_v17 = vld [vmem:[#allocation11 + $0x2c4] ss:$16 sps:$4 sm:$0xff]   ;;  %v8966_v18 = vld [vmem:[#allocation11 + $0x2cc] ss:$16 sps:$4 sm:$0xff]  }
 0x3ac   :  { %4673 = vmatpush1.bf16.msra.mxu0 %v8874_v19  ;;  %4779 = vmatpush1.bf16.msra.mxu1 %v8877_v20  ;;  %v8961_v19 = vld [vmem:[#allocation11 + $0x2c0] ss:$16 sps:$4 sm:$0xff]   ;;  %v8964_v20 = vld [vmem:[#allocation11 + $0x2c8] ss:$16 sps:$4 sm:$0xff]  }
 0x3ad   :  { %4674 = vmatprep.subr.bf16.mxu0 %v8882_v21  ;;  %4780 = vmatprep.subr.bf16.mxu1 %v8885_v22  ;;  %v8969_v21 = vld [vmem:[#allocation11 + $0x2e4] ss:$16 sps:$4 sm:$0xff]   ;;  %v8972_v22 = vld [vmem:[#allocation11 + $0x2ec] ss:$16 sps:$4 sm:$0xff]  }
 0x3b0   :  { %4675 = vmatpush1.bf16.msra.mxu0 %v8880_v24  ;;  %4781 = vmatpush1.bf16.msra.mxu1 %v8883_v25  ;;  %v8967_v24 = vld [vmem:[#allocation11 + $0x2e0] ss:$16 sps:$4 sm:$0xff]   ;;  %v8970_v25 = vld [vmem:[#allocation11 + $0x2e8] ss:$16 sps:$4 sm:$0xff]  }
 0x3b1   :  { %4676 = vmatprep.subr.bf16.mxu0 %v8888_v26  ;;  %4782 = vmatprep.subr.bf16.mxu1 %v8891_v27  ;;  %v8975_v26 = vld [vmem:[#allocation11 + $0x304] ss:$16 sps:$4 sm:$0xff]   ;;  %v8978_v27 = vld [vmem:[#allocation11 + $0x30c] ss:$16 sps:$4 sm:$0xff]  }
 0x3b4   :  { %4677 = vmatpush1.bf16.msra.mxu0 %v8886_v28  ;;  %4783 = vmatpush1.bf16.msra.mxu1 %v8889_v29  ;;  %v8973_v28 = vld [vmem:[#allocation11 + $0x300] ss:$16 sps:$4 sm:$0xff]   ;;  %v8976_v29 = vld [vmem:[#allocation11 + $0x308] ss:$16 sps:$4 sm:$0xff]  }
 0x3b5   :  { %4678 = vmatprep.subr.bf16.mxu0 %v8894_v30  ;;  %4784 = vmatprep.subr.bf16.mxu1 %v8897_v31  ;;  %v8981_v30 = vld [vmem:[#allocation11 + $0x324] ss:$16 sps:$4 sm:$0xff]   ;;  %v8984_v31 = vld [vmem:[#allocation11 + $0x32c] ss:$16 sps:$4 sm:$0xff]  }
 0x3b8   :  { %4679 = vmatpush1.bf16.msra.mxu0 %v8892_v32  ;;  %4785 = vmatpush1.bf16.msra.mxu1 %v8895_v33  ;;  %v8979_v32 = vld [vmem:[#allocation11 + $0x320] ss:$16 sps:$4 sm:$0xff]   ;;  %v8982_v33 = vld [vmem:[#allocation11 + $0x328] ss:$16 sps:$4 sm:$0xff]  }
 0x3b9   :  { %4680 = vmatprep.subr.bf16.mxu0 %v8900_v34  ;;  %4786 = vmatprep.subr.bf16.mxu1 %v8903_v35  ;;  %v8987_v34 = vld [vmem:[#allocation11 + $0x344] ss:$16 sps:$4 sm:$0xff]   ;;  %v8990_v35 = vld [vmem:[#allocation11 + $0x34c] ss:$16 sps:$4 sm:$0xff]  }
 0x3bc   :  { %4681 = vmatpush1.bf16.msra.mxu0 %v8898_v36  ;;  %4787 = vmatpush1.bf16.msra.mxu1 %v8901_v37  ;;  %v8985_v36 = vld [vmem:[#allocation11 + $0x340] ss:$16 sps:$4 sm:$0xff]   ;;  %v8988_v37 = vld [vmem:[#allocation11 + $0x348] ss:$16 sps:$4 sm:$0xff]  }
 0x3bd   :  { %4682 = vmatprep.subr.bf16.mxu0 %v8906_v38  ;;  %4788 = vmatprep.subr.bf16.mxu1 %v8909_v39  ;;  %v8993_v38 = vld [vmem:[#allocation11 + $0x364] ss:$16 sps:$4 sm:$0xff]   ;;  %v8996_v39 = vld [vmem:[#allocation11 + $0x36c] ss:$16 sps:$4 sm:$0xff]  }
 0x3c0   :  { %4683 = vmatpush1.bf16.msra.mxu0 %v8904_v40  ;;  %4789 = vmatpush1.bf16.msra.mxu1 %v8907_v44  ;;  %v8991_v40 = vld [vmem:[#allocation11 + $0x360] ss:$16 sps:$4 sm:$0xff]   ;;  %v8994_v44 = vld [vmem:[#allocation11 + $0x368] ss:$16 sps:$4 sm:$0xff]  }
 0x3c1   :  { %4684 = vmatprep.subr.bf16.mxu0 %v8912_v48  ;;  %4790 = vmatprep.subr.bf16.mxu1 %v8915_v49  ;;  %v8999_v48 = vld [vmem:[#allocation11 + $0x384] ss:$16 sps:$4 sm:$0xff]   ;;  %v9002_v49 = vld [vmem:[#allocation11 + $0x38c] ss:$16 sps:$4 sm:$0xff]  }
 0x3c4   :  { %4685 = vmatpush1.bf16.msra.mxu0 %v8910_v23  ;;  %4791 = vmatpush1.bf16.msra.mxu1 %v8913_v45  ;;  %v8997_v23 = vld [vmem:[#allocation11 + $0x380] ss:$16 sps:$4 sm:$0xff]   ;;  %v9000_v45 = vld [vmem:[#allocation11 + $0x388] ss:$16 sps:$4 sm:$0xff]  }
 0x3c5   :  { %4686 = vmatprep.subr.bf16.mxu0 %v8918_v52  ;;  %4792 = vmatprep.subr.bf16.mxu1 %v8921_v50  ;;  %v9005_v52 = vld [vmem:[#allocation11 + $0x3a4] ss:$16 sps:$4 sm:$0xff]   ;;  %v9008_v50 = vld [vmem:[#allocation11 + $0x3ac] ss:$16 sps:$4 sm:$0xff]  }
 0x3c8   :  { %4687 = vmatpush1.bf16.msra.mxu0 %v8916_v54  ;;  %4793 = vmatpush1.bf16.msra.mxu1 %v8919_v55  ;;  %v9003_v54 = vld [vmem:[#allocation11 + $0x3a0] ss:$16 sps:$4 sm:$0xff]   ;;  %v9006_v55 = vld [vmem:[#allocation11 + $0x3a8] ss:$16 sps:$4 sm:$0xff]  }
 0x3c9   :  { %4709 = vmatprep.subr.bf16.mxu0 %v8927_v56  ;;  %4815 = vmatprep.subr.bf16.mxu1 %v8930_v57  ;;  %v9014_v56 = vld [vmem:[#allocation11 + $0x3c4] ss:$16 sps:$4 sm:$0xff]   ;;  %v9017_v57 = vld [vmem:[#allocation11 + $0x3cc] ss:$16 sps:$4 sm:$0xff]  }
 0x3cb   :  { %4689 = vmatmul.mubr.bf16.vlgmr.msra.gmra.mrb[24].mxu0 %v8922_v58  ;;  %4795 = vmatmul.mubr.bf16.vlgmr.msra.gmra.mrb[24].mxu1 %v8922_v58  ;;  %v9012_v58 = vld [vmem:[#allocation11 + $0x3c0] ss:$16 sps:$4 sm:$0xff]  }
 0x3cc   :  { %4710 = vmatpush1.bf16.msra.mxu0 %v8925_v59  ;;  %4816 = vmatpush1.bf16.msra.mxu1 %v8928_v41  ;;  %v9015_v59 = vld [vmem:[#allocation11 + $0x3c8] ss:$16 sps:$4 sm:$0xff]   ;;  %v9020_v41 = vld [vmem:[#allocation11 + $0x3e4] ss:$16 sps:$4 sm:$0xff]  }
 0x3cd   :  { %4711 = vmatprep.subr.bf16.mxu0 %v8933_v60  ;;  %4817 = vmatprep.subr.bf16.mxu1 %v8936_v61  ;;  %v9023_v60 = vld [vmem:[#allocation11 + $0x3ec] ss:$16 sps:$4 sm:$0xff]   ;;  %v9018_v61 = vld [vmem:[#allocation11 + $0x3e0] ss:$16 sps:$4 sm:$0xff]  }
 0x3ce   :  { %4698 = vmatprep.mubr.bf16.mxu0 %v9009_v62  ;;  %4804 = vmatprep.mubr.bf16.mxu1 %v9009_v62  ;;  %v9021_v62 = vld [vmem:[#allocation11 + $0x3e8] ss:$16 sps:$4 sm:$0xff]  }
 0x3d0   :  { %4712 = vmatpush1.bf16.msra.mxu0 %v8931_v10  ;;  %4818 = vmatpush1.bf16.msra.mxu1 %v8934_v63  ;;  %v9032_v10 = vld [vmem:[#allocation13 + $0x4] ss:$16 sps:$4 sm:$0xff]   ;;  %v9035_v63 = vld [vmem:[#allocation13 + $0xc] ss:$16 sps:$4 sm:$0xff]  }
 0x3d1   :  { %4713 = vmatprep.subr.bf16.mxu0 %v8939_v51  ;;  %4819 = vmatprep.subr.bf16.mxu1 %v8942_v0  ;;  %v9024_v51 = vld [vmem:[#allocation5 + $0x8] ss:$16 sps:$4 sm:$0xff]   ;;  %v9027_v0 = vld [vmem:[#allocation5 + $0x2c] ss:$16 sps:$4 sm:$0xff]  }
 0x3d3   :  { %4699 = vmatmul.mubr.bf16.gmra.mrb[28].mxu0 %v9011_v1  ;;  %4805 = vmatmul.mubr.bf16.gmra.mrb[28].mxu1 %v9011_v1  ;;  %v9030_v1 = vld [vmem:[#allocation13] ss:$16 sps:$4 sm:$0xff]  }
 0x3d4   :  { %4714 = vmatpush1.bf16.msra.mxu0 %v8937_v2  ;;  %4820 = vmatpush1.bf16.msra.mxu1 %v8940_v3  ;;  %v9033_v2 = vld [vmem:[#allocation13 + $0x8] ss:$16 sps:$4 sm:$0xff]   ;;  %v9038_v3 = vld [vmem:[#allocation13 + $0x24] ss:$16 sps:$4 sm:$0xff]  }
 0x3d5   :  { %4715 = vmatprep.subr.bf16.mxu0 %v8945_v4  ;;  %4821 = vmatprep.subr.bf16.mxu1 %v8948_v5  ;;  %v9041_v4 = vld [vmem:[#allocation13 + $0x2c] ss:$16 sps:$4 sm:$0xff]   ;;  %v9036_v5 = vld [vmem:[#allocation13 + $0x20] ss:$16 sps:$4 sm:$0xff]  }
 0x3d6   :  { %4741 = vmatprep.mubr.bf16.mxu0 %v9026_v6  ;;  %4847 = vmatprep.mubr.bf16.mxu1 %v9026_v6  ;;  %v9039_v6 = vld [vmem:[#allocation13 + $0x28] ss:$16 sps:$4 sm:$0xff]  }
 0x3d8   :  { %4716 = vmatpush1.bf16.msra.mxu0 %v8943_v53  ;;  %4822 = vmatpush1.bf16.msra.mxu1 %v8946_v7  ;;  %v9044_v53 = vld [vmem:[#allocation13 + $0x44] ss:$16 sps:$4 sm:$0xff]   ;;  %v9047_v7 = vld [vmem:[#allocation13 + $0x4c] ss:$16 sps:$4 sm:$0xff]  }
 0x3d9   :  { %4717 = vmatprep.subr.bf16.mxu0 %v8951_v8  ;;  %4823 = vmatprep.subr.bf16.mxu1 %v8954_v9  ;;  %v9029_v8 = vld [vmem:[#allocation5 + $0x28] ss:$16 sps:$4 sm:$0xff]   ;;  %v9042_v9 = vld [vmem:[#allocation13 + $0x40] ss:$16 sps:$4 sm:$0xff]  }
 0x3dc   :  { %4718 = vmatpush1.bf16.msra.mxu0 %v8949_v11  ;;  %4824 = vmatpush1.bf16.msra.mxu1 %v8952_v12  ;;  %v9045_v11 = vld [vmem:[#allocation13 + $0x48] ss:$16 sps:$4 sm:$0xff]   ;;  %v9050_v12 = vld [vmem:[#allocation13 + $0x64] ss:$16 sps:$4 sm:$0xff]  }
 0x3dd   :  { %4719 = vmatprep.subr.bf16.mxu0 %v8957_v13  ;;  %4825 = vmatprep.subr.bf16.mxu1 %v8960_v14  ;;  %v9053_v13 = vld [vmem:[#allocation13 + $0x6c] ss:$16 sps:$4 sm:$0xff]   ;;  %v9048_v14 = vld [vmem:[#allocation13 + $0x60] ss:$16 sps:$4 sm:$0xff]  }
 0x3e0   :  { %4720 = vmatpush1.bf16.msra.mxu0 %v8955_v15  ;;  %4826 = vmatpush1.bf16.msra.mxu1 %v8958_v16  ;;  %v9051_v15 = vld [vmem:[#allocation13 + $0x68] ss:$16 sps:$4 sm:$0xff]   ;;  %v9056_v16 = vld [vmem:[#allocation13 + $0x84] ss:$16 sps:$4 sm:$0xff]  }
 0x3e1   :  { %4721 = vmatprep.subr.bf16.mxu0 %v8963_v17  ;;  %4827 = vmatprep.subr.bf16.mxu1 %v8966_v18  ;;  %v9059_v17 = vld [vmem:[#allocation13 + $0x8c] ss:$16 sps:$4 sm:$0xff]   ;;  %v9054_v18 = vld [vmem:[#allocation13 + $0x80] ss:$16 sps:$4 sm:$0xff]  }
 0x3e4   :  { %4722 = vmatpush1.bf16.msra.mxu0 %v8961_v19  ;;  %4828 = vmatpush1.bf16.msra.mxu1 %v8964_v20  ;;  %v9057_v19 = vld [vmem:[#allocation13 + $0x88] ss:$16 sps:$4 sm:$0xff]   ;;  %v9062_v20 = vld [vmem:[#allocation13 + $0xa4] ss:$16 sps:$4 sm:$0xff]  }
 0x3e5   :  { %4723 = vmatprep.subr.bf16.mxu0 %v8969_v21  ;;  %4829 = vmatprep.subr.bf16.mxu1 %v8972_v22  ;;  %v9065_v21 = vld [vmem:[#allocation13 + $0xac] ss:$16 sps:$4 sm:$0xff]   ;;  %v9060_v22 = vld [vmem:[#allocation13 + $0xa0] ss:$16 sps:$4 sm:$0xff]  }
 0x3e8   :  { %4724 = vmatpush1.bf16.msra.mxu0 %v8967_v24  ;;  %4830 = vmatpush1.bf16.msra.mxu1 %v8970_v25  ;;  %v9063_v24 = vld [vmem:[#allocation13 + $0xa8] ss:$16 sps:$4 sm:$0xff]   ;;  %v9068_v25 = vld [vmem:[#allocation13 + $0xc4] ss:$16 sps:$4 sm:$0xff]  }
 0x3e9   :  { %4725 = vmatprep.subr.bf16.mxu0 %v8975_v26  ;;  %4831 = vmatprep.subr.bf16.mxu1 %v8978_v27  ;;  %v9071_v26 = vld [vmem:[#allocation13 + $0xcc] ss:$16 sps:$4 sm:$0xff]   ;;  %v9066_v27 = vld [vmem:[#allocation13 + $0xc0] ss:$16 sps:$4 sm:$0xff]  }
 0x3ec   :  { %4726 = vmatpush1.bf16.msra.mxu0 %v8973_v28  ;;  %4832 = vmatpush1.bf16.msra.mxu1 %v8976_v29  ;;  %v9069_v28 = vld [vmem:[#allocation13 + $0xc8] ss:$16 sps:$4 sm:$0xff]   ;;  %v9074_v29 = vld [vmem:[#allocation13 + $0xe4] ss:$16 sps:$4 sm:$0xff]  }
 0x3ed   :  { %4727 = vmatprep.subr.bf16.mxu0 %v8981_v30  ;;  %4833 = vmatprep.subr.bf16.mxu1 %v8984_v31  ;;  %v9077_v30 = vld [vmem:[#allocation13 + $0xec] ss:$16 sps:$4 sm:$0xff]   ;;  %v9072_v31 = vld [vmem:[#allocation13 + $0xe0] ss:$16 sps:$4 sm:$0xff]  }
 0x3f0   :  { %4728 = vmatpush1.bf16.msra.mxu0 %v8979_v32  ;;  %4834 = vmatpush1.bf16.msra.mxu1 %v8982_v33  ;;  %v9075_v32 = vld [vmem:[#allocation13 + $0xe8] ss:$16 sps:$4 sm:$0xff]   ;;  %v9080_v33 = vld [vmem:[#allocation13 + $0x104] ss:$16 sps:$4 sm:$0xff]  }
 0x3f1   :  { %4729 = vmatprep.subr.bf16.mxu0 %v8987_v34  ;;  %4835 = vmatprep.subr.bf16.mxu1 %v8990_v35  ;;  %v9083_v34 = vld [vmem:[#allocation13 + $0x10c] ss:$16 sps:$4 sm:$0xff]   ;;  %v9078_v35 = vld [vmem:[#allocation13 + $0x100] ss:$16 sps:$4 sm:$0xff]  }
 0x3f4   :  { %4730 = vmatpush1.bf16.msra.mxu0 %v8985_v36  ;;  %4836 = vmatpush1.bf16.msra.mxu1 %v8988_v37  ;;  %v9081_v36 = vld [vmem:[#allocation13 + $0x108] ss:$16 sps:$4 sm:$0xff]   ;;  %v9086_v37 = vld [vmem:[#allocation13 + $0x124] ss:$16 sps:$4 sm:$0xff]  }
 0x3f5   :  { %4731 = vmatprep.subr.bf16.mxu0 %v8993_v38  ;;  %4837 = vmatprep.subr.bf16.mxu1 %v8996_v39  ;;  %v9089_v38 = vld [vmem:[#allocation13 + $0x12c] ss:$16 sps:$4 sm:$0xff]   ;;  %v9084_v39 = vld [vmem:[#allocation13 + $0x120] ss:$16 sps:$4 sm:$0xff]  }
 0x3f8   :  { %4732 = vmatpush1.bf16.msra.mxu0 %v8991_v40  ;;  %4838 = vmatpush1.bf16.msra.mxu1 %v8994_v44  ;;  %v9087_v40 = vld [vmem:[#allocation13 + $0x128] ss:$16 sps:$4 sm:$0xff]   ;;  %v9092_v44 = vld [vmem:[#allocation13 + $0x144] ss:$16 sps:$4 sm:$0xff]  }
 0x3f9   :  { %4733 = vmatprep.subr.bf16.mxu0 %v8999_v48  ;;  %4839 = vmatprep.subr.bf16.mxu1 %v9002_v49  ;;  %v9095_v48 = vld [vmem:[#allocation13 + $0x14c] ss:$16 sps:$4 sm:$0xff]   ;;  %v9090_v49 = vld [vmem:[#allocation13 + $0x140] ss:$16 sps:$4 sm:$0xff]  }
 0x3fc   :  { %4734 = vmatpush1.bf16.msra.mxu0 %v8997_v23  ;;  %4840 = vmatpush1.bf16.msra.mxu1 %v9000_v45  ;;  %v9093_v23 = vld [vmem:[#allocation13 + $0x148] ss:$16 sps:$4 sm:$0xff]   ;;  %v9098_v45 = vld [vmem:[#allocation13 + $0x164] ss:$16 sps:$4 sm:$0xff]  }
 0x3fd   :  { %4735 = vmatprep.subr.bf16.mxu0 %v9005_v52  ;;  %4841 = vmatprep.subr.bf16.mxu1 %v9008_v50  ;;  %v9101_v52 = vld [vmem:[#allocation13 + $0x16c] ss:$16 sps:$4 sm:$0xff]   ;;  %v9096_v50 = vld [vmem:[#allocation13 + $0x160] ss:$16 sps:$4 sm:$0xff]  }
 0x400   :  { %4736 = vmatpush1.bf16.msra.mxu0 %v9003_v54  ;;  %4842 = vmatpush1.bf16.msra.mxu1 %v9006_v55  ;;  %v9099_v54 = vld [vmem:[#allocation13 + $0x168] ss:$16 sps:$4 sm:$0xff]   ;;  %v9104_v55 = vld [vmem:[#allocation13 + $0x184] ss:$16 sps:$4 sm:$0xff]  }
 0x401   :  { %4737 = vmatprep.subr.bf16.mxu0 %v9014_v56  ;;  %4843 = vmatprep.subr.bf16.mxu1 %v9017_v57  ;;  %v9107_v56 = vld [vmem:[#allocation13 + $0x18c] ss:$16 sps:$4 sm:$0xff]   ;;  %v9102_v57 = vld [vmem:[#allocation13 + $0x180] ss:$16 sps:$4 sm:$0xff]  }
 0x404   :  { %4738 = vmatpush1.bf16.msra.mxu0 %v9012_v58  ;;  %4844 = vmatpush1.bf16.msra.mxu1 %v9015_v59  ;;  %v9105_v58 = vld [vmem:[#allocation13 + $0x188] ss:$16 sps:$4 sm:$0xff]   ;;  %v9110_v59 = vld [vmem:[#allocation13 + $0x1a4] ss:$16 sps:$4 sm:$0xff]  }
 0x405   :  { %4739 = vmatprep.subr.bf16.mxu0 %v9020_v41  ;;  %4845 = vmatprep.subr.bf16.mxu1 %v9023_v60  ;;  %v9113_v41 = vld [vmem:[#allocation13 + $0x1ac] ss:$16 sps:$4 sm:$0xff]   ;;  %v9108_v60 = vld [vmem:[#allocation13 + $0x1a0] ss:$16 sps:$4 sm:$0xff]  }
 0x408   :  { %4740 = vmatpush1.bf16.msra.mxu0 %v9018_v61  ;;  %4846 = vmatpush1.bf16.msra.mxu1 %v9021_v62  ;;  %v9111_v61 = vld [vmem:[#allocation13 + $0x1a8] ss:$16 sps:$4 sm:$0xff]   ;;  %v9116_v62 = vld [vmem:[#allocation13 + $0x1c4] ss:$16 sps:$4 sm:$0xff]  }
 0x409   :  { %5669 = vmatprep.subr.bf16.mxu0 %v9032_v10  ;;  %5775 = vmatprep.subr.bf16.mxu1 %v9035_v63  ;;  %v9119_v10 = vld [vmem:[#allocation13 + $0x1cc] ss:$16 sps:$4 sm:$0xff]   ;;  %v9114_v63 = vld [vmem:[#allocation13 + $0x1c0] ss:$16 sps:$4 sm:$0xff]  }
 0x40b   :  { %4742 = vmatmul.mubr.bf16.vlgmr.msra.gmra.mrb[24].mxu0 %v9024_v51  ;;  %4848 = vmatmul.mubr.bf16.vlgmr.msra.gmra.mrb[24].mxu1 %v9024_v51  ;;  %v9117_v51 = vld [vmem:[#allocation13 + $0x1c8] ss:$16 sps:$4 sm:$0xff]  }
 0x40c   :  { %4751 = vmatprep.mubr.bf16.mxu0 %v9027_v0  ;;  %4857 = vmatprep.mubr.bf16.mxu1 %v9027_v0  ;;  %v7263_v0 = vld [vmem:[%s10152_s8 + $0x1] ss:$4 sm:$0xf] }
 0x40d   :  { %5670 = vmatpush1.bf16.msra.mxu0 %v9030_v1  ;;  %5776 = vmatpush1.bf16.msra.mxu1 %v9033_v2  ;;  %v2855_v1 = vrot.slane %v7263_v0, %v9876_v42  ;;  %v2863_v2 = vrot.slane %v7263_v0, %v9878_v43 }
 0x40e   :  { %5671 = vmatprep.subr.bf16.mxu0 %v9038_v3  ;;  %5777 = vmatprep.subr.bf16.mxu1 %v9041_v4  ;;  %v2859_v3 = vrot.slane %v7263_v0, %v9883_v46 }
 0x411   :  { %5672 = vmatpush1.bf16.msra.mxu0 %v9036_v5  ;;  %5778 = vmatpush1.bf16.msra.mxu1 %v9039_v6  ;;  %v9910_v6 = vrot.slane %v7263_v0, %v9885_v47 }
 0x412   :  { %5673 = vmatprep.subr.bf16.mxu0 %v9044_v53  ;;  %5779 = vmatprep.subr.bf16.mxu1 %v9047_v7 }
 0x413   :  { %4752 = vmatmul.mubr.bf16.gmra.mrb[28].mxu0 %v9029_v8  ;;  %4858 = vmatmul.mubr.bf16.gmra.mrb[28].mxu1 %v9029_v8 }
 0x415   :  { %5674 = vmatpush1.bf16.msra.mxu0 %v9042_v9  ;;  %5780 = vmatpush1.bf16.msra.mxu1 %v9045_v11  ;;  %v9122_v9 = vld [vmem:[#allocation13 + $0x1e4] ss:$16 sps:$4 sm:$0xff]   ;;  %v9125_v11 = vld [vmem:[#allocation13 + $0x1ec] ss:$16 sps:$4 sm:$0xff]  }
 0x416   :  { %5675 = vmatprep.subr.bf16.mxu0 %v9050_v12  ;;  %5781 = vmatprep.subr.bf16.mxu1 %v9053_v13 }
 0x419   :  { %5676 = vmatpush1.bf16.msra.mxu0 %v9048_v14  ;;  %5782 = vmatpush1.bf16.msra.mxu1 %v9051_v15 }
 0x41a   :  { %5677 = vmatprep.subr.bf16.mxu0 %v9056_v16  ;;  %5783 = vmatprep.subr.bf16.mxu1 %v9059_v17  ;;  %v9120_v16 = vld [vmem:[#allocation13 + $0x1e0] ss:$16 sps:$4 sm:$0xff]   ;;  %v9123_v17 = vld [vmem:[#allocation13 + $0x1e8] ss:$16 sps:$4 sm:$0xff]  }
 0x41d   :  { %5678 = vmatpush1.bf16.msra.mxu0 %v9054_v18  ;;  %5784 = vmatpush1.bf16.msra.mxu1 %v9057_v19 }
 0x41e   :  { %5679 = vmatprep.subr.bf16.mxu0 %v9062_v20  ;;  %5785 = vmatprep.subr.bf16.mxu1 %v9065_v21 }
 0x421   :  { %5680 = vmatpush1.bf16.msra.mxu0 %v9060_v22  ;;  %5786 = vmatpush1.bf16.msra.mxu1 %v9063_v24 }
 0x422   :  { %5681 = vmatprep.subr.bf16.mxu0 %v9068_v25  ;;  %5787 = vmatprep.subr.bf16.mxu1 %v9071_v26 }
 0x425   :  { %5682 = vmatpush1.bf16.msra.mxu0 %v9066_v27  ;;  %5788 = vmatpush1.bf16.msra.mxu1 %v9069_v28  ;;  %v9128_v28 = vld [vmem:[#allocation13 + $0x204] ss:$16 sps:$4 sm:$0xff]  }
 0x426   :  { %5683 = vmatprep.subr.bf16.mxu0 %v9074_v29  ;;  %5789 = vmatprep.subr.bf16.mxu1 %v9077_v30  ;;  %v9131_v29 = vld [vmem:[#allocation13 + $0x20c] ss:$16 sps:$4 sm:$0xff]  }
 0x429   :  { %5684 = vmatpush1.bf16.msra.mxu0 %v9072_v31  ;;  %5790 = vmatpush1.bf16.msra.mxu1 %v9075_v32 }
 0x42a   :  { %5685 = vmatprep.subr.bf16.mxu0 %v9080_v33  ;;  %5791 = vmatprep.subr.bf16.mxu1 %v9083_v34 }
 0x42d   :  { %5686 = vmatpush1.bf16.msra.mxu0 %v9078_v35  ;;  %5792 = vmatpush1.bf16.msra.mxu1 %v9081_v36 }
 0x42e   :  { %5687 = vmatprep.subr.bf16.mxu0 %v9086_v37  ;;  %5793 = vmatprep.subr.bf16.mxu1 %v9089_v38 }
 0x431   :  { %5688 = vmatpush1.bf16.msra.mxu0 %v9084_v39  ;;  %5794 = vmatpush1.bf16.msra.mxu1 %v9087_v40 }
 0x432   :  { %5689 = vmatprep.subr.bf16.mxu0 %v9092_v44  ;;  %5795 = vmatprep.subr.bf16.mxu1 %v9095_v48 }
 0x435   :  { %5690 = vmatpush1.bf16.msra.mxu0 %v9090_v49  ;;  %5796 = vmatpush1.bf16.msra.mxu1 %v9093_v23 }
 0x436   :  { %5691 = vmatprep.subr.bf16.mxu0 %v9098_v45  ;;  %5797 = vmatprep.subr.bf16.mxu1 %v9101_v52 }
 0x439   :  { %5692 = vmatpush1.bf16.msra.mxu0 %v9096_v50  ;;  %5798 = vmatpush1.bf16.msra.mxu1 %v9099_v54 }
 0x43a   :  { %5693 = vmatprep.subr.bf16.mxu0 %v9104_v55  ;;  %5799 = vmatprep.subr.bf16.mxu1 %v9107_v56 }
 0x43d   :  { %5694 = vmatpush1.bf16.msra.mxu0 %v9102_v57  ;;  %5800 = vmatpush1.bf16.msra.mxu1 %v9105_v58 }
 0x43e   :  { %5695 = vmatprep.subr.bf16.mxu0 %v9110_v59  ;;  %5801 = vmatprep.subr.bf16.mxu1 %v9113_v41 }
 0x441   :  { %5696 = vmatpush1.bf16.msra.mxu0 %v9108_v60  ;;  %5802 = vmatpush1.bf16.msra.mxu1 %v9111_v61 }
 0x442   :  { %5697 = vmatprep.subr.bf16.mxu0 %v9116_v62  ;;  %5803 = vmatprep.subr.bf16.mxu1 %v9119_v10 }
 0x445   :  { %5698 = vmatpush1.bf16.msra.mxu0 %v9114_v63  ;;  %5804 = vmatpush1.bf16.msra.mxu1 %v9117_v51 }
 0x446   :  { %5699 = vmatprep.subr.bf16.mxu0 %v9122_v9  ;;  %5805 = vmatprep.subr.bf16.mxu1 %v9125_v11 }
 0x449   :  { %5700 = vmatpush1.bf16.msra.mxu0 %v9120_v16  ;;  %5806 = vmatpush1.bf16.msra.mxu1 %v9123_v17 }
 0x44a   :  { %5722 = vmatprep.subr.bf16.mxu0 %v9128_v28  ;;  %5828 = vmatprep.subr.bf16.mxu1 %v9131_v29 }
 0x45d   :  { %v3599_v4 = vpop.f32.mrb[16].mxu0  ;;  %v3705_v5 = vpop.f32.mrb[16].mxu1 }
 0x45e   :  { %v9912_v53 = vadd.f32 %v3599_v4, %v2855_v1  ;;  %v3601_v7 = vpop.f32.mrb[17].mxu0  ;;  %v3707_v8 = vpop.f32.mrb[17].mxu1  ;;  %v9914_v12 = vadd.f32 %v3705_v5, %v2863_v2 }
 0x45f   :  { %v9916_v13 = vadd.f32 %v3601_v7, %v2859_v3  ;;  %v3603_v14 = vpop.f32.mrb[18].mxu0  ;;  %v3709_v15 = vpop.f32.mrb[18].mxu1  ;;  %v9925_v24 = vadd.f32 %v3707_v8, %v9910_v6 }
 0x460   :  { %v3724_v18 = vmul.f32 %v9912_v53, %v9912_v53  ;;  %v9920_v19 = vadd.f32 %v3603_v14, %v2855_v1  ;;  %v3605_v20 = vpop.f32.mrb[19].mxu0  ;;  %v3711_v21 = vpop.f32.mrb[19].mxu1  ;;  %v9927_v25 = vadd.f32 %v3709_v15, %v2863_v2  ;;  %v3726_v30 = vmul.f32 %v9914_v12, %v9914_v12 }
 0x461   :  { %v3725_v22 = vmul.f32 %v9916_v13, %v9916_v13  ;;  %v9929_v26 = vadd.f32 %v3605_v20, %v2859_v3  ;;  %v9938_v33 = vadd.f32 %v3711_v21, %v9910_v6  ;;  %v3727_v38 = vmul.f32 %v9925_v24, %v9925_v24 }
 0x462   :  { %v3728_v27 = vmul.f32 %v9920_v19, %v9920_v19  ;;  %v3730_v34 = vmul.f32 %v9927_v25, %v9927_v25 }
 0x463   :  { %v3729_v31 = vmul.f32 %v9929_v26, %v9929_v26  ;;  %v3740_v32 = vadd.f32 %v3725_v22, %v3724_v18  ;;  %v3731_v55 = vmul.f32 %v9938_v33, %v9938_v33 }
 0x465   :  { %v3745_v35 = vadd.f32 %v3729_v31, %v3728_v27  ;;  %v3609_v36 = vpop.f32.mrb[20].mxu0  ;;  %v3715_v37 = vpop.f32.mrb[20].mxu1  ;;  %v3741_v39 = vadd.f32 %v3740_v32, %v3726_v30  ;;  %v9126_v31 = vld [vmem:[#allocation13 + $0x200] ss:$16 sps:$4 sm:$0xff]   ;;  %v9129_v32 = vld [vmem:[#allocation13 + $0x208] ss:$16 sps:$4 sm:$0xff]  }
 0x466   :  { %v9944_v40 = vadd.f32 %v3609_v36, %v2855_v1  ;;  %v3611_v44 = vpop.f32.mrb[21].mxu0  ;;  %v3717_v48 = vpop.f32.mrb[21].mxu1  ;;  %v9946_v49 = vadd.f32 %v3715_v37, %v2863_v2  ;;  %v9132_v37 = vld [vmem:[#allocation13 + $0x220] ss:$16 sps:$4 sm:$0xff]  }
 0x467   :  { %v9948_v23 = vadd.f32 %v3611_v44, %v2859_v3  ;;  %v3613_v45 = vpop.f32.mrb[22].mxu0  ;;  %v3719_v52 = vpop.f32.mrb[22].mxu1  ;;  %v3742_v50 = vadd.f32 %v3741_v39, %v3727_v38  ;;  %v3746_v54 = vadd.f32 %v3745_v35, %v3730_v34  ;;  %v9959_v60 = vadd.f32 %v3717_v48, %v9910_v6  ;;  %v9134_v34 = vld [vmem:[#allocation13 + $0x224] ss:$16 sps:$4 sm:$0xff]   ;;  %v9137_v35 = vld [vmem:[#allocation13 + $0x22c] ss:$16 sps:$4 sm:$0xff]  }
 0x468   :  { %v3732_v56 = vmul.f32 %v9944_v40, %v9944_v40  ;;  %v9954_v57 = vadd.f32 %v3613_v45, %v2855_v1  ;;  %v3615_v58 = vpop.f32.mrb[23].mxu0  ;;  %v3721_v59 = vpop.f32.mrb[23].mxu1  ;;  %v9961_v61 = vadd.f32 %v3719_v52, %v2863_v2  ;;  %v3734_v63 = vmul.f32 %v9946_v49, %v9946_v49  ;;  %v9135_v38 = vld [vmem:[#allocation13 + $0x228] ss:$16 sps:$4 sm:$0xff]   ;;  %v9140_v48 = vld [vmem:[#allocation13 + $0x244] ss:$16 sps:$4 sm:$0xff]  }
 0x469   :  { %v3733_v41 = vmul.f32 %v9948_v23, %v9948_v23  ;;  %v9963_v62 = vadd.f32 %v3615_v58, %v2859_v3  ;;  %3743 = vadd.xlane.f32.xlu0 %v3742_v50  ;;  %v3747_v0 = vadd.f32 %v3746_v54, %v3731_v55  ;;  %v9972_v4 = vadd.f32 %v3721_v59, %v9910_v6  ;;  %v9143_v45 = vld [vmem:[#allocation13 + $0x24c] ss:$16 sps:$4 sm:$0xff]  }
 0x46a   :  { %v3736_v10 = vmul.f32 %v9954_v57, %v9954_v57  ;;  %v3738_v2 = vmul.f32 %v9961_v61, %v9961_v61  ;;  %v3735_v5 = vmul.f32 %v9959_v60, %v9959_v60 }
 0x46b   :  { %v3737_v51 = vmul.f32 %v9963_v62, %v9963_v62  ;;  %v3750_v1 = vadd.f32 %v3733_v41, %v3732_v56  ;;  %v3739_v11 = vmul.f32 %v9972_v4, %v9972_v4 }
 0x46d   :  { %v3755_v3 = vadd.f32 %v3737_v51, %v3736_v10  ;;  %3748 = vadd.xlane.f32.xlu0 %v3747_v0  ;;  %v3751_v7 = vadd.f32 %v3750_v1, %v3734_v63  ;;  %v9138_v10 = vld [vmem:[#allocation13 + $0x240] ss:$16 sps:$4 sm:$0xff]   ;;  %v9141_v63 = vld [vmem:[#allocation13 + $0x248] ss:$16 sps:$4 sm:$0xff]   ;;  %v9146_v0 = vld [vmem:[#allocation13 + $0x264] ss:$16 sps:$4 sm:$0xff]  }
 0x46e   :  { %v9149_v1 = vld [vmem:[#allocation13 + $0x26c] ss:$16 sps:$4 sm:$0xff]  }
 0x46f   :  { %v3752_v8 = vadd.f32 %v3751_v7, %v3735_v5  ;;  %v3756_v9 = vadd.f32 %v3755_v3, %v3738_v2  ;;  %v9144_v2 = vld [vmem:[#allocation13 + $0x260] ss:$16 sps:$4 sm:$0xff]   ;;  %v9147_v3 = vld [vmem:[#allocation13 + $0x268] ss:$16 sps:$4 sm:$0xff]   ;;  %v9152_v5 = vld [vmem:[#allocation13 + $0x284] ss:$16 sps:$4 sm:$0xff]  }
 0x470   :  { %v9155_v7 = vld [vmem:[#allocation13 + $0x28c] ss:$16 sps:$4 sm:$0xff]  }
 0x471   :  { %3753 = vadd.xlane.f32.xlu1 %v3752_v8  ;;  %v3757_v14 = vadd.f32 %v3756_v9, %v3739_v11  ;;  %v9150_v8 = vld [vmem:[#allocation13 + $0x280] ss:$16 sps:$4 sm:$0xff]   ;;  %v9153_v9 = vld [vmem:[#allocation13 + $0x288] ss:$16 sps:$4 sm:$0xff]   ;;  %v9158_v11 = vld [vmem:[#allocation13 + $0x2a4] ss:$16 sps:$4 sm:$0xff]  }
 0x475   :  { %3758 = vadd.xlane.f32.xlu1 %v3757_v14  ;;  %v9161_v14 = vld [vmem:[#allocation13 + $0x2ac] ss:$16 sps:$4 sm:$0xff]  }
 0x4de   :  { %v4743_v15 = vpop.f32.mrb[24].mxu0  ;;  %v4849_v6 = vpop.f32.mrb[24].mxu1 }
 0x4df   :  { %v4745_v16 = vpop.f32.mrb[25].mxu0  ;;  %v4851_v17 = vpop.f32.mrb[25].mxu1 }
 0x4e0   :  { %v4747_v18 = vpop.f32.mrb[26].mxu0  ;;  %v4853_v20 = vpop.f32.mrb[26].mxu1 }
 0x4e1   :  { %v4872_v21 = vpack.c.bf16 %v4747_v18, %v4743_v15  ;;  %v9980_v22 = vpack.c.bf16 %v4853_v20, %v4849_v6  ;;  %v4749_v27 = vpop.f32.mrb[27].mxu0  ;;  %v4855_v28 = vpop.f32.mrb[27].mxu1  ;;  %v9156_v6 = vld [vmem:[#allocation13 + $0x2a0] ss:$16 sps:$4 sm:$0xff]   ;;  %v9164_v18 = vld [vmem:[#allocation13 + $0x2c4] ss:$16 sps:$4 sm:$0xff]  }
 0x4e2   :  { %v4873_v29 = vpack.c.bf16 %v4749_v27, %v4745_v16  ;;  %v4875_v30 = vpack.c.bf16 %v4855_v28, %v4851_v17  ;;  %v9159_v16 = vld [vmem:[#allocation13 + $0x2a8] ss:$16 sps:$4 sm:$0xff]   ;;  %v9167_v20 = vld [vmem:[#allocation13 + $0x2cc] ss:$16 sps:$4 sm:$0xff]   ;;  %v9162_v27 = vld [vmem:[#allocation13 + $0x2c0] ss:$16 sps:$4 sm:$0xff]  }
 0x4e3   :  { %v9165_v28 = vld [vmem:[#allocation13 + $0x2c8] ss:$16 sps:$4 sm:$0xff]  }
 0x4e4   :  { %5701 = vmatprep.mubr.bf16.mxu0 %v4873_v29  ;;  %5807 = vmatprep.mubr.bf16.mxu1 %v4873_v29 }
 0x4e5   :  { %5702 = vmatmul.mubr.bf16.vlgmr.msra.gmra.mrb[32].mxu0 %v4872_v21  ;;  %5808 = vmatmul.mubr.bf16.vlgmr.msra.gmra.mrb[32].mxu1 %v4872_v21 }
 0x4e6   :  { %5723 = vmatpush1.bf16.msra.mxu0 %v9126_v31  ;;  %5829 = vmatpush1.bf16.msra.mxu1 %v9129_v32  ;;  %v4753_v36 = vpop.f32.mrb[28].mxu0  ;;  %v4859_v39 = vpop.f32.mrb[28].mxu1  ;;  %v9173_v31 = vld [vmem:[#allocation13 + $0x2ec] ss:$16 sps:$4 sm:$0xff]  }
 0x4e7   :  { %v4755_v44 = vpop.f32.mrb[29].mxu0  ;;  %5724 = vmatprep.subr.bf16.mxu0 %v9134_v34  ;;  %5830 = vmatprep.subr.bf16.mxu1 %v9137_v35  ;;  %v4861_v52 = vpop.f32.mrb[29].mxu1  ;;  %v9168_v34 = vld [vmem:[#allocation13 + $0x2e0] ss:$16 sps:$4 sm:$0xff]   ;;  %v9171_v35 = vld [vmem:[#allocation13 + $0x2e8] ss:$16 sps:$4 sm:$0xff]  }
 0x4e8   :  { %v4757_v50 = vpop.f32.mrb[30].mxu0  ;;  %v4863_v54 = vpop.f32.mrb[30].mxu1 }
 0x4e9   :  { %v4876_v55 = vpack.c.bf16 %v4757_v50, %v4753_v36  ;;  %v4759_v56 = vpop.f32.mrb[31].mxu0  ;;  %v9982_v58 = vpack.c.bf16 %v4863_v54, %v4859_v39  ;;  %v4865_v59 = vpop.f32.mrb[31].mxu1  ;;  %v9182_v50 = vld [vmem:[#allocation13 + $0x324] ss:$16 sps:$4 sm:$0xff]   ;;  %v9185_v54 = vld [vmem:[#allocation13 + $0x32c] ss:$16 sps:$4 sm:$0xff]  }
 0x4ea   :  { %v4877_v41 = vpack.c.bf16 %v4759_v56, %v4755_v44  ;;  %5725 = vmatpush1.bf16.msra.mxu0 %v9132_v37  ;;  %5831 = vmatpush1.bf16.msra.mxu1 %v9135_v38  ;;  %v9984_v51 = vpack.c.bf16 %v4865_v59, %v4861_v52  ;;  %v9176_v37 = vld [vmem:[#allocation13 + $0x304] ss:$16 sps:$4 sm:$0xff]   ;;  %v9179_v38 = vld [vmem:[#allocation13 + $0x30c] ss:$16 sps:$4 sm:$0xff]   ;;  %v9174_v44 = vld [vmem:[#allocation13 + $0x300] ss:$16 sps:$4 sm:$0xff]  }
 0x4eb   :  { %5726 = vmatprep.subr.bf16.mxu0 %v9140_v48  ;;  %5832 = vmatprep.subr.bf16.mxu1 %v9143_v45  ;;  %v9177_v48 = vld [vmem:[#allocation13 + $0x308] ss:$16 sps:$4 sm:$0xff]  }
 0x4ec   :  { %5711 = vmatprep.mubr.bf16.mxu0 %v4877_v41  ;;  %5817 = vmatprep.mubr.bf16.mxu1 %v4877_v41 }
 0x4ed   :  { %5712 = vmatmul.mubr.bf16.gmra.mrb[36].mxu0 %v4876_v55  ;;  %5818 = vmatmul.mubr.bf16.gmra.mrb[36].mxu1 %v4876_v55 }
 0x4ee   :  { %5727 = vmatpush1.bf16.msra.mxu0 %v9138_v10  ;;  %5833 = vmatpush1.bf16.msra.mxu1 %v9141_v63  ;;  %v9180_v10 = vld [vmem:[#allocation13 + $0x320] ss:$16 sps:$4 sm:$0xff]   ;;  %v9183_v63 = vld [vmem:[#allocation13 + $0x328] ss:$16 sps:$4 sm:$0xff]  }
 0x4ef   :  { %5754 = vmatprep.mubr.bf16.mxu0 %v4875_v30  ;;  %5860 = vmatprep.mubr.bf16.mxu1 %v4875_v30  ;;  %v9170_v30 = vld [vmem:[#allocation13 + $0x2e4] ss:$16 sps:$4 sm:$0xff]  }
 0x4f0   :  { %5728 = vmatprep.subr.bf16.mxu0 %v9146_v0  ;;  %5834 = vmatprep.subr.bf16.mxu1 %v9149_v1 }
 0x4f2   :  { %5729 = vmatpush1.bf16.msra.mxu0 %v9144_v2  ;;  %5835 = vmatpush1.bf16.msra.mxu1 %v9147_v3  ;;  %v9188_v3 = vld [vmem:[#allocation13 + $0x344] ss:$16 sps:$4 sm:$0xff]  }
 0x4f3   :  { %5730 = vmatprep.subr.bf16.mxu0 %v9152_v5  ;;  %5836 = vmatprep.subr.bf16.mxu1 %v9155_v7  ;;  %v9191_v5 = vld [vmem:[#allocation13 + $0x34c] ss:$16 sps:$4 sm:$0xff]   ;;  %v9186_v7 = vld [vmem:[#allocation13 + $0x340] ss:$16 sps:$4 sm:$0xff]  }
 0x4f6   :  { %5731 = vmatpush1.bf16.msra.mxu0 %v9150_v8  ;;  %5837 = vmatpush1.bf16.msra.mxu1 %v9153_v9  ;;  %v3744_v15 = vpop.xlane.xlu0 %3743  ;;  %v9189_v8 = vld [vmem:[#allocation13 + $0x348] ss:$16 sps:$4 sm:$0xff]  }
 0x4f7   :  { %v3760_v17 = vmax.f32 %v3744_v15, 1e-24  ;;  %5732 = vmatprep.subr.bf16.mxu0 %v9158_v11  ;;  %5838 = vmatprep.subr.bf16.mxu1 %v9161_v14  ;;  %v9194_v15 = vld [vmem:[#allocation13 + $0x364] ss:$16 sps:$4 sm:$0xff]  }
 0x4f9   :  { %9414 = vrsqrt.f32 %v3760_v17  ;;  %v9195_v17 = vld [vmem:[#allocation13 + $0x368] ss:$16 sps:$4 sm:$0xff]  }
 0x4fa   :  { %5733 = vmatpush1.bf16.msra.mxu0 %v9156_v6  ;;  %5839 = vmatpush1.bf16.msra.mxu1 %v9159_v16  ;;  %v3749_v21 = vpop.xlane.xlu0 %3748  ;;  %v9197_v6 = vld [vmem:[#allocation13 + $0x36c] ss:$16 sps:$4 sm:$0xff]   ;;  %v9192_v16 = vld [vmem:[#allocation13 + $0x360] ss:$16 sps:$4 sm:$0xff]  }
 0x4fb   :  { %v3761_v29 = vmax.f32 %v3749_v21, 1e-24  ;;  %5734 = vmatprep.subr.bf16.mxu0 %v9164_v18  ;;  %5840 = vmatprep.subr.bf16.mxu1 %v9167_v20 }
 0x4fd   :  { %9416 = vrsqrt.f32 %v3761_v29  ;;  %v9198_v29 = vld [vmem:[#allocation13 + $0x380] ss:$16 sps:$4 sm:$0xff]  }
 0x4fe   :  { %5735 = vmatpush1.bf16.msra.mxu0 %v9162_v27  ;;  %5841 = vmatpush1.bf16.msra.mxu1 %v9165_v28  ;;  %v3754_v32 = vpop.xlane.xlu1 %3753  ;;  %v9200_v27 = vld [vmem:[#allocation13 + $0x384] ss:$16 sps:$4 sm:$0xff]   ;;  %v9203_v28 = vld [vmem:[#allocation13 + $0x38c] ss:$16 sps:$4 sm:$0xff]  }
 0x4ff   :  { %v3762_v36 = vmax.f32 %v3754_v32, 1e-24  ;;  %5736 = vmatprep.subr.bf16.mxu0 %v9170_v30  ;;  %5842 = vmatprep.subr.bf16.mxu1 %v9173_v31  ;;  %v9201_v30 = vld [vmem:[#allocation13 + $0x388] ss:$16 sps:$4 sm:$0xff]  }
 0x501   :  { %9418 = vrsqrt.f32 %v3762_v36  ;;  %v9210_v36 = vld [vmem:[#allocation13 + $0x3c0] ss:$16 sps:$4 sm:$0xff]  }
 0x502   :  { %5737 = vmatpush1.bf16.msra.mxu0 %v9168_v34  ;;  %5843 = vmatpush1.bf16.msra.mxu1 %v9171_v35  ;;  %v3759_v39 = vpop.xlane.xlu1 %3758  ;;  %v9206_v34 = vld [vmem:[#allocation13 + $0x3a4] ss:$16 sps:$4 sm:$0xff]   ;;  %v9209_v35 = vld [vmem:[#allocation13 + $0x3ac] ss:$16 sps:$4 sm:$0xff]  }
 0x503   :  { %v9415_v45 = vpop.eup %9414  ;;  %v3763_v52 = vmax.f32 %v3759_v39, 1e-24  ;;  %5738 = vmatprep.subr.bf16.mxu0 %v9176_v37  ;;  %5844 = vmatprep.subr.bf16.mxu1 %v9179_v38  ;;  %v9213_v37 = vld [vmem:[#allocation13 + $0x3c8] ss:$16 sps:$4 sm:$0xff]   ;;  %v9218_v38 = vld [vmem:[#allocation13 + $0x3e4] ss:$16 sps:$4 sm:$0xff]  }
 0x504   :  { %v3768_v55 = vmul.f32 %v9415_v45, %v9912_v53  ;;  %v3769_v56 = vmul.f32 %v9415_v45, %v9916_v13  ;;  %v3770_v59 = vmul.f32 %v9415_v45, %v9914_v12  ;;  %v3771_v41 = vmul.f32 %v9415_v45, %v9925_v24  ;;  %v9221_v39 = vld [vmem:[#allocation13 + $0x3ec] ss:$16 sps:$4 sm:$0xff]   ;;  %v9224_v45 = vld [vmem:[#allocation14 + $0x4] ss:$16 sps:$4 sm:$0xff]  }
 0x505   :  { %9420 = vrsqrt.f32 %v3763_v52  ;;  %v9227_v52 = vld [vmem:[#allocation14 + $0xc] ss:$16 sps:$4 sm:$0xff]  }
 0x506   :  { %5739 = vmatpush1.bf16.msra.mxu0 %v9174_v44  ;;  %5845 = vmatpush1.bf16.msra.mxu1 %v9177_v48  ;;  %v7930_v0 = vpack.c.bf16 %v3769_v56, %v3768_v55  ;;  %v7931_v1 = vpack.c.bf16 %v3771_v41, %v3770_v59  ;;  %v9216_v44 = vld [vmem:[#allocation13 + $0x3e0] ss:$16 sps:$4 sm:$0xff]   ;;  %v9219_v48 = vld [vmem:[#allocation13 + $0x3e8] ss:$16 sps:$4 sm:$0xff]   ;;  %v9230_v55 = vld [vmem:[#allocation14 + $0x24] ss:$16 sps:$4 sm:$0xff]  }
 0x507   :  { %v9417_v2 = vpop.eup %9416  ;;  %5740 = vmatprep.subr.bf16.mxu0 %v9182_v50  ;;  %5846 = vmatprep.subr.bf16.mxu1 %v9185_v54  ;;  %v9222_v50 = vld [vmem:[#allocation14] ss:$16 sps:$4 sm:$0xff]   ;;  %v9225_v54 = vld [vmem:[#allocation14 + $0x8] ss:$16 sps:$4 sm:$0xff]   ;;  %v9233_v56 = vld [vmem:[#allocation14 + $0x2c] ss:$16 sps:$4 sm:$0xff]  }
 0x508   :  { %v3772_v53 = vmul.f32 %v9417_v2, %v9920_v19  ;;  %v3773_v13 = vmul.f32 %v9417_v2, %v9929_v26  ;;  %v3774_v12 = vmul.f32 %v9417_v2, %v9927_v25  ;;  %v3775_v24 = vmul.f32 %v9417_v2, %v9938_v33  ;;  %3832 = vst [vmem:[#allocation16] sm:$0xff] %v7930_v0  ;;  %v9228_v59 = vld [vmem:[#allocation14 + $0x20] ss:$16 sps:$4 sm:$0xff]   ;;  %v9231_v41 = vld [vmem:[#allocation14 + $0x28] ss:$16 sps:$4 sm:$0xff]  }
 0x509   :  { %3833 = vst [vmem:[#allocation16 + $0x8] sm:$0xff] %v7931_v1  ;;  %v9234_v0 = vld [vmem:[#allocation14 + $0x40] ss:$16 sps:$4 sm:$0xff]   ;;  %v9237_v1 = vld [vmem:[#allocation14 + $0x48] ss:$16 sps:$4 sm:$0xff]  }
 0x50a   :  { %5741 = vmatpush1.bf16.msra.mxu0 %v9180_v10  ;;  %5847 = vmatpush1.bf16.msra.mxu1 %v9183_v63  ;;  %v7932_v9 = vpack.c.bf16 %v3773_v13, %v3772_v53  ;;  %v7933_v11 = vpack.c.bf16 %v3775_v24, %v3774_v12  ;;  %v9236_v10 = vld [vmem:[#allocation14 + $0x44] ss:$16 sps:$4 sm:$0xff]   ;;  %v9239_v63 = vld [vmem:[#allocation14 + $0x4c] ss:$16 sps:$4 sm:$0xff]   ;;  %v9246_v13 = vld [vmem:[#allocation14 + $0x80] ss:$16 sps:$4 sm:$0xff]  }
 0x50b   :  { %v9419_v14 = vpop.eup %9418  ;;  %5742 = vmatprep.subr.bf16.mxu0 %v9188_v3  ;;  %5848 = vmatprep.subr.bf16.mxu1 %v9191_v5  ;;  %v9242_v2 = vld [vmem:[#allocation14 + $0x64] ss:$16 sps:$4 sm:$0xff]   ;;  %v9243_v3 = vld [vmem:[#allocation14 + $0x68] ss:$16 sps:$4 sm:$0xff]   ;;  %v9251_v53 = vld [vmem:[#allocation14 + $0x8c] ss:$16 sps:$4 sm:$0xff]  }
 0x50c   :  { %v3776_v19 = vmul.f32 %v9419_v14, %v9944_v40  ;;  %v3777_v26 = vmul.f32 %v9419_v14, %v9948_v23  ;;  %v3778_v25 = vmul.f32 %v9419_v14, %v9946_v49  ;;  %v3779_v33 = vmul.f32 %v9419_v14, %v9959_v60  ;;  %3834 = vst [vmem:[#allocation16 + $0x10] sm:$0xff] %v7932_v9  ;;  %v9248_v5 = vld [vmem:[#allocation14 + $0x84] ss:$16 sps:$4 sm:$0xff]   ;;  %v9249_v12 = vld [vmem:[#allocation14 + $0x88] ss:$16 sps:$4 sm:$0xff]  }
 0x50d   :  { %3835 = vst [vmem:[#allocation16 + $0x18] sm:$0xff] %v7933_v11  ;;  %v9254_v24 = vld [vmem:[#allocation14 + $0xa4] ss:$16 sps:$4 sm:$0xff]   ;;  %v9263_v11 = vld [vmem:[#allocation14 + $0xcc] ss:$16 sps:$4 sm:$0xff]  }
 0x50e   :  { %5743 = vmatpush1.bf16.msra.mxu0 %v9186_v7  ;;  %5849 = vmatpush1.bf16.msra.mxu1 %v9189_v8  ;;  %v7934_v18 = vpack.c.bf16 %v3777_v26, %v3776_v19  ;;  %v7935_v20 = vpack.c.bf16 %v3779_v33, %v3778_v25  ;;  %v9257_v7 = vld [vmem:[#allocation14 + $0xac] ss:$16 sps:$4 sm:$0xff]   ;;  %v9252_v8 = vld [vmem:[#allocation14 + $0xa0] ss:$16 sps:$4 sm:$0xff]   ;;  %v9260_v9 = vld [vmem:[#allocation14 + $0xc4] ss:$16 sps:$4 sm:$0xff]  }
 0x50f   :  { %v9421_v21 = vpop.eup %9420  ;;  %5744 = vmatprep.subr.bf16.mxu0 %v9194_v15  ;;  %5850 = vmatprep.subr.bf16.mxu1 %v9197_v6  ;;  %v9258_v14 = vld [vmem:[#allocation14 + $0xc0] ss:$16 sps:$4 sm:$0xff]   ;;  %v9261_v15 = vld [vmem:[#allocation14 + $0xc8] ss:$16 sps:$4 sm:$0xff]   ;;  %v9266_v6 = vld [vmem:[#allocation14 + $0xe4] ss:$16 sps:$4 sm:$0xff]  }
 0x510   :  { %v3780_v40 = vmul.f32 %v9421_v21, %v9954_v57  ;;  %v3781_v23 = vmul.f32 %v9421_v21, %v9963_v62  ;;  %v3782_v49 = vmul.f32 %v9421_v21, %v9961_v61  ;;  %v3783_v60 = vmul.f32 %v9421_v21, %v9972_v4  ;;  %3836 = vst [vmem:[#allocation16 + $0x20] sm:$0xff] %v7934_v18  ;;  %v9204_v57 = vld [vmem:[#allocation13 + $0x3a0] ss:$16 sps:$4 sm:$0xff]   ;;  %v9207_v61 = vld [vmem:[#allocation13 + $0x3a8] ss:$16 sps:$4 sm:$0xff]  }
 0x511   :  { %3837 = vst [vmem:[#allocation16 + $0x28] sm:$0xff] %v7935_v20  ;;  %v9212_v62 = vld [vmem:[#allocation13 + $0x3c4] ss:$16 sps:$4 sm:$0xff]   ;;  %v9215_v4 = vld [vmem:[#allocation13 + $0x3cc] ss:$16 sps:$4 sm:$0xff]  }
 0x512   :  { %5745 = vmatpush1.bf16.msra.mxu0 %v9192_v16  ;;  %5851 = vmatpush1.bf16.msra.mxu1 %v9195_v17  ;;  %v7936_v31 = vpack.c.bf16 %v3781_v23, %v3780_v40  ;;  %v7937_v32 = vpack.c.bf16 %v3783_v60, %v3782_v49  ;;  %v9269_v19 = vld [vmem:[#allocation14 + $0xec] ss:$16 sps:$4 sm:$0xff]   ;;  %v9264_v26 = vld [vmem:[#allocation14 + $0xe0] ss:$16 sps:$4 sm:$0xff]   ;;  %v9267_v25 = vld [vmem:[#allocation14 + $0xe8] ss:$16 sps:$4 sm:$0xff]  }
 0x513   :  { %5746 = vmatprep.subr.bf16.mxu0 %v9200_v27  ;;  %5852 = vmatprep.subr.bf16.mxu1 %v9203_v28  ;;  %v9272_v33 = vld [vmem:[#allocation14 + $0x104] ss:$16 sps:$4 sm:$0xff]   ;;  %v9275_v16 = vld [vmem:[#allocation14 + $0x10c] ss:$16 sps:$4 sm:$0xff]   ;;  %v9270_v17 = vld [vmem:[#allocation14 + $0x100] ss:$16 sps:$4 sm:$0xff]  }
 0x514   :  { %3838 = vst [vmem:[#allocation16 + $0x30] sm:$0xff] %v7936_v31  ;;  %3839 = vst [vmem:[#allocation16 + $0x38] sm:$0xff] %v7937_v32  ;;  %v9273_v18 = vld [vmem:[#allocation14 + $0x108] ss:$16 sps:$4 sm:$0xff]   ;;  %v9278_v20 = vld [vmem:[#allocation14 + $0x124] ss:$16 sps:$4 sm:$0xff]  }
 0x515   :  { %v9281_v21 = vld [vmem:[#allocation14 + $0x12c] ss:$16 sps:$4 sm:$0xff]   ;;  %v9276_v27 = vld [vmem:[#allocation14 + $0x120] ss:$16 sps:$4 sm:$0xff]   ;;  %v9279_v28 = vld [vmem:[#allocation14 + $0x128] ss:$16 sps:$4 sm:$0xff]  }
 0x516   :  { %5747 = vmatpush1.bf16.msra.mxu0 %v9198_v29  ;;  %5853 = vmatpush1.bf16.msra.mxu1 %v9201_v30  ;;  %v9284_v40 = vld [vmem:[#allocation14 + $0x144] ss:$16 sps:$4 sm:$0xff]   ;;  %v9287_v23 = vld [vmem:[#allocation14 + $0x14c] ss:$16 sps:$4 sm:$0xff]   ;;  %v9282_v49 = vld [vmem:[#allocation14 + $0x140] ss:$16 sps:$4 sm:$0xff]  }
 0x517   :  { %5748 = vmatprep.subr.bf16.mxu0 %v9206_v34  ;;  %5854 = vmatprep.subr.bf16.mxu1 %v9209_v35  ;;  %v9285_v60 = vld [vmem:[#allocation14 + $0x148] ss:$16 sps:$4 sm:$0xff]   ;;  %v9290_v29 = vld [vmem:[#allocation14 + $0x164] ss:$16 sps:$4 sm:$0xff]   ;;  %v9293_v30 = vld [vmem:[#allocation14 + $0x16c] ss:$16 sps:$4 sm:$0xff]  }
 0x518   :  { %v9288_v31 = vld [vmem:[#allocation14 + $0x160] ss:$16 sps:$4 sm:$0xff]   ;;  %v9291_v32 = vld [vmem:[#allocation14 + $0x168] ss:$16 sps:$4 sm:$0xff]   ;;  %v9296_v34 = vld [vmem:[#allocation14 + $0x184] ss:$16 sps:$4 sm:$0xff]  }
 0x519   :  { %v9299_v35 = vld [vmem:[#allocation14 + $0x18c] ss:$16 sps:$4 sm:$0xff]  }
 0x51a   :  { %5749 = vmatpush1.bf16.msra.mxu0 %v9204_v57  ;;  %5855 = vmatpush1.bf16.msra.mxu1 %v9207_v61  ;;  %v9294_v57 = vld [vmem:[#allocation14 + $0x180] ss:$16 sps:$4 sm:$0xff]   ;;  %v9297_v61 = vld [vmem:[#allocation14 + $0x188] ss:$16 sps:$4 sm:$0xff]  }
 0x51b   :  { %5750 = vmatprep.subr.bf16.mxu0 %v9212_v62  ;;  %5856 = vmatprep.subr.bf16.mxu1 %v9215_v4  ;;  %v9302_v62 = vld [vmem:[#allocation14 + $0x1a4] ss:$16 sps:$4 sm:$0xff]   ;;  %v9305_v4 = vld [vmem:[#allocation14 + $0x1ac] ss:$16 sps:$4 sm:$0xff]  }
 0x51e   :  { %5751 = vmatpush1.bf16.msra.mxu0 %v9210_v36  ;;  %5857 = vmatpush1.bf16.msra.mxu1 %v9213_v37  ;;  %v9300_v36 = vld [vmem:[#allocation14 + $0x1a0] ss:$16 sps:$4 sm:$0xff]   ;;  %v9303_v37 = vld [vmem:[#allocation14 + $0x1a8] ss:$16 sps:$4 sm:$0xff]  }
 0x51f   :  { %5752 = vmatprep.subr.bf16.mxu0 %v9218_v38  ;;  %5858 = vmatprep.subr.bf16.mxu1 %v9221_v39  ;;  %v9308_v38 = vld [vmem:[#allocation14 + $0x1c4] ss:$16 sps:$4 sm:$0xff]   ;;  %v9311_v39 = vld [vmem:[#allocation14 + $0x1cc] ss:$16 sps:$4 sm:$0xff]  }
 0x522   :  { %5753 = vmatpush1.bf16.msra.mxu0 %v9216_v44  ;;  %5859 = vmatpush1.bf16.msra.mxu1 %v9219_v48  ;;  %v9306_v44 = vld [vmem:[#allocation14 + $0x1c0] ss:$16 sps:$4 sm:$0xff]   ;;  %v9309_v48 = vld [vmem:[#allocation14 + $0x1c8] ss:$16 sps:$4 sm:$0xff]  }
 0x523   :  { %6694 = vmatprep.subr.bf16.mxu0 %v9224_v45  ;;  %6800 = vmatprep.subr.bf16.mxu1 %v9227_v52  ;;  %v9314_v45 = vld [vmem:[#allocation14 + $0x1e4] ss:$16 sps:$4 sm:$0xff]   ;;  %v9317_v52 = vld [vmem:[#allocation14 + $0x1ec] ss:$16 sps:$4 sm:$0xff]  }
 0x525   :  { %5755 = vmatmul.mubr.bf16.vlgmr.msra.gmra.mrb[32].mxu0 %v9980_v22  ;;  %5861 = vmatmul.mubr.bf16.vlgmr.msra.gmra.mrb[32].mxu1 %v9980_v22  ;;  %v9245_v22 = vld [vmem:[#allocation14 + $0x6c] ss:$16 sps:$4 sm:$0xff]  }
 0x526   :  { %5764 = vmatprep.mubr.bf16.mxu0 %v9984_v51  ;;  %5870 = vmatprep.mubr.bf16.mxu1 %v9984_v51  ;;  %v9240_v51 = vld [vmem:[#allocation14 + $0x60] ss:$16 sps:$4 sm:$0xff]  }
 0x527   :  { %6695 = vmatpush1.bf16.msra.mxu0 %v9222_v50  ;;  %6801 = vmatpush1.bf16.msra.mxu1 %v9225_v54  ;;  %v9312_v50 = vld [vmem:[#allocation14 + $0x1e0] ss:$16 sps:$4 sm:$0xff]   ;;  %v9315_v54 = vld [vmem:[#allocation14 + $0x1e8] ss:$16 sps:$4 sm:$0xff]  }
 0x528   :  { %6696 = vmatprep.subr.bf16.mxu0 %v9230_v55  ;;  %6802 = vmatprep.subr.bf16.mxu1 %v9233_v56  ;;  %v9320_v55 = vld [vmem:[#allocation14 + $0x204] ss:$16 sps:$4 sm:$0xff]   ;;  %v9323_v56 = vld [vmem:[#allocation14 + $0x20c] ss:$16 sps:$4 sm:$0xff]  }
 0x52b   :  { %6697 = vmatpush1.bf16.msra.mxu0 %v9228_v59  ;;  %6803 = vmatpush1.bf16.msra.mxu1 %v9231_v41  ;;  %v7664_v59 = vld [vmem:[%s10152_s8 + $0x2] ss:$4 sm:$0xf] }
 0x52c   :  { %6698 = vmatprep.subr.bf16.mxu0 %v9236_v10  ;;  %6804 = vmatprep.subr.bf16.mxu1 %v9239_v63  ;;  %v5012_v41 = vrot.slane %v7664_v59, %v9876_v42  ;;  %v5020_v10 = vrot.slane %v7664_v59, %v9878_v43  ;;  %v5016_v63 = vrot.slane %v7664_v59, %v9883_v46 }
 0x52d   :  { %5765 = vmatmul.mubr.bf16.gmra.mrb[36].mxu0 %v9982_v58  ;;  %5871 = vmatmul.mubr.bf16.gmra.mrb[36].mxu1 %v9982_v58  ;;  %v9255_v58 = vld [vmem:[#allocation14 + $0xa8] ss:$16 sps:$4 sm:$0xff]  }
 0x52f   :  { %6699 = vmatpush1.bf16.msra.mxu0 %v9234_v0  ;;  %6805 = vmatpush1.bf16.msra.mxu1 %v9237_v1  ;;  %v5024_v0 = vrot.slane %v7664_v59, %v9885_v47  ;;  %v9335_v59 = vld [vmem:[#allocation14 + $0x24c] ss:$16 sps:$4 sm:$0xff]  }
 0x530   :  { %6700 = vmatprep.subr.bf16.mxu0 %v9242_v2  ;;  %6806 = vmatprep.subr.bf16.mxu1 %v9245_v22 }
 0x533   :  { %6701 = vmatpush1.bf16.msra.mxu0 %v9240_v51  ;;  %6807 = vmatpush1.bf16.msra.mxu1 %v9243_v3 }
 0x534   :  { %6702 = vmatprep.subr.bf16.mxu0 %v9248_v5  ;;  %6808 = vmatprep.subr.bf16.mxu1 %v9251_v53 }
 0x537   :  { %6703 = vmatpush1.bf16.msra.mxu0 %v9246_v13  ;;  %6809 = vmatpush1.bf16.msra.mxu1 %v9249_v12 }
 0x538   :  { %6704 = vmatprep.subr.bf16.mxu0 %v9254_v24  ;;  %6810 = vmatprep.subr.bf16.mxu1 %v9257_v7 }
 0x53b   :  { %6705 = vmatpush1.bf16.msra.mxu0 %v9252_v8  ;;  %6811 = vmatpush1.bf16.msra.mxu1 %v9255_v58 }
 0x53c   :  { %6706 = vmatprep.subr.bf16.mxu0 %v9260_v9  ;;  %6812 = vmatprep.subr.bf16.mxu1 %v9263_v11 }
 0x53f   :  { %6707 = vmatpush1.bf16.msra.mxu0 %v9258_v14  ;;  %6813 = vmatpush1.bf16.msra.mxu1 %v9261_v15 }
 0x540   :  { %6708 = vmatprep.subr.bf16.mxu0 %v9266_v6  ;;  %6814 = vmatprep.subr.bf16.mxu1 %v9269_v19 }
 0x543   :  { %6709 = vmatpush1.bf16.msra.mxu0 %v9264_v26  ;;  %6815 = vmatpush1.bf16.msra.mxu1 %v9267_v25 }
 0x544   :  { %6710 = vmatprep.subr.bf16.mxu0 %v9272_v33  ;;  %6816 = vmatprep.subr.bf16.mxu1 %v9275_v16 }
 0x547   :  { %6711 = vmatpush1.bf16.msra.mxu0 %v9270_v17  ;;  %6817 = vmatpush1.bf16.msra.mxu1 %v9273_v18 }
 0x548   :  { %6712 = vmatprep.subr.bf16.mxu0 %v9278_v20  ;;  %6818 = vmatprep.subr.bf16.mxu1 %v9281_v21 }
 0x54b   :  { %6713 = vmatpush1.bf16.msra.mxu0 %v9276_v27  ;;  %6819 = vmatpush1.bf16.msra.mxu1 %v9279_v28 }
 0x54c   :  { %6714 = vmatprep.subr.bf16.mxu0 %v9284_v40  ;;  %6820 = vmatprep.subr.bf16.mxu1 %v9287_v23  ;;  %v9318_v23 = vld [vmem:[#allocation14 + $0x200] ss:$16 sps:$4 sm:$0xff]  }
 0x54f   :  { %6715 = vmatpush1.bf16.msra.mxu0 %v9282_v49  ;;  %6821 = vmatpush1.bf16.msra.mxu1 %v9285_v60  ;;  %v9321_v49 = vld [vmem:[#allocation14 + $0x208] ss:$16 sps:$4 sm:$0xff]  }
 0x550   :  { %6716 = vmatprep.subr.bf16.mxu0 %v9290_v29  ;;  %6822 = vmatprep.subr.bf16.mxu1 %v9293_v30 }
 0x553   :  { %6717 = vmatpush1.bf16.msra.mxu0 %v9288_v31  ;;  %6823 = vmatpush1.bf16.msra.mxu1 %v9291_v32  ;;  %v9326_v32 = vld [vmem:[#allocation14 + $0x224] ss:$16 sps:$4 sm:$0xff]  }
 0x554   :  { %6718 = vmatprep.subr.bf16.mxu0 %v9296_v34  ;;  %6824 = vmatprep.subr.bf16.mxu1 %v9299_v35  ;;  %v9329_v34 = vld [vmem:[#allocation14 + $0x22c] ss:$16 sps:$4 sm:$0xff]  }
 0x557   :  { %6719 = vmatpush1.bf16.msra.mxu0 %v9294_v57  ;;  %6825 = vmatpush1.bf16.msra.mxu1 %v9297_v61 }
 0x558   :  { %6720 = vmatprep.subr.bf16.mxu0 %v9302_v62  ;;  %6826 = vmatprep.subr.bf16.mxu1 %v9305_v4 }
 0x55b   :  { %6721 = vmatpush1.bf16.msra.mxu0 %v9300_v36  ;;  %6827 = vmatpush1.bf16.msra.mxu1 %v9303_v37 }
 0x55c   :  { %6722 = vmatprep.subr.bf16.mxu0 %v9308_v38  ;;  %6828 = vmatprep.subr.bf16.mxu1 %v9311_v39 }
 0x55f   :  { %6723 = vmatpush1.bf16.msra.mxu0 %v9306_v44  ;;  %6829 = vmatpush1.bf16.msra.mxu1 %v9309_v48  ;;  %v9324_v48 = vld [vmem:[#allocation14 + $0x220] ss:$16 sps:$4 sm:$0xff]  }
 0x560   :  { %6724 = vmatprep.subr.bf16.mxu0 %v9314_v45  ;;  %6830 = vmatprep.subr.bf16.mxu1 %v9317_v52  ;;  %v9327_v45 = vld [vmem:[#allocation14 + $0x228] ss:$16 sps:$4 sm:$0xff]   ;;  %v9332_v52 = vld [vmem:[#allocation14 + $0x244] ss:$16 sps:$4 sm:$0xff]  }
 0x563   :  { %6725 = vmatpush1.bf16.msra.mxu0 %v9312_v50  ;;  %6831 = vmatpush1.bf16.msra.mxu1 %v9315_v54 }
 0x564   :  { %6747 = vmatprep.subr.bf16.mxu0 %v9320_v55  ;;  %6853 = vmatprep.subr.bf16.mxu1 %v9323_v56 }
 0x5f8   :  { %v5756_v1 = vpop.f32.mrb[32].mxu0  ;;  %v5862_v2 = vpop.f32.mrb[32].mxu1 }
 0x5f9   :  { %v7978_v22 = vadd.f32 %v5756_v1, %v5012_v41  ;;  %v7986_v51 = vadd.f32 %v5862_v2, %v5020_v10  ;;  %v5758_v3 = vpop.f32.mrb[33].mxu0  ;;  %v5864_v5 = vpop.f32.mrb[33].mxu1 }
 0x5fa   :  { %v7979_v53 = vadd.f32 %v5758_v3, %v5016_v63  ;;  %v7987_v13 = vadd.f32 %v5864_v5, %v5024_v0  ;;  %v5760_v12 = vpop.f32.mrb[34].mxu0  ;;  %v5866_v24 = vpop.f32.mrb[34].mxu1  ;;  %v9330_v3 = vld [vmem:[#allocation14 + $0x240] ss:$16 sps:$4 sm:$0xff]   ;;  %v9333_v5 = vld [vmem:[#allocation14 + $0x248] ss:$16 sps:$4 sm:$0xff]  }
 0x5fb   :  { %v7980_v7 = vadd.f32 %v5760_v12, %v5012_v41  ;;  %v7988_v8 = vadd.f32 %v5866_v24, %v5020_v10  ;;  %v5762_v58 = vpop.f32.mrb[35].mxu0  ;;  %v5868_v9 = vpop.f32.mrb[35].mxu1  ;;  %v5881_v15 = vmax.f32 %v7978_v22, 0.0  ;;  %v5883_v6 = vmax.f32 %v7986_v51, 0.0  ;;  %v9336_v12 = vld [vmem:[#allocation14 + $0x260] ss:$16 sps:$4 sm:$0xff]  }
 0x5fc   :  { %v7981_v11 = vadd.f32 %v5762_v58, %v5016_v63  ;;  %v7989_v14 = vadd.f32 %v5868_v9, %v5024_v0  ;;  %v5882_v25 = vmax.f32 %v7979_v53, 0.0  ;;  %v5884_v33 = vmax.f32 %v7987_v13, 0.0  ;;  %v9338_v53 = vld [vmem:[#allocation14 + $0x264] ss:$16 sps:$4 sm:$0xff]   ;;  %v9341_v13 = vld [vmem:[#allocation14 + $0x26c] ss:$16 sps:$4 sm:$0xff]  }
 0x5fd   :  { %v5885_v19 = vmax.f32 %v7980_v7, 0.0  ;;  %v5887_v26 = vmax.f32 %v7988_v8, 0.0  ;;  %v9339_v24 = vld [vmem:[#allocation14 + $0x268] ss:$16 sps:$4 sm:$0xff]   ;;  %v9344_v7 = vld [vmem:[#allocation14 + $0x284] ss:$16 sps:$4 sm:$0xff]  }
 0x5fe   :  { %v5886_v16 = vmax.f32 %v7981_v11, 0.0  ;;  %v5888_v17 = vmax.f32 %v7989_v14, 0.0  ;;  %v9347_v8 = vld [vmem:[#allocation14 + $0x28c] ss:$16 sps:$4 sm:$0xff]   ;;  %v9342_v58 = vld [vmem:[#allocation14 + $0x280] ss:$16 sps:$4 sm:$0xff]  }
 0x5ff   :  { %v5897_v18 = vpack.c.bf16 %v5885_v19, %v5881_v15  ;;  %v10015_v20 = vpack.c.bf16 %v5887_v26, %v5883_v6  ;;  %v9345_v9 = vld [vmem:[#allocation14 + $0x288] ss:$16 sps:$4 sm:$0xff]   ;;  %v9350_v11 = vld [vmem:[#allocation14 + $0x2a4] ss:$16 sps:$4 sm:$0xff]   ;;  %v9353_v14 = vld [vmem:[#allocation14 + $0x2ac] ss:$16 sps:$4 sm:$0xff]  }
 0x600   :  { %v5898_v21 = vpack.c.bf16 %v5886_v16, %v5882_v25  ;;  %v5900_v27 = vpack.c.bf16 %v5888_v17, %v5884_v33  ;;  %v5766_v28 = vpop.f32.mrb[36].mxu0  ;;  %v5872_v40 = vpop.f32.mrb[36].mxu1  ;;  %v9348_v15 = vld [vmem:[#allocation14 + $0x2a0] ss:$16 sps:$4 sm:$0xff]   ;;  %v9351_v6 = vld [vmem:[#allocation14 + $0x2a8] ss:$16 sps:$4 sm:$0xff]  }
 0x601   :  { %v7982_v60 = vadd.f32 %v5766_v28, %v5012_v41  ;;  %v7990_v29 = vadd.f32 %v5872_v40, %v5020_v10  ;;  %v5768_v30 = vpop.f32.mrb[37].mxu0  ;;  %v5874_v31 = vpop.f32.mrb[37].mxu1  ;;  %v9356_v19 = vld [vmem:[#allocation14 + $0x2c4] ss:$16 sps:$4 sm:$0xff]   ;;  %v9359_v26 = vld [vmem:[#allocation14 + $0x2cc] ss:$16 sps:$4 sm:$0xff]  }
 0x602   :  { %v7983_v35 = vadd.f32 %v5768_v30, %v5016_v63  ;;  %v7991_v57 = vadd.f32 %v5874_v31, %v5024_v0  ;;  %v5770_v61 = vpop.f32.mrb[38].mxu0  ;;  %v5876_v62 = vpop.f32.mrb[38].mxu1  ;;  %6726 = vmatprep.mubr.bf16.mxu0 %v5898_v21  ;;  %6832 = vmatprep.mubr.bf16.mxu1 %v5898_v21  ;;  %v9354_v25 = vld [vmem:[#allocation14 + $0x2c0] ss:$16 sps:$4 sm:$0xff]   ;;  %v9357_v33 = vld [vmem:[#allocation14 + $0x2c8] ss:$16 sps:$4 sm:$0xff]  }
 0x603   :  { %v7984_v4 = vadd.f32 %v5770_v61, %v5012_v41  ;;  %v7992_v36 = vadd.f32 %v5876_v62, %v5020_v10  ;;  %v5772_v37 = vpop.f32.mrb[39].mxu0  ;;  %v5878_v38 = vpop.f32.mrb[39].mxu1  ;;  %6727 = vmatmul.mubr.bf16.vlgmr.msra.gmra.mrb[40].mxu0 %v5897_v18  ;;  %6833 = vmatmul.mubr.bf16.vlgmr.msra.gmra.mrb[40].mxu1 %v5897_v18  ;;  %v5889_v50 = vmax.f32 %v7982_v60, 0.0  ;;  %v5891_v54 = vmax.f32 %v7990_v29, 0.0  ;;  %v9362_v16 = vld [vmem:[#allocation14 + $0x2e4] ss:$16 sps:$4 sm:$0xff]  }
 0x604   :  { %v7985_v39 = vadd.f32 %v5772_v37, %v5016_v63  ;;  %v7993_v44 = vadd.f32 %v5878_v38, %v5024_v0  ;;  %6748 = vmatpush1.bf16.msra.mxu0 %v9318_v23  ;;  %6854 = vmatpush1.bf16.msra.mxu1 %v9321_v49  ;;  %v5890_v41 = vmax.f32 %v7983_v35, 0.0  ;;  %v5892_v10 = vmax.f32 %v7991_v57, 0.0  ;;  %v9365_v17 = vld [vmem:[#allocation14 + $0x2ec] ss:$16 sps:$4 sm:$0xff]   ;;  %v9360_v18 = vld [vmem:[#allocation14 + $0x2e0] ss:$16 sps:$4 sm:$0xff]  }
 0x605   :  { %v5893_v55 = vmax.f32 %v7984_v4, 0.0  ;;  %v5895_v56 = vmax.f32 %v7992_v36, 0.0  ;;  %6749 = vmatprep.subr.bf16.mxu0 %v9326_v32  ;;  %6855 = vmatprep.subr.bf16.mxu1 %v9329_v34  ;;  %v9363_v21 = vld [vmem:[#allocation14 + $0x2e8] ss:$16 sps:$4 sm:$0xff]   ;;  %v9371_v28 = vld [vmem:[#allocation14 + $0x30c] ss:$16 sps:$4 sm:$0xff]  }
 0x606   :  { %v5894_v1 = vmax.f32 %v7985_v39, 0.0  ;;  %v5896_v2 = vmax.f32 %v7993_v44, 0.0  ;;  %v9366_v40 = vld [vmem:[#allocation14 + $0x300] ss:$16 sps:$4 sm:$0xff]   ;;  %v9369_v23 = vld [vmem:[#allocation14 + $0x308] ss:$16 sps:$4 sm:$0xff]  }
 0x607   :  { %v5901_v22 = vpack.c.bf16 %v5893_v55, %v5889_v50  ;;  %v10017_v51 = vpack.c.bf16 %v5895_v56, %v5891_v54  ;;  %v9374_v49 = vld [vmem:[#allocation14 + $0x324] ss:$16 sps:$4 sm:$0xff]   ;;  %v9377_v60 = vld [vmem:[#allocation14 + $0x32c] ss:$16 sps:$4 sm:$0xff]   ;;  %v9372_v29 = vld [vmem:[#allocation14 + $0x320] ss:$16 sps:$4 sm:$0xff]  }
 0x608   :  { %v5902_v63 = vpack.c.bf16 %v5894_v1, %v5890_v41  ;;  %v10019_v0 = vpack.c.bf16 %v5896_v2, %v5892_v10  ;;  %6750 = vmatpush1.bf16.msra.mxu0 %v9324_v48  ;;  %6856 = vmatpush1.bf16.msra.mxu1 %v9327_v45  ;;  %v9375_v30 = vld [vmem:[#allocation14 + $0x328] ss:$16 sps:$4 sm:$0xff]   ;;  %v9380_v31 = vld [vmem:[#allocation14 + $0x344] ss:$16 sps:$4 sm:$0xff]   ;;  %v9383_v32 = vld [vmem:[#allocation14 + $0x34c] ss:$16 sps:$4 sm:$0xff]  }
 0x609   :  { %6751 = vmatprep.subr.bf16.mxu0 %v9332_v52  ;;  %6857 = vmatprep.subr.bf16.mxu1 %v9335_v59  ;;  %v9378_v34 = vld [vmem:[#allocation14 + $0x340] ss:$16 sps:$4 sm:$0xff]   ;;  %v9381_v35 = vld [vmem:[#allocation14 + $0x348] ss:$16 sps:$4 sm:$0xff]   ;;  %v9386_v57 = vld [vmem:[#allocation14 + $0x364] ss:$16 sps:$4 sm:$0xff]  }
 0x60a   :  { %6736 = vmatprep.mubr.bf16.mxu0 %v5902_v63  ;;  %6842 = vmatprep.mubr.bf16.mxu1 %v5902_v63  ;;  %v9389_v61 = vld [vmem:[#allocation14 + $0x36c] ss:$16 sps:$4 sm:$0xff]   ;;  %v9384_v62 = vld [vmem:[#allocation14 + $0x360] ss:$16 sps:$4 sm:$0xff]   ;;  %v9387_v4 = vld [vmem:[#allocation14 + $0x368] ss:$16 sps:$4 sm:$0xff]  }
 0x60b   :  { %6737 = vmatmul.mubr.bf16.gmra.mrb[44].mxu0 %v5901_v22  ;;  %6843 = vmatmul.mubr.bf16.gmra.mrb[44].mxu1 %v5901_v22  ;;  %v9392_v36 = vld [vmem:[#allocation14 + $0x384] ss:$16 sps:$4 sm:$0xff]   ;;  %v9395_v37 = vld [vmem:[#allocation14 + $0x38c] ss:$16 sps:$4 sm:$0xff]   ;;  %v9390_v38 = vld [vmem:[#allocation14 + $0x380] ss:$16 sps:$4 sm:$0xff]  }
 0x60c   :  { %6752 = vmatpush1.bf16.msra.mxu0 %v9330_v3  ;;  %6858 = vmatpush1.bf16.msra.mxu1 %v9333_v5  ;;  %v9393_v39 = vld [vmem:[#allocation14 + $0x388] ss:$16 sps:$4 sm:$0xff]   ;;  %v9398_v44 = vld [vmem:[#allocation14 + $0x3a4] ss:$16 sps:$4 sm:$0xff]   ;;  %v9401_v48 = vld [vmem:[#allocation14 + $0x3ac] ss:$16 sps:$4 sm:$0xff]  }
 0x60d   :  { %6779 = vmatprep.mubr.bf16.mxu0 %v5900_v27  ;;  %6885 = vmatprep.mubr.bf16.mxu1 %v5900_v27  ;;  %v9368_v27 = vld [vmem:[#allocation14 + $0x304] ss:$16 sps:$4 sm:$0xff]   ;;  %v9396_v45 = vld [vmem:[#allocation14 + $0x3a0] ss:$16 sps:$4 sm:$0xff]   ;;  %v9399_v52 = vld [vmem:[#allocation14 + $0x3a8] ss:$16 sps:$4 sm:$0xff]  }
 0x60e   :  { %6753 = vmatprep.subr.bf16.mxu0 %v9338_v53  ;;  %6859 = vmatprep.subr.bf16.mxu1 %v9341_v13  ;;  %v9404_v50 = vld [vmem:[#allocation14 + $0x3c4] ss:$16 sps:$4 sm:$0xff]   ;;  %v9407_v54 = vld [vmem:[#allocation14 + $0x3cc] ss:$16 sps:$4 sm:$0xff]   ;;  %v9402_v55 = vld [vmem:[#allocation14 + $0x3c0] ss:$16 sps:$4 sm:$0xff]  }
 0x60f   :  { %v9405_v56 = vld [vmem:[#allocation14 + $0x3c8] ss:$16 sps:$4 sm:$0xff]   ;;  %v9410_v59 = vld [vmem:[#allocation14 + $0x3e4] ss:$16 sps:$4 sm:$0xff]   ;;  %v9413_v41 = vld [vmem:[#allocation14 + $0x3ec] ss:$16 sps:$4 sm:$0xff]  }
 0x610   :  { %6754 = vmatpush1.bf16.msra.mxu0 %v9336_v12  ;;  %6860 = vmatpush1.bf16.msra.mxu1 %v9339_v24  ;;  %v9408_v10 = vld [vmem:[#allocation14 + $0x3e0] ss:$16 sps:$4 sm:$0xff]   ;;  %v9411_v1 = vld [vmem:[#allocation14 + $0x3e8] ss:$16 sps:$4 sm:$0xff]  }
 0x611   :  { %6755 = vmatprep.subr.bf16.mxu0 %v9344_v7  ;;  %6861 = vmatprep.subr.bf16.mxu1 %v9347_v8  ;;  %v7665_v2 = vld [vmem:[%s10152_s8 + $0x3] ss:$4 sm:$0xf]  ;;  %s9676_s8 = smov [#allocation16]  }
 0x612   :  { %v6037_v22 = vrot.slane %v7665_v2, %v9876_v42  ;;  %v6045_v63 = vrot.slane %v7665_v2, %v9878_v43  ;;  %v6041_v3 = vrot.slane %v7665_v2, %v9883_v46  ;;  %v6049_v53 = vrot.slane %v7665_v2, %v9885_v47  ;;  %s7027_s15 = sshll.u32 %s9676_s8, 4  ;;  %s7028_s15 = int_to_ptr.vmem [resolvable:$true] %s7027_s15 }
 0x613   :  { %s9606_s16 = scalar_lea.vmem %s7028_s15, 1024  ;;  %p9611_p9 = scmp.lt.s32.totalorder %s7028_s15, %s7028_s15 }
 0x614   :  { %6756 = vmatpush1.bf16.msra.mxu0 %v9342_v58  ;;  %6862 = vmatpush1.bf16.msra.mxu1 %v9345_v9  ;;  %p9607_p8 = scmp.ne.s32.totalorder %s7028_s15, %s9606_s16  ;;  %p9612_p10 = scmp.lt.s32.totalorder %s9606_s16, %s9606_s16 }
 0x615   :  { %6757 = vmatprep.subr.bf16.mxu0 %v9350_v11  ;;  %6863 = vmatprep.subr.bf16.mxu1 %v9353_v14 }
 0x616   :  { %p9613_p11 = por %p9612_p10, %p9611_p9 }
 0x618   :  { %6758 = vmatpush1.bf16.msra.mxu0 %v9348_v15  ;;  %6864 = vmatpush1.bf16.msra.mxu1 %v9351_v6  ;;  %p9614_p12 = pnand %p9613_p11, %p9607_p8 }
 0x619   :  { %6759 = vmatprep.subr.bf16.mxu0 %v9356_v19  ;;  %6865 = vmatprep.subr.bf16.mxu1 %v9359_v26 }
 0x61c   :  { %6760 = vmatpush1.bf16.msra.mxu0 %v9354_v25  ;;  %6866 = vmatpush1.bf16.msra.mxu1 %v9357_v33 }
 0x61d   :  { %6761 = vmatprep.subr.bf16.mxu0 %v9362_v16  ;;  %6867 = vmatprep.subr.bf16.mxu1 %v9365_v17 }
 0x620   :  { %6762 = vmatpush1.bf16.msra.mxu0 %v9360_v18  ;;  %6868 = vmatpush1.bf16.msra.mxu1 %v9363_v21 }
 0x621   :  { %6763 = vmatprep.subr.bf16.mxu0 %v9368_v27  ;;  %6869 = vmatprep.subr.bf16.mxu1 %v9371_v28 }
 0x624   :  { %6764 = vmatpush1.bf16.msra.mxu0 %v9366_v40  ;;  %6870 = vmatpush1.bf16.msra.mxu1 %v9369_v23 }
 0x625   :  { %6765 = vmatprep.subr.bf16.mxu0 %v9374_v49  ;;  %6871 = vmatprep.subr.bf16.mxu1 %v9377_v60 }
 0x628   :  { %6766 = vmatpush1.bf16.msra.mxu0 %v9372_v29  ;;  %6872 = vmatpush1.bf16.msra.mxu1 %v9375_v30 }
 0x629   :  { %6767 = vmatprep.subr.bf16.mxu0 %v9380_v31  ;;  %6873 = vmatprep.subr.bf16.mxu1 %v9383_v32 }
 0x62c   :  { %6768 = vmatpush1.bf16.msra.mxu0 %v9378_v34  ;;  %6874 = vmatpush1.bf16.msra.mxu1 %v9381_v35 }
 0x62d   :  { %6769 = vmatprep.subr.bf16.mxu0 %v9386_v57  ;;  %6875 = vmatprep.subr.bf16.mxu1 %v9389_v61 }
 0x630   :  { %6770 = vmatpush1.bf16.msra.mxu0 %v9384_v62  ;;  %6876 = vmatpush1.bf16.msra.mxu1 %v9387_v4 }
 0x631   :  { %6771 = vmatprep.subr.bf16.mxu0 %v9392_v36  ;;  %6877 = vmatprep.subr.bf16.mxu1 %v9395_v37 }
 0x634   :  { %6772 = vmatpush1.bf16.msra.mxu0 %v9390_v38  ;;  %6878 = vmatpush1.bf16.msra.mxu1 %v9393_v39 }
 0x635   :  { %6773 = vmatprep.subr.bf16.mxu0 %v9398_v44  ;;  %6879 = vmatprep.subr.bf16.mxu1 %v9401_v48 }
 0x638   :  { %6774 = vmatpush1.bf16.msra.mxu0 %v9396_v45  ;;  %6880 = vmatpush1.bf16.msra.mxu1 %v9399_v52 }
 0x639   :  { %6775 = vmatprep.subr.bf16.mxu0 %v9404_v50  ;;  %6881 = vmatprep.subr.bf16.mxu1 %v9407_v54 }
 0x63c   :  { %6776 = vmatpush1.bf16.msra.mxu0 %v9402_v55  ;;  %6882 = vmatpush1.bf16.msra.mxu1 %v9405_v56 }
 0x63d   :  { %6777 = vmatprep.subr.bf16.mxu0 %v9410_v59  ;;  %6883 = vmatprep.subr.bf16.mxu1 %v9413_v41 }
 0x640   :  { %6778 = vmatpush1.bf16.msra.mxu0 %v9408_v10  ;;  %6884 = vmatpush1.bf16.msra.mxu1 %v9411_v1 }
 0x643   :  { %6780 = vmatmul.mubr.bf16.vlgmr.msra.gmra.mrb[40].mxu0 %v10015_v20  ;;  %6886 = vmatmul.mubr.bf16.vlgmr.msra.gmra.mrb[40].mxu1 %v10015_v20 }
 0x644   :  { %6789 = vmatprep.mubr.bf16.mxu0 %v10019_v0  ;;  %6895 = vmatprep.mubr.bf16.mxu1 %v10019_v0 }
 0x64b   :  { %6790 = vmatmul.mubr.bf16.gmra.mrb[44].mxu0 %v10017_v51  ;;  %6896 = vmatmul.mubr.bf16.gmra.mrb[44].mxu1 %v10017_v51 }
 0x716   :  { %v6781_v5 = vpop.f32.mrb[40].mxu0  ;;  %v6887_v20 = vpop.f32.mrb[40].mxu1 }
 0x717   :  { %v10034_v13 = vadd.f32 %v6781_v5, %v6037_v22  ;;  %v6783_v0 = vpop.f32.mrb[41].mxu0  ;;  %v6889_v12 = vpop.f32.mrb[41].mxu1  ;;  %v10036_v24 = vadd.f32 %v6887_v20, %v6045_v63 }
 0x718   :  { %v10038_v51 = vadd.f32 %v6783_v0, %v6041_v3  ;;  %v6785_v7 = vpop.f32.mrb[42].mxu0  ;;  %v6891_v8 = vpop.f32.mrb[42].mxu1  ;;  %v10046_v9 = vadd.f32 %v6889_v12, %v6049_v53 }
 0x719   :  { %v6906_v42 = vmul.f32 %v10034_v13, %v10034_v13  ;;  %v10042_v43 = vadd.f32 %v6785_v7, %v6037_v22  ;;  %v6787_v46 = vpop.f32.mrb[43].mxu0  ;;  %v6893_v58 = vpop.f32.mrb[43].mxu1  ;;  %v10048_v11 = vadd.f32 %v6891_v8, %v6045_v63  ;;  %v6908_v6 = vmul.f32 %v10036_v24, %v10036_v24 }
 0x71a   :  { %v6907_v47 = vmul.f32 %v10038_v51, %v10038_v51  ;;  %v10050_v14 = vadd.f32 %v6787_v46, %v6041_v3  ;;  %v10058_v25 = vadd.f32 %v6893_v58, %v6049_v53  ;;  %v6909_v33 = vmul.f32 %v10046_v9, %v10046_v9 }
 0x71b   :  { %v6910_v15 = vmul.f32 %v10042_v43, %v10042_v43  ;;  %v6912_v16 = vmul.f32 %v10048_v11, %v10048_v11 }
 0x71c   :  { %v6922_v19 = vadd.f32 %v6907_v47, %v6906_v42  ;;  %v6911_v26 = vmul.f32 %v10050_v14, %v10050_v14  ;;  %v6913_v34 = vmul.f32 %v10058_v25, %v10058_v25 }
 0x71e   :  { %v6927_v17 = vadd.f32 %v6911_v26, %v6910_v15  ;;  %v6791_v18 = vpop.f32.mrb[44].mxu0  ;;  %v6897_v21 = vpop.f32.mrb[44].mxu1  ;;  %v6923_v27 = vadd.f32 %v6922_v19, %v6908_v6 }
 0x71f   :  { %v10064_v28 = vadd.f32 %v6791_v18, %v6037_v22  ;;  %v6793_v40 = vpop.f32.mrb[45].mxu0  ;;  %v6899_v23 = vpop.f32.mrb[45].mxu1  ;;  %v10066_v49 = vadd.f32 %v6897_v21, %v6045_v63 }
 0x720   :  { %v10068_v60 = vadd.f32 %v6793_v40, %v6041_v3  ;;  %v6795_v29 = vpop.f32.mrb[46].mxu0  ;;  %v6901_v30 = vpop.f32.mrb[46].mxu1  ;;  %v6924_v31 = vadd.f32 %v6923_v27, %v6909_v33  ;;  %v6928_v32 = vadd.f32 %v6927_v17, %v6912_v16  ;;  %v10078_v36 = vadd.f32 %v6899_v23, %v6049_v53 }
 0x721   :  { %v6914_v35 = vmul.f32 %v10064_v28, %v10064_v28  ;;  %v10074_v57 = vadd.f32 %v6795_v29, %v6037_v22  ;;  %v6797_v61 = vpop.f32.mrb[47].mxu0  ;;  %v6903_v62 = vpop.f32.mrb[47].mxu1  ;;  %v10080_v37 = vadd.f32 %v6901_v30, %v6045_v63  ;;  %v6916_v48 = vmul.f32 %v10066_v49, %v10066_v49 }
 0x722   :  { %v6915_v4 = vmul.f32 %v10068_v60, %v10068_v60  ;;  %v10082_v38 = vadd.f32 %v6797_v61, %v6041_v3  ;;  %6925 = vadd.xlane.f32.xlu0 %v6924_v31  ;;  %v6929_v44 = vadd.f32 %v6928_v32, %v6913_v34  ;;  %v10090_v50 = vadd.f32 %v6903_v62, %v6049_v53 }
 0x723   :  { %v6918_v39 = vmul.f32 %v10074_v57, %v10074_v57  ;;  %v6917_v54 = vmul.f32 %v10078_v36, %v10078_v36  ;;  %v6920_v55 = vmul.f32 %v10080_v37, %v10080_v37 }
 0x724   :  { %v6932_v45 = vadd.f32 %v6915_v4, %v6914_v35  ;;  %v6919_v52 = vmul.f32 %v10082_v38, %v10082_v38  ;;  %6930 = vadd.xlane.f32.xlu1 %v6929_v44  ;;  %v6921_v41 = vmul.f32 %v10090_v50, %v10090_v50 }
 0x726   :  { %v6937_v56 = vadd.f32 %v6919_v52, %v6918_v39  ;;  %v6933_v59 = vadd.f32 %v6932_v45, %v6916_v48 }
 0x728   :  { %v6934_v10 = vadd.f32 %v6933_v59, %v6917_v54  ;;  %v6938_v1 = vadd.f32 %v6937_v56, %v6920_v55 }
 0x72a   :  { %6935 = vadd.xlane.f32.xlu0 %v6934_v10  ;;  %v6939_v2 = vadd.f32 %v6938_v1, %v6921_v41 }
 0x72c   :  { %6940 = vadd.xlane.f32.xlu1 %v6939_v2 }
 0x72d   :  { %9617 = shalt.err (!%p9614_p12)
}
 0x72e   :  { %s9618_s13 = scalar_lea.hbm %s10153_s9, 1024 }
 0x72f   :  { %p9619_p13 = scmp.ne.s32.totalorder %s10153_s9, %s9618_s13  ;;  %p9622_p0 = scmp.lt.u32.totalorder %s9618_s13, %s10153_s9 }
 0x731   :  { %p9624_p1 = pnand %p9622_p0, %p9619_p13 }
 0x733   :  { %9627 = shalt.err (!%p9624_p1)
}
 0x734   :  { %7033 = dma.vmem_to_hbm [thread:$0]  %s7028_s15, 1024, %s10153_s9, [#allocation4], %s9665_s23, %s9665_s23, %s9666_s24  }
 0x735   :  { %s9677_s9 = smov [#allocation17]  }
 0x736   :  { %s7039_s20 = sshll.u32 %s9677_s9, 4  ;;  %s7040_s20 = int_to_ptr.vmem [resolvable:$true] %s7039_s20 }
 0x737   :  { %s9628_s5 = scalar_lea.vmem %s7040_s20, 1024  ;;  %p9633_p3 = scmp.lt.s32.totalorder %s7040_s20, %s7040_s20 }
 0x738   :  { %p9629_p2 = scmp.ne.s32.totalorder %s7040_s20, %s9628_s5  ;;  %p9634_p4 = scmp.lt.s32.totalorder %s9628_s5, %s9628_s5 }
 0x73a   :  { %p9635_p5 = por %p9634_p4, %p9633_p3 }
 0x73c   :  { %p9636_p6 = pnand %p9635_p5, %p9629_p2 }
 0x7af   :  { %v6926_v22 = vpop.xlane.xlu0 %6925 }
 0x7b0   :  { %v6942_v63 = vmax.f32 %v6926_v22, 1e-24 }
 0x7b1   :  { %v6931_v3 = vpop.xlane.xlu1 %6930 }
 0x7b2   :  { %9422 = vrsqrt.f32 %v6942_v63  ;;  %v6943_v5 = vmax.f32 %v6931_v3, 1e-24 }
 0x7b4   :  { %9424 = vrsqrt.f32 %v6943_v5 }
 0x7b7   :  { %v6936_v20 = vpop.xlane.xlu0 %6935 }
 0x7b8   :  { %v6944_v53 = vmax.f32 %v6936_v20, 1e-24 }
 0x7b9   :  { %v6941_v0 = vpop.xlane.xlu1 %6940 }
 0x7ba   :  { %9426 = vrsqrt.f32 %v6944_v53  ;;  %v6945_v12 = vmax.f32 %v6941_v0, 1e-24 }
 0x7bc   :  { %v9423_v7 = vpop.eup %9422  ;;  %9428 = vrsqrt.f32 %v6945_v12 }
 0x7bd   :  { %v6950_v8 = vmul.f32 %v9423_v7, %v10034_v13  ;;  %v6951_v42 = vmul.f32 %v9423_v7, %v10038_v51  ;;  %v6952_v46 = vmul.f32 %v9423_v7, %v10036_v24  ;;  %v6953_v58 = vmul.f32 %v9423_v7, %v10046_v9 }
 0x7be   :  { %v9425_v47 = vpop.eup %9424 }
 0x7bf   :  { %v7938_v15 = vpack.c.bf16 %v6951_v42, %v6950_v8  ;;  %v7939_v6 = vpack.c.bf16 %v6953_v58, %v6952_v46  ;;  %v6954_v19 = vmul.f32 %v9425_v47, %v10042_v43  ;;  %v6955_v26 = vmul.f32 %v9425_v47, %v10050_v14 }
 0x7c0   :  { %v6956_v33 = vmul.f32 %v9425_v47, %v10048_v11  ;;  %v6957_v16 = vmul.f32 %v9425_v47, %v10058_v25 }
 0x7c1   :  { %7014 = vst [vmem:[#allocation17] sm:$0xff] %v7938_v15  ;;  %7015 = vst [vmem:[#allocation17 + $0x8] sm:$0xff] %v7939_v6  ;;  %v7940_v13 = vpack.c.bf16 %v6955_v26, %v6954_v19 }
 0x7c2   :  { %v7941_v17 = vpack.c.bf16 %v6957_v16, %v6956_v33 }
 0x7c3   :  { %7016 = vst [vmem:[#allocation17 + $0x10] sm:$0xff] %v7940_v13 }
 0x7c4   :  { %v9427_v51 = vpop.eup %9426  ;;  %7017 = vst [vmem:[#allocation17 + $0x18] sm:$0xff] %v7941_v17 }
 0x7c5   :  { %v6958_v24 = vmul.f32 %v9427_v51, %v10064_v28  ;;  %v6959_v9 = vmul.f32 %v9427_v51, %v10068_v60  ;;  %v6960_v18 = vmul.f32 %v9427_v51, %v10066_v49  ;;  %v6961_v43 = vmul.f32 %v9427_v51, %v10078_v36 }
 0x7c6   :  { %v9429_v14 = vpop.eup %9428 }
 0x7c7   :  { %v6962_v11 = vmul.f32 %v9429_v14, %v10074_v57  ;;  %v6963_v25 = vmul.f32 %v9429_v14, %v10082_v38  ;;  %v6964_v21 = vmul.f32 %v9429_v14, %v10080_v37  ;;  %v6965_v27 = vmul.f32 %v9429_v14, %v10090_v50 }
 0x7c8   :  { %v7942_v40 = vpack.c.bf16 %v6959_v9, %v6958_v24  ;;  %v7943_v23 = vpack.c.bf16 %v6961_v43, %v6960_v18 }
 0x7c9   :  { %v7944_v28 = vpack.c.bf16 %v6963_v25, %v6962_v11  ;;  %v7945_v29 = vpack.c.bf16 %v6965_v27, %v6964_v21 }
 0x7ca   :  { %7018 = vst [vmem:[#allocation17 + $0x20] sm:$0xff] %v7942_v40  ;;  %7019 = vst [vmem:[#allocation17 + $0x28] sm:$0xff] %v7943_v23 }
 0x7cb   :  { %7020 = vst [vmem:[#allocation17 + $0x30] sm:$0xff] %v7944_v28  ;;  %7021 = vst [vmem:[#allocation17 + $0x38] sm:$0xff] %v7945_v29 }
 0x7cc   :  { %9639 = shalt.err (!%p9636_p6)
}
 0x7cd   :  { %s9640_s22 = scalar_lea.hbm %s10154_s10, 1024 }
 0x7ce   :  { %p9641_p7 = scmp.ne.s32.totalorder %s10154_s10, %s9640_s22  ;;  %p9644_p8 = scmp.lt.u32.totalorder %s9640_s22, %s10154_s10 }
 0x7d0   :  { %p9646_p9 = pnand %p9644_p8, %p9641_p7 }
 0x7d2   :  { %9649 = shalt.err (!%p9646_p9)
}
 0x7d3   :  { %7045 = dma.vmem_to_hbm [thread:$0]  %s7040_s20, 1024, %s10154_s10, [#allocation18], %s9665_s23, %s9665_s23, %s9666_s24  }
 0x7d4   :  { %9660 = dma.done.wait [#allocation4], 1024  }
 0x7d5   :  { %9661 = vsyncadd [#allocation4], 4294966272 }
 0x7d6   :  { %9662 = dma.done.wait [#allocation18], 1024  }
 0x7d7   :  { %9663 = vsyncadd [#allocation18], 4294966272 }
 0x7d8   :  { %7052 = vsyncpa [#allocation3], 1 }
 0x7d9   :  { %7053 = vsyncpa [#allocation6], 1 }
 0x7da   :  { %7054 = vsyncpa [#allocation9], 1 }
 0x7db   :  { %7055 = vsyncpa [#allocation12], 1 }
 0x7dc   :  { %7056 = vsyncpa [#allocation15], 1 }
 0x7dd   :  { %7057 = vsyncpa [#allocation4], 1 }
 0x7de   :  { %7058 = vsyncpa [#allocation18], 1 }

</bundles_post_ra>
